<compile_context>
chip_gen: v5e
topology: v5e:2x2
jax: 0.10.0
libtpu: 0.0.40
codegen_flags: <defaults>
</compile_context>

<pallas_src>
import jax
import jax.numpy as jnp
from jax.experimental import pallas as pl
from jax.experimental.pallas import tpu as pltpu

# ---- scaled-down AlexNet configuration (same kernel sizes / strides / pads as
#      torchvision AlexNet, channel counts shrunk to keep shapes small) --------
C1, C2, C3, C4, C5 = 16, 32, 48, 32, 32
FC_HIDDEN = 128
NUM_CLASSES = 10
IN_H = IN_W = 63          # smallest input that survives the AlexNet trunk
AVGPOOL_OUT = 6           # AdaptiveAvgPool2d((6, 6))

LANES = 128               # channel lane padding

# trunk geometry (fixed by the config above)
#   conv1 (space-to-depth): 3x3/s1 on 17x17 -> 15x15 ; pool1 -> 7x7
#   conv2: 5x5/s1/p2 on 7x7 -> 7x7            ; pool2 -> 3x3
#   conv3/4/5: 3x3/s1/p1 on 3x3 -> 3x3        ; pool3 -> 1x1
WP1, HO1 = 17, 15         # conv1 extended width / output height
L1 = 18 * WP1             # flattened conv1 input rows (17x17 + 1 spare row)
WP2, HO2 = 11, 7          # conv2 padded width / output height
WP3, HO3 = 5, 3           # conv3..5 padded width / output height


# ------------------------------ Pallas kernel -------------------------------

def _alexnet_kernel(x_ref,
                    w1_ref, b1_ref, w2_ref, b2_ref, w3_ref, b3_ref,
                    w4_ref, b4_ref, w5_ref, b5_ref,
                    f1w_ref, f1b_ref, f2w_ref, f2b_ref, f3w_ref, f3b_ref,
                    o_ref,
                    acc_ref, in2_ref, in3_ref, in4_ref, in5_ref):
    f32 = jnp.float32
    bf16 = jnp.bfloat16

    def conv(src_ref, w_ref, b_ref, k, wp, ho):
        """Shift-and-matmul conv + bias + ReLU on a flattened (rows,128) slab.

        Returns the 'extended' output (ho*wp rows); columns >= valid width are
        garbage and are never read downstream."""
        rows = ho * wp
        acc = None
        for kh in range(k):
            for kw in range(k):
                off = kh * wp + kw
                lhs = src_ref[off:off + rows, :].astype(bf16)   # bf16 MXU feed
                p = jnp.dot(lhs, w_ref[kh * k + kw],
                            preferred_element_type=f32)
                acc = p if acc is None else acc + p
        acc = acc + b_ref[...]                                   # f32 epilogue
        return jnp.maximum(acc, 0.0)

    def pool3x3s2(wp, po, qo, emit):
        """3x3/stride-2 max-pool over acc_ref (extended width wp)."""
        wneed = 2 * (qo - 1) + 3
        for i in range(po):
            r0 = 2 * i * wp
            v = jnp.maximum(
                jnp.maximum(acc_ref[r0:r0 + wneed, :],
                            acc_ref[r0 + wp:r0 + wp + wneed, :]),
                acc_ref[r0 + 2 * wp:r0 + 2 * wp + wneed, :])
            for j in range(qo):
                emit(i, j, jnp.max(v[2 * j:2 * j + 3, :],
                                   axis=0, keepdims=True))

    def repack(wp, ho, wo, dst_ref, wp_dst, pad):
        """Copy the valid conv output into the next conv's padded input buffer."""
        for h in range(ho):
            s = h * wp
            d = (h + pad) * wp_dst + pad
            dst_ref[d:d + wo, :] = acc_ref[s:s + wo, :]

    # zero the staging buffers: their borders are the convs' zero padding.
    in2_ref[...] = jnp.zeros_like(in2_ref)
    in3_ref[...] = jnp.zeros_like(in3_ref)
    in4_ref[...] = jnp.zeros_like(in4_ref)
    in5_ref[...] = jnp.zeros_like(in5_ref)

    # conv1 (11x11/s4/p2 folded to 3x3/s1 on the space-to-depth input) + ReLU
    acc_ref[0:HO1 * WP1, :] = conv(x_ref, w1_ref, b1_ref, k=3, wp=WP1, ho=HO1)

    # pool1 -> interior of conv2's zero-padded input (pad=2, width 11)
    def emit_pool1(i, j, m):
        r = (i + 2) * WP2 + (j + 2)
        in2_ref[r:r + 1, :] = m
    pool3x3s2(wp=WP1, po=7, qo=7, emit=emit_pool1)

    # conv2 (5x5/s1/p2) + ReLU
    acc_ref[0:HO2 * WP2, :] = conv(in2_ref, w2_ref, b2_ref, k=5, wp=WP2, ho=HO2)

    # pool2 -> interior of conv3's zero-padded input (pad=1, width 5)
    def emit_pool2(i, j, m):
        r = (i + 1) * WP3 + (j + 1)
        in3_ref[r:r + 1, :] = m
    pool3x3s2(wp=WP2, po=3, qo=3, emit=emit_pool2)

    # conv3 + ReLU, feed conv4
    acc_ref[0:HO3 * WP3, :] = conv(in3_ref, w3_ref, b3_ref, k=3, wp=WP3, ho=HO3)
    repack(wp=WP3, ho=3, wo=3, dst_ref=in4_ref, wp_dst=WP3, pad=1)

    # conv4 + ReLU, feed conv5
    acc_ref[0:HO3 * WP3, :] = conv(in4_ref, w4_ref, b4_ref, k=3, wp=WP3, ho=HO3)
    repack(wp=WP3, ho=3, wo=3, dst_ref=in5_ref, wp_dst=WP3, pad=1)

    # conv5 + ReLU
    acc_ref[0:HO3 * WP3, :] = conv(in5_ref, w5_ref, b5_ref, k=3, wp=WP3, ho=HO3)

    # pool3: 3x3/s2 over the 3x3 map -> single (1,128) channel vector
    v = jnp.maximum(jnp.maximum(acc_ref[0:3, :], acc_ref[WP3:WP3 + 3, :]),
                    acc_ref[2 * WP3:2 * WP3 + 3, :])
    v = jnp.max(v, axis=0, keepdims=True)                        # (1, 128)

    # classifier: Dropout(identity at inference), fc1+ReLU, fc2+ReLU, output.
    # AdaptiveAvgPool2d((6,6)) + flatten are folded into f1w at prepare time
    # (exact because pool3 output is 1x1).
    # TODO(synk): Dropout stochastic masking (train mode) not implemented.
    h = jnp.broadcast_to(v, (8, LANES))       # 8 identical rows: aligned MXU/store shapes
    h = jnp.maximum(jnp.dot(h.astype(bf16), f1w_ref[...],
                            preferred_element_type=f32) + f1b_ref[...], 0.0)
    h = jnp.maximum(jnp.dot(h.astype(bf16), f2w_ref[...],
                            preferred_element_type=f32) + f2b_ref[...], 0.0)
    o = jnp.dot(h.astype(bf16), f3w_ref[...],
                preferred_element_type=f32) + f3b_ref[...]
    o_ref[...] = o


# ------------------------- parameter init / prepare -------------------------

def init_params(key):
    """PyTorch-like parameters (HWIO conv weights, (in,out) linear weights)."""
    ks = jax.random.split(key, 16)

    def conv_w(k, kh, kw, cin, cout):
        return (1.0 / jnp.sqrt(kh * kw * cin)) * jax.random.normal(
            k, (kh, kw, cin, cout), jnp.float32)

    def lin_w(k, fin, fout):
        return (1.0 / jnp.sqrt(fin)) * jax.random.normal(
            k, (fin, fout), jnp.float32)

    def bias(k, n):
        return 0.01 * jax.random.normal(k, (n,), jnp.float32)

    flat = C5 * AVGPOOL_OUT * AVGPOOL_OUT
    return {
        "conv1_w": conv_w(ks[0], 11, 11, 3, C1), "conv1_b": bias(ks[1], C1),
        "conv2_w": conv_w(ks[2], 5, 5, C1, C2),  "conv2_b": bias(ks[3], C2),
        "conv3_w": conv_w(ks[4], 3, 3, C2, C3),  "conv3_b": bias(ks[5], C3),
        "conv4_w": conv_w(ks[6], 3, 3, C3, C4),  "conv4_b": bias(ks[7], C4),
        "conv5_w": conv_w(ks[8], 3, 3, C4, C5),  "conv5_b": bias(ks[9], C5),
        "fc1_w": lin_w(ks[10], flat, FC_HIDDEN), "fc1_b": bias(ks[11], FC_HIDDEN),
        "fc2_w": lin_w(ks[12], FC_HIDDEN, FC_HIDDEN), "fc2_b": bias(ks[13], FC_HIDDEN),
        "out_w": lin_w(ks[14], FC_HIDDEN, NUM_CLASSES), "out_b": bias(ks[15], NUM_CLASSES),
    }


def prepare_params(params):
    """One-time weight remap: lane-pad to 128, cast to bf16, fold conv1 stride
    and the avgpool/flatten into weights.  Kept out of the jitted forward."""
    def pad_to(a, shape):
        z = jnp.zeros(shape, a.dtype)
        return z.at[tuple(slice(0, s) for s in a.shape)].set(a)

    def conv_taps(w):  # (KH,KW,Cin,Cout) -> (KH*KW, 128, 128) bf16
        kh, kw, cin, cout = w.shape
        t = w.reshape(kh * kw, cin, cout)
        return pad_to(t, (kh * kw, LANES, LANES)).astype(jnp.bfloat16)

    def bias128(b):
        return pad_to(b.reshape(1, -1), (1, LANES)).astype(jnp.float32)

    # conv1: fold the stride-4 11x11 conv into a 3x3 stride-1 conv over the
    # space-to-depth (4x4 block -> depth) input.
    w1 = jnp.pad(params["conv1_w"], ((0, 1), (0, 1), (0, 0), (0, 0)))  # (12,12,3,C1)
    w1 = (w1.reshape(3, 4, 3, 4, 3, C1)          # (qh, rh, qw, rw, c, co)
            .transpose(0, 2, 1, 3, 4, 5)         # (qh, qw, rh, rw, c, co)
            .reshape(9, 48, C1))
    w1 = pad_to(w1, (9, LANES, LANES)).astype(jnp.bfloat16)

    # fc1: AdaptiveAvgPool2d((6,6)) on the 1x1 pool3 map + flatten (C,H,W order)
    # just replicates each channel 36x -> fold exactly into the fc1 weight.
    f1 = params["fc1_w"].reshape(C5, AVGPOOL_OUT * AVGPOOL_OUT, FC_HIDDEN).sum(axis=1)
    f1 = pad_to(f1, (LANES, LANES)).astype(jnp.bfloat16)

    return (
        w1, bias128(params["conv1_b"]),
        conv_taps(params["conv2_w"]), bias128(params["conv2_b"]),
        conv_taps(params["conv3_w"]), bias128(params["conv3_b"]),
        conv_taps(params["conv4_w"]), bias128(params["conv4_b"]),
        conv_taps(params["conv5_w"]), bias128(params["conv5_b"]),
        f1, bias128(params["fc1_b"]),
        pad_to(params["fc2_w"], (LANES, LANES)).astype(jnp.bfloat16), bias128(params["fc2_b"]),
        pad_to(params["out_w"], (LANES, LANES)).astype(jnp.bfloat16), bias128(params["out_b"]),
    )


# --------------------------------- forward ----------------------------------

def alexnet_feature_extractor_forward(x_nchw, prepped):
    """features -> avgpool -> flatten -> classifier, all in one Pallas call."""
    n = x_nchw.shape[0]

    # input prep (cheap XLA glue, a handful of ops): NCHW -> NHWC, conv1 spatial
    # pad, space-to-depth (stride-4 fold), lane-pad channels, flatten spatial.
    x = jnp.transpose(x_nchw, (0, 2, 3, 1))                       # (N,63,63,3)
    x = jnp.pad(x, ((0, 0), (2, 3), (2, 3), (0, 0)))              # (N,68,68,3)
    x = (x.reshape(n, 17, 4, 17, 4, 3)
           .transpose(0, 1, 3, 2, 4, 5)
           .reshape(n, 17, 17, 48))                               # space-to-depth
    x = jnp.pad(x, ((0, 0), (0, 1), (0, 0), (0, LANES - 48)))     # (N,18,17,128)
    x = x.reshape(n, L1, LANES)

    def wspec(taps):
        return pl.BlockSpec((taps, LANES, LANES), lambda i: (0, 0, 0))

    def vspec():
        return pl.BlockSpec((1, LANES), lambda i: (0, 0))

    def mspec():
        return pl.BlockSpec((LANES, LANES), lambda i: (0, 0))

    out = pl.pallas_call(
        _alexnet_kernel,
        out_shape=jax.ShapeDtypeStruct((n, 8, LANES), jnp.float32),
        grid=(n,),
        in_specs=[
            pl.BlockSpec((None, L1, LANES), lambda i: (i, 0, 0)),  # x (per image)
            wspec(9), vspec(),     # conv1 (folded)
            wspec(25), vspec(),    # conv2
            wspec(9), vspec(),     # conv3
            wspec(9), vspec(),     # conv4
            wspec(9), vspec(),     # conv5
            mspec(), vspec(),      # fc1 (avgpool+flatten folded)
            mspec(), vspec(),      # fc2
            mspec(), vspec(),      # output
        ],
        out_specs=pl.BlockSpec((None, 8, LANES), lambda i: (i, 0, 0)),
        scratch_shapes=[
            pltpu.VMEM((256, LANES), jnp.float32),   # conv output accumulator
            pltpu.VMEM((128, LANES), jnp.float32),   # conv2 input (11x11 padded)
            pltpu.VMEM((32, LANES), jnp.float32),    # conv3 input (5x5 padded)
            pltpu.VMEM((32, LANES), jnp.float32),    # conv4 input
            pltpu.VMEM((32, LANES), jnp.float32),    # conv5 input
        ],
        compiler_params=pltpu.CompilerParams(
            dimension_semantics=("parallel",),
            vmem_limit_bytes=32 * 1024 * 1024),
    )(x, *prepped)

    return out[:, 0, :NUM_CLASSES]


if __name__ == "__main__":
    key = jax.random.PRNGKey(0)
    k_x, k_p = jax.random.split(key)
    x = jax.random.normal(k_x, (2, 3, IN_H, IN_W), jnp.float32)   # NCHW input
    params = init_params(k_p)
    prepped = prepare_params(params)   # one-time weight fold/pad/cast

    fwd = jax.jit(alexnet_feature_extractor_forward)
    out = fwd(x, prepped)
    out = jax.block_until_ready(out)

    assert out.shape == (2, NUM_CLASSES), out.shape
    assert bool(jnp.all(jnp.isfinite(out)))
    print("KERNEL_OK")
</pallas_src>

<mosaic_0001>
module attributes {stable_mosaic.version = 11 : i64} {
  func.func @_alexnet_kernel(%arg0: i32, %arg1: memref<1x306x128xf32, #tpu.memory_space<vmem>>, %arg2: memref<9x128x128xbf16, #tpu.memory_space<vmem>>, %arg3: memref<1x128xf32, #tpu.memory_space<vmem>>, %arg4: memref<25x128x128xbf16, #tpu.memory_space<vmem>>, %arg5: memref<1x128xf32, #tpu.memory_space<vmem>>, %arg6: memref<9x128x128xbf16, #tpu.memory_space<vmem>>, %arg7: memref<1x128xf32, #tpu.memory_space<vmem>>, %arg8: memref<9x128x128xbf16, #tpu.memory_space<vmem>>, %arg9: memref<1x128xf32, #tpu.memory_space<vmem>>, %arg10: memref<9x128x128xbf16, #tpu.memory_space<vmem>>, %arg11: memref<1x128xf32, #tpu.memory_space<vmem>>, %arg12: memref<128x128xbf16, #tpu.memory_space<vmem>>, %arg13: memref<1x128xf32, #tpu.memory_space<vmem>>, %arg14: memref<128x128xbf16, #tpu.memory_space<vmem>>, %arg15: memref<1x128xf32, #tpu.memory_space<vmem>>, %arg16: memref<128x128xbf16, #tpu.memory_space<vmem>>, %arg17: memref<1x128xf32, #tpu.memory_space<vmem>>, %arg18: memref<1x8x128xf32, #tpu.memory_space<vmem>>, %arg19: memref<256x128xf32, #tpu.memory_space<vmem>>, %arg20: memref<128x128xf32, #tpu.memory_space<vmem>>, %arg21: memref<32x128xf32, #tpu.memory_space<vmem>>, %arg22: memref<32x128xf32, #tpu.memory_space<vmem>>, %arg23: memref<32x128xf32, #tpu.memory_space<vmem>>) attributes {dimension_semantics = [#tpu.dimension_semantics<parallel>], iteration_bounds = array<i64: 2>, scalar_prefetch = 0 : i64, scratch_operands = 5 : i64, tpu.core_type = #tpu.core_type<tc>, window_params = [{transform_indices = @transform_0, window_bounds = array<i64: 1, 306, 128>}, {pipeline_mode = #tpu.pipeline_mode<synchronous>, transform_indices = @transform_1, window_bounds = array<i64: 9, 128, 128>}, {pipeline_mode = #tpu.pipeline_mode<synchronous>, transform_indices = @transform_2, window_bounds = array<i64: 1, 128>}, {pipeline_mode = #tpu.pipeline_mode<synchronous>, transform_indices = @transform_3, window_bounds = array<i64: 25, 128, 128>}, {pipeline_mode = #tpu.pipeline_mode<synchronous>, transform_indices = @transform_4, window_bounds = array<i64: 1, 128>}, {pipeline_mode = #tpu.pipeline_mode<synchronous>, transform_indices = @transform_5, window_bounds = array<i64: 9, 128, 128>}, {pipeline_mode = #tpu.pipeline_mode<synchronous>, transform_indices = @transform_6, window_bounds = array<i64: 1, 128>}, {pipeline_mode = #tpu.pipeline_mode<synchronous>, transform_indices = @transform_7, window_bounds = array<i64: 9, 128, 128>}, {pipeline_mode = #tpu.pipeline_mode<synchronous>, transform_indices = @transform_8, window_bounds = array<i64: 1, 128>}, {pipeline_mode = #tpu.pipeline_mode<synchronous>, transform_indices = @transform_9, window_bounds = array<i64: 9, 128, 128>}, {pipeline_mode = #tpu.pipeline_mode<synchronous>, transform_indices = @transform_10, window_bounds = array<i64: 1, 128>}, {pipeline_mode = #tpu.pipeline_mode<synchronous>, transform_indices = @transform_11, window_bounds = array<i64: 128, 128>}, {pipeline_mode = #tpu.pipeline_mode<synchronous>, transform_indices = @transform_12, window_bounds = array<i64: 1, 128>}, {pipeline_mode = #tpu.pipeline_mode<synchronous>, transform_indices = @transform_13, window_bounds = array<i64: 128, 128>}, {pipeline_mode = #tpu.pipeline_mode<synchronous>, transform_indices = @transform_14, window_bounds = array<i64: 1, 128>}, {pipeline_mode = #tpu.pipeline_mode<synchronous>, transform_indices = @transform_15, window_bounds = array<i64: 128, 128>}, {pipeline_mode = #tpu.pipeline_mode<synchronous>, transform_indices = @transform_16, window_bounds = array<i64: 1, 128>}, {transform_indices = @transform_17, window_bounds = array<i64: 1, 8, 128>}]} {
    %cst = arith.constant 0.000000e+00 : f32
    %0 = vector.broadcast %cst : f32 to vector<128x128xf32>
    %c0 = arith.constant 0 : index
    %c0_0 = arith.constant 0 : index
    %1 = vector.load %arg20[%c0, %c0_0] : memref<128x128xf32, #tpu.memory_space<vmem>>, vector<128x128xf32>
    tpu.vector_store %arg20[%c0, %c0_0], %0 {strides = array<i32>} : memref<128x128xf32, #tpu.memory_space<vmem>>, vector<128x128xf32>,
    %cst_1 = arith.constant 0.000000e+00 : f32
    %2 = vector.broadcast %cst_1 : f32 to vector<32x128xf32>
    %c0_2 = arith.constant 0 : index
    %c0_3 = arith.constant 0 : index
    %3 = vector.load %arg21[%c0_2, %c0_3] : memref<32x128xf32, #tpu.memory_space<vmem>>, vector<32x128xf32>
    tpu.vector_store %arg21[%c0_2, %c0_3], %2 {strides = array<i32>} : memref<32x128xf32, #tpu.memory_space<vmem>>, vector<32x128xf32>,
    %cst_4 = arith.constant 0.000000e+00 : f32
    %4 = vector.broadcast %cst_4 : f32 to vector<32x128xf32>
    %c0_5 = arith.constant 0 : index
    %c0_6 = arith.constant 0 : index
    %5 = vector.load %arg22[%c0_5, %c0_6] : memref<32x128xf32, #tpu.memory_space<vmem>>, vector<32x128xf32>
    tpu.vector_store %arg22[%c0_5, %c0_6], %4 {strides = array<i32>} : memref<32x128xf32, #tpu.memory_space<vmem>>, vector<32x128xf32>,
    %cst_7 = arith.constant 0.000000e+00 : f32
    %6 = vector.broadcast %cst_7 : f32 to vector<32x128xf32>
    %c0_8 = arith.constant 0 : index
    %c0_9 = arith.constant 0 : index
    %7 = vector.load %arg23[%c0_8, %c0_9] : memref<32x128xf32, #tpu.memory_space<vmem>>, vector<32x128xf32>
    tpu.vector_store %arg23[%c0_8, %c0_9], %6 {strides = array<i32>} : memref<32x128xf32, #tpu.memory_space<vmem>>, vector<32x128xf32>,
    %c0_10 = arith.constant 0 : index
    %c0_11 = arith.constant 0 : index
    %c0_12 = arith.constant 0 : index
    %8 = vector.load %arg1[%c0_10, %c0_11, %c0_12] : memref<1x306x128xf32, #tpu.memory_space<vmem>>, vector<1x255x128xf32>
    %9 = vector.shape_cast %8 : vector<1x255x128xf32> to vector<255x128xf32>
    %10 = arith.truncf %9 : vector<255x128xf32> to vector<255x128xbf16>
    %c0_13 = arith.constant 0 : index
    %c0_14 = arith.constant 0 : index
    %c0_15 = arith.constant 0 : index
    %11 = vector.load %arg2[%c0_13, %c0_14, %c0_15] : memref<9x128x128xbf16, #tpu.memory_space<vmem>>, vector<1x128x128xbf16>
    %12 = vector.shape_cast %11 : vector<1x128x128xbf16> to vector<128x128xbf16>
    %cst_16 = arith.constant dense<0.000000e+00> : vector<255x128xf32>
    %13 = tpu.matmul %10, %12, %cst_16 {dimension_numbers = #tpu.dot_dimension_numbers<[1], [0], [0], [1], [0, 0, 1, 1], [], []>} : vector<255x128xbf16>, vector<128x128xbf16>, vector<255x128xf32> -> vector<255x128xf32>
    %c0_17 = arith.constant 0 : index
    %c1 = arith.constant 1 : index
    %c0_18 = arith.constant 0 : index
    %14 = vector.load %arg1[%c0_17, %c1, %c0_18] : memref<1x306x128xf32, #tpu.memory_space<vmem>>, vector<1x255x128xf32>
    %15 = vector.shape_cast %14 : vector<1x255x128xf32> to vector<255x128xf32>
    %16 = arith.truncf %15 : vector<255x128xf32> to vector<255x128xbf16>
    %c1_19 = arith.constant 1 : index
    %c0_20 = arith.constant 0 : index
    %c0_21 = arith.constant 0 : index
    %17 = vector.load %arg2[%c1_19, %c0_20, %c0_21] : memref<9x128x128xbf16, #tpu.memory_space<vmem>>, vector<1x128x128xbf16>
    %18 = vector.shape_cast %17 : vector<1x128x128xbf16> to vector<128x128xbf16>
    %cst_22 = arith.constant dense<0.000000e+00> : vector<255x128xf32>
    %19 = tpu.matmul %16, %18, %cst_22 {dimension_numbers = #tpu.dot_dimension_numbers<[1], [0], [0], [1], [0, 0, 1, 1], [], []>} : vector<255x128xbf16>, vector<128x128xbf16>, vector<255x128xf32> -> vector<255x128xf32>
    %20 = arith.addf %13, %19 : vector<255x128xf32>
    %c0_23 = arith.constant 0 : index
    %c2 = arith.constant 2 : index
    %c0_24 = arith.constant 0 : index
    %21 = vector.load %arg1[%c0_23, %c2, %c0_24] : memref<1x306x128xf32, #tpu.memory_space<vmem>>, vector<1x255x128xf32>
    %22 = vector.shape_cast %21 : vector<1x255x128xf32> to vector<255x128xf32>
    %23 = arith.truncf %22 : vector<255x128xf32> to vector<255x128xbf16>
    %c2_25 = arith.constant 2 : index
    %c0_26 = arith.constant 0 : index
    %c0_27 = arith.constant 0 : index
    %24 = vector.load %arg2[%c2_25, %c0_26, %c0_27] : memref<9x128x128xbf16, #tpu.memory_space<vmem>>, vector<1x128x128xbf16>
    %25 = vector.shape_cast %24 : vector<1x128x128xbf16> to vector<128x128xbf16>
    %cst_28 = arith.constant dense<0.000000e+00> : vector<255x128xf32>
    %26 = tpu.matmul %23, %25, %cst_28 {dimension_numbers = #tpu.dot_dimension_numbers<[1], [0], [0], [1], [0, 0, 1, 1], [], []>} : vector<255x128xbf16>, vector<128x128xbf16>, vector<255x128xf32> -> vector<255x128xf32>
    %27 = arith.addf %20, %26 : vector<255x128xf32>
    %c0_29 = arith.constant 0 : index
    %c17 = arith.constant 17 : index
    %c0_30 = arith.constant 0 : index
    %28 = vector.load %arg1[%c0_29, %c17, %c0_30] : memref<1x306x128xf32, #tpu.memory_space<vmem>>, vector<1x255x128xf32>
    %29 = vector.shape_cast %28 : vector<1x255x128xf32> to vector<255x128xf32>
    %30 = arith.truncf %29 : vector<255x128xf32> to vector<255x128xbf16>
    %c3 = arith.constant 3 : index
    %c0_31 = arith.constant 0 : index
    %c0_32 = arith.constant 0 : index
    %31 = vector.load %arg2[%c3, %c0_31, %c0_32] : memref<9x128x128xbf16, #tpu.memory_space<vmem>>, vector<1x128x128xbf16>
    %32 = vector.shape_cast %31 : vector<1x128x128xbf16> to vector<128x128xbf16>
    %cst_33 = arith.constant dense<0.000000e+00> : vector<255x128xf32>
    %33 = tpu.matmul %30, %32, %cst_33 {dimension_numbers = #tpu.dot_dimension_numbers<[1], [0], [0], [1], [0, 0, 1, 1], [], []>} : vector<255x128xbf16>, vector<128x128xbf16>, vector<255x128xf32> -> vector<255x128xf32>
    %34 = arith.addf %27, %33 : vector<255x128xf32>
    %c0_34 = arith.constant 0 : index
    %c18 = arith.constant 18 : index
    %c0_35 = arith.constant 0 : index
    %35 = vector.load %arg1[%c0_34, %c18, %c0_35] : memref<1x306x128xf32, #tpu.memory_space<vmem>>, vector<1x255x128xf32>
    %36 = vector.shape_cast %35 : vector<1x255x128xf32> to vector<255x128xf32>
    %37 = arith.truncf %36 : vector<255x128xf32> to vector<255x128xbf16>
    %c4 = arith.constant 4 : index
    %c0_36 = arith.constant 0 : index
    %c0_37 = arith.constant 0 : index
    %38 = vector.load %arg2[%c4, %c0_36, %c0_37] : memref<9x128x128xbf16, #tpu.memory_space<vmem>>, vector<1x128x128xbf16>
    %39 = vector.shape_cast %38 : vector<1x128x128xbf16> to vector<128x128xbf16>
    %cst_38 = arith.constant dense<0.000000e+00> : vector<255x128xf32>
    %40 = tpu.matmul %37, %39, %cst_38 {dimension_numbers = #tpu.dot_dimension_numbers<[1], [0], [0], [1], [0, 0, 1, 1], [], []>} : vector<255x128xbf16>, vector<128x128xbf16>, vector<255x128xf32> -> vector<255x128xf32>
    %41 = arith.addf %34, %40 : vector<255x128xf32>
    %c0_39 = arith.constant 0 : index
    %c19 = arith.constant 19 : index
    %c0_40 = arith.constant 0 : index
    %42 = vector.load %arg1[%c0_39, %c19, %c0_40] : memref<1x306x128xf32, #tpu.memory_space<vmem>>, vector<1x255x128xf32>
    %43 = vector.shape_cast %42 : vector<1x255x128xf32> to vector<255x128xf32>
    %44 = arith.truncf %43 : vector<255x128xf32> to vector<255x128xbf16>
    %c5 = arith.constant 5 : index
    %c0_41 = arith.constant 0 : index
    %c0_42 = arith.constant 0 : index
    %45 = vector.load %arg2[%c5, %c0_41, %c0_42] : memref<9x128x128xbf16, #tpu.memory_space<vmem>>, vector<1x128x128xbf16>
    %46 = vector.shape_cast %45 : vector<1x128x128xbf16> to vector<128x128xbf16>
    %cst_43 = arith.constant dense<0.000000e+00> : vector<255x128xf32>
    %47 = tpu.matmul %44, %46, %cst_43 {dimension_numbers = #tpu.dot_dimension_numbers<[1], [0], [0], [1], [0, 0, 1, 1], [], []>} : vector<255x128xbf16>, vector<128x128xbf16>, vector<255x128xf32> -> vector<255x128xf32>
    %48 = arith.addf %41, %47 : vector<255x128xf32>
    %c0_44 = arith.constant 0 : index
    %c34 = arith.constant 34 : index
    %c0_45 = arith.constant 0 : index
    %49 = vector.load %arg1[%c0_44, %c34, %c0_45] : memref<1x306x128xf32, #tpu.memory_space<vmem>>, vector<1x255x128xf32>
    %50 = vector.shape_cast %49 : vector<1x255x128xf32> to vector<255x128xf32>
    %51 = arith.truncf %50 : vector<255x128xf32> to vector<255x128xbf16>
    %c6 = arith.constant 6 : index
    %c0_46 = arith.constant 0 : index
    %c0_47 = arith.constant 0 : index
    %52 = vector.load %arg2[%c6, %c0_46, %c0_47] : memref<9x128x128xbf16, #tpu.memory_space<vmem>>, vector<1x128x128xbf16>
    %53 = vector.shape_cast %52 : vector<1x128x128xbf16> to vector<128x128xbf16>
    %cst_48 = arith.constant dense<0.000000e+00> : vector<255x128xf32>
    %54 = tpu.matmul %51, %53, %cst_48 {dimension_numbers = #tpu.dot_dimension_numbers<[1], [0], [0], [1], [0, 0, 1, 1], [], []>} : vector<255x128xbf16>, vector<128x128xbf16>, vector<255x128xf32> -> vector<255x128xf32>
    %55 = arith.addf %48, %54 : vector<255x128xf32>
    %c0_49 = arith.constant 0 : index
    %c35 = arith.constant 35 : index
    %c0_50 = arith.constant 0 : index
    %56 = vector.load %arg1[%c0_49, %c35, %c0_50] : memref<1x306x128xf32, #tpu.memory_space<vmem>>, vector<1x255x128xf32>
    %57 = vector.shape_cast %56 : vector<1x255x128xf32> to vector<255x128xf32>
    %58 = arith.truncf %57 : vector<255x128xf32> to vector<255x128xbf16>
    %c7 = arith.constant 7 : index
    %c0_51 = arith.constant 0 : index
    %c0_52 = arith.constant 0 : index
    %59 = vector.load %arg2[%c7, %c0_51, %c0_52] : memref<9x128x128xbf16, #tpu.memory_space<vmem>>, vector<1x128x128xbf16>
    %60 = vector.shape_cast %59 : vector<1x128x128xbf16> to vector<128x128xbf16>
    %cst_53 = arith.constant dense<0.000000e+00> : vector<255x128xf32>
    %61 = tpu.matmul %58, %60, %cst_53 {dimension_numbers = #tpu.dot_dimension_numbers<[1], [0], [0], [1], [0, 0, 1, 1], [], []>} : vector<255x128xbf16>, vector<128x128xbf16>, vector<255x128xf32> -> vector<255x128xf32>
    %62 = arith.addf %55, %61 : vector<255x128xf32>
    %c0_54 = arith.constant 0 : index
    %c36 = arith.constant 36 : index
    %c0_55 = arith.constant 0 : index
    %63 = vector.load %arg1[%c0_54, %c36, %c0_55] : memref<1x306x128xf32, #tpu.memory_space<vmem>>, vector<1x255x128xf32>
    %64 = vector.shape_cast %63 : vector<1x255x128xf32> to vector<255x128xf32>
    %65 = arith.truncf %64 : vector<255x128xf32> to vector<255x128xbf16>
    %c8 = arith.constant 8 : index
    %c0_56 = arith.constant 0 : index
    %c0_57 = arith.constant 0 : index
    %66 = vector.load %arg2[%c8, %c0_56, %c0_57] : memref<9x128x128xbf16, #tpu.memory_space<vmem>>, vector<1x128x128xbf16>
    %67 = vector.shape_cast %66 : vector<1x128x128xbf16> to vector<128x128xbf16>
    %cst_58 = arith.constant dense<0.000000e+00> : vector<255x128xf32>
    %68 = tpu.matmul %65, %67, %cst_58 {dimension_numbers = #tpu.dot_dimension_numbers<[1], [0], [0], [1], [0, 0, 1, 1], [], []>} : vector<255x128xbf16>, vector<128x128xbf16>, vector<255x128xf32> -> vector<255x128xf32>
    %69 = arith.addf %62, %68 : vector<255x128xf32>
    %c0_59 = arith.constant 0 : index
    %c0_60 = arith.constant 0 : index
    %70 = vector.load %arg3[%c0_59, %c0_60] : memref<1x128xf32, #tpu.memory_space<vmem>>, vector<1x128xf32>
    %71 = vector.broadcast %70 : vector<1x128xf32> to vector<255x128xf32>
    %72 = arith.addf %69, %71 : vector<255x128xf32>
    %cst_61 = arith.constant 0.000000e+00 : f32
    %73 = vector.broadcast %cst_61 : f32 to vector<255x128xf32>
    %74 = arith.maximumf %72, %73 : vector<255x128xf32>
    %c0_62 = arith.constant 0 : index
    %c0_63 = arith.constant 0 : index
    %75 = vector.load %arg19[%c0_62, %c0_63] : memref<256x128xf32, #tpu.memory_space<vmem>>, vector<255x128xf32>
    tpu.vector_store %arg19[%c0_62, %c0_63], %74 {strides = array<i32>} : memref<256x128xf32, #tpu.memory_space<vmem>>, vector<255x128xf32>,
    %c0_64 = arith.constant 0 : index
    %c0_65 = arith.constant 0 : index
    %76 = vector.load %arg19[%c0_64, %c0_65] : memref<256x128xf32, #tpu.memory_space<vmem>>, vector<15x128xf32>
    %c17_66 = arith.constant 17 : index
    %c0_67 = arith.constant 0 : index
    %77 = vector.load %arg19[%c17_66, %c0_67] : memref<256x128xf32, #tpu.memory_space<vmem>>, vector<15x128xf32>
    %78 = arith.maximumf %76, %77 : vector<15x128xf32>
    %c34_68 = arith.constant 34 : index
    %c0_69 = arith.constant 0 : index
    %79 = vector.load %arg19[%c34_68, %c0_69] : memref<256x128xf32, #tpu.memory_space<vmem>>, vector<15x128xf32>
    %80 = arith.maximumf %78, %79 : vector<15x128xf32>
    %81 = vector.extract_strided_slice %80 {offsets = [0, 0], sizes = [3, 128], strides = [1, 1]} : vector<15x128xf32> to vector<3x128xf32>
    %cst_70 = arith.constant dense<0xFF800000> : vector<128xf32>
    %82 = vector.multi_reduction <maximumf>, %81, %cst_70 [0] : vector<3x128xf32> to vector<128xf32>
    %83 = vector.shape_cast %82 : vector<128xf32> to vector<1x128xf32>
    %c24 = arith.constant 24 : index
    %c0_71 = arith.constant 0 : index
    %84 = vector.load %arg20[%c24, %c0_71] : memref<128x128xf32, #tpu.memory_space<vmem>>, vector<1x128xf32>
    tpu.vector_store %arg20[%c24, %c0_71], %83 {strides = array<i32>} : memref<128x128xf32, #tpu.memory_space<vmem>>, vector<1x128xf32>,
    %85 = vector.extract_strided_slice %80 {offsets = [2, 0], sizes = [3, 128], strides = [1, 1]} : vector<15x128xf32> to vector<3x128xf32>
    %cst_72 = arith.constant dense<0xFF800000> : vector<128xf32>
    %86 = vector.multi_reduction <maximumf>, %85, %cst_72 [0] : vector<3x128xf32> to vector<128xf32>
    %87 = vector.shape_cast %86 : vector<128xf32> to vector<1x128xf32>
    %c25 = arith.constant 25 : index
    %c0_73 = arith.constant 0 : index
    %88 = vector.load %arg20[%c25, %c0_73] : memref<128x128xf32, #tpu.memory_space<vmem>>, vector<1x128xf32>
    tpu.vector_store %arg20[%c25, %c0_73], %87 {strides = array<i32>} : memref<128x128xf32, #tpu.memory_space<vmem>>, vector<1x128xf32>,
    %89 = vector.extract_strided_slice %80 {offsets = [4, 0], sizes = [3, 128], strides = [1, 1]} : vector<15x128xf32> to vector<3x128xf32>
    %cst_74 = arith.constant dense<0xFF800000> : vector<128xf32>
    %90 = vector.multi_reduction <maximumf>, %89, %cst_74 [0] : vector<3x128xf32> to vector<128xf32>
    %91 = vector.shape_cast %90 : vector<128xf32> to vector<1x128xf32>
    %c26 = arith.constant 26 : index
    %c0_75 = arith.constant 0 : index
    %92 = vector.load %arg20[%c26, %c0_75] : memref<128x128xf32, #tpu.memory_space<vmem>>, vector<1x128xf32>
    tpu.vector_store %arg20[%c26, %c0_75], %91 {strides = array<i32>} : memref<128x128xf32, #tpu.memory_space<vmem>>, vector<1x128xf32>,
    %93 = vector.extract_strided_slice %80 {offsets = [6, 0], sizes = [3, 128], strides = [1, 1]} : vector<15x128xf32> to vector<3x128xf32>
    %cst_76 = arith.constant dense<0xFF800000> : vector<128xf32>
    %94 = vector.multi_reduction <maximumf>, %93, %cst_76 [0] : vector<3x128xf32> to vector<128xf32>
    %95 = vector.shape_cast %94 : vector<128xf32> to vector<1x128xf32>
    %c27 = arith.constant 27 : index
    %c0_77 = arith.constant 0 : index
    %96 = vector.load %arg20[%c27, %c0_77] : memref<128x128xf32, #tpu.memory_space<vmem>>, vector<1x128xf32>
    tpu.vector_store %arg20[%c27, %c0_77], %95 {strides = array<i32>} : memref<128x128xf32, #tpu.memory_space<vmem>>, vector<1x128xf32>,
    %97 = vector.extract_strided_slice %80 {offsets = [8, 0], sizes = [3, 128], strides = [1, 1]} : vector<15x128xf32> to vector<3x128xf32>
    %cst_78 = arith.constant dense<0xFF800000> : vector<128xf32>
    %98 = vector.multi_reduction <maximumf>, %97, %cst_78 [0] : vector<3x128xf32> to vector<128xf32>
    %99 = vector.shape_cast %98 : vector<128xf32> to vector<1x128xf32>
    %c28 = arith.constant 28 : index
    %c0_79 = arith.constant 0 : index
    %100 = vector.load %arg20[%c28, %c0_79] : memref<128x128xf32, #tpu.memory_space<vmem>>, vector<1x128xf32>
    tpu.vector_store %arg20[%c28, %c0_79], %99 {strides = array<i32>} : memref<128x128xf32, #tpu.memory_space<vmem>>, vector<1x128xf32>,
    %101 = vector.extract_strided_slice %80 {offsets = [10, 0], sizes = [3, 128], strides = [1, 1]} : vector<15x128xf32> to vector<3x128xf32>
    %cst_80 = arith.constant dense<0xFF800000> : vector<128xf32>
    %102 = vector.multi_reduction <maximumf>, %101, %cst_80 [0] : vector<3x128xf32> to vector<128xf32>
    %103 = vector.shape_cast %102 : vector<128xf32> to vector<1x128xf32>
    %c29 = arith.constant 29 : index
    %c0_81 = arith.constant 0 : index
    %104 = vector.load %arg20[%c29, %c0_81] : memref<128x128xf32, #tpu.memory_space<vmem>>, vector<1x128xf32>
    tpu.vector_store %arg20[%c29, %c0_81], %103 {strides = array<i32>} : memref<128x128xf32, #tpu.memory_space<vmem>>, vector<1x128xf32>,
    %105 = vector.extract_strided_slice %80 {offsets = [12, 0], sizes = [3, 128], strides = [1, 1]} : vector<15x128xf32> to vector<3x128xf32>
    %cst_82 = arith.constant dense<0xFF800000> : vector<128xf32>
    %106 = vector.multi_reduction <maximumf>, %105, %cst_82 [0] : vector<3x128xf32> to vector<128xf32>
    %107 = vector.shape_cast %106 : vector<128xf32> to vector<1x128xf32>
    %c30 = arith.constant 30 : index
    %c0_83 = arith.constant 0 : index
    %108 = vector.load %arg20[%c30, %c0_83] : memref<128x128xf32, #tpu.memory_space<vmem>>, vector<1x128xf32>
    tpu.vector_store %arg20[%c30, %c0_83], %107 {strides = array<i32>} : memref<128x128xf32, #tpu.memory_space<vmem>>, vector<1x128xf32>,
    %c34_84 = arith.constant 34 : index
    %c0_85 = arith.constant 0 : index
    %109 = vector.load %arg19[%c34_84, %c0_85] : memref<256x128xf32, #tpu.memory_space<vmem>>, vector<15x128xf32>
    %c51 = arith.constant 51 : index
    %c0_86 = arith.constant 0 : index
    %110 = vector.load %arg19[%c51, %c0_86] : memref<256x128xf32, #tpu.memory_space<vmem>>, vector<15x128xf32>
    %111 = arith.maximumf %109, %110 : vector<15x128xf32>
    %c68 = arith.constant 68 : index
    %c0_87 = arith.constant 0 : index
    %112 = vector.load %arg19[%c68, %c0_87] : memref<256x128xf32, #tpu.memory_space<vmem>>, vector<15x128xf32>
    %113 = arith.maximumf %111, %112 : vector<15x128xf32>
    %114 = vector.extract_strided_slice %113 {offsets = [0, 0], sizes = [3, 128], strides = [1, 1]} : vector<15x128xf32> to vector<3x128xf32>
    %cst_88 = arith.constant dense<0xFF800000> : vector<128xf32>
    %115 = vector.multi_reduction <maximumf>, %114, %cst_88 [0] : vector<3x128xf32> to vector<128xf32>
    %116 = vector.shape_cast %115 : vector<128xf32> to vector<1x128xf32>
    %c35_89 = arith.constant 35 : index
    %c0_90 = arith.constant 0 : index
    %117 = vector.load %arg20[%c35_89, %c0_90] : memref<128x128xf32, #tpu.memory_space<vmem>>, vector<1x128xf32>
    tpu.vector_store %arg20[%c35_89, %c0_90], %116 {strides = array<i32>} : memref<128x128xf32, #tpu.memory_space<vmem>>, vector<1x128xf32>,
    %118 = vector.extract_strided_slice %113 {offsets = [2, 0], sizes = [3, 128], strides = [1, 1]} : vector<15x128xf32> to vector<3x128xf32>
    %cst_91 = arith.constant dense<0xFF800000> : vector<128xf32>
    %119 = vector.multi_reduction <maximumf>, %118, %cst_91 [0] : vector<3x128xf32> to vector<128xf32>
    %120 = vector.shape_cast %119 : vector<128xf32> to vector<1x128xf32>
    %c36_92 = arith.constant 36 : index
    %c0_93 = arith.constant 0 : index
    %121 = vector.load %arg20[%c36_92, %c0_93] : memref<128x128xf32, #tpu.memory_space<vmem>>, vector<1x128xf32>
    tpu.vector_store %arg20[%c36_92, %c0_93], %120 {strides = array<i32>} : memref<128x128xf32, #tpu.memory_space<vmem>>, vector<1x128xf32>,
    %122 = vector.extract_strided_slice %113 {offsets = [4, 0], sizes = [3, 128], strides = [1, 1]} : vector<15x128xf32> to vector<3x128xf32>
    %cst_94 = arith.constant dense<0xFF800000> : vector<128xf32>
    %123 = vector.multi_reduction <maximumf>, %122, %cst_94 [0] : vector<3x128xf32> to vector<128xf32>
    %124 = vector.shape_cast %123 : vector<128xf32> to vector<1x128xf32>
    %c37 = arith.constant 37 : index
    %c0_95 = arith.constant 0 : index
    %125 = vector.load %arg20[%c37, %c0_95] : memref<128x128xf32, #tpu.memory_space<vmem>>, vector<1x128xf32>
    tpu.vector_store %arg20[%c37, %c0_95], %124 {strides = array<i32>} : memref<128x128xf32, #tpu.memory_space<vmem>>, vector<1x128xf32>,
    %126 = vector.extract_strided_slice %113 {offsets = [6, 0], sizes = [3, 128], strides = [1, 1]} : vector<15x128xf32> to vector<3x128xf32>
    %cst_96 = arith.constant dense<0xFF800000> : vector<128xf32>
    %127 = vector.multi_reduction <maximumf>, %126, %cst_96 [0] : vector<3x128xf32> to vector<128xf32>
    %128 = vector.shape_cast %127 : vector<128xf32> to vector<1x128xf32>
    %c38 = arith.constant 38 : index
    %c0_97 = arith.constant 0 : index
    %129 = vector.load %arg20[%c38, %c0_97] : memref<128x128xf32, #tpu.memory_space<vmem>>, vector<1x128xf32>
    tpu.vector_store %arg20[%c38, %c0_97], %128 {strides = array<i32>} : memref<128x128xf32, #tpu.memory_space<vmem>>, vector<1x128xf32>,
    %130 = vector.extract_strided_slice %113 {offsets = [8, 0], sizes = [3, 128], strides = [1, 1]} : vector<15x128xf32> to vector<3x128xf32>
    %cst_98 = arith.constant dense<0xFF800000> : vector<128xf32>
    %131 = vector.multi_reduction <maximumf>, %130, %cst_98 [0] : vector<3x128xf32> to vector<128xf32>
    %132 = vector.shape_cast %131 : vector<128xf32> to vector<1x128xf32>
    %c39 = arith.constant 39 : index
    %c0_99 = arith.constant 0 : index
    %133 = vector.load %arg20[%c39, %c0_99] : memref<128x128xf32, #tpu.memory_space<vmem>>, vector<1x128xf32>
    tpu.vector_store %arg20[%c39, %c0_99], %132 {strides = array<i32>} : memref<128x128xf32, #tpu.memory_space<vmem>>, vector<1x128xf32>,
    %134 = vector.extract_strided_slice %113 {offsets = [10, 0], sizes = [3, 128], strides = [1, 1]} : vector<15x128xf32> to vector<3x128xf32>
    %cst_100 = arith.constant dense<0xFF800000> : vector<128xf32>
    %135 = vector.multi_reduction <maximumf>, %134, %cst_100 [0] : vector<3x128xf32> to vector<128xf32>
    %136 = vector.shape_cast %135 : vector<128xf32> to vector<1x128xf32>
    %c40 = arith.constant 40 : index
    %c0_101 = arith.constant 0 : index
    %137 = vector.load %arg20[%c40, %c0_101] : memref<128x128xf32, #tpu.memory_space<vmem>>, vector<1x128xf32>
    tpu.vector_store %arg20[%c40, %c0_101], %136 {strides = array<i32>} : memref<128x128xf32, #tpu.memory_space<vmem>>, vector<1x128xf32>,
    %138 = vector.extract_strided_slice %113 {offsets = [12, 0], sizes = [3, 128], strides = [1, 1]} : vector<15x128xf32> to vector<3x128xf32>
    %cst_102 = arith.constant dense<0xFF800000> : vector<128xf32>
    %139 = vector.multi_reduction <maximumf>, %138, %cst_102 [0] : vector<3x128xf32> to vector<128xf32>
    %140 = vector.shape_cast %139 : vector<128xf32> to vector<1x128xf32>
    %c41 = arith.constant 41 : index
    %c0_103 = arith.constant 0 : index
    %141 = vector.load %arg20[%c41, %c0_103] : memref<128x128xf32, #tpu.memory_space<vmem>>, vector<1x128xf32>
    tpu.vector_store %arg20[%c41, %c0_103], %140 {strides = array<i32>} : memref<128x128xf32, #tpu.memory_space<vmem>>, vector<1x128xf32>,
    %c68_104 = arith.constant 68 : index
    %c0_105 = arith.constant 0 : index
    %142 = vector.load %arg19[%c68_104, %c0_105] : memref<256x128xf32, #tpu.memory_space<vmem>>, vector<15x128xf32>
    %c85 = arith.constant 85 : index
    %c0_106 = arith.constant 0 : index
    %143 = vector.load %arg19[%c85, %c0_106] : memref<256x128xf32, #tpu.memory_space<vmem>>, vector<15x128xf32>
    %144 = arith.maximumf %142, %143 : vector<15x128xf32>
    %c102 = arith.constant 102 : index
    %c0_107 = arith.constant 0 : index
    %145 = vector.load %arg19[%c102, %c0_107] : memref<256x128xf32, #tpu.memory_space<vmem>>, vector<15x128xf32>
    %146 = arith.maximumf %144, %145 : vector<15x128xf32>
    %147 = vector.extract_strided_slice %146 {offsets = [0, 0], sizes = [3, 128], strides = [1, 1]} : vector<15x128xf32> to vector<3x128xf32>
    %cst_108 = arith.constant dense<0xFF800000> : vector<128xf32>
    %148 = vector.multi_reduction <maximumf>, %147, %cst_108 [0] : vector<3x128xf32> to vector<128xf32>
    %149 = vector.shape_cast %148 : vector<128xf32> to vector<1x128xf32>
    %c46 = arith.constant 46 : index
    %c0_109 = arith.constant 0 : index
    %150 = vector.load %arg20[%c46, %c0_109] : memref<128x128xf32, #tpu.memory_space<vmem>>, vector<1x128xf32>
    tpu.vector_store %arg20[%c46, %c0_109], %149 {strides = array<i32>} : memref<128x128xf32, #tpu.memory_space<vmem>>, vector<1x128xf32>,
    %151 = vector.extract_strided_slice %146 {offsets = [2, 0], sizes = [3, 128], strides = [1, 1]} : vector<15x128xf32> to vector<3x128xf32>
    %cst_110 = arith.constant dense<0xFF800000> : vector<128xf32>
    %152 = vector.multi_reduction <maximumf>, %151, %cst_110 [0] : vector<3x128xf32> to vector<128xf32>
    %153 = vector.shape_cast %152 : vector<128xf32> to vector<1x128xf32>
    %c47 = arith.constant 47 : index
    %c0_111 = arith.constant 0 : index
    %154 = vector.load %arg20[%c47, %c0_111] : memref<128x128xf32, #tpu.memory_space<vmem>>, vector<1x128xf32>
    tpu.vector_store %arg20[%c47, %c0_111], %153 {strides = array<i32>} : memref<128x128xf32, #tpu.memory_space<vmem>>, vector<1x128xf32>,
    %155 = vector.extract_strided_slice %146 {offsets = [4, 0], sizes = [3, 128], strides = [1, 1]} : vector<15x128xf32> to vector<3x128xf32>
    %cst_112 = arith.constant dense<0xFF800000> : vector<128xf32>
    %156 = vector.multi_reduction <maximumf>, %155, %cst_112 [0] : vector<3x128xf32> to vector<128xf32>
    %157 = vector.shape_cast %156 : vector<128xf32> to vector<1x128xf32>
    %c48 = arith.constant 48 : index
    %c0_113 = arith.constant 0 : index
    %158 = vector.load %arg20[%c48, %c0_113] : memref<128x128xf32, #tpu.memory_space<vmem>>, vector<1x128xf32>
    tpu.vector_store %arg20[%c48, %c0_113], %157 {strides = array<i32>} : memref<128x128xf32, #tpu.memory_space<vmem>>, vector<1x128xf32>,
    %159 = vector.extract_strided_slice %146 {offsets = [6, 0], sizes = [3, 128], strides = [1, 1]} : vector<15x128xf32> to vector<3x128xf32>
    %cst_114 = arith.constant dense<0xFF800000> : vector<128xf32>
    %160 = vector.multi_reduction <maximumf>, %159, %cst_114 [0] : vector<3x128xf32> to vector<128xf32>
    %161 = vector.shape_cast %160 : vector<128xf32> to vector<1x128xf32>
    %c49 = arith.constant 49 : index
    %c0_115 = arith.constant 0 : index
    %162 = vector.load %arg20[%c49, %c0_115] : memref<128x128xf32, #tpu.memory_space<vmem>>, vector<1x128xf32>
    tpu.vector_store %arg20[%c49, %c0_115], %161 {strides = array<i32>} : memref<128x128xf32, #tpu.memory_space<vmem>>, vector<1x128xf32>,
    %163 = vector.extract_strided_slice %146 {offsets = [8, 0], sizes = [3, 128], strides = [1, 1]} : vector<15x128xf32> to vector<3x128xf32>
    %cst_116 = arith.constant dense<0xFF800000> : vector<128xf32>
    %164 = vector.multi_reduction <maximumf>, %163, %cst_116 [0] : vector<3x128xf32> to vector<128xf32>
    %165 = vector.shape_cast %164 : vector<128xf32> to vector<1x128xf32>
    %c50 = arith.constant 50 : index
    %c0_117 = arith.constant 0 : index
    %166 = vector.load %arg20[%c50, %c0_117] : memref<128x128xf32, #tpu.memory_space<vmem>>, vector<1x128xf32>
    tpu.vector_store %arg20[%c50, %c0_117], %165 {strides = array<i32>} : memref<128x128xf32, #tpu.memory_space<vmem>>, vector<1x128xf32>,
    %167 = vector.extract_strided_slice %146 {offsets = [10, 0], sizes = [3, 128], strides = [1, 1]} : vector<15x128xf32> to vector<3x128xf32>
    %cst_118 = arith.constant dense<0xFF800000> : vector<128xf32>
    %168 = vector.multi_reduction <maximumf>, %167, %cst_118 [0] : vector<3x128xf32> to vector<128xf32>
    %169 = vector.shape_cast %168 : vector<128xf32> to vector<1x128xf32>
    %c51_119 = arith.constant 51 : index
    %c0_120 = arith.constant 0 : index
    %170 = vector.load %arg20[%c51_119, %c0_120] : memref<128x128xf32, #tpu.memory_space<vmem>>, vector<1x128xf32>
    tpu.vector_store %arg20[%c51_119, %c0_120], %169 {strides = array<i32>} : memref<128x128xf32, #tpu.memory_space<vmem>>, vector<1x128xf32>,
    %171 = vector.extract_strided_slice %146 {offsets = [12, 0], sizes = [3, 128], strides = [1, 1]} : vector<15x128xf32> to vector<3x128xf32>
    %cst_121 = arith.constant dense<0xFF800000> : vector<128xf32>
    %172 = vector.multi_reduction <maximumf>, %171, %cst_121 [0] : vector<3x128xf32> to vector<128xf32>
    %173 = vector.shape_cast %172 : vector<128xf32> to vector<1x128xf32>
    %c52 = arith.constant 52 : index
    %c0_122 = arith.constant 0 : index
    %174 = vector.load %arg20[%c52, %c0_122] : memref<128x128xf32, #tpu.memory_space<vmem>>, vector<1x128xf32>
    tpu.vector_store %arg20[%c52, %c0_122], %173 {strides = array<i32>} : memref<128x128xf32, #tpu.memory_space<vmem>>, vector<1x128xf32>,
    %c102_123 = arith.constant 102 : index
    %c0_124 = arith.constant 0 : index
    %175 = vector.load %arg19[%c102_123, %c0_124] : memref<256x128xf32, #tpu.memory_space<vmem>>, vector<15x128xf32>
    %c119 = arith.constant 119 : index
    %c0_125 = arith.constant 0 : index
    %176 = vector.load %arg19[%c119, %c0_125] : memref<256x128xf32, #tpu.memory_space<vmem>>, vector<15x128xf32>
    %177 = arith.maximumf %175, %176 : vector<15x128xf32>
    %c136 = arith.constant 136 : index
    %c0_126 = arith.constant 0 : index
    %178 = vector.load %arg19[%c136, %c0_126] : memref<256x128xf32, #tpu.memory_space<vmem>>, vector<15x128xf32>
    %179 = arith.maximumf %177, %178 : vector<15x128xf32>
    %180 = vector.extract_strided_slice %179 {offsets = [0, 0], sizes = [3, 128], strides = [1, 1]} : vector<15x128xf32> to vector<3x128xf32>
    %cst_127 = arith.constant dense<0xFF800000> : vector<128xf32>
    %181 = vector.multi_reduction <maximumf>, %180, %cst_127 [0] : vector<3x128xf32> to vector<128xf32>
    %182 = vector.shape_cast %181 : vector<128xf32> to vector<1x128xf32>
    %c57 = arith.constant 57 : index
    %c0_128 = arith.constant 0 : index
    %183 = vector.load %arg20[%c57, %c0_128] : memref<128x128xf32, #tpu.memory_space<vmem>>, vector<1x128xf32>
    tpu.vector_store %arg20[%c57, %c0_128], %182 {strides = array<i32>} : memref<128x128xf32, #tpu.memory_space<vmem>>, vector<1x128xf32>,
    %184 = vector.extract_strided_slice %179 {offsets = [2, 0], sizes = [3, 128], strides = [1, 1]} : vector<15x128xf32> to vector<3x128xf32>
    %cst_129 = arith.constant dense<0xFF800000> : vector<128xf32>
    %185 = vector.multi_reduction <maximumf>, %184, %cst_129 [0] : vector<3x128xf32> to vector<128xf32>
    %186 = vector.shape_cast %185 : vector<128xf32> to vector<1x128xf32>
    %c58 = arith.constant 58 : index
    %c0_130 = arith.constant 0 : index
    %187 = vector.load %arg20[%c58, %c0_130] : memref<128x128xf32, #tpu.memory_space<vmem>>, vector<1x128xf32>
    tpu.vector_store %arg20[%c58, %c0_130], %186 {strides = array<i32>} : memref<128x128xf32, #tpu.memory_space<vmem>>, vector<1x128xf32>,
    %188 = vector.extract_strided_slice %179 {offsets = [4, 0], sizes = [3, 128], strides = [1, 1]} : vector<15x128xf32> to vector<3x128xf32>
    %cst_131 = arith.constant dense<0xFF800000> : vector<128xf32>
    %189 = vector.multi_reduction <maximumf>, %188, %cst_131 [0] : vector<3x128xf32> to vector<128xf32>
    %190 = vector.shape_cast %189 : vector<128xf32> to vector<1x128xf32>
    %c59 = arith.constant 59 : index
    %c0_132 = arith.constant 0 : index
    %191 = vector.load %arg20[%c59, %c0_132] : memref<128x128xf32, #tpu.memory_space<vmem>>, vector<1x128xf32>
    tpu.vector_store %arg20[%c59, %c0_132], %190 {strides = array<i32>} : memref<128x128xf32, #tpu.memory_space<vmem>>, vector<1x128xf32>,
    %192 = vector.extract_strided_slice %179 {offsets = [6, 0], sizes = [3, 128], strides = [1, 1]} : vector<15x128xf32> to vector<3x128xf32>
    %cst_133 = arith.constant dense<0xFF800000> : vector<128xf32>
    %193 = vector.multi_reduction <maximumf>, %192, %cst_133 [0] : vector<3x128xf32> to vector<128xf32>
    %194 = vector.shape_cast %193 : vector<128xf32> to vector<1x128xf32>
    %c60 = arith.constant 60 : index
    %c0_134 = arith.constant 0 : index
    %195 = vector.load %arg20[%c60, %c0_134] : memref<128x128xf32, #tpu.memory_space<vmem>>, vector<1x128xf32>
    tpu.vector_store %arg20[%c60, %c0_134], %194 {strides = array<i32>} : memref<128x128xf32, #tpu.memory_space<vmem>>, vector<1x128xf32>,
    %196 = vector.extract_strided_slice %179 {offsets = [8, 0], sizes = [3, 128], strides = [1, 1]} : vector<15x128xf32> to vector<3x128xf32>
    %cst_135 = arith.constant dense<0xFF800000> : vector<128xf32>
    %197 = vector.multi_reduction <maximumf>, %196, %cst_135 [0] : vector<3x128xf32> to vector<128xf32>
    %198 = vector.shape_cast %197 : vector<128xf32> to vector<1x128xf32>
    %c61 = arith.constant 61 : index
    %c0_136 = arith.constant 0 : index
    %199 = vector.load %arg20[%c61, %c0_136] : memref<128x128xf32, #tpu.memory_space<vmem>>, vector<1x128xf32>
    tpu.vector_store %arg20[%c61, %c0_136], %198 {strides = array<i32>} : memref<128x128xf32, #tpu.memory_space<vmem>>, vector<1x128xf32>,
    %200 = vector.extract_strided_slice %179 {offsets = [10, 0], sizes = [3, 128], strides = [1, 1]} : vector<15x128xf32> to vector<3x128xf32>
    %cst_137 = arith.constant dense<0xFF800000> : vector<128xf32>
    %201 = vector.multi_reduction <maximumf>, %200, %cst_137 [0] : vector<3x128xf32> to vector<128xf32>
    %202 = vector.shape_cast %201 : vector<128xf32> to vector<1x128xf32>
    %c62 = arith.constant 62 : index
    %c0_138 = arith.constant 0 : index
    %203 = vector.load %arg20[%c62, %c0_138] : memref<128x128xf32, #tpu.memory_space<vmem>>, vector<1x128xf32>
    tpu.vector_store %arg20[%c62, %c0_138], %202 {strides = array<i32>} : memref<128x128xf32, #tpu.memory_space<vmem>>, vector<1x128xf32>,
    %204 = vector.extract_strided_slice %179 {offsets = [12, 0], sizes = [3, 128], strides = [1, 1]} : vector<15x128xf32> to vector<3x128xf32>
    %cst_139 = arith.constant dense<0xFF800000> : vector<128xf32>
    %205 = vector.multi_reduction <maximumf>, %204, %cst_139 [0] : vector<3x128xf32> to vector<128xf32>
    %206 = vector.shape_cast %205 : vector<128xf32> to vector<1x128xf32>
    %c63 = arith.constant 63 : index
    %c0_140 = arith.constant 0 : index
    %207 = vector.load %arg20[%c63, %c0_140] : memref<128x128xf32, #tpu.memory_space<vmem>>, vector<1x128xf32>
    tpu.vector_store %arg20[%c63, %c0_140], %206 {strides = array<i32>} : memref<128x128xf32, #tpu.memory_space<vmem>>, vector<1x128xf32>,
    %c136_141 = arith.constant 136 : index
    %c0_142 = arith.constant 0 : index
    %208 = vector.load %arg19[%c136_141, %c0_142] : memref<256x128xf32, #tpu.memory_space<vmem>>, vector<15x128xf32>
    %c153 = arith.constant 153 : index
    %c0_143 = arith.constant 0 : index
    %209 = vector.load %arg19[%c153, %c0_143] : memref<256x128xf32, #tpu.memory_space<vmem>>, vector<15x128xf32>
    %210 = arith.maximumf %208, %209 : vector<15x128xf32>
    %c170 = arith.constant 170 : index
    %c0_144 = arith.constant 0 : index
    %211 = vector.load %arg19[%c170, %c0_144] : memref<256x128xf32, #tpu.memory_space<vmem>>, vector<15x128xf32>
    %212 = arith.maximumf %210, %211 : vector<15x128xf32>
    %213 = vector.extract_strided_slice %212 {offsets = [0, 0], sizes = [3, 128], strides = [1, 1]} : vector<15x128xf32> to vector<3x128xf32>
    %cst_145 = arith.constant dense<0xFF800000> : vector<128xf32>
    %214 = vector.multi_reduction <maximumf>, %213, %cst_145 [0] : vector<3x128xf32> to vector<128xf32>
    %215 = vector.shape_cast %214 : vector<128xf32> to vector<1x128xf32>
    %c68_146 = arith.constant 68 : index
    %c0_147 = arith.constant 0 : index
    %216 = vector.load %arg20[%c68_146, %c0_147] : memref<128x128xf32, #tpu.memory_space<vmem>>, vector<1x128xf32>
    tpu.vector_store %arg20[%c68_146, %c0_147], %215 {strides = array<i32>} : memref<128x128xf32, #tpu.memory_space<vmem>>, vector<1x128xf32>,
    %217 = vector.extract_strided_slice %212 {offsets = [2, 0], sizes = [3, 128], strides = [1, 1]} : vector<15x128xf32> to vector<3x128xf32>
    %cst_148 = arith.constant dense<0xFF800000> : vector<128xf32>
    %218 = vector.multi_reduction <maximumf>, %217, %cst_148 [0] : vector<3x128xf32> to vector<128xf32>
    %219 = vector.shape_cast %218 : vector<128xf32> to vector<1x128xf32>
    %c69 = arith.constant 69 : index
    %c0_149 = arith.constant 0 : index
    %220 = vector.load %arg20[%c69, %c0_149] : memref<128x128xf32, #tpu.memory_space<vmem>>, vector<1x128xf32>
    tpu.vector_store %arg20[%c69, %c0_149], %219 {strides = array<i32>} : memref<128x128xf32, #tpu.memory_space<vmem>>, vector<1x128xf32>,
    %221 = vector.extract_strided_slice %212 {offsets = [4, 0], sizes = [3, 128], strides = [1, 1]} : vector<15x128xf32> to vector<3x128xf32>
    %cst_150 = arith.constant dense<0xFF800000> : vector<128xf32>
    %222 = vector.multi_reduction <maximumf>, %221, %cst_150 [0] : vector<3x128xf32> to vector<128xf32>
    %223 = vector.shape_cast %222 : vector<128xf32> to vector<1x128xf32>
    %c70 = arith.constant 70 : index
    %c0_151 = arith.constant 0 : index
    %224 = vector.load %arg20[%c70, %c0_151] : memref<128x128xf32, #tpu.memory_space<vmem>>, vector<1x128xf32>
    tpu.vector_store %arg20[%c70, %c0_151], %223 {strides = array<i32>} : memref<128x128xf32, #tpu.memory_space<vmem>>, vector<1x128xf32>,
    %225 = vector.extract_strided_slice %212 {offsets = [6, 0], sizes = [3, 128], strides = [1, 1]} : vector<15x128xf32> to vector<3x128xf32>
    %cst_152 = arith.constant dense<0xFF800000> : vector<128xf32>
    %226 = vector.multi_reduction <maximumf>, %225, %cst_152 [0] : vector<3x128xf32> to vector<128xf32>
    %227 = vector.shape_cast %226 : vector<128xf32> to vector<1x128xf32>
    %c71 = arith.constant 71 : index
    %c0_153 = arith.constant 0 : index
    %228 = vector.load %arg20[%c71, %c0_153] : memref<128x128xf32, #tpu.memory_space<vmem>>, vector<1x128xf32>
    tpu.vector_store %arg20[%c71, %c0_153], %227 {strides = array<i32>} : memref<128x128xf32, #tpu.memory_space<vmem>>, vector<1x128xf32>,
    %229 = vector.extract_strided_slice %212 {offsets = [8, 0], sizes = [3, 128], strides = [1, 1]} : vector<15x128xf32> to vector<3x128xf32>
    %cst_154 = arith.constant dense<0xFF800000> : vector<128xf32>
    %230 = vector.multi_reduction <maximumf>, %229, %cst_154 [0] : vector<3x128xf32> to vector<128xf32>
    %231 = vector.shape_cast %230 : vector<128xf32> to vector<1x128xf32>
    %c72 = arith.constant 72 : index
    %c0_155 = arith.constant 0 : index
    %232 = vector.load %arg20[%c72, %c0_155] : memref<128x128xf32, #tpu.memory_space<vmem>>, vector<1x128xf32>
    tpu.vector_store %arg20[%c72, %c0_155], %231 {strides = array<i32>} : memref<128x128xf32, #tpu.memory_space<vmem>>, vector<1x128xf32>,
    %233 = vector.extract_strided_slice %212 {offsets = [10, 0], sizes = [3, 128], strides = [1, 1]} : vector<15x128xf32> to vector<3x128xf32>
    %cst_156 = arith.constant dense<0xFF800000> : vector<128xf32>
    %234 = vector.multi_reduction <maximumf>, %233, %cst_156 [0] : vector<3x128xf32> to vector<128xf32>
    %235 = vector.shape_cast %234 : vector<128xf32> to vector<1x128xf32>
    %c73 = arith.constant 73 : index
    %c0_157 = arith.constant 0 : index
    %236 = vector.load %arg20[%c73, %c0_157] : memref<128x128xf32, #tpu.memory_space<vmem>>, vector<1x128xf32>
    tpu.vector_store %arg20[%c73, %c0_157], %235 {strides = array<i32>} : memref<128x128xf32, #tpu.memory_space<vmem>>, vector<1x128xf32>,
    %237 = vector.extract_strided_slice %212 {offsets = [12, 0], sizes = [3, 128], strides = [1, 1]} : vector<15x128xf32> to vector<3x128xf32>
    %cst_158 = arith.constant dense<0xFF800000> : vector<128xf32>
    %238 = vector.multi_reduction <maximumf>, %237, %cst_158 [0] : vector<3x128xf32> to vector<128xf32>
    %239 = vector.shape_cast %238 : vector<128xf32> to vector<1x128xf32>
    %c74 = arith.constant 74 : index
    %c0_159 = arith.constant 0 : index
    %240 = vector.load %arg20[%c74, %c0_159] : memref<128x128xf32, #tpu.memory_space<vmem>>, vector<1x128xf32>
    tpu.vector_store %arg20[%c74, %c0_159], %239 {strides = array<i32>} : memref<128x128xf32, #tpu.memory_space<vmem>>, vector<1x128xf32>,
    %c170_160 = arith.constant 170 : index
    %c0_161 = arith.constant 0 : index
    %241 = vector.load %arg19[%c170_160, %c0_161] : memref<256x128xf32, #tpu.memory_space<vmem>>, vector<15x128xf32>
    %c187 = arith.constant 187 : index
    %c0_162 = arith.constant 0 : index
    %242 = vector.load %arg19[%c187, %c0_162] : memref<256x128xf32, #tpu.memory_space<vmem>>, vector<15x128xf32>
    %243 = arith.maximumf %241, %242 : vector<15x128xf32>
    %c204 = arith.constant 204 : index
    %c0_163 = arith.constant 0 : index
    %244 = vector.load %arg19[%c204, %c0_163] : memref<256x128xf32, #tpu.memory_space<vmem>>, vector<15x128xf32>
    %245 = arith.maximumf %243, %244 : vector<15x128xf32>
    %246 = vector.extract_strided_slice %245 {offsets = [0, 0], sizes = [3, 128], strides = [1, 1]} : vector<15x128xf32> to vector<3x128xf32>
    %cst_164 = arith.constant dense<0xFF800000> : vector<128xf32>
    %247 = vector.multi_reduction <maximumf>, %246, %cst_164 [0] : vector<3x128xf32> to vector<128xf32>
    %248 = vector.shape_cast %247 : vector<128xf32> to vector<1x128xf32>
    %c79 = arith.constant 79 : index
    %c0_165 = arith.constant 0 : index
    %249 = vector.load %arg20[%c79, %c0_165] : memref<128x128xf32, #tpu.memory_space<vmem>>, vector<1x128xf32>
    tpu.vector_store %arg20[%c79, %c0_165], %248 {strides = array<i32>} : memref<128x128xf32, #tpu.memory_space<vmem>>, vector<1x128xf32>,
    %250 = vector.extract_strided_slice %245 {offsets = [2, 0], sizes = [3, 128], strides = [1, 1]} : vector<15x128xf32> to vector<3x128xf32>
    %cst_166 = arith.constant dense<0xFF800000> : vector<128xf32>
    %251 = vector.multi_reduction <maximumf>, %250, %cst_166 [0] : vector<3x128xf32> to vector<128xf32>
    %252 = vector.shape_cast %251 : vector<128xf32> to vector<1x128xf32>
    %c80 = arith.constant 80 : index
    %c0_167 = arith.constant 0 : index
    %253 = vector.load %arg20[%c80, %c0_167] : memref<128x128xf32, #tpu.memory_space<vmem>>, vector<1x128xf32>
    tpu.vector_store %arg20[%c80, %c0_167], %252 {strides = array<i32>} : memref<128x128xf32, #tpu.memory_space<vmem>>, vector<1x128xf32>,
    %254 = vector.extract_strided_slice %245 {offsets = [4, 0], sizes = [3, 128], strides = [1, 1]} : vector<15x128xf32> to vector<3x128xf32>
    %cst_168 = arith.constant dense<0xFF800000> : vector<128xf32>
    %255 = vector.multi_reduction <maximumf>, %254, %cst_168 [0] : vector<3x128xf32> to vector<128xf32>
    %256 = vector.shape_cast %255 : vector<128xf32> to vector<1x128xf32>
    %c81 = arith.constant 81 : index
    %c0_169 = arith.constant 0 : index
    %257 = vector.load %arg20[%c81, %c0_169] : memref<128x128xf32, #tpu.memory_space<vmem>>, vector<1x128xf32>
    tpu.vector_store %arg20[%c81, %c0_169], %256 {strides = array<i32>} : memref<128x128xf32, #tpu.memory_space<vmem>>, vector<1x128xf32>,
    %258 = vector.extract_strided_slice %245 {offsets = [6, 0], sizes = [3, 128], strides = [1, 1]} : vector<15x128xf32> to vector<3x128xf32>
    %cst_170 = arith.constant dense<0xFF800000> : vector<128xf32>
    %259 = vector.multi_reduction <maximumf>, %258, %cst_170 [0] : vector<3x128xf32> to vector<128xf32>
    %260 = vector.shape_cast %259 : vector<128xf32> to vector<1x128xf32>
    %c82 = arith.constant 82 : index
    %c0_171 = arith.constant 0 : index
    %261 = vector.load %arg20[%c82, %c0_171] : memref<128x128xf32, #tpu.memory_space<vmem>>, vector<1x128xf32>
    tpu.vector_store %arg20[%c82, %c0_171], %260 {strides = array<i32>} : memref<128x128xf32, #tpu.memory_space<vmem>>, vector<1x128xf32>,
    %262 = vector.extract_strided_slice %245 {offsets = [8, 0], sizes = [3, 128], strides = [1, 1]} : vector<15x128xf32> to vector<3x128xf32>
    %cst_172 = arith.constant dense<0xFF800000> : vector<128xf32>
    %263 = vector.multi_reduction <maximumf>, %262, %cst_172 [0] : vector<3x128xf32> to vector<128xf32>
    %264 = vector.shape_cast %263 : vector<128xf32> to vector<1x128xf32>
    %c83 = arith.constant 83 : index
    %c0_173 = arith.constant 0 : index
    %265 = vector.load %arg20[%c83, %c0_173] : memref<128x128xf32, #tpu.memory_space<vmem>>, vector<1x128xf32>
    tpu.vector_store %arg20[%c83, %c0_173], %264 {strides = array<i32>} : memref<128x128xf32, #tpu.memory_space<vmem>>, vector<1x128xf32>,
    %266 = vector.extract_strided_slice %245 {offsets = [10, 0], sizes = [3, 128], strides = [1, 1]} : vector<15x128xf32> to vector<3x128xf32>
    %cst_174 = arith.constant dense<0xFF800000> : vector<128xf32>
    %267 = vector.multi_reduction <maximumf>, %266, %cst_174 [0] : vector<3x128xf32> to vector<128xf32>
    %268 = vector.shape_cast %267 : vector<128xf32> to vector<1x128xf32>
    %c84 = arith.constant 84 : index
    %c0_175 = arith.constant 0 : index
    %269 = vector.load %arg20[%c84, %c0_175] : memref<128x128xf32, #tpu.memory_space<vmem>>, vector<1x128xf32>
    tpu.vector_store %arg20[%c84, %c0_175], %268 {strides = array<i32>} : memref<128x128xf32, #tpu.memory_space<vmem>>, vector<1x128xf32>,
    %270 = vector.extract_strided_slice %245 {offsets = [12, 0], sizes = [3, 128], strides = [1, 1]} : vector<15x128xf32> to vector<3x128xf32>
    %cst_176 = arith.constant dense<0xFF800000> : vector<128xf32>
    %271 = vector.multi_reduction <maximumf>, %270, %cst_176 [0] : vector<3x128xf32> to vector<128xf32>
    %272 = vector.shape_cast %271 : vector<128xf32> to vector<1x128xf32>
    %c85_177 = arith.constant 85 : index
    %c0_178 = arith.constant 0 : index
    %273 = vector.load %arg20[%c85_177, %c0_178] : memref<128x128xf32, #tpu.memory_space<vmem>>, vector<1x128xf32>
    tpu.vector_store %arg20[%c85_177, %c0_178], %272 {strides = array<i32>} : memref<128x128xf32, #tpu.memory_space<vmem>>, vector<1x128xf32>,
    %c204_179 = arith.constant 204 : index
    %c0_180 = arith.constant 0 : index
    %274 = vector.load %arg19[%c204_179, %c0_180] : memref<256x128xf32, #tpu.memory_space<vmem>>, vector<15x128xf32>
    %c221 = arith.constant 221 : index
    %c0_181 = arith.constant 0 : index
    %275 = vector.load %arg19[%c221, %c0_181] : memref<256x128xf32, #tpu.memory_space<vmem>>, vector<15x128xf32>
    %276 = arith.maximumf %274, %275 : vector<15x128xf32>
    %c238 = arith.constant 238 : index
    %c0_182 = arith.constant 0 : index
    %277 = vector.load %arg19[%c238, %c0_182] : memref<256x128xf32, #tpu.memory_space<vmem>>, vector<15x128xf32>
    %278 = arith.maximumf %276, %277 : vector<15x128xf32>
    %279 = vector.extract_strided_slice %278 {offsets = [0, 0], sizes = [3, 128], strides = [1, 1]} : vector<15x128xf32> to vector<3x128xf32>
    %cst_183 = arith.constant dense<0xFF800000> : vector<128xf32>
    %280 = vector.multi_reduction <maximumf>, %279, %cst_183 [0] : vector<3x128xf32> to vector<128xf32>
    %281 = vector.shape_cast %280 : vector<128xf32> to vector<1x128xf32>
    %c90 = arith.constant 90 : index
    %c0_184 = arith.constant 0 : index
    %282 = vector.load %arg20[%c90, %c0_184] : memref<128x128xf32, #tpu.memory_space<vmem>>, vector<1x128xf32>
    tpu.vector_store %arg20[%c90, %c0_184], %281 {strides = array<i32>} : memref<128x128xf32, #tpu.memory_space<vmem>>, vector<1x128xf32>,
    %283 = vector.extract_strided_slice %278 {offsets = [2, 0], sizes = [3, 128], strides = [1, 1]} : vector<15x128xf32> to vector<3x128xf32>
    %cst_185 = arith.constant dense<0xFF800000> : vector<128xf32>
    %284 = vector.multi_reduction <maximumf>, %283, %cst_185 [0] : vector<3x128xf32> to vector<128xf32>
    %285 = vector.shape_cast %284 : vector<128xf32> to vector<1x128xf32>
    %c91 = arith.constant 91 : index
    %c0_186 = arith.constant 0 : index
    %286 = vector.load %arg20[%c91, %c0_186] : memref<128x128xf32, #tpu.memory_space<vmem>>, vector<1x128xf32>
    tpu.vector_store %arg20[%c91, %c0_186], %285 {strides = array<i32>} : memref<128x128xf32, #tpu.memory_space<vmem>>, vector<1x128xf32>,
    %287 = vector.extract_strided_slice %278 {offsets = [4, 0], sizes = [3, 128], strides = [1, 1]} : vector<15x128xf32> to vector<3x128xf32>
    %cst_187 = arith.constant dense<0xFF800000> : vector<128xf32>
    %288 = vector.multi_reduction <maximumf>, %287, %cst_187 [0] : vector<3x128xf32> to vector<128xf32>
    %289 = vector.shape_cast %288 : vector<128xf32> to vector<1x128xf32>
    %c92 = arith.constant 92 : index
    %c0_188 = arith.constant 0 : index
    %290 = vector.load %arg20[%c92, %c0_188] : memref<128x128xf32, #tpu.memory_space<vmem>>, vector<1x128xf32>
    tpu.vector_store %arg20[%c92, %c0_188], %289 {strides = array<i32>} : memref<128x128xf32, #tpu.memory_space<vmem>>, vector<1x128xf32>,
    %291 = vector.extract_strided_slice %278 {offsets = [6, 0], sizes = [3, 128], strides = [1, 1]} : vector<15x128xf32> to vector<3x128xf32>
    %cst_189 = arith.constant dense<0xFF800000> : vector<128xf32>
    %292 = vector.multi_reduction <maximumf>, %291, %cst_189 [0] : vector<3x128xf32> to vector<128xf32>
    %293 = vector.shape_cast %292 : vector<128xf32> to vector<1x128xf32>
    %c93 = arith.constant 93 : index
    %c0_190 = arith.constant 0 : index
    %294 = vector.load %arg20[%c93, %c0_190] : memref<128x128xf32, #tpu.memory_space<vmem>>, vector<1x128xf32>
    tpu.vector_store %arg20[%c93, %c0_190], %293 {strides = array<i32>} : memref<128x128xf32, #tpu.memory_space<vmem>>, vector<1x128xf32>,
    %295 = vector.extract_strided_slice %278 {offsets = [8, 0], sizes = [3, 128], strides = [1, 1]} : vector<15x128xf32> to vector<3x128xf32>
    %cst_191 = arith.constant dense<0xFF800000> : vector<128xf32>
    %296 = vector.multi_reduction <maximumf>, %295, %cst_191 [0] : vector<3x128xf32> to vector<128xf32>
    %297 = vector.shape_cast %296 : vector<128xf32> to vector<1x128xf32>
    %c94 = arith.constant 94 : index
    %c0_192 = arith.constant 0 : index
    %298 = vector.load %arg20[%c94, %c0_192] : memref<128x128xf32, #tpu.memory_space<vmem>>, vector<1x128xf32>
    tpu.vector_store %arg20[%c94, %c0_192], %297 {strides = array<i32>} : memref<128x128xf32, #tpu.memory_space<vmem>>, vector<1x128xf32>,
    %299 = vector.extract_strided_slice %278 {offsets = [10, 0], sizes = [3, 128], strides = [1, 1]} : vector<15x128xf32> to vector<3x128xf32>
    %cst_193 = arith.constant dense<0xFF800000> : vector<128xf32>
    %300 = vector.multi_reduction <maximumf>, %299, %cst_193 [0] : vector<3x128xf32> to vector<128xf32>
    %301 = vector.shape_cast %300 : vector<128xf32> to vector<1x128xf32>
    %c95 = arith.constant 95 : index
    %c0_194 = arith.constant 0 : index
    %302 = vector.load %arg20[%c95, %c0_194] : memref<128x128xf32, #tpu.memory_space<vmem>>, vector<1x128xf32>
    tpu.vector_store %arg20[%c95, %c0_194], %301 {strides = array<i32>} : memref<128x128xf32, #tpu.memory_space<vmem>>, vector<1x128xf32>,
    %303 = vector.extract_strided_slice %278 {offsets = [12, 0], sizes = [3, 128], strides = [1, 1]} : vector<15x128xf32> to vector<3x128xf32>
    %cst_195 = arith.constant dense<0xFF800000> : vector<128xf32>
    %304 = vector.multi_reduction <maximumf>, %303, %cst_195 [0] : vector<3x128xf32> to vector<128xf32>
    %305 = vector.shape_cast %304 : vector<128xf32> to vector<1x128xf32>
    %c96 = arith.constant 96 : index
    %c0_196 = arith.constant 0 : index
    %306 = vector.load %arg20[%c96, %c0_196] : memref<128x128xf32, #tpu.memory_space<vmem>>, vector<1x128xf32>
    tpu.vector_store %arg20[%c96, %c0_196], %305 {strides = array<i32>} : memref<128x128xf32, #tpu.memory_space<vmem>>, vector<1x128xf32>,
    %c0_197 = arith.constant 0 : index
    %c0_198 = arith.constant 0 : index
    %307 = vector.load %arg20[%c0_197, %c0_198] : memref<128x128xf32, #tpu.memory_space<vmem>>, vector<77x128xf32>
    %308 = arith.truncf %307 : vector<77x128xf32> to vector<77x128xbf16>
    %c0_199 = arith.constant 0 : index
    %c0_200 = arith.constant 0 : index
    %c0_201 = arith.constant 0 : index
    %309 = vector.load %arg4[%c0_199, %c0_200, %c0_201] : memref<25x128x128xbf16, #tpu.memory_space<vmem>>, vector<1x128x128xbf16>
    %310 = vector.shape_cast %309 : vector<1x128x128xbf16> to vector<128x128xbf16>
    %cst_202 = arith.constant dense<0.000000e+00> : vector<77x128xf32>
    %311 = tpu.matmul %308, %310, %cst_202 {dimension_numbers = #tpu.dot_dimension_numbers<[1], [0], [0], [1], [0, 0, 1, 1], [], []>} : vector<77x128xbf16>, vector<128x128xbf16>, vector<77x128xf32> -> vector<77x128xf32>
    %c1_203 = arith.constant 1 : index
    %c0_204 = arith.constant 0 : index
    %312 = vector.load %arg20[%c1_203, %c0_204] : memref<128x128xf32, #tpu.memory_space<vmem>>, vector<77x128xf32>
    %313 = arith.truncf %312 : vector<77x128xf32> to vector<77x128xbf16>
    %c1_205 = arith.constant 1 : index
    %c0_206 = arith.constant 0 : index
    %c0_207 = arith.constant 0 : index
    %314 = vector.load %arg4[%c1_205, %c0_206, %c0_207] : memref<25x128x128xbf16, #tpu.memory_space<vmem>>, vector<1x128x128xbf16>
    %315 = vector.shape_cast %314 : vector<1x128x128xbf16> to vector<128x128xbf16>
    %cst_208 = arith.constant dense<0.000000e+00> : vector<77x128xf32>
    %316 = tpu.matmul %313, %315, %cst_208 {dimension_numbers = #tpu.dot_dimension_numbers<[1], [0], [0], [1], [0, 0, 1, 1], [], []>} : vector<77x128xbf16>, vector<128x128xbf16>, vector<77x128xf32> -> vector<77x128xf32>
    %317 = arith.addf %311, %316 : vector<77x128xf32>
    %c2_209 = arith.constant 2 : index
    %c0_210 = arith.constant 0 : index
    %318 = vector.load %arg20[%c2_209, %c0_210] : memref<128x128xf32, #tpu.memory_space<vmem>>, vector<77x128xf32>
    %319 = arith.truncf %318 : vector<77x128xf32> to vector<77x128xbf16>
    %c2_211 = arith.constant 2 : index
    %c0_212 = arith.constant 0 : index
    %c0_213 = arith.constant 0 : index
    %320 = vector.load %arg4[%c2_211, %c0_212, %c0_213] : memref<25x128x128xbf16, #tpu.memory_space<vmem>>, vector<1x128x128xbf16>
    %321 = vector.shape_cast %320 : vector<1x128x128xbf16> to vector<128x128xbf16>
    %cst_214 = arith.constant dense<0.000000e+00> : vector<77x128xf32>
    %322 = tpu.matmul %319, %321, %cst_214 {dimension_numbers = #tpu.dot_dimension_numbers<[1], [0], [0], [1], [0, 0, 1, 1], [], []>} : vector<77x128xbf16>, vector<128x128xbf16>, vector<77x128xf32> -> vector<77x128xf32>
    %323 = arith.addf %317, %322 : vector<77x128xf32>
    %c3_215 = arith.constant 3 : index
    %c0_216 = arith.constant 0 : index
    %324 = vector.load %arg20[%c3_215, %c0_216] : memref<128x128xf32, #tpu.memory_space<vmem>>, vector<77x128xf32>
    %325 = arith.truncf %324 : vector<77x128xf32> to vector<77x128xbf16>
    %c3_217 = arith.constant 3 : index
    %c0_218 = arith.constant 0 : index
    %c0_219 = arith.constant 0 : index
    %326 = vector.load %arg4[%c3_217, %c0_218, %c0_219] : memref<25x128x128xbf16, #tpu.memory_space<vmem>>, vector<1x128x128xbf16>
    %327 = vector.shape_cast %326 : vector<1x128x128xbf16> to vector<128x128xbf16>
    %cst_220 = arith.constant dense<0.000000e+00> : vector<77x128xf32>
    %328 = tpu.matmul %325, %327, %cst_220 {dimension_numbers = #tpu.dot_dimension_numbers<[1], [0], [0], [1], [0, 0, 1, 1], [], []>} : vector<77x128xbf16>, vector<128x128xbf16>, vector<77x128xf32> -> vector<77x128xf32>
    %329 = arith.addf %323, %328 : vector<77x128xf32>
    %c4_221 = arith.constant 4 : index
    %c0_222 = arith.constant 0 : index
    %330 = vector.load %arg20[%c4_221, %c0_222] : memref<128x128xf32, #tpu.memory_space<vmem>>, vector<77x128xf32>
    %331 = arith.truncf %330 : vector<77x128xf32> to vector<77x128xbf16>
    %c4_223 = arith.constant 4 : index
    %c0_224 = arith.constant 0 : index
    %c0_225 = arith.constant 0 : index
    %332 = vector.load %arg4[%c4_223, %c0_224, %c0_225] : memref<25x128x128xbf16, #tpu.memory_space<vmem>>, vector<1x128x128xbf16>
    %333 = vector.shape_cast %332 : vector<1x128x128xbf16> to vector<128x128xbf16>
    %cst_226 = arith.constant dense<0.000000e+00> : vector<77x128xf32>
    %334 = tpu.matmul %331, %333, %cst_226 {dimension_numbers = #tpu.dot_dimension_numbers<[1], [0], [0], [1], [0, 0, 1, 1], [], []>} : vector<77x128xbf16>, vector<128x128xbf16>, vector<77x128xf32> -> vector<77x128xf32>
    %335 = arith.addf %329, %334 : vector<77x128xf32>
    %c11 = arith.constant 11 : index
    %c0_227 = arith.constant 0 : index
    %336 = vector.load %arg20[%c11, %c0_227] : memref<128x128xf32, #tpu.memory_space<vmem>>, vector<77x128xf32>
    %337 = arith.truncf %336 : vector<77x128xf32> to vector<77x128xbf16>
    %c5_228 = arith.constant 5 : index
    %c0_229 = arith.constant 0 : index
    %c0_230 = arith.constant 0 : index
    %338 = vector.load %arg4[%c5_228, %c0_229, %c0_230] : memref<25x128x128xbf16, #tpu.memory_space<vmem>>, vector<1x128x128xbf16>
    %339 = vector.shape_cast %338 : vector<1x128x128xbf16> to vector<128x128xbf16>
    %cst_231 = arith.constant dense<0.000000e+00> : vector<77x128xf32>
    %340 = tpu.matmul %337, %339, %cst_231 {dimension_numbers = #tpu.dot_dimension_numbers<[1], [0], [0], [1], [0, 0, 1, 1], [], []>} : vector<77x128xbf16>, vector<128x128xbf16>, vector<77x128xf32> -> vector<77x128xf32>
    %341 = arith.addf %335, %340 : vector<77x128xf32>
    %c12 = arith.constant 12 : index
    %c0_232 = arith.constant 0 : index
    %342 = vector.load %arg20[%c12, %c0_232] : memref<128x128xf32, #tpu.memory_space<vmem>>, vector<77x128xf32>
    %343 = arith.truncf %342 : vector<77x128xf32> to vector<77x128xbf16>
    %c6_233 = arith.constant 6 : index
    %c0_234 = arith.constant 0 : index
    %c0_235 = arith.constant 0 : index
    %344 = vector.load %arg4[%c6_233, %c0_234, %c0_235] : memref<25x128x128xbf16, #tpu.memory_space<vmem>>, vector<1x128x128xbf16>
    %345 = vector.shape_cast %344 : vector<1x128x128xbf16> to vector<128x128xbf16>
    %cst_236 = arith.constant dense<0.000000e+00> : vector<77x128xf32>
    %346 = tpu.matmul %343, %345, %cst_236 {dimension_numbers = #tpu.dot_dimension_numbers<[1], [0], [0], [1], [0, 0, 1, 1], [], []>} : vector<77x128xbf16>, vector<128x128xbf16>, vector<77x128xf32> -> vector<77x128xf32>
    %347 = arith.addf %341, %346 : vector<77x128xf32>
    %c13 = arith.constant 13 : index
    %c0_237 = arith.constant 0 : index
    %348 = vector.load %arg20[%c13, %c0_237] : memref<128x128xf32, #tpu.memory_space<vmem>>, vector<77x128xf32>
    %349 = arith.truncf %348 : vector<77x128xf32> to vector<77x128xbf16>
    %c7_238 = arith.constant 7 : index
    %c0_239 = arith.constant 0 : index
    %c0_240 = arith.constant 0 : index
    %350 = vector.load %arg4[%c7_238, %c0_239, %c0_240] : memref<25x128x128xbf16, #tpu.memory_space<vmem>>, vector<1x128x128xbf16>
    %351 = vector.shape_cast %350 : vector<1x128x128xbf16> to vector<128x128xbf16>
    %cst_241 = arith.constant dense<0.000000e+00> : vector<77x128xf32>
    %352 = tpu.matmul %349, %351, %cst_241 {dimension_numbers = #tpu.dot_dimension_numbers<[1], [0], [0], [1], [0, 0, 1, 1], [], []>} : vector<77x128xbf16>, vector<128x128xbf16>, vector<77x128xf32> -> vector<77x128xf32>
    %353 = arith.addf %347, %352 : vector<77x128xf32>
    %c14 = arith.constant 14 : index
    %c0_242 = arith.constant 0 : index
    %354 = vector.load %arg20[%c14, %c0_242] : memref<128x128xf32, #tpu.memory_space<vmem>>, vector<77x128xf32>
    %355 = arith.truncf %354 : vector<77x128xf32> to vector<77x128xbf16>
    %c8_243 = arith.constant 8 : index
    %c0_244 = arith.constant 0 : index
    %c0_245 = arith.constant 0 : index
    %356 = vector.load %arg4[%c8_243, %c0_244, %c0_245] : memref<25x128x128xbf16, #tpu.memory_space<vmem>>, vector<1x128x128xbf16>
    %357 = vector.shape_cast %356 : vector<1x128x128xbf16> to vector<128x128xbf16>
    %cst_246 = arith.constant dense<0.000000e+00> : vector<77x128xf32>
    %358 = tpu.matmul %355, %357, %cst_246 {dimension_numbers = #tpu.dot_dimension_numbers<[1], [0], [0], [1], [0, 0, 1, 1], [], []>} : vector<77x128xbf16>, vector<128x128xbf16>, vector<77x128xf32> -> vector<77x128xf32>
    %359 = arith.addf %353, %358 : vector<77x128xf32>
    %c15 = arith.constant 15 : index
    %c0_247 = arith.constant 0 : index
    %360 = vector.load %arg20[%c15, %c0_247] : memref<128x128xf32, #tpu.memory_space<vmem>>, vector<77x128xf32>
    %361 = arith.truncf %360 : vector<77x128xf32> to vector<77x128xbf16>
    %c9 = arith.constant 9 : index
    %c0_248 = arith.constant 0 : index
    %c0_249 = arith.constant 0 : index
    %362 = vector.load %arg4[%c9, %c0_248, %c0_249] : memref<25x128x128xbf16, #tpu.memory_space<vmem>>, vector<1x128x128xbf16>
    %363 = vector.shape_cast %362 : vector<1x128x128xbf16> to vector<128x128xbf16>
    %cst_250 = arith.constant dense<0.000000e+00> : vector<77x128xf32>
    %364 = tpu.matmul %361, %363, %cst_250 {dimension_numbers = #tpu.dot_dimension_numbers<[1], [0], [0], [1], [0, 0, 1, 1], [], []>} : vector<77x128xbf16>, vector<128x128xbf16>, vector<77x128xf32> -> vector<77x128xf32>
    %365 = arith.addf %359, %364 : vector<77x128xf32>
    %c22 = arith.constant 22 : index
    %c0_251 = arith.constant 0 : index
    %366 = vector.load %arg20[%c22, %c0_251] : memref<128x128xf32, #tpu.memory_space<vmem>>, vector<77x128xf32>
    %367 = arith.truncf %366 : vector<77x128xf32> to vector<77x128xbf16>
    %c10 = arith.constant 10 : index
    %c0_252 = arith.constant 0 : index
    %c0_253 = arith.constant 0 : index
    %368 = vector.load %arg4[%c10, %c0_252, %c0_253] : memref<25x128x128xbf16, #tpu.memory_space<vmem>>, vector<1x128x128xbf16>
    %369 = vector.shape_cast %368 : vector<1x128x128xbf16> to vector<128x128xbf16>
    %cst_254 = arith.constant dense<0.000000e+00> : vector<77x128xf32>
    %370 = tpu.matmul %367, %369, %cst_254 {dimension_numbers = #tpu.dot_dimension_numbers<[1], [0], [0], [1], [0, 0, 1, 1], [], []>} : vector<77x128xbf16>, vector<128x128xbf16>, vector<77x128xf32> -> vector<77x128xf32>
    %371 = arith.addf %365, %370 : vector<77x128xf32>
    %c23 = arith.constant 23 : index
    %c0_255 = arith.constant 0 : index
    %372 = vector.load %arg20[%c23, %c0_255] : memref<128x128xf32, #tpu.memory_space<vmem>>, vector<77x128xf32>
    %373 = arith.truncf %372 : vector<77x128xf32> to vector<77x128xbf16>
    %c11_256 = arith.constant 11 : index
    %c0_257 = arith.constant 0 : index
    %c0_258 = arith.constant 0 : index
    %374 = vector.load %arg4[%c11_256, %c0_257, %c0_258] : memref<25x128x128xbf16, #tpu.memory_space<vmem>>, vector<1x128x128xbf16>
    %375 = vector.shape_cast %374 : vector<1x128x128xbf16> to vector<128x128xbf16>
    %cst_259 = arith.constant dense<0.000000e+00> : vector<77x128xf32>
    %376 = tpu.matmul %373, %375, %cst_259 {dimension_numbers = #tpu.dot_dimension_numbers<[1], [0], [0], [1], [0, 0, 1, 1], [], []>} : vector<77x128xbf16>, vector<128x128xbf16>, vector<77x128xf32> -> vector<77x128xf32>
    %377 = arith.addf %371, %376 : vector<77x128xf32>
    %c24_260 = arith.constant 24 : index
    %c0_261 = arith.constant 0 : index
    %378 = vector.load %arg20[%c24_260, %c0_261] : memref<128x128xf32, #tpu.memory_space<vmem>>, vector<77x128xf32>
    %379 = arith.truncf %378 : vector<77x128xf32> to vector<77x128xbf16>
    %c12_262 = arith.constant 12 : index
    %c0_263 = arith.constant 0 : index
    %c0_264 = arith.constant 0 : index
    %380 = vector.load %arg4[%c12_262, %c0_263, %c0_264] : memref<25x128x128xbf16, #tpu.memory_space<vmem>>, vector<1x128x128xbf16>
    %381 = vector.shape_cast %380 : vector<1x128x128xbf16> to vector<128x128xbf16>
    %cst_265 = arith.constant dense<0.000000e+00> : vector<77x128xf32>
    %382 = tpu.matmul %379, %381, %cst_265 {dimension_numbers = #tpu.dot_dimension_numbers<[1], [0], [0], [1], [0, 0, 1, 1], [], []>} : vector<77x128xbf16>, vector<128x128xbf16>, vector<77x128xf32> -> vector<77x128xf32>
    %383 = arith.addf %377, %382 : vector<77x128xf32>
    %c25_266 = arith.constant 25 : index
    %c0_267 = arith.constant 0 : index
    %384 = vector.load %arg20[%c25_266, %c0_267] : memref<128x128xf32, #tpu.memory_space<vmem>>, vector<77x128xf32>
    %385 = arith.truncf %384 : vector<77x128xf32> to vector<77x128xbf16>
    %c13_268 = arith.constant 13 : index
    %c0_269 = arith.constant 0 : index
    %c0_270 = arith.constant 0 : index
    %386 = vector.load %arg4[%c13_268, %c0_269, %c0_270] : memref<25x128x128xbf16, #tpu.memory_space<vmem>>, vector<1x128x128xbf16>
    %387 = vector.shape_cast %386 : vector<1x128x128xbf16> to vector<128x128xbf16>
    %cst_271 = arith.constant dense<0.000000e+00> : vector<77x128xf32>
    %388 = tpu.matmul %385, %387, %cst_271 {dimension_numbers = #tpu.dot_dimension_numbers<[1], [0], [0], [1], [0, 0, 1, 1], [], []>} : vector<77x128xbf16>, vector<128x128xbf16>, vector<77x128xf32> -> vector<77x128xf32>
    %389 = arith.addf %383, %388 : vector<77x128xf32>
    %c26_272 = arith.constant 26 : index
    %c0_273 = arith.constant 0 : index
    %390 = vector.load %arg20[%c26_272, %c0_273] : memref<128x128xf32, #tpu.memory_space<vmem>>, vector<77x128xf32>
    %391 = arith.truncf %390 : vector<77x128xf32> to vector<77x128xbf16>
    %c14_274 = arith.constant 14 : index
    %c0_275 = arith.constant 0 : index
    %c0_276 = arith.constant 0 : index
    %392 = vector.load %arg4[%c14_274, %c0_275, %c0_276] : memref<25x128x128xbf16, #tpu.memory_space<vmem>>, vector<1x128x128xbf16>
    %393 = vector.shape_cast %392 : vector<1x128x128xbf16> to vector<128x128xbf16>
    %cst_277 = arith.constant dense<0.000000e+00> : vector<77x128xf32>
    %394 = tpu.matmul %391, %393, %cst_277 {dimension_numbers = #tpu.dot_dimension_numbers<[1], [0], [0], [1], [0, 0, 1, 1], [], []>} : vector<77x128xbf16>, vector<128x128xbf16>, vector<77x128xf32> -> vector<77x128xf32>
    %395 = arith.addf %389, %394 : vector<77x128xf32>
    %c33 = arith.constant 33 : index
    %c0_278 = arith.constant 0 : index
    %396 = vector.load %arg20[%c33, %c0_278] : memref<128x128xf32, #tpu.memory_space<vmem>>, vector<77x128xf32>
    %397 = arith.truncf %396 : vector<77x128xf32> to vector<77x128xbf16>
    %c15_279 = arith.constant 15 : index
    %c0_280 = arith.constant 0 : index
    %c0_281 = arith.constant 0 : index
    %398 = vector.load %arg4[%c15_279, %c0_280, %c0_281] : memref<25x128x128xbf16, #tpu.memory_space<vmem>>, vector<1x128x128xbf16>
    %399 = vector.shape_cast %398 : vector<1x128x128xbf16> to vector<128x128xbf16>
    %cst_282 = arith.constant dense<0.000000e+00> : vector<77x128xf32>
    %400 = tpu.matmul %397, %399, %cst_282 {dimension_numbers = #tpu.dot_dimension_numbers<[1], [0], [0], [1], [0, 0, 1, 1], [], []>} : vector<77x128xbf16>, vector<128x128xbf16>, vector<77x128xf32> -> vector<77x128xf32>
    %401 = arith.addf %395, %400 : vector<77x128xf32>
    %c34_283 = arith.constant 34 : index
    %c0_284 = arith.constant 0 : index
    %402 = vector.load %arg20[%c34_283, %c0_284] : memref<128x128xf32, #tpu.memory_space<vmem>>, vector<77x128xf32>
    %403 = arith.truncf %402 : vector<77x128xf32> to vector<77x128xbf16>
    %c16 = arith.constant 16 : index
    %c0_285 = arith.constant 0 : index
    %c0_286 = arith.constant 0 : index
    %404 = vector.load %arg4[%c16, %c0_285, %c0_286] : memref<25x128x128xbf16, #tpu.memory_space<vmem>>, vector<1x128x128xbf16>
    %405 = vector.shape_cast %404 : vector<1x128x128xbf16> to vector<128x128xbf16>
    %cst_287 = arith.constant dense<0.000000e+00> : vector<77x128xf32>
    %406 = tpu.matmul %403, %405, %cst_287 {dimension_numbers = #tpu.dot_dimension_numbers<[1], [0], [0], [1], [0, 0, 1, 1], [], []>} : vector<77x128xbf16>, vector<128x128xbf16>, vector<77x128xf32> -> vector<77x128xf32>
    %407 = arith.addf %401, %406 : vector<77x128xf32>
    %c35_288 = arith.constant 35 : index
    %c0_289 = arith.constant 0 : index
    %408 = vector.load %arg20[%c35_288, %c0_289] : memref<128x128xf32, #tpu.memory_space<vmem>>, vector<77x128xf32>
    %409 = arith.truncf %408 : vector<77x128xf32> to vector<77x128xbf16>
    %c17_290 = arith.constant 17 : index
    %c0_291 = arith.constant 0 : index
    %c0_292 = arith.constant 0 : index
    %410 = vector.load %arg4[%c17_290, %c0_291, %c0_292] : memref<25x128x128xbf16, #tpu.memory_space<vmem>>, vector<1x128x128xbf16>
    %411 = vector.shape_cast %410 : vector<1x128x128xbf16> to vector<128x128xbf16>
    %cst_293 = arith.constant dense<0.000000e+00> : vector<77x128xf32>
    %412 = tpu.matmul %409, %411, %cst_293 {dimension_numbers = #tpu.dot_dimension_numbers<[1], [0], [0], [1], [0, 0, 1, 1], [], []>} : vector<77x128xbf16>, vector<128x128xbf16>, vector<77x128xf32> -> vector<77x128xf32>
    %413 = arith.addf %407, %412 : vector<77x128xf32>
    %c36_294 = arith.constant 36 : index
    %c0_295 = arith.constant 0 : index
    %414 = vector.load %arg20[%c36_294, %c0_295] : memref<128x128xf32, #tpu.memory_space<vmem>>, vector<77x128xf32>
    %415 = arith.truncf %414 : vector<77x128xf32> to vector<77x128xbf16>
    %c18_296 = arith.constant 18 : index
    %c0_297 = arith.constant 0 : index
    %c0_298 = arith.constant 0 : index
    %416 = vector.load %arg4[%c18_296, %c0_297, %c0_298] : memref<25x128x128xbf16, #tpu.memory_space<vmem>>, vector<1x128x128xbf16>
    %417 = vector.shape_cast %416 : vector<1x128x128xbf16> to vector<128x128xbf16>
    %cst_299 = arith.constant dense<0.000000e+00> : vector<77x128xf32>
    %418 = tpu.matmul %415, %417, %cst_299 {dimension_numbers = #tpu.dot_dimension_numbers<[1], [0], [0], [1], [0, 0, 1, 1], [], []>} : vector<77x128xbf16>, vector<128x128xbf16>, vector<77x128xf32> -> vector<77x128xf32>
    %419 = arith.addf %413, %418 : vector<77x128xf32>
    %c37_300 = arith.constant 37 : index
    %c0_301 = arith.constant 0 : index
    %420 = vector.load %arg20[%c37_300, %c0_301] : memref<128x128xf32, #tpu.memory_space<vmem>>, vector<77x128xf32>
    %421 = arith.truncf %420 : vector<77x128xf32> to vector<77x128xbf16>
    %c19_302 = arith.constant 19 : index
    %c0_303 = arith.constant 0 : index
    %c0_304 = arith.constant 0 : index
    %422 = vector.load %arg4[%c19_302, %c0_303, %c0_304] : memref<25x128x128xbf16, #tpu.memory_space<vmem>>, vector<1x128x128xbf16>
    %423 = vector.shape_cast %422 : vector<1x128x128xbf16> to vector<128x128xbf16>
    %cst_305 = arith.constant dense<0.000000e+00> : vector<77x128xf32>
    %424 = tpu.matmul %421, %423, %cst_305 {dimension_numbers = #tpu.dot_dimension_numbers<[1], [0], [0], [1], [0, 0, 1, 1], [], []>} : vector<77x128xbf16>, vector<128x128xbf16>, vector<77x128xf32> -> vector<77x128xf32>
    %425 = arith.addf %419, %424 : vector<77x128xf32>
    %c44 = arith.constant 44 : index
    %c0_306 = arith.constant 0 : index
    %426 = vector.load %arg20[%c44, %c0_306] : memref<128x128xf32, #tpu.memory_space<vmem>>, vector<77x128xf32>
    %427 = arith.truncf %426 : vector<77x128xf32> to vector<77x128xbf16>
    %c20 = arith.constant 20 : index
    %c0_307 = arith.constant 0 : index
    %c0_308 = arith.constant 0 : index
    %428 = vector.load %arg4[%c20, %c0_307, %c0_308] : memref<25x128x128xbf16, #tpu.memory_space<vmem>>, vector<1x128x128xbf16>
    %429 = vector.shape_cast %428 : vector<1x128x128xbf16> to vector<128x128xbf16>
    %cst_309 = arith.constant dense<0.000000e+00> : vector<77x128xf32>
    %430 = tpu.matmul %427, %429, %cst_309 {dimension_numbers = #tpu.dot_dimension_numbers<[1], [0], [0], [1], [0, 0, 1, 1], [], []>} : vector<77x128xbf16>, vector<128x128xbf16>, vector<77x128xf32> -> vector<77x128xf32>
    %431 = arith.addf %425, %430 : vector<77x128xf32>
    %c45 = arith.constant 45 : index
    %c0_310 = arith.constant 0 : index
    %432 = vector.load %arg20[%c45, %c0_310] : memref<128x128xf32, #tpu.memory_space<vmem>>, vector<77x128xf32>
    %433 = arith.truncf %432 : vector<77x128xf32> to vector<77x128xbf16>
    %c21 = arith.constant 21 : index
    %c0_311 = arith.constant 0 : index
    %c0_312 = arith.constant 0 : index
    %434 = vector.load %arg4[%c21, %c0_311, %c0_312] : memref<25x128x128xbf16, #tpu.memory_space<vmem>>, vector<1x128x128xbf16>
    %435 = vector.shape_cast %434 : vector<1x128x128xbf16> to vector<128x128xbf16>
    %cst_313 = arith.constant dense<0.000000e+00> : vector<77x128xf32>
    %436 = tpu.matmul %433, %435, %cst_313 {dimension_numbers = #tpu.dot_dimension_numbers<[1], [0], [0], [1], [0, 0, 1, 1], [], []>} : vector<77x128xbf16>, vector<128x128xbf16>, vector<77x128xf32> -> vector<77x128xf32>
    %437 = arith.addf %431, %436 : vector<77x128xf32>
    %c46_314 = arith.constant 46 : index
    %c0_315 = arith.constant 0 : index
    %438 = vector.load %arg20[%c46_314, %c0_315] : memref<128x128xf32, #tpu.memory_space<vmem>>, vector<77x128xf32>
    %439 = arith.truncf %438 : vector<77x128xf32> to vector<77x128xbf16>
    %c22_316 = arith.constant 22 : index
    %c0_317 = arith.constant 0 : index
    %c0_318 = arith.constant 0 : index
    %440 = vector.load %arg4[%c22_316, %c0_317, %c0_318] : memref<25x128x128xbf16, #tpu.memory_space<vmem>>, vector<1x128x128xbf16>
    %441 = vector.shape_cast %440 : vector<1x128x128xbf16> to vector<128x128xbf16>
    %cst_319 = arith.constant dense<0.000000e+00> : vector<77x128xf32>
    %442 = tpu.matmul %439, %441, %cst_319 {dimension_numbers = #tpu.dot_dimension_numbers<[1], [0], [0], [1], [0, 0, 1, 1], [], []>} : vector<77x128xbf16>, vector<128x128xbf16>, vector<77x128xf32> -> vector<77x128xf32>
    %443 = arith.addf %437, %442 : vector<77x128xf32>
    %c47_320 = arith.constant 47 : index
    %c0_321 = arith.constant 0 : index
    %444 = vector.load %arg20[%c47_320, %c0_321] : memref<128x128xf32, #tpu.memory_space<vmem>>, vector<77x128xf32>
    %445 = arith.truncf %444 : vector<77x128xf32> to vector<77x128xbf16>
    %c23_322 = arith.constant 23 : index
    %c0_323 = arith.constant 0 : index
    %c0_324 = arith.constant 0 : index
    %446 = vector.load %arg4[%c23_322, %c0_323, %c0_324] : memref<25x128x128xbf16, #tpu.memory_space<vmem>>, vector<1x128x128xbf16>
    %447 = vector.shape_cast %446 : vector<1x128x128xbf16> to vector<128x128xbf16>
    %cst_325 = arith.constant dense<0.000000e+00> : vector<77x128xf32>
    %448 = tpu.matmul %445, %447, %cst_325 {dimension_numbers = #tpu.dot_dimension_numbers<[1], [0], [0], [1], [0, 0, 1, 1], [], []>} : vector<77x128xbf16>, vector<128x128xbf16>, vector<77x128xf32> -> vector<77x128xf32>
    %449 = arith.addf %443, %448 : vector<77x128xf32>
    %c48_326 = arith.constant 48 : index
    %c0_327 = arith.constant 0 : index
    %450 = vector.load %arg20[%c48_326, %c0_327] : memref<128x128xf32, #tpu.memory_space<vmem>>, vector<77x128xf32>
    %451 = arith.truncf %450 : vector<77x128xf32> to vector<77x128xbf16>
    %c24_328 = arith.constant 24 : index
    %c0_329 = arith.constant 0 : index
    %c0_330 = arith.constant 0 : index
    %452 = vector.load %arg4[%c24_328, %c0_329, %c0_330] : memref<25x128x128xbf16, #tpu.memory_space<vmem>>, vector<1x128x128xbf16>
    %453 = vector.shape_cast %452 : vector<1x128x128xbf16> to vector<128x128xbf16>
    %cst_331 = arith.constant dense<0.000000e+00> : vector<77x128xf32>
    %454 = tpu.matmul %451, %453, %cst_331 {dimension_numbers = #tpu.dot_dimension_numbers<[1], [0], [0], [1], [0, 0, 1, 1], [], []>} : vector<77x128xbf16>, vector<128x128xbf16>, vector<77x128xf32> -> vector<77x128xf32>
    %455 = arith.addf %449, %454 : vector<77x128xf32>
    %c0_332 = arith.constant 0 : index
    %c0_333 = arith.constant 0 : index
    %456 = vector.load %arg5[%c0_332, %c0_333] : memref<1x128xf32, #tpu.memory_space<vmem>>, vector<1x128xf32>
    %457 = vector.broadcast %456 : vector<1x128xf32> to vector<77x128xf32>
    %458 = arith.addf %455, %457 : vector<77x128xf32>
    %cst_334 = arith.constant 0.000000e+00 : f32
    %459 = vector.broadcast %cst_334 : f32 to vector<77x128xf32>
    %460 = arith.maximumf %458, %459 : vector<77x128xf32>
    %c0_335 = arith.constant 0 : index
    %c0_336 = arith.constant 0 : index
    %461 = vector.load %arg19[%c0_335, %c0_336] : memref<256x128xf32, #tpu.memory_space<vmem>>, vector<77x128xf32>
    tpu.vector_store %arg19[%c0_335, %c0_336], %460 {strides = array<i32>} : memref<256x128xf32, #tpu.memory_space<vmem>>, vector<77x128xf32>,
    %c0_337 = arith.constant 0 : index
    %c0_338 = arith.constant 0 : index
    %462 = vector.load %arg19[%c0_337, %c0_338] : memref<256x128xf32, #tpu.memory_space<vmem>>, vector<7x128xf32>
    %c11_339 = arith.constant 11 : index
    %c0_340 = arith.constant 0 : index
    %463 = vector.load %arg19[%c11_339, %c0_340] : memref<256x128xf32, #tpu.memory_space<vmem>>, vector<7x128xf32>
    %464 = arith.maximumf %462, %463 : vector<7x128xf32>
    %c22_341 = arith.constant 22 : index
    %c0_342 = arith.constant 0 : index
    %465 = vector.load %arg19[%c22_341, %c0_342] : memref<256x128xf32, #tpu.memory_space<vmem>>, vector<7x128xf32>
    %466 = arith.maximumf %464, %465 : vector<7x128xf32>
    %467 = vector.extract_strided_slice %466 {offsets = [0, 0], sizes = [3, 128], strides = [1, 1]} : vector<7x128xf32> to vector<3x128xf32>
    %cst_343 = arith.constant dense<0xFF800000> : vector<128xf32>
    %468 = vector.multi_reduction <maximumf>, %467, %cst_343 [0] : vector<3x128xf32> to vector<128xf32>
    %469 = vector.shape_cast %468 : vector<128xf32> to vector<1x128xf32>
    %c6_344 = arith.constant 6 : index
    %c0_345 = arith.constant 0 : index
    %470 = vector.load %arg21[%c6_344, %c0_345] : memref<32x128xf32, #tpu.memory_space<vmem>>, vector<1x128xf32>
    tpu.vector_store %arg21[%c6_344, %c0_345], %469 {strides = array<i32>} : memref<32x128xf32, #tpu.memory_space<vmem>>, vector<1x128xf32>,
    %471 = vector.extract_strided_slice %466 {offsets = [2, 0], sizes = [3, 128], strides = [1, 1]} : vector<7x128xf32> to vector<3x128xf32>
    %cst_346 = arith.constant dense<0xFF800000> : vector<128xf32>
    %472 = vector.multi_reduction <maximumf>, %471, %cst_346 [0] : vector<3x128xf32> to vector<128xf32>
    %473 = vector.shape_cast %472 : vector<128xf32> to vector<1x128xf32>
    %c7_347 = arith.constant 7 : index
    %c0_348 = arith.constant 0 : index
    %474 = vector.load %arg21[%c7_347, %c0_348] : memref<32x128xf32, #tpu.memory_space<vmem>>, vector<1x128xf32>
    tpu.vector_store %arg21[%c7_347, %c0_348], %473 {strides = array<i32>} : memref<32x128xf32, #tpu.memory_space<vmem>>, vector<1x128xf32>,
    %475 = vector.extract_strided_slice %466 {offsets = [4, 0], sizes = [3, 128], strides = [1, 1]} : vector<7x128xf32> to vector<3x128xf32>
    %cst_349 = arith.constant dense<0xFF800000> : vector<128xf32>
    %476 = vector.multi_reduction <maximumf>, %475, %cst_349 [0] : vector<3x128xf32> to vector<128xf32>
    %477 = vector.shape_cast %476 : vector<128xf32> to vector<1x128xf32>
    %c8_350 = arith.constant 8 : index
    %c0_351 = arith.constant 0 : index
    %478 = vector.load %arg21[%c8_350, %c0_351] : memref<32x128xf32, #tpu.memory_space<vmem>>, vector<1x128xf32>
    tpu.vector_store %arg21[%c8_350, %c0_351], %477 {strides = array<i32>} : memref<32x128xf32, #tpu.memory_space<vmem>>, vector<1x128xf32>,
    %c22_352 = arith.constant 22 : index
    %c0_353 = arith.constant 0 : index
    %479 = vector.load %arg19[%c22_352, %c0_353] : memref<256x128xf32, #tpu.memory_space<vmem>>, vector<7x128xf32>
    %c33_354 = arith.constant 33 : index
    %c0_355 = arith.constant 0 : index
    %480 = vector.load %arg19[%c33_354, %c0_355] : memref<256x128xf32, #tpu.memory_space<vmem>>, vector<7x128xf32>
    %481 = arith.maximumf %479, %480 : vector<7x128xf32>
    %c44_356 = arith.constant 44 : index
    %c0_357 = arith.constant 0 : index
    %482 = vector.load %arg19[%c44_356, %c0_357] : memref<256x128xf32, #tpu.memory_space<vmem>>, vector<7x128xf32>
    %483 = arith.maximumf %481, %482 : vector<7x128xf32>
    %484 = vector.extract_strided_slice %483 {offsets = [0, 0], sizes = [3, 128], strides = [1, 1]} : vector<7x128xf32> to vector<3x128xf32>
    %cst_358 = arith.constant dense<0xFF800000> : vector<128xf32>
    %485 = vector.multi_reduction <maximumf>, %484, %cst_358 [0] : vector<3x128xf32> to vector<128xf32>
    %486 = vector.shape_cast %485 : vector<128xf32> to vector<1x128xf32>
    %c11_359 = arith.constant 11 : index
    %c0_360 = arith.constant 0 : index
    %487 = vector.load %arg21[%c11_359, %c0_360] : memref<32x128xf32, #tpu.memory_space<vmem>>, vector<1x128xf32>
    tpu.vector_store %arg21[%c11_359, %c0_360], %486 {strides = array<i32>} : memref<32x128xf32, #tpu.memory_space<vmem>>, vector<1x128xf32>,
    %488 = vector.extract_strided_slice %483 {offsets = [2, 0], sizes = [3, 128], strides = [1, 1]} : vector<7x128xf32> to vector<3x128xf32>
    %cst_361 = arith.constant dense<0xFF800000> : vector<128xf32>
    %489 = vector.multi_reduction <maximumf>, %488, %cst_361 [0] : vector<3x128xf32> to vector<128xf32>
    %490 = vector.shape_cast %489 : vector<128xf32> to vector<1x128xf32>
    %c12_362 = arith.constant 12 : index
    %c0_363 = arith.constant 0 : index
    %491 = vector.load %arg21[%c12_362, %c0_363] : memref<32x128xf32, #tpu.memory_space<vmem>>, vector<1x128xf32>
    tpu.vector_store %arg21[%c12_362, %c0_363], %490 {strides = array<i32>} : memref<32x128xf32, #tpu.memory_space<vmem>>, vector<1x128xf32>,
    %492 = vector.extract_strided_slice %483 {offsets = [4, 0], sizes = [3, 128], strides = [1, 1]} : vector<7x128xf32> to vector<3x128xf32>
    %cst_364 = arith.constant dense<0xFF800000> : vector<128xf32>
    %493 = vector.multi_reduction <maximumf>, %492, %cst_364 [0] : vector<3x128xf32> to vector<128xf32>
    %494 = vector.shape_cast %493 : vector<128xf32> to vector<1x128xf32>
    %c13_365 = arith.constant 13 : index
    %c0_366 = arith.constant 0 : index
    %495 = vector.load %arg21[%c13_365, %c0_366] : memref<32x128xf32, #tpu.memory_space<vmem>>, vector<1x128xf32>
    tpu.vector_store %arg21[%c13_365, %c0_366], %494 {strides = array<i32>} : memref<32x128xf32, #tpu.memory_space<vmem>>, vector<1x128xf32>,
    %c44_367 = arith.constant 44 : index
    %c0_368 = arith.constant 0 : index
    %496 = vector.load %arg19[%c44_367, %c0_368] : memref<256x128xf32, #tpu.memory_space<vmem>>, vector<7x128xf32>
    %c55 = arith.constant 55 : index
    %c0_369 = arith.constant 0 : index
    %497 = vector.load %arg19[%c55, %c0_369] : memref<256x128xf32, #tpu.memory_space<vmem>>, vector<7x128xf32>
    %498 = arith.maximumf %496, %497 : vector<7x128xf32>
    %c66 = arith.constant 66 : index
    %c0_370 = arith.constant 0 : index
    %499 = vector.load %arg19[%c66, %c0_370] : memref<256x128xf32, #tpu.memory_space<vmem>>, vector<7x128xf32>
    %500 = arith.maximumf %498, %499 : vector<7x128xf32>
    %501 = vector.extract_strided_slice %500 {offsets = [0, 0], sizes = [3, 128], strides = [1, 1]} : vector<7x128xf32> to vector<3x128xf32>
    %cst_371 = arith.constant dense<0xFF800000> : vector<128xf32>
    %502 = vector.multi_reduction <maximumf>, %501, %cst_371 [0] : vector<3x128xf32> to vector<128xf32>
    %503 = vector.shape_cast %502 : vector<128xf32> to vector<1x128xf32>
    %c16_372 = arith.constant 16 : index
    %c0_373 = arith.constant 0 : index
    %504 = vector.load %arg21[%c16_372, %c0_373] : memref<32x128xf32, #tpu.memory_space<vmem>>, vector<1x128xf32>
    tpu.vector_store %arg21[%c16_372, %c0_373], %503 {strides = array<i32>} : memref<32x128xf32, #tpu.memory_space<vmem>>, vector<1x128xf32>,
    %505 = vector.extract_strided_slice %500 {offsets = [2, 0], sizes = [3, 128], strides = [1, 1]} : vector<7x128xf32> to vector<3x128xf32>
    %cst_374 = arith.constant dense<0xFF800000> : vector<128xf32>
    %506 = vector.multi_reduction <maximumf>, %505, %cst_374 [0] : vector<3x128xf32> to vector<128xf32>
    %507 = vector.shape_cast %506 : vector<128xf32> to vector<1x128xf32>
    %c17_375 = arith.constant 17 : index
    %c0_376 = arith.constant 0 : index
    %508 = vector.load %arg21[%c17_375, %c0_376] : memref<32x128xf32, #tpu.memory_space<vmem>>, vector<1x128xf32>
    tpu.vector_store %arg21[%c17_375, %c0_376], %507 {strides = array<i32>} : memref<32x128xf32, #tpu.memory_space<vmem>>, vector<1x128xf32>,
    %509 = vector.extract_strided_slice %500 {offsets = [4, 0], sizes = [3, 128], strides = [1, 1]} : vector<7x128xf32> to vector<3x128xf32>
    %cst_377 = arith.constant dense<0xFF800000> : vector<128xf32>
    %510 = vector.multi_reduction <maximumf>, %509, %cst_377 [0] : vector<3x128xf32> to vector<128xf32>
    %511 = vector.shape_cast %510 : vector<128xf32> to vector<1x128xf32>
    %c18_378 = arith.constant 18 : index
    %c0_379 = arith.constant 0 : index
    %512 = vector.load %arg21[%c18_378, %c0_379] : memref<32x128xf32, #tpu.memory_space<vmem>>, vector<1x128xf32>
    tpu.vector_store %arg21[%c18_378, %c0_379], %511 {strides = array<i32>} : memref<32x128xf32, #tpu.memory_space<vmem>>, vector<1x128xf32>,
    %c0_380 = arith.constant 0 : index
    %c0_381 = arith.constant 0 : index
    %513 = vector.load %arg21[%c0_380, %c0_381] : memref<32x128xf32, #tpu.memory_space<vmem>>, vector<15x128xf32>
    %514 = arith.truncf %513 : vector<15x128xf32> to vector<15x128xbf16>
    %c0_382 = arith.constant 0 : index
    %c0_383 = arith.constant 0 : index
    %c0_384 = arith.constant 0 : index
    %515 = vector.load %arg6[%c0_382, %c0_383, %c0_384] : memref<9x128x128xbf16, #tpu.memory_space<vmem>>, vector<1x128x128xbf16>
    %516 = vector.shape_cast %515 : vector<1x128x128xbf16> to vector<128x128xbf16>
    %cst_385 = arith.constant dense<0.000000e+00> : vector<15x128xf32>
    %517 = tpu.matmul %514, %516, %cst_385 {dimension_numbers = #tpu.dot_dimension_numbers<[1], [0], [0], [1], [0, 0, 1, 1], [], []>} : vector<15x128xbf16>, vector<128x128xbf16>, vector<15x128xf32> -> vector<15x128xf32>
    %c1_386 = arith.constant 1 : index
    %c0_387 = arith.constant 0 : index
    %518 = vector.load %arg21[%c1_386, %c0_387] : memref<32x128xf32, #tpu.memory_space<vmem>>, vector<15x128xf32>
    %519 = arith.truncf %518 : vector<15x128xf32> to vector<15x128xbf16>
    %c1_388 = arith.constant 1 : index
    %c0_389 = arith.constant 0 : index
    %c0_390 = arith.constant 0 : index
    %520 = vector.load %arg6[%c1_388, %c0_389, %c0_390] : memref<9x128x128xbf16, #tpu.memory_space<vmem>>, vector<1x128x128xbf16>
    %521 = vector.shape_cast %520 : vector<1x128x128xbf16> to vector<128x128xbf16>
    %cst_391 = arith.constant dense<0.000000e+00> : vector<15x128xf32>
    %522 = tpu.matmul %519, %521, %cst_391 {dimension_numbers = #tpu.dot_dimension_numbers<[1], [0], [0], [1], [0, 0, 1, 1], [], []>} : vector<15x128xbf16>, vector<128x128xbf16>, vector<15x128xf32> -> vector<15x128xf32>
    %523 = arith.addf %517, %522 : vector<15x128xf32>
    %c2_392 = arith.constant 2 : index
    %c0_393 = arith.constant 0 : index
    %524 = vector.load %arg21[%c2_392, %c0_393] : memref<32x128xf32, #tpu.memory_space<vmem>>, vector<15x128xf32>
    %525 = arith.truncf %524 : vector<15x128xf32> to vector<15x128xbf16>
    %c2_394 = arith.constant 2 : index
    %c0_395 = arith.constant 0 : index
    %c0_396 = arith.constant 0 : index
    %526 = vector.load %arg6[%c2_394, %c0_395, %c0_396] : memref<9x128x128xbf16, #tpu.memory_space<vmem>>, vector<1x128x128xbf16>
    %527 = vector.shape_cast %526 : vector<1x128x128xbf16> to vector<128x128xbf16>
    %cst_397 = arith.constant dense<0.000000e+00> : vector<15x128xf32>
    %528 = tpu.matmul %525, %527, %cst_397 {dimension_numbers = #tpu.dot_dimension_numbers<[1], [0], [0], [1], [0, 0, 1, 1], [], []>} : vector<15x128xbf16>, vector<128x128xbf16>, vector<15x128xf32> -> vector<15x128xf32>
    %529 = arith.addf %523, %528 : vector<15x128xf32>
    %c5_398 = arith.constant 5 : index
    %c0_399 = arith.constant 0 : index
    %530 = vector.load %arg21[%c5_398, %c0_399] : memref<32x128xf32, #tpu.memory_space<vmem>>, vector<15x128xf32>
    %531 = arith.truncf %530 : vector<15x128xf32> to vector<15x128xbf16>
    %c3_400 = arith.constant 3 : index
    %c0_401 = arith.constant 0 : index
    %c0_402 = arith.constant 0 : index
    %532 = vector.load %arg6[%c3_400, %c0_401, %c0_402] : memref<9x128x128xbf16, #tpu.memory_space<vmem>>, vector<1x128x128xbf16>
    %533 = vector.shape_cast %532 : vector<1x128x128xbf16> to vector<128x128xbf16>
    %cst_403 = arith.constant dense<0.000000e+00> : vector<15x128xf32>
    %534 = tpu.matmul %531, %533, %cst_403 {dimension_numbers = #tpu.dot_dimension_numbers<[1], [0], [0], [1], [0, 0, 1, 1], [], []>} : vector<15x128xbf16>, vector<128x128xbf16>, vector<15x128xf32> -> vector<15x128xf32>
    %535 = arith.addf %529, %534 : vector<15x128xf32>
    %c6_404 = arith.constant 6 : index
    %c0_405 = arith.constant 0 : index
    %536 = vector.load %arg21[%c6_404, %c0_405] : memref<32x128xf32, #tpu.memory_space<vmem>>, vector<15x128xf32>
    %537 = arith.truncf %536 : vector<15x128xf32> to vector<15x128xbf16>
    %c4_406 = arith.constant 4 : index
    %c0_407 = arith.constant 0 : index
    %c0_408 = arith.constant 0 : index
    %538 = vector.load %arg6[%c4_406, %c0_407, %c0_408] : memref<9x128x128xbf16, #tpu.memory_space<vmem>>, vector<1x128x128xbf16>
    %539 = vector.shape_cast %538 : vector<1x128x128xbf16> to vector<128x128xbf16>
    %cst_409 = arith.constant dense<0.000000e+00> : vector<15x128xf32>
    %540 = tpu.matmul %537, %539, %cst_409 {dimension_numbers = #tpu.dot_dimension_numbers<[1], [0], [0], [1], [0, 0, 1, 1], [], []>} : vector<15x128xbf16>, vector<128x128xbf16>, vector<15x128xf32> -> vector<15x128xf32>
    %541 = arith.addf %535, %540 : vector<15x128xf32>
    %c7_410 = arith.constant 7 : index
    %c0_411 = arith.constant 0 : index
    %542 = vector.load %arg21[%c7_410, %c0_411] : memref<32x128xf32, #tpu.memory_space<vmem>>, vector<15x128xf32>
    %543 = arith.truncf %542 : vector<15x128xf32> to vector<15x128xbf16>
    %c5_412 = arith.constant 5 : index
    %c0_413 = arith.constant 0 : index
    %c0_414 = arith.constant 0 : index
    %544 = vector.load %arg6[%c5_412, %c0_413, %c0_414] : memref<9x128x128xbf16, #tpu.memory_space<vmem>>, vector<1x128x128xbf16>
    %545 = vector.shape_cast %544 : vector<1x128x128xbf16> to vector<128x128xbf16>
    %cst_415 = arith.constant dense<0.000000e+00> : vector<15x128xf32>
    %546 = tpu.matmul %543, %545, %cst_415 {dimension_numbers = #tpu.dot_dimension_numbers<[1], [0], [0], [1], [0, 0, 1, 1], [], []>} : vector<15x128xbf16>, vector<128x128xbf16>, vector<15x128xf32> -> vector<15x128xf32>
    %547 = arith.addf %541, %546 : vector<15x128xf32>
    %c10_416 = arith.constant 10 : index
    %c0_417 = arith.constant 0 : index
    %548 = vector.load %arg21[%c10_416, %c0_417] : memref<32x128xf32, #tpu.memory_space<vmem>>, vector<15x128xf32>
    %549 = arith.truncf %548 : vector<15x128xf32> to vector<15x128xbf16>
    %c6_418 = arith.constant 6 : index
    %c0_419 = arith.constant 0 : index
    %c0_420 = arith.constant 0 : index
    %550 = vector.load %arg6[%c6_418, %c0_419, %c0_420] : memref<9x128x128xbf16, #tpu.memory_space<vmem>>, vector<1x128x128xbf16>
    %551 = vector.shape_cast %550 : vector<1x128x128xbf16> to vector<128x128xbf16>
    %cst_421 = arith.constant dense<0.000000e+00> : vector<15x128xf32>
    %552 = tpu.matmul %549, %551, %cst_421 {dimension_numbers = #tpu.dot_dimension_numbers<[1], [0], [0], [1], [0, 0, 1, 1], [], []>} : vector<15x128xbf16>, vector<128x128xbf16>, vector<15x128xf32> -> vector<15x128xf32>
    %553 = arith.addf %547, %552 : vector<15x128xf32>
    %c11_422 = arith.constant 11 : index
    %c0_423 = arith.constant 0 : index
    %554 = vector.load %arg21[%c11_422, %c0_423] : memref<32x128xf32, #tpu.memory_space<vmem>>, vector<15x128xf32>
    %555 = arith.truncf %554 : vector<15x128xf32> to vector<15x128xbf16>
    %c7_424 = arith.constant 7 : index
    %c0_425 = arith.constant 0 : index
    %c0_426 = arith.constant 0 : index
    %556 = vector.load %arg6[%c7_424, %c0_425, %c0_426] : memref<9x128x128xbf16, #tpu.memory_space<vmem>>, vector<1x128x128xbf16>
    %557 = vector.shape_cast %556 : vector<1x128x128xbf16> to vector<128x128xbf16>
    %cst_427 = arith.constant dense<0.000000e+00> : vector<15x128xf32>
    %558 = tpu.matmul %555, %557, %cst_427 {dimension_numbers = #tpu.dot_dimension_numbers<[1], [0], [0], [1], [0, 0, 1, 1], [], []>} : vector<15x128xbf16>, vector<128x128xbf16>, vector<15x128xf32> -> vector<15x128xf32>
    %559 = arith.addf %553, %558 : vector<15x128xf32>
    %c12_428 = arith.constant 12 : index
    %c0_429 = arith.constant 0 : index
    %560 = vector.load %arg21[%c12_428, %c0_429] : memref<32x128xf32, #tpu.memory_space<vmem>>, vector<15x128xf32>
    %561 = arith.truncf %560 : vector<15x128xf32> to vector<15x128xbf16>
    %c8_430 = arith.constant 8 : index
    %c0_431 = arith.constant 0 : index
    %c0_432 = arith.constant 0 : index
    %562 = vector.load %arg6[%c8_430, %c0_431, %c0_432] : memref<9x128x128xbf16, #tpu.memory_space<vmem>>, vector<1x128x128xbf16>
    %563 = vector.shape_cast %562 : vector<1x128x128xbf16> to vector<128x128xbf16>
    %cst_433 = arith.constant dense<0.000000e+00> : vector<15x128xf32>
    %564 = tpu.matmul %561, %563, %cst_433 {dimension_numbers = #tpu.dot_dimension_numbers<[1], [0], [0], [1], [0, 0, 1, 1], [], []>} : vector<15x128xbf16>, vector<128x128xbf16>, vector<15x128xf32> -> vector<15x128xf32>
    %565 = arith.addf %559, %564 : vector<15x128xf32>
    %c0_434 = arith.constant 0 : index
    %c0_435 = arith.constant 0 : index
    %566 = vector.load %arg7[%c0_434, %c0_435] : memref<1x128xf32, #tpu.memory_space<vmem>>, vector<1x128xf32>
    %567 = vector.broadcast %566 : vector<1x128xf32> to vector<15x128xf32>
    %568 = arith.addf %565, %567 : vector<15x128xf32>
    %cst_436 = arith.constant 0.000000e+00 : f32
    %569 = vector.broadcast %cst_436 : f32 to vector<15x128xf32>
    %570 = arith.maximumf %568, %569 : vector<15x128xf32>
    %c0_437 = arith.constant 0 : index
    %c0_438 = arith.constant 0 : index
    %571 = vector.load %arg19[%c0_437, %c0_438] : memref<256x128xf32, #tpu.memory_space<vmem>>, vector<15x128xf32>
    tpu.vector_store %arg19[%c0_437, %c0_438], %570 {strides = array<i32>} : memref<256x128xf32, #tpu.memory_space<vmem>>, vector<15x128xf32>,
    %c0_439 = arith.constant 0 : index
    %c0_440 = arith.constant 0 : index
    %572 = vector.load %arg19[%c0_439, %c0_440] : memref<256x128xf32, #tpu.memory_space<vmem>>, vector<3x128xf32>
    %c6_441 = arith.constant 6 : index
    %c0_442 = arith.constant 0 : index
    %573 = vector.load %arg22[%c6_441, %c0_442] : memref<32x128xf32, #tpu.memory_space<vmem>>, vector<3x128xf32>
    tpu.vector_store %arg22[%c6_441, %c0_442], %572 {strides = array<i32>} : memref<32x128xf32, #tpu.memory_space<vmem>>, vector<3x128xf32>,
    %c5_443 = arith.constant 5 : index
    %c0_444 = arith.constant 0 : index
    %574 = vector.load %arg19[%c5_443, %c0_444] : memref<256x128xf32, #tpu.memory_space<vmem>>, vector<3x128xf32>
    %c11_445 = arith.constant 11 : index
    %c0_446 = arith.constant 0 : index
    %575 = vector.load %arg22[%c11_445, %c0_446] : memref<32x128xf32, #tpu.memory_space<vmem>>, vector<3x128xf32>
    tpu.vector_store %arg22[%c11_445, %c0_446], %574 {strides = array<i32>} : memref<32x128xf32, #tpu.memory_space<vmem>>, vector<3x128xf32>,
    %c10_447 = arith.constant 10 : index
    %c0_448 = arith.constant 0 : index
    %576 = vector.load %arg19[%c10_447, %c0_448] : memref<256x128xf32, #tpu.memory_space<vmem>>, vector<3x128xf32>
    %c16_449 = arith.constant 16 : index
    %c0_450 = arith.constant 0 : index
    %577 = vector.load %arg22[%c16_449, %c0_450] : memref<32x128xf32, #tpu.memory_space<vmem>>, vector<3x128xf32>
    tpu.vector_store %arg22[%c16_449, %c0_450], %576 {strides = array<i32>} : memref<32x128xf32, #tpu.memory_space<vmem>>, vector<3x128xf32>,
    %c0_451 = arith.constant 0 : index
    %c0_452 = arith.constant 0 : index
    %578 = vector.load %arg22[%c0_451, %c0_452] : memref<32x128xf32, #tpu.memory_space<vmem>>, vector<15x128xf32>
    %579 = arith.truncf %578 : vector<15x128xf32> to vector<15x128xbf16>
    %c0_453 = arith.constant 0 : index
    %c0_454 = arith.constant 0 : index
    %c0_455 = arith.constant 0 : index
    %580 = vector.load %arg8[%c0_453, %c0_454, %c0_455] : memref<9x128x128xbf16, #tpu.memory_space<vmem>>, vector<1x128x128xbf16>
    %581 = vector.shape_cast %580 : vector<1x128x128xbf16> to vector<128x128xbf16>
    %cst_456 = arith.constant dense<0.000000e+00> : vector<15x128xf32>
    %582 = tpu.matmul %579, %581, %cst_456 {dimension_numbers = #tpu.dot_dimension_numbers<[1], [0], [0], [1], [0, 0, 1, 1], [], []>} : vector<15x128xbf16>, vector<128x128xbf16>, vector<15x128xf32> -> vector<15x128xf32>
    %c1_457 = arith.constant 1 : index
    %c0_458 = arith.constant 0 : index
    %583 = vector.load %arg22[%c1_457, %c0_458] : memref<32x128xf32, #tpu.memory_space<vmem>>, vector<15x128xf32>
    %584 = arith.truncf %583 : vector<15x128xf32> to vector<15x128xbf16>
    %c1_459 = arith.constant 1 : index
    %c0_460 = arith.constant 0 : index
    %c0_461 = arith.constant 0 : index
    %585 = vector.load %arg8[%c1_459, %c0_460, %c0_461] : memref<9x128x128xbf16, #tpu.memory_space<vmem>>, vector<1x128x128xbf16>
    %586 = vector.shape_cast %585 : vector<1x128x128xbf16> to vector<128x128xbf16>
    %cst_462 = arith.constant dense<0.000000e+00> : vector<15x128xf32>
    %587 = tpu.matmul %584, %586, %cst_462 {dimension_numbers = #tpu.dot_dimension_numbers<[1], [0], [0], [1], [0, 0, 1, 1], [], []>} : vector<15x128xbf16>, vector<128x128xbf16>, vector<15x128xf32> -> vector<15x128xf32>
    %588 = arith.addf %582, %587 : vector<15x128xf32>
    %c2_463 = arith.constant 2 : index
    %c0_464 = arith.constant 0 : index
    %589 = vector.load %arg22[%c2_463, %c0_464] : memref<32x128xf32, #tpu.memory_space<vmem>>, vector<15x128xf32>
    %590 = arith.truncf %589 : vector<15x128xf32> to vector<15x128xbf16>
    %c2_465 = arith.constant 2 : index
    %c0_466 = arith.constant 0 : index
    %c0_467 = arith.constant 0 : index
    %591 = vector.load %arg8[%c2_465, %c0_466, %c0_467] : memref<9x128x128xbf16, #tpu.memory_space<vmem>>, vector<1x128x128xbf16>
    %592 = vector.shape_cast %591 : vector<1x128x128xbf16> to vector<128x128xbf16>
    %cst_468 = arith.constant dense<0.000000e+00> : vector<15x128xf32>
    %593 = tpu.matmul %590, %592, %cst_468 {dimension_numbers = #tpu.dot_dimension_numbers<[1], [0], [0], [1], [0, 0, 1, 1], [], []>} : vector<15x128xbf16>, vector<128x128xbf16>, vector<15x128xf32> -> vector<15x128xf32>
    %594 = arith.addf %588, %593 : vector<15x128xf32>
    %c5_469 = arith.constant 5 : index
    %c0_470 = arith.constant 0 : index
    %595 = vector.load %arg22[%c5_469, %c0_470] : memref<32x128xf32, #tpu.memory_space<vmem>>, vector<15x128xf32>
    %596 = arith.truncf %595 : vector<15x128xf32> to vector<15x128xbf16>
    %c3_471 = arith.constant 3 : index
    %c0_472 = arith.constant 0 : index
    %c0_473 = arith.constant 0 : index
    %597 = vector.load %arg8[%c3_471, %c0_472, %c0_473] : memref<9x128x128xbf16, #tpu.memory_space<vmem>>, vector<1x128x128xbf16>
    %598 = vector.shape_cast %597 : vector<1x128x128xbf16> to vector<128x128xbf16>
    %cst_474 = arith.constant dense<0.000000e+00> : vector<15x128xf32>
    %599 = tpu.matmul %596, %598, %cst_474 {dimension_numbers = #tpu.dot_dimension_numbers<[1], [0], [0], [1], [0, 0, 1, 1], [], []>} : vector<15x128xbf16>, vector<128x128xbf16>, vector<15x128xf32> -> vector<15x128xf32>
    %600 = arith.addf %594, %599 : vector<15x128xf32>
    %c6_475 = arith.constant 6 : index
    %c0_476 = arith.constant 0 : index
    %601 = vector.load %arg22[%c6_475, %c0_476] : memref<32x128xf32, #tpu.memory_space<vmem>>, vector<15x128xf32>
    %602 = arith.truncf %601 : vector<15x128xf32> to vector<15x128xbf16>
    %c4_477 = arith.constant 4 : index
    %c0_478 = arith.constant 0 : index
    %c0_479 = arith.constant 0 : index
    %603 = vector.load %arg8[%c4_477, %c0_478, %c0_479] : memref<9x128x128xbf16, #tpu.memory_space<vmem>>, vector<1x128x128xbf16>
    %604 = vector.shape_cast %603 : vector<1x128x128xbf16> to vector<128x128xbf16>
    %cst_480 = arith.constant dense<0.000000e+00> : vector<15x128xf32>
    %605 = tpu.matmul %602, %604, %cst_480 {dimension_numbers = #tpu.dot_dimension_numbers<[1], [0], [0], [1], [0, 0, 1, 1], [], []>} : vector<15x128xbf16>, vector<128x128xbf16>, vector<15x128xf32> -> vector<15x128xf32>
    %606 = arith.addf %600, %605 : vector<15x128xf32>
    %c7_481 = arith.constant 7 : index
    %c0_482 = arith.constant 0 : index
    %607 = vector.load %arg22[%c7_481, %c0_482] : memref<32x128xf32, #tpu.memory_space<vmem>>, vector<15x128xf32>
    %608 = arith.truncf %607 : vector<15x128xf32> to vector<15x128xbf16>
    %c5_483 = arith.constant 5 : index
    %c0_484 = arith.constant 0 : index
    %c0_485 = arith.constant 0 : index
    %609 = vector.load %arg8[%c5_483, %c0_484, %c0_485] : memref<9x128x128xbf16, #tpu.memory_space<vmem>>, vector<1x128x128xbf16>
    %610 = vector.shape_cast %609 : vector<1x128x128xbf16> to vector<128x128xbf16>
    %cst_486 = arith.constant dense<0.000000e+00> : vector<15x128xf32>
    %611 = tpu.matmul %608, %610, %cst_486 {dimension_numbers = #tpu.dot_dimension_numbers<[1], [0], [0], [1], [0, 0, 1, 1], [], []>} : vector<15x128xbf16>, vector<128x128xbf16>, vector<15x128xf32> -> vector<15x128xf32>
    %612 = arith.addf %606, %611 : vector<15x128xf32>
    %c10_487 = arith.constant 10 : index
    %c0_488 = arith.constant 0 : index
    %613 = vector.load %arg22[%c10_487, %c0_488] : memref<32x128xf32, #tpu.memory_space<vmem>>, vector<15x128xf32>
    %614 = arith.truncf %613 : vector<15x128xf32> to vector<15x128xbf16>
    %c6_489 = arith.constant 6 : index
    %c0_490 = arith.constant 0 : index
    %c0_491 = arith.constant 0 : index
    %615 = vector.load %arg8[%c6_489, %c0_490, %c0_491] : memref<9x128x128xbf16, #tpu.memory_space<vmem>>, vector<1x128x128xbf16>
    %616 = vector.shape_cast %615 : vector<1x128x128xbf16> to vector<128x128xbf16>
    %cst_492 = arith.constant dense<0.000000e+00> : vector<15x128xf32>
    %617 = tpu.matmul %614, %616, %cst_492 {dimension_numbers = #tpu.dot_dimension_numbers<[1], [0], [0], [1], [0, 0, 1, 1], [], []>} : vector<15x128xbf16>, vector<128x128xbf16>, vector<15x128xf32> -> vector<15x128xf32>
    %618 = arith.addf %612, %617 : vector<15x128xf32>
    %c11_493 = arith.constant 11 : index
    %c0_494 = arith.constant 0 : index
    %619 = vector.load %arg22[%c11_493, %c0_494] : memref<32x128xf32, #tpu.memory_space<vmem>>, vector<15x128xf32>
    %620 = arith.truncf %619 : vector<15x128xf32> to vector<15x128xbf16>
    %c7_495 = arith.constant 7 : index
    %c0_496 = arith.constant 0 : index
    %c0_497 = arith.constant 0 : index
    %621 = vector.load %arg8[%c7_495, %c0_496, %c0_497] : memref<9x128x128xbf16, #tpu.memory_space<vmem>>, vector<1x128x128xbf16>
    %622 = vector.shape_cast %621 : vector<1x128x128xbf16> to vector<128x128xbf16>
    %cst_498 = arith.constant dense<0.000000e+00> : vector<15x128xf32>
    %623 = tpu.matmul %620, %622, %cst_498 {dimension_numbers = #tpu.dot_dimension_numbers<[1], [0], [0], [1], [0, 0, 1, 1], [], []>} : vector<15x128xbf16>, vector<128x128xbf16>, vector<15x128xf32> -> vector<15x128xf32>
    %624 = arith.addf %618, %623 : vector<15x128xf32>
    %c12_499 = arith.constant 12 : index
    %c0_500 = arith.constant 0 : index
    %625 = vector.load %arg22[%c12_499, %c0_500] : memref<32x128xf32, #tpu.memory_space<vmem>>, vector<15x128xf32>
    %626 = arith.truncf %625 : vector<15x128xf32> to vector<15x128xbf16>
    %c8_501 = arith.constant 8 : index
    %c0_502 = arith.constant 0 : index
    %c0_503 = arith.constant 0 : index
    %627 = vector.load %arg8[%c8_501, %c0_502, %c0_503] : memref<9x128x128xbf16, #tpu.memory_space<vmem>>, vector<1x128x128xbf16>
    %628 = vector.shape_cast %627 : vector<1x128x128xbf16> to vector<128x128xbf16>
    %cst_504 = arith.constant dense<0.000000e+00> : vector<15x128xf32>
    %629 = tpu.matmul %626, %628, %cst_504 {dimension_numbers = #tpu.dot_dimension_numbers<[1], [0], [0], [1], [0, 0, 1, 1], [], []>} : vector<15x128xbf16>, vector<128x128xbf16>, vector<15x128xf32> -> vector<15x128xf32>
    %630 = arith.addf %624, %629 : vector<15x128xf32>
    %c0_505 = arith.constant 0 : index
    %c0_506 = arith.constant 0 : index
    %631 = vector.load %arg9[%c0_505, %c0_506] : memref<1x128xf32, #tpu.memory_space<vmem>>, vector<1x128xf32>
    %632 = vector.broadcast %631 : vector<1x128xf32> to vector<15x128xf32>
    %633 = arith.addf %630, %632 : vector<15x128xf32>
    %cst_507 = arith.constant 0.000000e+00 : f32
    %634 = vector.broadcast %cst_507 : f32 to vector<15x128xf32>
    %635 = arith.maximumf %633, %634 : vector<15x128xf32>
    %c0_508 = arith.constant 0 : index
    %c0_509 = arith.constant 0 : index
    %636 = vector.load %arg19[%c0_508, %c0_509] : memref<256x128xf32, #tpu.memory_space<vmem>>, vector<15x128xf32>
    tpu.vector_store %arg19[%c0_508, %c0_509], %635 {strides = array<i32>} : memref<256x128xf32, #tpu.memory_space<vmem>>, vector<15x128xf32>,
    %c0_510 = arith.constant 0 : index
    %c0_511 = arith.constant 0 : index
    %637 = vector.load %arg19[%c0_510, %c0_511] : memref<256x128xf32, #tpu.memory_space<vmem>>, vector<3x128xf32>
    %c6_512 = arith.constant 6 : index
    %c0_513 = arith.constant 0 : index
    %638 = vector.load %arg23[%c6_512, %c0_513] : memref<32x128xf32, #tpu.memory_space<vmem>>, vector<3x128xf32>
    tpu.vector_store %arg23[%c6_512, %c0_513], %637 {strides = array<i32>} : memref<32x128xf32, #tpu.memory_space<vmem>>, vector<3x128xf32>,
    %c5_514 = arith.constant 5 : index
    %c0_515 = arith.constant 0 : index
    %639 = vector.load %arg19[%c5_514, %c0_515] : memref<256x128xf32, #tpu.memory_space<vmem>>, vector<3x128xf32>
    %c11_516 = arith.constant 11 : index
    %c0_517 = arith.constant 0 : index
    %640 = vector.load %arg23[%c11_516, %c0_517] : memref<32x128xf32, #tpu.memory_space<vmem>>, vector<3x128xf32>
    tpu.vector_store %arg23[%c11_516, %c0_517], %639 {strides = array<i32>} : memref<32x128xf32, #tpu.memory_space<vmem>>, vector<3x128xf32>,
    %c10_518 = arith.constant 10 : index
    %c0_519 = arith.constant 0 : index
    %641 = vector.load %arg19[%c10_518, %c0_519] : memref<256x128xf32, #tpu.memory_space<vmem>>, vector<3x128xf32>
    %c16_520 = arith.constant 16 : index
    %c0_521 = arith.constant 0 : index
    %642 = vector.load %arg23[%c16_520, %c0_521] : memref<32x128xf32, #tpu.memory_space<vmem>>, vector<3x128xf32>
    tpu.vector_store %arg23[%c16_520, %c0_521], %641 {strides = array<i32>} : memref<32x128xf32, #tpu.memory_space<vmem>>, vector<3x128xf32>,
    %c0_522 = arith.constant 0 : index
    %c0_523 = arith.constant 0 : index
    %643 = vector.load %arg23[%c0_522, %c0_523] : memref<32x128xf32, #tpu.memory_space<vmem>>, vector<15x128xf32>
    %644 = arith.truncf %643 : vector<15x128xf32> to vector<15x128xbf16>
    %c0_524 = arith.constant 0 : index
    %c0_525 = arith.constant 0 : index
    %c0_526 = arith.constant 0 : index
    %645 = vector.load %arg10[%c0_524, %c0_525, %c0_526] : memref<9x128x128xbf16, #tpu.memory_space<vmem>>, vector<1x128x128xbf16>
    %646 = vector.shape_cast %645 : vector<1x128x128xbf16> to vector<128x128xbf16>
    %cst_527 = arith.constant dense<0.000000e+00> : vector<15x128xf32>
    %647 = tpu.matmul %644, %646, %cst_527 {dimension_numbers = #tpu.dot_dimension_numbers<[1], [0], [0], [1], [0, 0, 1, 1], [], []>} : vector<15x128xbf16>, vector<128x128xbf16>, vector<15x128xf32> -> vector<15x128xf32>
    %c1_528 = arith.constant 1 : index
    %c0_529 = arith.constant 0 : index
    %648 = vector.load %arg23[%c1_528, %c0_529] : memref<32x128xf32, #tpu.memory_space<vmem>>, vector<15x128xf32>
    %649 = arith.truncf %648 : vector<15x128xf32> to vector<15x128xbf16>
    %c1_530 = arith.constant 1 : index
    %c0_531 = arith.constant 0 : index
    %c0_532 = arith.constant 0 : index
    %650 = vector.load %arg10[%c1_530, %c0_531, %c0_532] : memref<9x128x128xbf16, #tpu.memory_space<vmem>>, vector<1x128x128xbf16>
    %651 = vector.shape_cast %650 : vector<1x128x128xbf16> to vector<128x128xbf16>
    %cst_533 = arith.constant dense<0.000000e+00> : vector<15x128xf32>
    %652 = tpu.matmul %649, %651, %cst_533 {dimension_numbers = #tpu.dot_dimension_numbers<[1], [0], [0], [1], [0, 0, 1, 1], [], []>} : vector<15x128xbf16>, vector<128x128xbf16>, vector<15x128xf32> -> vector<15x128xf32>
    %653 = arith.addf %647, %652 : vector<15x128xf32>
    %c2_534 = arith.constant 2 : index
    %c0_535 = arith.constant 0 : index
    %654 = vector.load %arg23[%c2_534, %c0_535] : memref<32x128xf32, #tpu.memory_space<vmem>>, vector<15x128xf32>
    %655 = arith.truncf %654 : vector<15x128xf32> to vector<15x128xbf16>
    %c2_536 = arith.constant 2 : index
    %c0_537 = arith.constant 0 : index
    %c0_538 = arith.constant 0 : index
    %656 = vector.load %arg10[%c2_536, %c0_537, %c0_538] : memref<9x128x128xbf16, #tpu.memory_space<vmem>>, vector<1x128x128xbf16>
    %657 = vector.shape_cast %656 : vector<1x128x128xbf16> to vector<128x128xbf16>
    %cst_539 = arith.constant dense<0.000000e+00> : vector<15x128xf32>
    %658 = tpu.matmul %655, %657, %cst_539 {dimension_numbers = #tpu.dot_dimension_numbers<[1], [0], [0], [1], [0, 0, 1, 1], [], []>} : vector<15x128xbf16>, vector<128x128xbf16>, vector<15x128xf32> -> vector<15x128xf32>
    %659 = arith.addf %653, %658 : vector<15x128xf32>
    %c5_540 = arith.constant 5 : index
    %c0_541 = arith.constant 0 : index
    %660 = vector.load %arg23[%c5_540, %c0_541] : memref<32x128xf32, #tpu.memory_space<vmem>>, vector<15x128xf32>
    %661 = arith.truncf %660 : vector<15x128xf32> to vector<15x128xbf16>
    %c3_542 = arith.constant 3 : index
    %c0_543 = arith.constant 0 : index
    %c0_544 = arith.constant 0 : index
    %662 = vector.load %arg10[%c3_542, %c0_543, %c0_544] : memref<9x128x128xbf16, #tpu.memory_space<vmem>>, vector<1x128x128xbf16>
    %663 = vector.shape_cast %662 : vector<1x128x128xbf16> to vector<128x128xbf16>
    %cst_545 = arith.constant dense<0.000000e+00> : vector<15x128xf32>
    %664 = tpu.matmul %661, %663, %cst_545 {dimension_numbers = #tpu.dot_dimension_numbers<[1], [0], [0], [1], [0, 0, 1, 1], [], []>} : vector<15x128xbf16>, vector<128x128xbf16>, vector<15x128xf32> -> vector<15x128xf32>
    %665 = arith.addf %659, %664 : vector<15x128xf32>
    %c6_546 = arith.constant 6 : index
    %c0_547 = arith.constant 0 : index
    %666 = vector.load %arg23[%c6_546, %c0_547] : memref<32x128xf32, #tpu.memory_space<vmem>>, vector<15x128xf32>
    %667 = arith.truncf %666 : vector<15x128xf32> to vector<15x128xbf16>
    %c4_548 = arith.constant 4 : index
    %c0_549 = arith.constant 0 : index
    %c0_550 = arith.constant 0 : index
    %668 = vector.load %arg10[%c4_548, %c0_549, %c0_550] : memref<9x128x128xbf16, #tpu.memory_space<vmem>>, vector<1x128x128xbf16>
    %669 = vector.shape_cast %668 : vector<1x128x128xbf16> to vector<128x128xbf16>
    %cst_551 = arith.constant dense<0.000000e+00> : vector<15x128xf32>
    %670 = tpu.matmul %667, %669, %cst_551 {dimension_numbers = #tpu.dot_dimension_numbers<[1], [0], [0], [1], [0, 0, 1, 1], [], []>} : vector<15x128xbf16>, vector<128x128xbf16>, vector<15x128xf32> -> vector<15x128xf32>
    %671 = arith.addf %665, %670 : vector<15x128xf32>
    %c7_552 = arith.constant 7 : index
    %c0_553 = arith.constant 0 : index
    %672 = vector.load %arg23[%c7_552, %c0_553] : memref<32x128xf32, #tpu.memory_space<vmem>>, vector<15x128xf32>
    %673 = arith.truncf %672 : vector<15x128xf32> to vector<15x128xbf16>
    %c5_554 = arith.constant 5 : index
    %c0_555 = arith.constant 0 : index
    %c0_556 = arith.constant 0 : index
    %674 = vector.load %arg10[%c5_554, %c0_555, %c0_556] : memref<9x128x128xbf16, #tpu.memory_space<vmem>>, vector<1x128x128xbf16>
    %675 = vector.shape_cast %674 : vector<1x128x128xbf16> to vector<128x128xbf16>
    %cst_557 = arith.constant dense<0.000000e+00> : vector<15x128xf32>
    %676 = tpu.matmul %673, %675, %cst_557 {dimension_numbers = #tpu.dot_dimension_numbers<[1], [0], [0], [1], [0, 0, 1, 1], [], []>} : vector<15x128xbf16>, vector<128x128xbf16>, vector<15x128xf32> -> vector<15x128xf32>
    %677 = arith.addf %671, %676 : vector<15x128xf32>
    %c10_558 = arith.constant 10 : index
    %c0_559 = arith.constant 0 : index
    %678 = vector.load %arg23[%c10_558, %c0_559] : memref<32x128xf32, #tpu.memory_space<vmem>>, vector<15x128xf32>
    %679 = arith.truncf %678 : vector<15x128xf32> to vector<15x128xbf16>
    %c6_560 = arith.constant 6 : index
    %c0_561 = arith.constant 0 : index
    %c0_562 = arith.constant 0 : index
    %680 = vector.load %arg10[%c6_560, %c0_561, %c0_562] : memref<9x128x128xbf16, #tpu.memory_space<vmem>>, vector<1x128x128xbf16>
    %681 = vector.shape_cast %680 : vector<1x128x128xbf16> to vector<128x128xbf16>
    %cst_563 = arith.constant dense<0.000000e+00> : vector<15x128xf32>
    %682 = tpu.matmul %679, %681, %cst_563 {dimension_numbers = #tpu.dot_dimension_numbers<[1], [0], [0], [1], [0, 0, 1, 1], [], []>} : vector<15x128xbf16>, vector<128x128xbf16>, vector<15x128xf32> -> vector<15x128xf32>
    %683 = arith.addf %677, %682 : vector<15x128xf32>
    %c11_564 = arith.constant 11 : index
    %c0_565 = arith.constant 0 : index
    %684 = vector.load %arg23[%c11_564, %c0_565] : memref<32x128xf32, #tpu.memory_space<vmem>>, vector<15x128xf32>
    %685 = arith.truncf %684 : vector<15x128xf32> to vector<15x128xbf16>
    %c7_566 = arith.constant 7 : index
    %c0_567 = arith.constant 0 : index
    %c0_568 = arith.constant 0 : index
    %686 = vector.load %arg10[%c7_566, %c0_567, %c0_568] : memref<9x128x128xbf16, #tpu.memory_space<vmem>>, vector<1x128x128xbf16>
    %687 = vector.shape_cast %686 : vector<1x128x128xbf16> to vector<128x128xbf16>
    %cst_569 = arith.constant dense<0.000000e+00> : vector<15x128xf32>
    %688 = tpu.matmul %685, %687, %cst_569 {dimension_numbers = #tpu.dot_dimension_numbers<[1], [0], [0], [1], [0, 0, 1, 1], [], []>} : vector<15x128xbf16>, vector<128x128xbf16>, vector<15x128xf32> -> vector<15x128xf32>
    %689 = arith.addf %683, %688 : vector<15x128xf32>
    %c12_570 = arith.constant 12 : index
    %c0_571 = arith.constant 0 : index
    %690 = vector.load %arg23[%c12_570, %c0_571] : memref<32x128xf32, #tpu.memory_space<vmem>>, vector<15x128xf32>
    %691 = arith.truncf %690 : vector<15x128xf32> to vector<15x128xbf16>
    %c8_572 = arith.constant 8 : index
    %c0_573 = arith.constant 0 : index
    %c0_574 = arith.constant 0 : index
    %692 = vector.load %arg10[%c8_572, %c0_573, %c0_574] : memref<9x128x128xbf16, #tpu.memory_space<vmem>>, vector<1x128x128xbf16>
    %693 = vector.shape_cast %692 : vector<1x128x128xbf16> to vector<128x128xbf16>
    %cst_575 = arith.constant dense<0.000000e+00> : vector<15x128xf32>
    %694 = tpu.matmul %691, %693, %cst_575 {dimension_numbers = #tpu.dot_dimension_numbers<[1], [0], [0], [1], [0, 0, 1, 1], [], []>} : vector<15x128xbf16>, vector<128x128xbf16>, vector<15x128xf32> -> vector<15x128xf32>
    %695 = arith.addf %689, %694 : vector<15x128xf32>
    %c0_576 = arith.constant 0 : index
    %c0_577 = arith.constant 0 : index
    %696 = vector.load %arg11[%c0_576, %c0_577] : memref<1x128xf32, #tpu.memory_space<vmem>>, vector<1x128xf32>
    %697 = vector.broadcast %696 : vector<1x128xf32> to vector<15x128xf32>
    %698 = arith.addf %695, %697 : vector<15x128xf32>
    %cst_578 = arith.constant 0.000000e+00 : f32
    %699 = vector.broadcast %cst_578 : f32 to vector<15x128xf32>
    %700 = arith.maximumf %698, %699 : vector<15x128xf32>
    %c0_579 = arith.constant 0 : index
    %c0_580 = arith.constant 0 : index
    %701 = vector.load %arg19[%c0_579, %c0_580] : memref<256x128xf32, #tpu.memory_space<vmem>>, vector<15x128xf32>
    tpu.vector_store %arg19[%c0_579, %c0_580], %700 {strides = array<i32>} : memref<256x128xf32, #tpu.memory_space<vmem>>, vector<15x128xf32>,
    %c0_581 = arith.constant 0 : index
    %c0_582 = arith.constant 0 : index
    %702 = vector.load %arg19[%c0_581, %c0_582] : memref<256x128xf32, #tpu.memory_space<vmem>>, vector<3x128xf32>
    %c5_583 = arith.constant 5 : index
    %c0_584 = arith.constant 0 : index
    %703 = vector.load %arg19[%c5_583, %c0_584] : memref<256x128xf32, #tpu.memory_space<vmem>>, vector<3x128xf32>
    %704 = arith.maximumf %702, %703 : vector<3x128xf32>
    %c10_585 = arith.constant 10 : index
    %c0_586 = arith.constant 0 : index
    %705 = vector.load %arg19[%c10_585, %c0_586] : memref<256x128xf32, #tpu.memory_space<vmem>>, vector<3x128xf32>
    %706 = arith.maximumf %704, %705 : vector<3x128xf32>
    %cst_587 = arith.constant dense<0xFF800000> : vector<128xf32>
    %707 = vector.multi_reduction <maximumf>, %706, %cst_587 [0] : vector<3x128xf32> to vector<128xf32>
    %708 = vector.shape_cast %707 : vector<128xf32> to vector<1x128xf32>
    %709 = vector.shape_cast %708 : vector<1x128xf32> to vector<1x128xf32>
    %710 = vector.broadcast %709 : vector<1x128xf32> to vector<8x128xf32>
    %711 = arith.truncf %710 : vector<8x128xf32> to vector<8x128xbf16>
    %c0_588 = arith.constant 0 : index
    %c0_589 = arith.constant 0 : index
    %712 = vector.load %arg12[%c0_588, %c0_589] : memref<128x128xbf16, #tpu.memory_space<vmem>>, vector<128x128xbf16>
    %cst_590 = arith.constant dense<0.000000e+00> : vector<8x128xf32>
    %713 = tpu.matmul %711, %712, %cst_590 {dimension_numbers = #tpu.dot_dimension_numbers<[1], [0], [0], [1], [0, 0, 1, 1], [], []>} : vector<8x128xbf16>, vector<128x128xbf16>, vector<8x128xf32> -> vector<8x128xf32>
    %c0_591 = arith.constant 0 : index
    %c0_592 = arith.constant 0 : index
    %714 = vector.load %arg13[%c0_591, %c0_592] : memref<1x128xf32, #tpu.memory_space<vmem>>, vector<1x128xf32>
    %715 = vector.broadcast %714 : vector<1x128xf32> to vector<8x128xf32>
    %716 = arith.addf %713, %715 : vector<8x128xf32>
    %cst_593 = arith.constant 0.000000e+00 : f32
    %717 = vector.broadcast %cst_593 : f32 to vector<8x128xf32>
    %718 = arith.maximumf %716, %717 : vector<8x128xf32>
    %719 = arith.truncf %718 : vector<8x128xf32> to vector<8x128xbf16>
    %c0_594 = arith.constant 0 : index
    %c0_595 = arith.constant 0 : index
    %720 = vector.load %arg14[%c0_594, %c0_595] : memref<128x128xbf16, #tpu.memory_space<vmem>>, vector<128x128xbf16>
    %cst_596 = arith.constant dense<0.000000e+00> : vector<8x128xf32>
    %721 = tpu.matmul %719, %720, %cst_596 {dimension_numbers = #tpu.dot_dimension_numbers<[1], [0], [0], [1], [0, 0, 1, 1], [], []>} : vector<8x128xbf16>, vector<128x128xbf16>, vector<8x128xf32> -> vector<8x128xf32>
    %c0_597 = arith.constant 0 : index
    %c0_598 = arith.constant 0 : index
    %722 = vector.load %arg15[%c0_597, %c0_598] : memref<1x128xf32, #tpu.memory_space<vmem>>, vector<1x128xf32>
    %723 = vector.broadcast %722 : vector<1x128xf32> to vector<8x128xf32>
    %724 = arith.addf %721, %723 : vector<8x128xf32>
    %cst_599 = arith.constant 0.000000e+00 : f32
    %725 = vector.broadcast %cst_599 : f32 to vector<8x128xf32>
    %726 = arith.maximumf %724, %725 : vector<8x128xf32>
    %727 = arith.truncf %726 : vector<8x128xf32> to vector<8x128xbf16>
    %c0_600 = arith.constant 0 : index
    %c0_601 = arith.constant 0 : index
    %728 = vector.load %arg16[%c0_600, %c0_601] : memref<128x128xbf16, #tpu.memory_space<vmem>>, vector<128x128xbf16>
    %cst_602 = arith.constant dense<0.000000e+00> : vector<8x128xf32>
    %729 = tpu.matmul %727, %728, %cst_602 {dimension_numbers = #tpu.dot_dimension_numbers<[1], [0], [0], [1], [0, 0, 1, 1], [], []>} : vector<8x128xbf16>, vector<128x128xbf16>, vector<8x128xf32> -> vector<8x128xf32>
    %c0_603 = arith.constant 0 : index
    %c0_604 = arith.constant 0 : index
    %730 = vector.load %arg17[%c0_603, %c0_604] : memref<1x128xf32, #tpu.memory_space<vmem>>, vector<1x128xf32>
    %731 = vector.broadcast %730 : vector<1x128xf32> to vector<8x128xf32>
    %732 = arith.addf %729, %731 : vector<8x128xf32>
    %c0_605 = arith.constant 0 : index
    %c0_606 = arith.constant 0 : index
    %c0_607 = arith.constant 0 : index
    %733 = vector.load %arg18[%c0_605, %c0_606, %c0_607] : memref<1x8x128xf32, #tpu.memory_space<vmem>>, vector<1x8x128xf32>
    %734 = vector.shape_cast %733 : vector<1x8x128xf32> to vector<8x128xf32>
    %735 = vector.shape_cast %732 : vector<8x128xf32> to vector<1x8x128xf32>
    tpu.vector_store %arg18[%c0_605, %c0_606, %c0_607], %735 {strides = array<i32>} : memref<1x8x128xf32, #tpu.memory_space<vmem>>, vector<1x8x128xf32>,
    return
  }
  func.func @transform_0(%arg0: i32) -> (i32, i32, i32) {
    %c0_i32 = arith.constant 0 : i32
    %c0_i32_0 = arith.constant 0 : i32
    %c0_i32_1 = arith.constant 0 : i32
    return %arg0, %c0_i32, %c0_i32_0 : i32, i32, i32
  }
  func.func @transform_1(%arg0: i32) -> (i32, i32, i32) {
    %c0_i32 = arith.constant 0 : i32
    %c0_i32_0 = arith.constant 0 : i32
    %c0_i32_1 = arith.constant 0 : i32
    %c0_i32_2 = arith.constant 0 : i32
    return %c0_i32, %c0_i32_0, %c0_i32_1 : i32, i32, i32
  }
  func.func @transform_2(%arg0: i32) -> (i32, i32) {
    %c0_i32 = arith.constant 0 : i32
    %c0_i32_0 = arith.constant 0 : i32
    %c0_i32_1 = arith.constant 0 : i32
    return %c0_i32, %c0_i32_0 : i32, i32
  }
  func.func @transform_3(%arg0: i32) -> (i32, i32, i32) {
    %c0_i32 = arith.constant 0 : i32
    %c0_i32_0 = arith.constant 0 : i32
    %c0_i32_1 = arith.constant 0 : i32
    %c0_i32_2 = arith.constant 0 : i32
    return %c0_i32, %c0_i32_0, %c0_i32_1 : i32, i32, i32
  }
  func.func @transform_4(%arg0: i32) -> (i32, i32) {
    %c0_i32 = arith.constant 0 : i32
    %c0_i32_0 = arith.constant 0 : i32
    %c0_i32_1 = arith.constant 0 : i32
    return %c0_i32, %c0_i32_0 : i32, i32
  }
  func.func @transform_5(%arg0: i32) -> (i32, i32, i32) {
    %c0_i32 = arith.constant 0 : i32
    %c0_i32_0 = arith.constant 0 : i32
    %c0_i32_1 = arith.constant 0 : i32
    %c0_i32_2 = arith.constant 0 : i32
    return %c0_i32, %c0_i32_0, %c0_i32_1 : i32, i32, i32
  }
  func.func @transform_6(%arg0: i32) -> (i32, i32) {
    %c0_i32 = arith.constant 0 : i32
    %c0_i32_0 = arith.constant 0 : i32
    %c0_i32_1 = arith.constant 0 : i32
    return %c0_i32, %c0_i32_0 : i32, i32
  }
  func.func @transform_7(%arg0: i32) -> (i32, i32, i32) {
    %c0_i32 = arith.constant 0 : i32
    %c0_i32_0 = arith.constant 0 : i32
    %c0_i32_1 = arith.constant 0 : i32
    %c0_i32_2 = arith.constant 0 : i32
    return %c0_i32, %c0_i32_0, %c0_i32_1 : i32, i32, i32
  }
  func.func @transform_8(%arg0: i32) -> (i32, i32) {
    %c0_i32 = arith.constant 0 : i32
    %c0_i32_0 = arith.constant 0 : i32
    %c0_i32_1 = arith.constant 0 : i32
    return %c0_i32, %c0_i32_0 : i32, i32
  }
  func.func @transform_9(%arg0: i32) -> (i32, i32, i32) {
    %c0_i32 = arith.constant 0 : i32
    %c0_i32_0 = arith.constant 0 : i32
    %c0_i32_1 = arith.constant 0 : i32
    %c0_i32_2 = arith.constant 0 : i32
    return %c0_i32, %c0_i32_0, %c0_i32_1 : i32, i32, i32
  }
  func.func @transform_10(%arg0: i32) -> (i32, i32) {
    %c0_i32 = arith.constant 0 : i32
    %c0_i32_0 = arith.constant 0 : i32
    %c0_i32_1 = arith.constant 0 : i32
    return %c0_i32, %c0_i32_0 : i32, i32
  }
  func.func @transform_11(%arg0: i32) -> (i32, i32) {
    %c0_i32 = arith.constant 0 : i32
    %c0_i32_0 = arith.constant 0 : i32
    %c0_i32_1 = arith.constant 0 : i32
    return %c0_i32, %c0_i32_0 : i32, i32
  }
  func.func @transform_12(%arg0: i32) -> (i32, i32) {
    %c0_i32 = arith.constant 0 : i32
    %c0_i32_0 = arith.constant 0 : i32
    %c0_i32_1 = arith.constant 0 : i32
    return %c0_i32, %c0_i32_0 : i32, i32
  }
  func.func @transform_13(%arg0: i32) -> (i32, i32) {
    %c0_i32 = arith.constant 0 : i32
    %c0_i32_0 = arith.constant 0 : i32
    %c0_i32_1 = arith.constant 0 : i32
    return %c0_i32, %c0_i32_0 : i32, i32
  }
  func.func @transform_14(%arg0: i32) -> (i32, i32) {
    %c0_i32 = arith.constant 0 : i32
    %c0_i32_0 = arith.constant 0 : i32
    %c0_i32_1 = arith.constant 0 : i32
    return %c0_i32, %c0_i32_0 : i32, i32
  }
  func.func @transform_15(%arg0: i32) -> (i32, i32) {
    %c0_i32 = arith.constant 0 : i32
    %c0_i32_0 = arith.constant 0 : i32
    %c0_i32_1 = arith.constant 0 : i32
    return %c0_i32, %c0_i32_0 : i32, i32
  }
  func.func @transform_16(%arg0: i32) -> (i32, i32) {
    %c0_i32 = arith.constant 0 : i32
    %c0_i32_0 = arith.constant 0 : i32
    %c0_i32_1 = arith.constant 0 : i32
    return %c0_i32, %c0_i32_0 : i32, i32
  }
  func.func @transform_17(%arg0: i32) -> (i32, i32, i32) {
    %c0_i32 = arith.constant 0 : i32
    %c0_i32_0 = arith.constant 0 : i32
    %c0_i32_1 = arith.constant 0 : i32
    return %arg0, %c0_i32, %c0_i32_0 : i32, i32, i32
  }
}

</mosaic_0001>

<bundles_post_ra>
// kernel: alexnet_feature_extractor_forward.1
= control target key start
LH: loop header
LB: loop body
LE: loop exit
PB: predicated region body
PF: predicated region fallthrough
CT: control target
= control target key end

     0   :  { %s12593_s24 = smov 0   ;;  %s15466_s0 = inlined_call_operand.vmem [shape: f32[2,306,128], index: 0, kind: input, shape index: {}]   ;;  %s15467_s1 = inlined_call_operand.vmem [shape: bf16[9,128,128], index: 1, kind: input, shape index: {}]   ;;  %s15468_s2 = inlined_call_operand.vmem [shape: f32[1,128], index: 2, kind: input, shape index: {}]   ;;  %s15469_s3 = inlined_call_operand.vmem [shape: bf16[25,128,128], index: 3, kind: input, shape index: {}]   ;;  %s15470_s4 = inlined_call_operand.vmem [shape: f32[1,128], index: 4, kind: input, shape index: {}]   ;;  %s15471_s5 = inlined_call_operand.vmem [shape: bf16[9,128,128], index: 5, kind: input, shape index: {}]   ;;  %s15472_s6 = inlined_call_operand.vmem [shape: f32[1,128], index: 6, kind: input, shape index: {}]   ;;  %s15473_s7 = inlined_call_operand.vmem [shape: bf16[9,128,128], index: 7, kind: input, shape index: {}]   ;;  %s15474_s8 = inlined_call_operand.vmem [shape: f32[1,128], index: 8, kind: input, shape index: {}]   ;;  %s15475_s9 = inlined_call_operand.vmem [shape: bf16[9,128,128], index: 9, kind: input, shape index: {}]   ;;  %s15476_s10 = inlined_call_operand.vmem [shape: f32[1,128], index: 10, kind: input, shape index: {}]   ;;  %s15477_s11 = inlined_call_operand.vmem [shape: bf16[128,128], index: 11, kind: input, shape index: {}]   ;;  %s15478_s12 = inlined_call_operand.vmem [shape: f32[1,128], index: 12, kind: input, shape index: {}]   ;;  %s15479_s13 = inlined_call_operand.vmem [shape: bf16[128,128], index: 13, kind: input, shape index: {}]   ;;  %s15480_s14 = inlined_call_operand.vmem [shape: f32[1,128], index: 14, kind: input, shape index: {}]   ;;  %s15481_s15 = inlined_call_operand.vmem [shape: bf16[128,128], index: 15, kind: input, shape index: {}]   ;;  %s15482_s16 = inlined_call_operand.vmem [shape: f32[1,128], index: 16, kind: input, shape index: {}]   ;;  %s15483_s17 = inlined_call_operand.vmem [shape: f32[2,8,128], index: 17, kind: output, shape index: {}]  }
   0x1   :  { %15487 = sst [smem:[#allocation29_spill]] %s15466_s0 }
   0x2   :  { %15488 = sst [smem:[#allocation30_spill]] %s15467_s1 }
   0x3 LB: > { %15489 = sst [smem:[#allocation7_spill]] %s12499_s24  ;;  %s9006_s25 = sadd.s32 4294967295, %s12499_s24   ;;  %s12499_s24 = sphi %s12593_s24, %s27_s24  }
   0x4   : > { %p9010_p0 = scmp.ge.s32.totalorder %s12499_s24, 1  ;;  %p487_p1 = scmp.lt.s32.totalorder %s12499_s24, 3 }
   0x6   : > { %p488_p2 = pnand %p9010_p0, %p487_p1 }
   0x8   : > { %491 = sbr.rel (%p488_p2) target bundleno = 2555 (0x9fb), region = 88 }
   0xd   : > { %s15490_s28 = sld [smem:[#allocation30_spill]]  ;;  %p538_p3 = scmp.lt.s32.totalorder %s9006_s25, 1  ;;  %vm2726_vm0 = vcmask 1042432   ;;  %vm2735_vm1 = vcmask 1044482   ;;  %vm2744_vm2 = vcmask 1046532   ;;  %vm2753_vm3 = vcmask 1047558  }
   0xe   : > { %s15491_s1 = sld [smem:[#allocation29_spill]]  ;;  %vm2755_vm4 = vcmask 1040384  }
   0xf   : > { %s15537_s25 = smov (!%p538_p3, %s9006_s25), 1 }
  0x10   : > { %s12471_s20 = smul.u32 312, %s15537_s25  ;;  %s9012_s21 = sshll.u32 %s15537_s25, 3 }
  0x11   : > { %s546_s27 = scalar_lea.vmem %s15483_s17, %s9012_s21 }
  0x13   : > { %v11974_v0 = vld [vmem:[%s15490_s28 + $0x78] sm:$0xff]  ;;  %v11973_v4 = vld [vmem:[%s15490_s28 + $0x70] sm:$0xff]  ;;  %v11972_v8 = vld [vmem:[%s15490_s28 + $0x68] sm:$0xff] }
  0x14   : > { %v11966_v1 = vld [vmem:[%s15490_s28 + $0x38] sm:$0xff]  ;;  %752 = vmatpush.bf16.msra.mxu0 %v11974_v0  ;;  %v11965_v5 = vld [vmem:[%s15490_s28 + $0x30] sm:$0xff]  ;;  %v11964_v9 = vld [vmem:[%s15490_s28 + $0x28] sm:$0xff]  ;;  %s12689_s24 = scalar_lea.vmem %s15491_s1, %s12471_s20 }
  0x15   : > { %v11982_v2 = vld [vmem:[%s15490_s28 + $0xb8] sm:$0xff]  ;;  %889 = vmatpush.bf16.msra.mxu1 %v11966_v1  ;;  %v11981_v6 = vld [vmem:[%s15490_s28 + $0xb0] sm:$0xff]  ;;  %v11980_v10 = vld [vmem:[%s15490_s28 + $0xa8] sm:$0xff] }
  0x16   : > { %v11990_v3 = vld [vmem:[%s15490_s28 + $0xf8] sm:$0xff]  ;;  %1091 = vmatpush.bf16.msra.mxu2 %v11982_v2  ;;  %v11989_v7 = vld [vmem:[%s15490_s28 + $0xf0] sm:$0xff]  ;;  %v11988_v11 = vld [vmem:[%s15490_s28 + $0xe8] sm:$0xff] }
  0x17   : > { %1325 = vmatpush.bf16.msra.mxu3 %v11990_v3  ;;  %v11971_v12 = vld [vmem:[%s15490_s28 + $0x60] sm:$0xff]  ;;  %v11970_v16 = vld [vmem:[%s15490_s28 + $0x58] sm:$0xff]  ;;  %v11969_v20 = vld [vmem:[%s15490_s28 + $0x50] sm:$0xff] }
  0x18   : > { %753 = vmatpush.bf16.msra.mxu0 %v11973_v4  ;;  %v11963_v13 = vld [vmem:[%s15490_s28 + $0x20] sm:$0xff]  ;;  %v11962_v17 = vld [vmem:[%s15490_s28 + $0x18] sm:$0xff]  ;;  %v11961_v21 = vld [vmem:[%s15490_s28 + $0x10] sm:$0xff] }
  0x19   : > { %890 = vmatpush.bf16.msra.mxu1 %v11965_v5  ;;  %v11979_v14 = vld [vmem:[%s15490_s28 + $0xa0] sm:$0xff]  ;;  %v11978_v18 = vld [vmem:[%s15490_s28 + $0x98] sm:$0xff]  ;;  %v11977_v22 = vld [vmem:[%s15490_s28 + $0x90] sm:$0xff] }
  0x1a   : > { %1092 = vmatpush.bf16.msra.mxu2 %v11981_v6  ;;  %v11987_v15 = vld [vmem:[%s15490_s28 + $0xe0] sm:$0xff]  ;;  %v11986_v19 = vld [vmem:[%s15490_s28 + $0xd8] sm:$0xff]  ;;  %v11985_v23 = vld [vmem:[%s15490_s28 + $0xd0] sm:$0xff] }
  0x1b   : > { %1326 = vmatpush.bf16.msra.mxu3 %v11989_v7  ;;  %v11968_v24 = vld [vmem:[%s15490_s28 + $0x48] sm:$0xff]  ;;  %v11967_v28 = vld [vmem:[%s15490_s28 + $0x40] sm:$0xff]  ;;  %v1212_v38 = vld [vmem:[%s12689_s24 + $0x11] sm:$0xff] }
  0x1c   : > { %754 = vmatpush.bf16.msra.mxu0 %v11972_v8  ;;  %v11960_v25 = vld [vmem:[%s15490_s28 + $0x8] sm:$0xff]  ;;  %v11959_v29 = vld [vmem:[%s15490_s28] sm:$0xff]  ;;  %v11998_v40 = vld [vmem:[%s15490_s28 + $0x138] sm:$0xff] }
  0x1d   : > { %891 = vmatpush.bf16.msra.mxu1 %v11964_v9  ;;  %v11976_v26 = vld [vmem:[%s15490_s28 + $0x88] sm:$0xff]  ;;  %v11975_v30 = vld [vmem:[%s15490_s28 + $0x80] sm:$0xff]  ;;  %v11997_v45 = vld [vmem:[%s15490_s28 + $0x130] sm:$0xff] }
  0x1e   : > { %1093 = vmatpush.bf16.msra.mxu2 %v11980_v10  ;;  %v11984_v27 = vld [vmem:[%s15490_s28 + $0xc8] sm:$0xff]  ;;  %v11983_v31 = vld [vmem:[%s15490_s28 + $0xc0] sm:$0xff]  ;;  %v577_v46 = vld [vmem:[%s12689_s24 + $0x10] sm:$0xff] }
  0x1f   : > { %1327 = vmatpush.bf16.msra.mxu3 %v11988_v11  ;;  %v639_v32 = vld [vmem:[%s12689_s24 + $0x1] sm:$0xff]  ;;  %v640_v33 = vld [vmem:[%s12689_s24 + $0x9] sm:$0xff]  ;;  %v1213_v39 = vld [vmem:[%s12689_s24 + $0x19] sm:$0xff] }
  0x20   : > { %755 = vmatpush.bf16.msra.mxu0 %v11971_v12  ;;  %v575_v34 = vld [vmem:[%s12689_s24] sm:$0xff]  ;;  %v576_v35 = vld [vmem:[%s12689_s24 + $0x8] sm:$0xff]  ;;  %v671_v41 = vpack.c.bf16 %v640_v33, %v639_v32  ;;  %v1244_v44 = vpack.c.bf16 %v1213_v39, %v1212_v38  ;;  %v578_v47 = vld [vmem:[%s12689_s24 + $0x18] sm:$0xff] }
  0x21   : > { %892 = vmatpush.bf16.msra.mxu1 %v11963_v13  ;;  %v978_v36 = vld [vmem:[%s12689_s24 + $0x2] sm:$0xff]  ;;  %v979_v37 = vld [vmem:[%s12689_s24 + $0xa] sm:$0xff]  ;;  %v607_v42 = vpack.c.bf16 %v576_v35, %v575_v34  ;;  %v980_v48 = vld [vmem:[%s12689_s24 + $0x12] sm:$0xff]  ;;  %v608_v52 = vpack.c.bf16 %v578_v47, %v577_v46 }
  0x22   : > { %1094 = vmatpush.bf16.msra.mxu2 %v11979_v14  ;;  %v1010_v43 = vpack.c.bf16 %v979_v37, %v978_v36  ;;  %v981_v49 = vld [vmem:[%s12689_s24 + $0x1a] sm:$0xff]  ;;  %v1215_v51 = vld [vmem:[%s12689_s24 + $0x29] sm:$0xff]  ;;  %v1216_v59 = vld [vmem:[%s12689_s24 + $0x31] sm:$0xff] }
  0x23   : > { %1328 = vmatpush.bf16.msra.mxu3 %v11987_v15  ;;  %v1214_v50 = vld [vmem:[%s12689_s24 + $0x21] sm:$0xff]  ;;  %v12729_v53 = vpack.c.bf16 %v981_v49, %v980_v48  ;;  %v983_v58 = vld [vmem:[%s12689_s24 + $0x2a] sm:$0xff]  ;;  %v1217_v60 = vld [vmem:[%s12689_s24 + $0x39] sm:$0xff] }
  0x24   : > { %756 = vmatpush.bf16.msra.mxu0 %v11970_v16  ;;  %v1245_v54 = vpack.c.bf16 %v1215_v51, %v1214_v50  ;;  %v579_v55 = vld [vmem:[%s12689_s24 + $0x20] sm:$0xff]  ;;  %v580_v56 = vld [vmem:[%s12689_s24 + $0x28] sm:$0xff]  ;;  %v1246_v63 = vpack.c.bf16 %v1217_v60, %v1216_v59  ;;  %v581_v1 = vld [vmem:[%s12689_s24 + $0x30] sm:$0xff] }
  0x25   : > { %893 = vmatpush.bf16.msra.mxu1 %v11962_v17  ;;  %v982_v57 = vld [vmem:[%s12689_s24 + $0x22] sm:$0xff]  ;;  %v609_v61 = vpack.c.bf16 %v580_v56, %v579_v55  ;;  %v582_v2 = vld [vmem:[%s12689_s24 + $0x38] sm:$0xff]  ;;  %v987_v13 = vld [vmem:[%s12689_s24 + $0x4a] sm:$0xff] }
  0x26   : > { %1095 = vmatpush.bf16.msra.mxu2 %v11978_v18  ;;  %v12738_v62 = vpack.c.bf16 %v983_v58, %v982_v57  ;;  %v11996_v0 = vld [vmem:[%s15490_s28 + $0x128] sm:$0xff]  ;;  %v984_v3 = vld [vmem:[%s12689_s24 + $0x32] sm:$0xff]  ;;  %v985_v4 = vld [vmem:[%s12689_s24 + $0x3a] sm:$0xff]  ;;  %v610_v7 = vpack.c.bf16 %v582_v2, %v581_v1 }
  0x27   : > { %1329 = vmatpush.bf16.msra.mxu3 %v11986_v19  ;;  %v1218_v5 = vld [vmem:[%s12689_s24 + $0x41] sm:$0xff]  ;;  %v1219_v6 = vld [vmem:[%s12689_s24 + $0x49] sm:$0xff]  ;;  %v12750_v8 = vpack.c.bf16 %v985_v4, %v984_v3  ;;  %v1220_v14 = vld [vmem:[%s12689_s24 + $0x51] sm:$0xff] }
  0x28   : > { %757 = vmatpush.bf16.msra.mxu0 %v11969_v20  ;;  %v1247_v9 = vpack.c.bf16 %v1219_v6, %v1218_v5  ;;  %v583_v10 = vld [vmem:[%s12689_s24 + $0x40] sm:$0xff]  ;;  %v584_v11 = vld [vmem:[%s12689_s24 + $0x48] sm:$0xff]  ;;  %v585_v20 = vld [vmem:[%s12689_s24 + $0x50] sm:$0xff] }
  0x29   : > { %894 = vmatpush.bf16.msra.mxu1 %v11961_v21  ;;  %v986_v12 = vld [vmem:[%s12689_s24 + $0x42] sm:$0xff]  ;;  %v1221_v15 = vld [vmem:[%s12689_s24 + $0x59] sm:$0xff]  ;;  %v611_v16 = vpack.c.bf16 %v584_v11, %v583_v10  ;;  %v991_v32 = vld [vmem:[%s12689_s24 + $0x6a] sm:$0xff] }
  0x2a   : > { %1096 = vmatpush.bf16.msra.mxu2 %v11977_v22  ;;  %v12759_v17 = vpack.c.bf16 %v987_v13, %v986_v12  ;;  %v1248_v18 = vpack.c.bf16 %v1221_v15, %v1220_v14  ;;  %v11995_v19 = vld [vmem:[%s15490_s28 + $0x120] sm:$0xff]  ;;  %v586_v21 = vld [vmem:[%s12689_s24 + $0x58] sm:$0xff]  ;;  %v589_v39 = vld [vmem:[%s12689_s24 + $0x70] sm:$0xff] }
  0x2b   : > { %1330 = vmatpush.bf16.msra.mxu3 %v11985_v23  ;;  %v988_v22 = vld [vmem:[%s12689_s24 + $0x52] sm:$0xff]  ;;  %v989_v23 = vld [vmem:[%s12689_s24 + $0x5a] sm:$0xff]  ;;  %v592_v49 = vld [vmem:[%s12689_s24 + $0x88] sm:$0xff] }
  0x2c   : > { %758 = vmatpush.bf16.msra.mxu0 %v11968_v24  ;;  %v1222_v24 = vld [vmem:[%s12689_s24 + $0x61] sm:$0xff]  ;;  %v1224_v33 = vld [vmem:[%s12689_s24 + $0x71] sm:$0xff]  ;;  %v1225_v34 = vld [vmem:[%s12689_s24 + $0x79] sm:$0xff] }
  0x2d   : > { %895 = vmatpush.bf16.msra.mxu1 %v11960_v25  ;;  %v1223_v25 = vld [vmem:[%s12689_s24 + $0x69] sm:$0xff]  ;;  %v1250_v37 = vpack.c.bf16 %v1225_v34, %v1224_v33  ;;  %v11994_v38 = vld [vmem:[%s15490_s28 + $0x118] sm:$0xff]  ;;  %v591_v48 = vld [vmem:[%s12689_s24 + $0x80] sm:$0xff] }
  0x2e   : > { %1097 = vmatpush.bf16.msra.mxu2 %v11976_v26  ;;  %v612_v26 = vpack.c.bf16 %v586_v21, %v585_v20  ;;  %v994_v50 = vld [vmem:[%s12689_s24 + $0x82] sm:$0xff]  ;;  %v995_v51 = vld [vmem:[%s12689_s24 + $0x8a] sm:$0xff]  ;;  %v615_v55 = vpack.c.bf16 %v592_v49, %v591_v48  ;;  %v997_v10 = vld [vmem:[%s12689_s24 + $0x9a] sm:$0xff] }
  0x2f   : > { %1331 = vmatpush.bf16.msra.mxu3 %v11984_v27  ;;  %v12771_v27 = vpack.c.bf16 %v989_v23, %v988_v22  ;;  %v1018_v58 = vpack.c.bf16 %v995_v51, %v994_v50  ;;  %v593_v6 = vld [vmem:[%s12689_s24 + $0x90] sm:$0xff]  ;;  %v1230_v11 = vld [vmem:[%s12689_s24 + $0xa1] sm:$0xff] }
  0x30   : > { %759 = vmatpush.bf16.msra.mxu0 %v11967_v28  ;;  %v1249_v28 = vpack.c.bf16 %v1223_v25, %v1222_v24  ;;  %v1231_v12 = vld [vmem:[%s12689_s24 + $0xa9] sm:$0xff] }
  0x31   : > { %896 = vmatpush.bf16.msra.mxu1 %v11959_v29  ;;  %v587_v29 = vld [vmem:[%s12689_s24 + $0x60] sm:$0xff]  ;;  %v1253_v21 = vpack.c.bf16 %v1231_v12, %v1230_v11  ;;  %v596_v33 = vld [vmem:[%s12689_s24 + $0xa8] sm:$0xff] }
  0x32   : > { %1098 = vmatpush.bf16.msra.mxu2 %v11975_v30  ;;  %v588_v30 = vld [vmem:[%s12689_s24 + $0x68] sm:$0xff] }
  0x33   : > { %1332 = vmatpush.bf16.msra.mxu3 %v11983_v31  ;;  %760 = vmatmul.bf16.vlgmr.msra.gmra.mxu0 %v671_v41  ;;  %v990_v31 = vld [vmem:[%s12689_s24 + $0x62] sm:$0xff]  ;;  %v613_v35 = vpack.c.bf16 %v588_v30, %v587_v29  ;;  %v992_v41 = vld [vmem:[%s12689_s24 + $0x72] sm:$0xff] }
  0x34   : > { %1559 = vmatpush.bf16.msrb.mxu0 %v11998_v40  ;;  %897 = vmatmul.bf16.vlgmr.msra.gmra.mxu1 %v607_v42  ;;  %v1016_v36 = vpack.c.bf16 %v991_v32, %v990_v31  ;;  %v590_v40 = vld [vmem:[%s12689_s24 + $0x78] sm:$0xff]  ;;  %v595_v32 = vld [vmem:[%s12689_s24 + $0xa0] sm:$0xff]  ;;  %v11992_v48 = vld [vmem:[%s15490_s28 + $0x108] sm:$0xff] }
  0x35   : > { %1099 = vmatmul.bf16.vlgmr.msra.gmra.mxu2 %v1010_v43  ;;  %v993_v42 = vld [vmem:[%s12689_s24 + $0x7a] sm:$0xff]  ;;  %v998_v34 = vld [vmem:[%s12689_s24 + $0xa2] sm:$0xff] }
  0x36   : > { %1333 = vmatmul.bf16.vlgmr.msra.gmra.mxu3 %v1244_v44  ;;  %v1226_v43 = vld [vmem:[%s12689_s24 + $0x81] sm:$0xff]  ;;  %v1017_v46 = vpack.c.bf16 %v993_v42, %v992_v41 }
  0x38   : > { %1560 = vmatpush.bf16.msrb.mxu0 %v11997_v45  ;;  %v614_v45 = vpack.c.bf16 %v590_v40, %v589_v39  ;;  %v617_v40 = vpack.c.bf16 %v596_v33, %v595_v32 }
  0x3c   : > { %1561 = vmatpush.bf16.msrb.mxu0 %v11996_v0 }
  0x40   : > { %1562 = vmatpush.bf16.msrb.mxu0 %v11995_v19 }
  0x43   : > { %765 = vmatmul.bf16.gmra.mxu0 %v1244_v44  ;;  %v1227_v44 = vld [vmem:[%s12689_s24 + $0x89] sm:$0xff] }
  0x44   : > { %902 = vmatmul.bf16.gmra.mxu1 %v608_v52  ;;  %1563 = vmatpush.bf16.msrb.mxu0 %v11994_v38  ;;  %v1251_v47 = vpack.c.bf16 %v1227_v44, %v1226_v43  ;;  %v1228_v52 = vld [vmem:[%s12689_s24 + $0x91] sm:$0xff] }
  0x45   : > { %1104 = vmatmul.bf16.gmra.mxu2 %v12729_v53 }
  0x46   : > { %1338 = vmatmul.bf16.gmra.mxu3 %v1245_v54 }
  0x53   : > { %770 = vmatmul.bf16.gmra.mxu0 %v1245_v54  ;;  %v1229_v54 = vld [vmem:[%s12689_s24 + $0x99] sm:$0xff] }
  0x54   : > { %907 = vmatmul.bf16.gmra.mxu1 %v609_v61  ;;  %v1252_v59 = vpack.c.bf16 %v1229_v54, %v1228_v52  ;;  %v11993_v61 = vld [vmem:[%s15490_s28 + $0x110] sm:$0xff] }
  0x55   : > { %1109 = vmatmul.bf16.gmra.mxu2 %v12738_v62  ;;  %1564 = vmatpush.bf16.msrb.mxu0 %v11993_v61  ;;  %v1234_v61 = vld [vmem:[%s12689_s24 + $0xc1] sm:$0xff] }
  0x56   : > { %1343 = vmatmul.bf16.gmra.mxu3 %v1246_v63 }
  0x59   : > { %1565 = vmatpush.bf16.msrb.mxu0 %v11992_v48 }
  0x63   : > { %775 = vmatmul.bf16.gmra.mxu0 %v1246_v63 }
  0x64   : > { %912 = vmatmul.bf16.gmra.mxu1 %v610_v7  ;;  %v594_v7 = vld [vmem:[%s12689_s24 + $0x98] sm:$0xff] }
  0x65   : > { %1114 = vmatmul.bf16.gmra.mxu2 %v12750_v8  ;;  %v616_v15 = vpack.c.bf16 %v594_v7, %v593_v6 }
  0x66   : > { %1348 = vmatmul.bf16.gmra.mxu3 %v1247_v9 }
  0x73   : > { %780 = vmatmul.bf16.gmra.mxu0 %v1247_v9  ;;  %v996_v9 = vld [vmem:[%s12689_s24 + $0x92] sm:$0xff] }
  0x74   : > { %917 = vmatmul.bf16.gmra.mxu1 %v611_v16  ;;  %v1019_v20 = vpack.c.bf16 %v997_v10, %v996_v9 }
  0x75   : > { %1119 = vmatmul.bf16.gmra.mxu2 %v12759_v17 }
  0x76   : > { %1353 = vmatmul.bf16.gmra.mxu3 %v1248_v18 }
  0x83   : > { %785 = vmatmul.bf16.gmra.mxu0 %v1248_v18 }
  0x84   : > { %922 = vmatmul.bf16.gmra.mxu1 %v612_v26 }
  0x85   : > { %1124 = vmatmul.bf16.gmra.mxu2 %v12771_v27 }
  0x86   : > { %1358 = vmatmul.bf16.gmra.mxu3 %v1249_v28 }
  0x93   : > { %790 = vmatmul.bf16.gmra.mxu0 %v1249_v28 }
  0x94   : > { %927 = vmatmul.bf16.gmra.mxu1 %v613_v35  ;;  %v999_v35 = vld [vmem:[%s12689_s24 + $0xaa] sm:$0xff] }
  0x95   : > { %1129 = vmatmul.bf16.gmra.mxu2 %v1016_v36  ;;  %v1232_v36 = vld [vmem:[%s12689_s24 + $0xb1] sm:$0xff]  ;;  %v1020_v44 = vpack.c.bf16 %v999_v35, %v998_v34 }
  0x96   : > { %1363 = vmatmul.bf16.gmra.mxu3 %v1250_v37 }
  0xa3   : > { %795 = vmatmul.bf16.gmra.mxu0 %v1250_v37  ;;  %v1233_v37 = vld [vmem:[%s12689_s24 + $0xb9] sm:$0xff] }
  0xa4   : > { %932 = vmatmul.bf16.gmra.mxu1 %v614_v45  ;;  %v1254_v45 = vpack.c.bf16 %v1233_v37, %v1232_v36 }
  0xa5   : > { %1134 = vmatmul.bf16.gmra.mxu2 %v1017_v46 }
  0xa6   : > { %1368 = vmatmul.bf16.gmra.mxu3 %v1251_v47 }
  0xb0   : > { %v761_v56 = vpop.f32.mrf.mxu0 }
  0xb1   : > { %v898_v57 = vpop.f32.mrf.mxu1 }
  0xb2   : > { %v899_v60 = vadd.f32 %v898_v57, %v761_v56  ;;  %v597_v57 = vld [vmem:[%s12689_s24 + $0xb0] sm:$0xff] }
  0xb3   : > { %800 = vmatmul.bf16.gmra.mxu0 %v1251_v47 }
  0xb4   : > { %937 = vmatmul.bf16.gmra.mxu1 %v615_v55 }
  0xb5   : > { %1139 = vmatmul.bf16.gmra.mxu2 %v1018_v58  ;;  %v598_v58 = vld [vmem:[%s12689_s24 + $0xb8] sm:$0xff] }
  0xb6   : > { %1373 = vmatmul.bf16.gmra.mxu3 %v1252_v59 }
  0xb8   : > { %v1100_v63 = vpop.f32.mrf.mxu2  ;;  %v763_v2 = vpop.f32.mrf.mxu0 }
  0xb9   : > { %v1334_v0 = vpop.f32.mrf.mxu3  ;;  %v1180_v1 = vadd.f32 %v1100_v63, %v899_v60  ;;  %v900_v3 = vpop.f32.mrf.mxu1  ;;  %v1001_v60 = vld [vmem:[%s12689_s24 + $0xba] sm:$0xff]  ;;  %v1235_v63 = vld [vmem:[%s12689_s24 + $0xc9] sm:$0xff] }
  0xba   : > { %v901_v4 = vadd.f32 %v900_v3, %v763_v2  ;;  %v618_v2 = vpack.c.bf16 %v598_v58, %v597_v57  ;;  %v1255_v9 = vpack.c.bf16 %v1235_v63, %v1234_v61  ;;  %v601_v57 = vld [vmem:[%s12689_s24 + $0xd0] sm:$0xff]  ;;  %v602_v58 = vld [vmem:[%s12689_s24 + $0xd8] sm:$0xff]  ;;  %v1238_v61 = vld [vmem:[%s12689_s24 + $0xe1] sm:$0xff] }
  0xbb   : > { %v12798_v5 = vadd.f32 %v1334_v0, %v1180_v1  ;;  %v1239_v63 = vld [vmem:[%s12689_s24 + $0xe9] sm:$0xff] }
  0xc0   : > { %v1102_v13 = vpop.f32.mrf.mxu2  ;;  %v766_v18 = vpop.f32.mrf.mxu0 }
  0xc1   : > { %v1336_v14 = vpop.f32.mrf.mxu3  ;;  %v1181_v16 = vadd.f32 %v1102_v13, %v901_v4  ;;  %v903_v19 = vpop.f32.mrf.mxu1 }
  0xc2   : > { %v904_v22 = vadd.f32 %v903_v19, %v766_v18 }
  0xc3   : > { %v12806_v23 = vadd.f32 %v1336_v14, %v1181_v16  ;;  %805 = vmatmul.bf16.gmra.mxu0 %v1252_v59  ;;  %v1000_v59 = vld [vmem:[%s12689_s24 + $0xb2] sm:$0xff] }
  0xc4   : > { %942 = vmatmul.bf16.gmra.mxu1 %v616_v15  ;;  %v1021_v7 = vpack.c.bf16 %v1001_v60, %v1000_v59  ;;  %v1004_v59 = vld [vmem:[%s12689_s24 + $0xd2] sm:$0xff]  ;;  %v1005_v60 = vld [vmem:[%s12689_s24 + $0xda] sm:$0xff] }
  0xc5   : > { %1144 = vmatmul.bf16.gmra.mxu2 %v1019_v20  ;;  %v599_v20 = vld [vmem:[%s12689_s24 + $0xc0] sm:$0xff] }
  0xc6   : > { %1378 = vmatmul.bf16.gmra.mxu3 %v1253_v21 }
  0xc8   : > { %v1105_v24 = vpop.f32.mrf.mxu2  ;;  %v768_v28 = vpop.f32.mrf.mxu0 }
  0xc9   : > { %v1339_v25 = vpop.f32.mrf.mxu3  ;;  %v1182_v26 = vadd.f32 %v1105_v24, %v904_v22  ;;  %v905_v29 = vpop.f32.mrf.mxu1  ;;  %v1002_v22 = vld [vmem:[%s12689_s24 + $0xc2] sm:$0xff]  ;;  %v1003_v24 = vld [vmem:[%s12689_s24 + $0xca] sm:$0xff] }
  0xca   : > { %v906_v30 = vadd.f32 %v905_v29, %v768_v28  ;;  %v1022_v35 = vpack.c.bf16 %v1003_v24, %v1002_v22  ;;  %v12018_v22 = vld [vmem:[%s15490_s28 + $0x1d8] sm:$0xff] }
  0xcb   : > { %v12808_v31 = vadd.f32 %v1339_v25, %v1182_v26  ;;  %v1236_v25 = vld [vmem:[%s12689_s24 + $0xd1] sm:$0xff]  ;;  %v1237_v26 = vld [vmem:[%s12689_s24 + $0xd9] sm:$0xff] }
  0xcc   : > { %v1256_v36 = vpack.c.bf16 %v1237_v26, %v1236_v25  ;;  %v12009_v26 = vld [vmem:[%s15490_s28 + $0x190] sm:$0xff] }
  0xd0   : > { %v1107_v38 = vpop.f32.mrf.mxu2  ;;  %v771_v42 = vpop.f32.mrf.mxu0 }
  0xd1   : > { %v1341_v39 = vpop.f32.mrf.mxu3  ;;  %v1183_v41 = vadd.f32 %v1107_v38, %v906_v30  ;;  %v908_v43 = vpop.f32.mrf.mxu1 }
  0xd2   : > { %v909_v46 = vadd.f32 %v908_v43, %v771_v42  ;;  %v12022_v42 = vld [vmem:[%s15490_s28 + $0x1f8] sm:$0xff] }
  0xd3   : > { %v12816_v47 = vadd.f32 %v1341_v39, %v1183_v41  ;;  %810 = vmatmul.bf16.gmra.mxu0 %v1253_v21  ;;  %v600_v21 = vld [vmem:[%s12689_s24 + $0xc8] sm:$0xff]  ;;  %v12014_v39 = vld [vmem:[%s15490_s28 + $0x1b8] sm:$0xff]  ;;  %2261 = vmatpush.bf16.msrb.mxu3 %v12022_v42 }
  0xd4   : > { %947 = vmatmul.bf16.gmra.mxu1 %v617_v40  ;;  %v619_v30 = vpack.c.bf16 %v600_v21, %v599_v20  ;;  %v11991_v40 = vld [vmem:[%s15490_s28 + $0x100] sm:$0xff]  ;;  %2027 = vmatpush.bf16.msrb.mxu2 %v12014_v39  ;;  %v12006_v41 = vld [vmem:[%s15490_s28 + $0x178] sm:$0xff]  ;;  %v604_v39 = vld [vmem:[%s12689_s24 + $0xe8] sm:$0xff] }
  0xd5   : > { %1149 = vmatmul.bf16.gmra.mxu2 %v1020_v44  ;;  %1566 = vmatpush.bf16.msrb.mxu0 %v11991_v40  ;;  %v12010_v20 = vld [vmem:[%s15490_s28 + $0x198] sm:$0xff]  ;;  %v1006_v40 = vld [vmem:[%s12689_s24 + $0xe2] sm:$0xff] }
  0xd6   : > { %1383 = vmatmul.bf16.gmra.mxu3 %v1254_v45  ;;  %1793 = vmatpush.bf16.msrb.mxu1 %v12006_v41  ;;  %v12002_v21 = vld [vmem:[%s15490_s28 + $0x158] sm:$0xff]  ;;  %v1007_v41 = vld [vmem:[%s12689_s24 + $0xea] sm:$0xff] }
  0xd7   : > { %v1240_v42 = vld [vmem:[%s12689_s24 + $0xf1] sm:$0xff] }
  0xd8   : > { %v1110_v49 = vpop.f32.mrf.mxu2  ;;  %v773_v52 = vpop.f32.mrf.mxu0 }
  0xd9   : > { %v1344_v50 = vpop.f32.mrf.mxu3  ;;  %v1184_v51 = vadd.f32 %v1110_v49, %v909_v46  ;;  %v910_v54 = vpop.f32.mrf.mxu1 }
  0xda   : > { %v911_v55 = vadd.f32 %v910_v54, %v773_v52  ;;  %v12021_v52 = vld [vmem:[%s15490_s28 + $0x1f0] sm:$0xff] }
  0xdb   : > { %v12821_v56 = vadd.f32 %v1344_v50, %v1184_v51  ;;  %v12005_v51 = vld [vmem:[%s15490_s28 + $0x170] sm:$0xff]  ;;  %2262 = vmatpush.bf16.msrb.mxu3 %v12021_v52 }
  0xdc   : > { %1794 = vmatpush.bf16.msrb.mxu1 %v12005_v51 }
  0xe0   : > { %v1112_v0 = vpop.f32.mrf.mxu2  ;;  %v776_v4 = vpop.f32.mrf.mxu0 }
  0xe1   : > { %v1346_v1 = vpop.f32.mrf.mxu3  ;;  %v1185_v3 = vadd.f32 %v1112_v0, %v911_v55  ;;  %v913_v6 = vpop.f32.mrf.mxu1  ;;  %v12012_v55 = vld [vmem:[%s15490_s28 + $0x1a8] sm:$0xff] }
  0xe2   : > { %v914_v10 = vadd.f32 %v913_v6, %v776_v4  ;;  %v12004_v0 = vld [vmem:[%s15490_s28 + $0x168] sm:$0xff]  ;;  %v620_v4 = vpack.c.bf16 %v602_v58, %v601_v57  ;;  %v12011_v6 = vld [vmem:[%s15490_s28 + $0x1a0] sm:$0xff]  ;;  %v1024_v57 = vpack.c.bf16 %v1007_v41, %v1006_v40 }
  0xe3   : > { %v12829_v11 = vadd.f32 %v1346_v1, %v1185_v3  ;;  %815 = vmatmul.bf16.gmra.mxu0 %v1254_v45  ;;  %v12013_v45 = vld [vmem:[%s15490_s28 + $0x1b0] sm:$0xff]  ;;  %v12020_v1 = vld [vmem:[%s15490_s28 + $0x1e8] sm:$0xff]  ;;  %1795 = vmatpush.bf16.msrb.mxu1 %v12004_v0  ;;  %v12030_v0 = vld [vmem:[%s15490_s28 + $0x238] sm:$0xff] }
  0xe4   : > { %952 = vmatmul.bf16.gmra.mxu1 %v618_v2  ;;  %2028 = vmatpush.bf16.msrb.mxu2 %v12013_v45  ;;  %v12016_v45 = vld [vmem:[%s15490_s28 + $0x1c8] sm:$0xff] }
  0xe5   : > { %1154 = vmatmul.bf16.gmra.mxu2 %v1021_v7  ;;  %2263 = vmatpush.bf16.msrb.mxu3 %v12020_v1 }
  0xe6   : > { %1388 = vmatmul.bf16.gmra.mxu3 %v1255_v9  ;;  %2495 = vmatpush.bf16.msra.mxu0 %v12030_v0 }
  0xe8   : > { %v1115_v12 = vpop.f32.mrf.mxu2  ;;  %v778_v15 = vpop.f32.mrf.mxu0  ;;  %2029 = vmatpush.bf16.msrb.mxu2 %v12012_v55 }
  0xe9   : > { %v1349_v13 = vpop.f32.mrf.mxu3  ;;  %v1186_v14 = vadd.f32 %v1115_v12, %v914_v10  ;;  %v915_v16 = vpop.f32.mrf.mxu1  ;;  %v1023_v12 = vpack.c.bf16 %v1005_v60, %v1004_v59  ;;  %v11999_v60 = vld [vmem:[%s15490_s28 + $0x140] sm:$0xff] }
  0xea   : > { %v916_v18 = vadd.f32 %v915_v16, %v778_v15  ;;  %v12003_v15 = vld [vmem:[%s15490_s28 + $0x160] sm:$0xff] }
  0xeb   : > { %v12831_v19 = vadd.f32 %v1349_v13, %v1186_v14  ;;  %v1257_v13 = vpack.c.bf16 %v1239_v63, %v1238_v61  ;;  %v12019_v16 = vld [vmem:[%s15490_s28 + $0x1e0] sm:$0xff]  ;;  %1796 = vmatpush.bf16.msrb.mxu1 %v12003_v15 }
  0xec   : > { %2030 = vmatpush.bf16.msrb.mxu2 %v12011_v6  ;;  %2264 = vmatpush.bf16.msrb.mxu3 %v12019_v16  ;;  %v12015_v61 = vld [vmem:[%s15490_s28 + $0x1c0] sm:$0xff] }
  0xed   : > { %v1009_v15 = vld [vmem:[%s12689_s24 + $0xfa] sm:$0x7f]  ;;  %v1242_v16 = vld [vmem:[%s12689_s24 + $0x101] sm:$0xff] }
  0xef   : > { %1797 = vmatpush.bf16.msrb.mxu1 %v12002_v21 }
  0xf0   : > { %v1117_v28 = vpop.f32.mrf.mxu2  ;;  %v781_v33 = vpop.f32.mrf.mxu0  ;;  %2031 = vmatpush.bf16.msrb.mxu2 %v12010_v20  ;;  %2265 = vmatpush.bf16.msrb.mxu3 %v12018_v22  ;;  %v1243_v20 = vld [vmem:[%s12689_s24 + $0x109] sm:$0x7f] }
  0xf1   : > { %v1351_v29 = vpop.f32.mrf.mxu3  ;;  %v1187_v32 = vadd.f32 %v1117_v28, %v916_v18  ;;  %v918_v34 = vpop.f32.mrf.mxu1 }
  0xf2   : > { %v919_v37 = vadd.f32 %v918_v34, %v781_v33  ;;  %v12001_v33 = vld [vmem:[%s15490_s28 + $0x150] sm:$0xff] }
  0xf3   : > { %v12839_v38 = vadd.f32 %v1351_v29, %v1187_v32  ;;  %820 = vmatmul.bf16.gmra.mxu0 %v1255_v9  ;;  %v12017_v34 = vld [vmem:[%s15490_s28 + $0x1d0] sm:$0xff]  ;;  %1798 = vmatpush.bf16.msrb.mxu1 %v12001_v33 }
  0xf4   : > { %957 = vmatmul.bf16.gmra.mxu1 %v619_v30  ;;  %2032 = vmatpush.bf16.msrb.mxu2 %v12009_v26 }
  0xf5   : > { %1159 = vmatmul.bf16.gmra.mxu2 %v1022_v35  ;;  %2266 = vmatpush.bf16.msrb.mxu3 %v12017_v34 }
  0xf6   : > { %1393 = vmatmul.bf16.gmra.mxu3 %v1256_v36 }
  0xf8   : > { %v1120_v43 = vpop.f32.mrf.mxu2  ;;  %v783_v48 = vpop.f32.mrf.mxu0 }
  0xf9   : > { %v1354_v44 = vpop.f32.mrf.mxu3  ;;  %v1188_v46 = vadd.f32 %v1120_v43, %v919_v37  ;;  %v920_v49 = vpop.f32.mrf.mxu1  ;;  %v603_v37 = vld [vmem:[%s12689_s24 + $0xe0] sm:$0xff]  ;;  %2267 = vmatpush.bf16.msrb.mxu3 %v12016_v45 }
  0xfa   : > { %v921_v50 = vadd.f32 %v920_v49, %v783_v48  ;;  %v1241_v43 = vld [vmem:[%s12689_s24 + $0xf9] sm:$0xff]  ;;  %v621_v49 = vpack.c.bf16 %v604_v39, %v603_v37 }
  0xfb   : > { %v12862_v54 = vadd.f32 %v1354_v44, %v1188_v46  ;;  %v12000_v44 = vld [vmem:[%s15490_s28 + $0x148] sm:$0xff]  ;;  %v1258_v58 = vpack.c.bf16 %v1241_v43, %v1240_v42  ;;  %v1681_v45 = vld [vmem:[%s12689_s24 + $0x1b] sm:$0xff] }
  0xfc   : > { %1799 = vmatpush.bf16.msrb.mxu1 %v12000_v44  ;;  %v1680_v44 = vld [vmem:[%s12689_s24 + $0x13] sm:$0xff] }
  0xfd   : > { %2268 = vmatpush.bf16.msrb.mxu3 %v12015_v61  ;;  %v12029_v61 = vld [vmem:[%s15490_s28 + $0x230] sm:$0xff] }
  0xfe   : > { %2496 = vmatpush.bf16.msra.mxu0 %v12029_v61  ;;  %v2154_v61 = vld [vmem:[%s12689_s24 + $0x53] sm:$0xff] }
 0x100   : > { %v1122_v2 = vpop.f32.mrf.mxu2  ;;  %v786_v9 = vpop.f32.mrf.mxu0  ;;  %1800 = vmatpush.bf16.msrb.mxu1 %v11999_v60 }
 0x101   : > { %v1356_v3 = vpop.f32.mrf.mxu3  ;;  %v1189_v7 = vadd.f32 %v1122_v2, %v921_v50  ;;  %v923_v10 = vpop.f32.mrf.mxu1  ;;  %v12007_v50 = vld [vmem:[%s15490_s28 + $0x180] sm:$0xff] }
 0x102   : > { %v924_v14 = vadd.f32 %v923_v10, %v786_v9  ;;  %v670_v10 = vld [vmem:[%s12689_s24 + $0xf9] sm:$0x7f] }
 0x103   : > { %v12888_v18 = vadd.f32 %v1356_v3, %v1189_v7  ;;  %825 = vmatmul.bf16.gmra.mxu0 %v1256_v36  ;;  %v12008_v36 = vld [vmem:[%s15490_s28 + $0x188] sm:$0xff] }
 0x104   : > { %962 = vmatmul.bf16.gmra.mxu1 %v620_v4  ;;  %2033 = vmatpush.bf16.msrb.mxu2 %v12008_v36 }
 0x105   : > { %1164 = vmatmul.bf16.gmra.mxu2 %v1023_v12  ;;  %v605_v12 = vld [vmem:[%s12689_s24 + $0xf0] sm:$0xff] }
 0x106   : > { %1398 = vmatmul.bf16.gmra.mxu3 %v1257_v13 }
 0x108   : > { %v1125_v24 = vpop.f32.mrf.mxu2  ;;  %v788_v29 = vpop.f32.mrf.mxu0  ;;  %2034 = vmatpush.bf16.msrb.mxu2 %v12007_v50 }
 0x109   : > { %v1359_v25 = vpop.f32.mrf.mxu3  ;;  %v1190_v28 = vadd.f32 %v1125_v24, %v924_v14  ;;  %v925_v30 = vpop.f32.mrf.mxu1  ;;  %v12945_v14 = vld [vmem:[%s12689_s24 + $0xf2] sm:$0xff]  ;;  %v686_v24 = vpack.c.bf16 %v670_v10, %v1240_v42 }
 0x10a   : > { %v926_v32 = vadd.f32 %v925_v30, %v788_v29  ;;  %v1025_v30 = vpack.c.bf16 %v1009_v15, %v12945_v14  ;;  %v2150_v10 = vld [vmem:[%s12689_s24 + $0x33] sm:$0xff] }
 0x10b   : > { %v12908_v35 = vadd.f32 %v1359_v25, %v1190_v28 }
 0x110   : > { %v1127_v46 = vpop.f32.mrf.mxu2  ;;  %v791_v52 = vpop.f32.mrf.mxu0 }
 0x111   : > { %v1361_v48 = vpop.f32.mrf.mxu3  ;;  %v1191_v51 = vadd.f32 %v1127_v46, %v926_v32  ;;  %v928_v55 = vpop.f32.mrf.mxu1  ;;  %v1259_v32 = vpack.c.bf16 %v1243_v20, %v1242_v16  ;;  %v2148_v46 = vld [vmem:[%s12689_s24 + $0x23] sm:$0xff] }
 0x112   : > { %v929_v59 = vadd.f32 %v928_v55, %v791_v52 }
 0x113   : > { %v12934_v63 = vadd.f32 %v1361_v48, %v1191_v51  ;;  %830 = vmatmul.bf16.gmra.mxu0 %v1257_v13  ;;  %v606_v13 = vld [vmem:[%s12689_s24 + $0xf8] sm:$0x7f]  ;;  %v2149_v48 = vld [vmem:[%s12689_s24 + $0x2b] sm:$0xff]  ;;  %v1712_v51 = vpack.c.bf16 %v1681_v45, %v1680_v44 }
 0x114   : > { %967 = vmatmul.bf16.gmra.mxu1 %v621_v49  ;;  %v622_v25 = vpack.c.bf16 %v606_v13, %v605_v12  ;;  %v2151_v12 = vld [vmem:[%s12689_s24 + $0x3b] sm:$0xff] }
 0x115   : > { %1169 = vmatmul.bf16.gmra.mxu2 %v1024_v57 }
 0x116   : > { %1403 = vmatmul.bf16.gmra.mxu3 %v1258_v58  ;;  %v2180_v58 = vpack.c.bf16 %v2149_v48, %v2148_v46  ;;  %v12028_v48 = vld [vmem:[%s15490_s28 + $0x228] sm:$0xff] }
 0x117   : > { %2497 = vmatpush.bf16.msra.mxu0 %v12028_v48 }
 0x118   : > { %v1130_v1 = vpop.f32.mrf.mxu2  ;;  %v793_v4 = vpop.f32.mrf.mxu0 }
 0x119   : > { %v1364_v2 = vpop.f32.mrf.mxu3  ;;  %v1192_v3 = vadd.f32 %v1130_v1, %v929_v59  ;;  %v930_v6 = vpop.f32.mrf.mxu1 }
 0x11a   : > { %v931_v7 = vadd.f32 %v930_v6, %v793_v4 }
 0x11b   : > { %v12939_v9 = vadd.f32 %v1364_v2, %v1192_v3 }
 0x120   : > { %v1132_v21 = vpop.f32.mrf.mxu2  ;;  %v796_v28 = vpop.f32.mrf.mxu0 }
 0x121   : > { %v1366_v22 = vpop.f32.mrf.mxu3  ;;  %v1193_v26 = vadd.f32 %v1132_v21, %v931_v7  ;;  %v933_v29 = vpop.f32.mrf.mxu1  ;;  %v2181_v21 = vpack.c.bf16 %v2151_v12, %v2150_v10 }
 0x122   : > { %v934_v33 = vadd.f32 %v933_v29, %v796_v28 }
 0x123   : > { %v12951_v34 = vadd.f32 %v1366_v22, %v1193_v26  ;;  %835 = vmatmul.bf16.gmra.mxu0 %v686_v24 }
 0x124   : > { %972 = vmatmul.bf16.gmra.mxu1 %v622_v25 }
 0x125   : > { %1174 = vmatmul.bf16.gmra.mxu2 %v1025_v30 }
 0x126   : > { %1408 = vmatmul.bf16.gmra.mxu3 %v1259_v32 }
 0x128   : > { %v1135_v36 = vpop.f32.mrf.mxu2  ;;  %v798_v40 = vpop.f32.mrf.mxu0 }
 0x129   : > { %v1369_v37 = vpop.f32.mrf.mxu3  ;;  %v1194_v39 = vadd.f32 %v1135_v36, %v934_v33  ;;  %v935_v41 = vpop.f32.mrf.mxu1  ;;  %v2152_v36 = vld [vmem:[%s12689_s24 + $0x43] sm:$0xff] }
 0x12a   : > { %v936_v42 = vadd.f32 %v935_v41, %v798_v40 }
 0x12b   : > { %v12953_v43 = vadd.f32 %v1369_v37, %v1194_v39  ;;  %v2153_v37 = vld [vmem:[%s12689_s24 + $0x4b] sm:$0xff] }
 0x130   : > { %v1137_v49 = vpop.f32.mrf.mxu2  ;;  %v801_v55 = vpop.f32.mrf.mxu0 }
 0x131   : > { %v1371_v50 = vpop.f32.mrf.mxu3  ;;  %v1195_v52 = vadd.f32 %v1137_v49, %v936_v42  ;;  %v938_v57 = vpop.f32.mrf.mxu1 }
 0x132   : > { %v939_v59 = vadd.f32 %v938_v57, %v801_v55 }
 0x133   : > { %v12959_v60 = vadd.f32 %v1371_v50, %v1195_v52  ;;  %1567 = vmatmul.bf16.vlgmr.msrb.gmra.mxu0 %v12729_v53 }
 0x134   : > { %1801 = vmatmul.bf16.vlgmr.msrb.gmra.mxu1 %v1712_v51 }
 0x135   : > { %2035 = vmatmul.bf16.vlgmr.msrb.gmra.mxu2 %v12738_v62 }
 0x136   : > { %2269 = vmatmul.bf16.vlgmr.msrb.gmra.mxu3 %v2180_v58 }
 0x138   : > { %v1140_v0 = vpop.f32.mrf.mxu2  ;;  %v803_v3 = vpop.f32.mrf.mxu0 }
 0x139   : > { %v1374_v1 = vpop.f32.mrf.mxu3  ;;  %v1196_v2 = vadd.f32 %v1140_v0, %v939_v59  ;;  %v940_v4 = vpop.f32.mrf.mxu1  ;;  %v1452_v59 = vld [vmem:[%s12689_s24 + $0x42] sm:$0xff] }
 0x13a   : > { %v941_v6 = vadd.f32 %v940_v4, %v803_v3  ;;  %v2155_v0 = vld [vmem:[%s12689_s24 + $0x5b] sm:$0xff] }
 0x13b   : > { %v12966_v7 = vadd.f32 %v1374_v1, %v1196_v2  ;;  %v2183_v10 = vpack.c.bf16 %v2155_v0, %v2154_v61  ;;  %v1924_v61 = vld [vmem:[%s12689_s24 + $0x72] sm:$0xff]  ;;  %v1925_v0 = vld [vmem:[%s12689_s24 + $0x7a] sm:$0xff] }
 0x140   : > { %v1142_v53 = vpop.f32.mrf.mxu2  ;;  %v806_v16 = vpop.f32.mrf.mxu0 }
 0x141   : > { %v1376_v13 = vpop.f32.mrf.mxu3  ;;  %v1197_v15 = vadd.f32 %v1142_v53, %v941_v6  ;;  %v943_v20 = vpop.f32.mrf.mxu1 }
 0x142   : > { %v944_v22 = vadd.f32 %v943_v20, %v806_v16 }
 0x143   : > { %v12970_v24 = vadd.f32 %v1376_v13, %v1197_v15  ;;  %1572 = vmatmul.bf16.gmra.mxu0 %v12738_v62  ;;  %v2182_v62 = vpack.c.bf16 %v2153_v37, %v2152_v36  ;;  %v2157_v36 = vld [vmem:[%s12689_s24 + $0x6b] sm:$0xff] }
 0x144   : > { %1806 = vmatmul.bf16.gmra.mxu1 %v2180_v58 }
 0x145   : > { %2040 = vmatmul.bf16.gmra.mxu2 %v12750_v8 }
 0x146   : > { %2274 = vmatmul.bf16.gmra.mxu3 %v2181_v21 }
 0x148   : > { %v1145_v25 = vpop.f32.mrf.mxu2  ;;  %v808_v29 = vpop.f32.mrf.mxu0 }
 0x149   : > { %v1379_v26 = vpop.f32.mrf.mxu3  ;;  %v1198_v28 = vadd.f32 %v1145_v25, %v944_v22  ;;  %v945_v30 = vpop.f32.mrf.mxu1 }
 0x14a   : > { %v946_v32 = vadd.f32 %v945_v30, %v808_v29  ;;  %v1922_v29 = vld [vmem:[%s12689_s24 + $0x62] sm:$0xff]  ;;  %v1923_v30 = vld [vmem:[%s12689_s24 + $0x6a] sm:$0xff] }
 0x14b   : > { %v12974_v33 = vadd.f32 %v1379_v26, %v1198_v28  ;;  %v1454_v26 = vld [vmem:[%s12689_s24 + $0x52] sm:$0xff]  ;;  %v1455_v28 = vld [vmem:[%s12689_s24 + $0x5a] sm:$0xff] }
 0x150   : > { %v1147_v39 = vpop.f32.mrf.mxu2  ;;  %v811_v42 = vpop.f32.mrf.mxu0 }
 0x151   : > { %v1381_v40 = vpop.f32.mrf.mxu3  ;;  %v1199_v41 = vadd.f32 %v1147_v39, %v946_v32  ;;  %v948_v44 = vpop.f32.mrf.mxu1  ;;  %v2156_v32 = vld [vmem:[%s12689_s24 + $0x63] sm:$0xff] }
 0x152   : > { %v949_v45 = vadd.f32 %v948_v44, %v811_v42  ;;  %v1950_v44 = vpack.c.bf16 %v1923_v30, %v1922_v29 }
 0x153   : > { %v12978_v46 = vadd.f32 %v1381_v40, %v1199_v41  ;;  %1577 = vmatmul.bf16.gmra.mxu0 %v12750_v8  ;;  %v1453_v8 = vld [vmem:[%s12689_s24 + $0x4a] sm:$0xff]  ;;  %v1482_v40 = vpack.c.bf16 %v1455_v28, %v1454_v26 }
 0x154   : > { %1811 = vmatmul.bf16.gmra.mxu1 %v2181_v21  ;;  %v1481_v2 = vpack.c.bf16 %v1453_v8, %v1452_v59 }
 0x155   : > { %2045 = vmatmul.bf16.gmra.mxu2 %v12759_v17 }
 0x156   : > { %2279 = vmatmul.bf16.gmra.mxu3 %v2182_v62 }
 0x158   : > { %v1150_v49 = vpop.f32.mrf.mxu2  ;;  %v813_v52 = vpop.f32.mrf.mxu0 }
 0x159   : > { %v1384_v50 = vpop.f32.mrf.mxu3  ;;  %v1200_v51 = vadd.f32 %v1150_v49, %v949_v45  ;;  %v950_v55 = vpop.f32.mrf.mxu1  ;;  %v12027_v49 = vld [vmem:[%s15490_s28 + $0x220] sm:$0xff] }
 0x15a   : > { %v951_v57 = vadd.f32 %v950_v55, %v813_v52  ;;  %2498 = vmatpush.bf16.msra.mxu0 %v12027_v49 }
 0x15b   : > { %v12985_v58 = vadd.f32 %v1384_v50, %v1200_v51 }
 0x160   : > { %v1152_v1 = vpop.f32.mrf.mxu2  ;;  %v816_v4 = vpop.f32.mrf.mxu0 }
 0x161   : > { %v1386_v17 = vpop.f32.mrf.mxu3  ;;  %v1201_v3 = vadd.f32 %v1152_v1, %v951_v57  ;;  %v953_v6 = vpop.f32.mrf.mxu1  ;;  %v2158_v1 = vld [vmem:[%s12689_s24 + $0x73] sm:$0xff] }
 0x162   : > { %v954_v12 = vadd.f32 %v953_v6, %v816_v4 }
 0x163   : > { %v12991_v53 = vadd.f32 %v1386_v17, %v1201_v3  ;;  %1582 = vmatmul.bf16.gmra.mxu0 %v1481_v2  ;;  %v2159_v17 = vld [vmem:[%s12689_s24 + $0x7b] sm:$0xff] }
 0x164   : > { %1816 = vmatmul.bf16.gmra.mxu1 %v2182_v62  ;;  %v2184_v62 = vpack.c.bf16 %v2157_v36, %v2156_v32  ;;  %v1926_v32 = vld [vmem:[%s12689_s24 + $0x82] sm:$0xff]  ;;  %v1927_v36 = vld [vmem:[%s12689_s24 + $0x8a] sm:$0xff] }
 0x165   : > { %2050 = vmatmul.bf16.gmra.mxu2 %v12771_v27 }
 0x166   : > { %2284 = vmatmul.bf16.gmra.mxu3 %v2183_v10 }
 0x168   : > { %v1155_v13 = vpop.f32.mrf.mxu2  ;;  %v818_v20 = vpop.f32.mrf.mxu0 }
 0x169   : > { %v1389_v15 = vpop.f32.mrf.mxu3  ;;  %v1202_v16 = vadd.f32 %v1155_v13, %v954_v12  ;;  %v955_v21 = vpop.f32.mrf.mxu1  ;;  %v1951_v12 = vpack.c.bf16 %v1925_v0, %v1924_v61  ;;  %v2185_v13 = vpack.c.bf16 %v2159_v17, %v2158_v1  ;;  %v1928_v17 = vld [vmem:[%s12689_s24 + $0x92] sm:$0xff] }
 0x16a   : > { %v956_v22 = vadd.f32 %v955_v21, %v818_v20 }
 0x16b   : > { %v12994_v25 = vadd.f32 %v1389_v15, %v1202_v16 }
 0x170   : > { %v1157_v37 = vpop.f32.mrf.mxu2  ;;  %v821_v27 = vpop.f32.mrf.mxu0 }
 0x171   : > { %v1391_v39 = vpop.f32.mrf.mxu3  ;;  %v1203_v41 = vadd.f32 %v1157_v37, %v956_v22  ;;  %v958_v42 = vpop.f32.mrf.mxu1  ;;  %v2160_v37 = vld [vmem:[%s12689_s24 + $0x83] sm:$0xff] }
 0x172   : > { %v959_v45 = vadd.f32 %v958_v42, %v821_v27 }
 0x173   : > { %v13002_v48 = vadd.f32 %v1391_v39, %v1203_v41  ;;  %1587 = vmatmul.bf16.gmra.mxu0 %v1482_v40  ;;  %v2161_v39 = vld [vmem:[%s12689_s24 + $0x8b] sm:$0xff] }
 0x174   : > { %1821 = vmatmul.bf16.gmra.mxu1 %v2183_v10 }
 0x175   : > { %2055 = vmatmul.bf16.gmra.mxu2 %v1950_v44 }
 0x176   : > { %2289 = vmatmul.bf16.gmra.mxu3 %v2184_v62 }
 0x178   : > { %v1160_v50 = vpop.f32.mrf.mxu2  ;;  %v823_v55 = vpop.f32.mrf.mxu0 }
 0x179   : > { %v1394_v51 = vpop.f32.mrf.mxu3  ;;  %v1204_v52 = vadd.f32 %v1160_v50, %v959_v45  ;;  %v960_v57 = vpop.f32.mrf.mxu1  ;;  %v2186_v45 = vpack.c.bf16 %v2161_v39, %v2160_v37 }
 0x17a   : > { %v961_v59 = vadd.f32 %v960_v57, %v823_v55 }
 0x17b   : > { %v13007_v8 = vadd.f32 %v1394_v51, %v1204_v52  ;;  %v12026_v51 = vld [vmem:[%s15490_s28 + $0x218] sm:$0xff] }
 0x17c   : > { %2499 = vmatpush.bf16.msra.mxu0 %v12026_v51 }
 0x180   : > { %v1162_v2 = vpop.f32.mrf.mxu2  ;;  %v826_v6 = vpop.f32.mrf.mxu0 }
 0x181   : > { %v1396_v3 = vpop.f32.mrf.mxu3  ;;  %v1205_v4 = vadd.f32 %v1162_v2, %v961_v59  ;;  %v963_v10 = vpop.f32.mrf.mxu1  ;;  %v1929_v2 = vld [vmem:[%s12689_s24 + $0x9a] sm:$0xff] }
 0x182   : > { %v964_v15 = vadd.f32 %v963_v10, %v826_v6 }
 0x183   : > { %v13013_v16 = vadd.f32 %v1396_v3, %v1205_v4  ;;  %1592 = vmatmul.bf16.gmra.mxu0 %v1950_v44  ;;  %v2162_v3 = vld [vmem:[%s12689_s24 + $0x93] sm:$0xff]  ;;  %v2163_v4 = vld [vmem:[%s12689_s24 + $0x9b] sm:$0xff] }
 0x184   : > { %1826 = vmatmul.bf16.gmra.mxu1 %v2184_v62  ;;  %v1952_v62 = vpack.c.bf16 %v1927_v36, %v1926_v32 }
 0x185   : > { %2060 = vmatmul.bf16.gmra.mxu2 %v1951_v12 }
 0x186   : > { %2294 = vmatmul.bf16.gmra.mxu3 %v2185_v13 }
 0x188   : > { %v1165_v20 = vpop.f32.mrf.mxu2  ;;  %v828_v26 = vpop.f32.mrf.mxu0 }
 0x189   : > { %v1399_v21 = vpop.f32.mrf.mxu3  ;;  %v1206_v22 = vadd.f32 %v1165_v20, %v964_v15  ;;  %v965_v28 = vpop.f32.mrf.mxu1  ;;  %v1953_v20 = vpack.c.bf16 %v1929_v2, %v1928_v17  ;;  %v12025_v17 = vld [vmem:[%s15490_s28 + $0x210] sm:$0xff] }
 0x18a   : > { %v966_v29 = vadd.f32 %v965_v28, %v828_v26  ;;  %2500 = vmatpush.bf16.msra.mxu0 %v12025_v17  ;;  %v1935_v17 = vld [vmem:[%s12689_s24 + $0xca] sm:$0xff] }
 0x18b   : > { %v13015_v30 = vadd.f32 %v1399_v21, %v1206_v22  ;;  %v2187_v21 = vpack.c.bf16 %v2163_v4, %v2162_v3 }
 0x190   : > { %v1167_v40 = vpop.f32.mrf.mxu2  ;;  %v831_v42 = vpop.f32.mrf.mxu0 }
 0x191   : > { %v1401_v41 = vpop.f32.mrf.mxu3  ;;  %v1207_v27 = vadd.f32 %v1167_v40, %v966_v29  ;;  %v968_v44 = vpop.f32.mrf.mxu1 }
 0x192   : > { %v969_v49 = vadd.f32 %v968_v44, %v831_v42  ;;  %v2164_v42 = vld [vmem:[%s12689_s24 + $0xa3] sm:$0xff]  ;;  %v2165_v44 = vld [vmem:[%s12689_s24 + $0xab] sm:$0xff] }
 0x193   : > { %v13021_v50 = vadd.f32 %v1401_v41, %v1207_v27  ;;  %1597 = vmatmul.bf16.gmra.mxu0 %v1951_v12  ;;  %v1930_v41 = vld [vmem:[%s12689_s24 + $0xa2] sm:$0xff]  ;;  %v1931_v27 = vld [vmem:[%s12689_s24 + $0xaa] sm:$0xff] }
 0x194   : > { %1831 = vmatmul.bf16.gmra.mxu1 %v2185_v13 }
 0x195   : > { %2065 = vmatmul.bf16.gmra.mxu2 %v1952_v62 }
 0x196   : > { %2299 = vmatmul.bf16.gmra.mxu3 %v2186_v45 }
 0x198   : > { %v1170_v52 = vpop.f32.mrf.mxu2  ;;  %v833_v59 = vpop.f32.mrf.mxu0 }
 0x199   : > { %v1404_v55 = vpop.f32.mrf.mxu3  ;;  %v1208_v57 = vadd.f32 %v1170_v52, %v969_v49  ;;  %v970_v61 = vpop.f32.mrf.mxu1 }
 0x19a   : > { %v971_v0 = vadd.f32 %v970_v61, %v833_v59 }
 0x19b   : > { %v13026_v1 = vadd.f32 %v1404_v55, %v1208_v57  ;;  %v2188_v57 = vpack.c.bf16 %v2165_v44, %v2164_v42 }
 0x1a0   : > { %v1172_v6 = vpop.f32.mrf.mxu2  ;;  %v836_v13 = vpop.f32.mrf.mxu0 }
 0x1a1   : > { %v1406_v10 = vpop.f32.mrf.mxu3  ;;  %v1209_v12 = vadd.f32 %v1172_v6, %v971_v0  ;;  %v973_v15 = vpop.f32.mrf.mxu1 }
 0x1a2   : > { %v974_v22 = vadd.f32 %v973_v15, %v836_v13  ;;  %v1932_v15 = vld [vmem:[%s12689_s24 + $0xb2] sm:$0xff] }
 0x1a3   : > { %v13032_v26 = vadd.f32 %v1406_v10, %v1209_v12  ;;  %1602 = vmatmul.bf16.gmra.mxu0 %v1952_v62 }
 0x1a4   : > { %1836 = vmatmul.bf16.gmra.mxu1 %v2186_v45  ;;  %v1954_v45 = vpack.c.bf16 %v1931_v27, %v1930_v41 }
 0x1a5   : > { %2070 = vmatmul.bf16.gmra.mxu2 %v1953_v20 }
 0x1a6   : > { %2304 = vmatmul.bf16.gmra.mxu3 %v2187_v21 }
 0x1a8   : > { %v1175_v28 = vpop.f32.mrf.mxu2  ;;  %v838_v36 = vpop.f32.mrf.mxu0 }
 0x1a9   : > { %v1409_v29 = vpop.f32.mrf.mxu3  ;;  %v1210_v32 = vadd.f32 %v1175_v28, %v974_v22  ;;  %v975_v37 = vpop.f32.mrf.mxu1  ;;  %v2167_v22 = vld [vmem:[%s12689_s24 + $0xbb] sm:$0xff] }
 0x1aa   : > { %v976_v39 = vadd.f32 %v975_v37, %v838_v36 }
 0x1ab   : > { %v13034_v40 = vadd.f32 %v1409_v29, %v1210_v32 }
 0x1b0   : > { %v1177_v49 = vpop.f32.mrf.mxu2  ;;  %v1568_v55 = vpop.f32.mrf.mxu0 }
 0x1b1   : > { %v1411_v51 = vpop.f32.mrf.mxu3  ;;  %v1211_v52 = vadd.f32 %v1177_v49, %v976_v39  ;;  %v1802_v62 = vpop.f32.mrf.mxu1  ;;  %v1648_v59 = vadd.f32 %v1568_v55, %v12798_v5 }
 0x1b3   : > { %v13041_v61 = vadd.f32 %v1411_v51, %v1211_v52  ;;  %v1882_v0 = vadd.f32 %v1802_v62, %v1648_v59  ;;  %1607 = vmatmul.bf16.gmra.mxu0 %v1953_v20  ;;  %v1933_v20 = vld [vmem:[%s12689_s24 + $0xba] sm:$0xff] }
 0x1b4   : > { %1841 = vmatmul.bf16.gmra.mxu1 %v2187_v21  ;;  %v2166_v21 = vld [vmem:[%s12689_s24 + $0xb3] sm:$0xff]  ;;  %v1955_v39 = vpack.c.bf16 %v1933_v20, %v1932_v15 }
 0x1b5   : > { %2075 = vmatmul.bf16.gmra.mxu2 %v1954_v45  ;;  %v2189_v41 = vpack.c.bf16 %v2167_v22, %v2166_v21  ;;  %v12024_v21 = vld [vmem:[%s15490_s28 + $0x208] sm:$0xff] }
 0x1b6   : > { %2309 = vmatmul.bf16.gmra.mxu3 %v2188_v57  ;;  %2501 = vmatpush.bf16.msra.mxu0 %v12024_v21  ;;  %v1939_v21 = vld [vmem:[%s12689_s24 + $0xea] sm:$0xff] }
 0x1b8   : > { %v2036_v2 = vpop.f32.mrf.mxu2  ;;  %v1570_v5 = vpop.f32.mrf.mxu0 }
 0x1b9   : > { %v2270_v3 = vpop.f32.mrf.mxu3  ;;  %v2116_v4 = vadd.f32 %v2036_v2, %v1882_v0  ;;  %v1804_v6 = vpop.f32.mrf.mxu1  ;;  %v1649_v10 = vadd.f32 %v1570_v5, %v12806_v23  ;;  %v1934_v0 = vld [vmem:[%s12689_s24 + $0xc2] sm:$0xff] }
 0x1ba   : > { %v2168_v2 = vld [vmem:[%s12689_s24 + $0xc3] sm:$0xff] }
 0x1bb   : > { %v13047_v12 = vadd.f32 %v2270_v3, %v2116_v4  ;;  %v1883_v13 = vadd.f32 %v1804_v6, %v1649_v10  ;;  %v2169_v3 = vld [vmem:[%s12689_s24 + $0xcb] sm:$0xff]  ;;  %v1956_v10 = vpack.c.bf16 %v1935_v17, %v1934_v0 }
 0x1c0   : > { %v2038_v28 = vpop.f32.mrf.mxu2  ;;  %v1573_v36 = vpop.f32.mrf.mxu0 }
 0x1c1   : > { %v2272_v29 = vpop.f32.mrf.mxu3  ;;  %v2117_v32 = vadd.f32 %v2038_v28, %v1883_v13  ;;  %v1807_v37 = vpop.f32.mrf.mxu1  ;;  %v1650_v27 = vadd.f32 %v1573_v36, %v12808_v31  ;;  %v2190_v13 = vpack.c.bf16 %v2169_v3, %v2168_v2 }
 0x1c3   : > { %v13054_v42 = vadd.f32 %v2272_v29, %v2117_v32  ;;  %v1884_v23 = vadd.f32 %v1807_v37, %v1650_v27  ;;  %1612 = vmatmul.bf16.gmra.mxu0 %v1954_v45  ;;  %v1936_v27 = vld [vmem:[%s12689_s24 + $0xd2] sm:$0xff] }
 0x1c4   : > { %1846 = vmatmul.bf16.gmra.mxu1 %v2188_v57 }
 0x1c5   : > { %2080 = vmatmul.bf16.gmra.mxu2 %v1955_v39 }
 0x1c6   : > { %2314 = vmatmul.bf16.gmra.mxu3 %v2189_v41 }
 0x1c8   : > { %v2041_v44 = vpop.f32.mrf.mxu2  ;;  %v1575_v52 = vpop.f32.mrf.mxu0 }
 0x1c9   : > { %v2275_v49 = vpop.f32.mrf.mxu3  ;;  %v2118_v51 = vadd.f32 %v2041_v44, %v1884_v23  ;;  %v1809_v55 = vpop.f32.mrf.mxu1  ;;  %v1651_v62 = vadd.f32 %v1575_v52, %v12816_v47  ;;  %v2170_v23 = vld [vmem:[%s12689_s24 + $0xd3] sm:$0xff]  ;;  %v2171_v44 = vld [vmem:[%s12689_s24 + $0xdb] sm:$0xff] }
 0x1ca   : > { %v2191_v0 = vpack.c.bf16 %v2171_v44, %v2170_v23  ;;  %v2174_v44 = vld [vmem:[%s12689_s24 + $0xf3] sm:$0xff] }
 0x1cb   : > { %v13057_v59 = vadd.f32 %v2275_v49, %v2118_v51  ;;  %v1885_v31 = vadd.f32 %v1809_v55, %v1651_v62 }
 0x1d0   : > { %v2043_v4 = vpop.f32.mrf.mxu2  ;;  %v1578_v57 = vpop.f32.mrf.mxu0 }
 0x1d1   : > { %v2277_v5 = vpop.f32.mrf.mxu3  ;;  %v2119_v45 = vadd.f32 %v2043_v4, %v1885_v31  ;;  %v1812_v6 = vpop.f32.mrf.mxu1  ;;  %v1652_v15 = vadd.f32 %v1578_v57, %v12821_v56 }
 0x1d3   : > { %v13064_v20 = vadd.f32 %v2277_v5, %v2119_v45  ;;  %v1886_v47 = vadd.f32 %v1812_v6, %v1652_v15  ;;  %1617 = vmatmul.bf16.gmra.mxu0 %v1955_v39 }
 0x1d4   : > { %1851 = vmatmul.bf16.gmra.mxu1 %v2189_v41  ;;  %v1937_v41 = vld [vmem:[%s12689_s24 + $0xda] sm:$0xff] }
 0x1d5   : > { %2085 = vmatmul.bf16.gmra.mxu2 %v1956_v10  ;;  %v1957_v31 = vpack.c.bf16 %v1937_v41, %v1936_v27  ;;  %v12023_v27 = vld [vmem:[%s15490_s28 + $0x200] sm:$0xff] }
 0x1d6   : > { %2319 = vmatmul.bf16.gmra.mxu3 %v2190_v13  ;;  %2502 = vmatpush.bf16.msra.mxu0 %v12023_v27 }
 0x1d8   : > { %v2046_v22 = vpop.f32.mrf.mxu2  ;;  %v1580_v56 = vpop.f32.mrf.mxu0 }
 0x1d9   : > { %v2280_v28 = vpop.f32.mrf.mxu3  ;;  %v2120_v29 = vadd.f32 %v2046_v22, %v1886_v47  ;;  %v1814_v32 = vpop.f32.mrf.mxu1  ;;  %v1653_v36 = vadd.f32 %v1580_v56, %v12829_v11  ;;  %v1938_v47 = vld [vmem:[%s12689_s24 + $0xe2] sm:$0xff] }
 0x1da   : > { %v2172_v22 = vld [vmem:[%s12689_s24 + $0xe3] sm:$0xff] }
 0x1db   : > { %v13070_v37 = vadd.f32 %v2280_v28, %v2120_v29  ;;  %v1887_v39 = vadd.f32 %v1814_v32, %v1653_v36  ;;  %v2173_v28 = vld [vmem:[%s12689_s24 + $0xeb] sm:$0xff]  ;;  %v1958_v32 = vpack.c.bf16 %v1939_v21, %v1938_v47 }
 0x1dc   : > { %v2192_v36 = vpack.c.bf16 %v2173_v28, %v2172_v22  ;;  %v1944_v47 = vld [vmem:[%s12689_s24 + $0x112] sm:$0xff]  ;;  %v1711_v21 = vld [vmem:[%s12689_s24 + $0x10b] sm:$0x7f]  ;;  %v1945_v22 = vld [vmem:[%s12689_s24 + $0x11a] sm:$0x7f] }
 0x1dd   : > { %v2178_v28 = vld [vmem:[%s12689_s24 + $0x113] sm:$0xff] }
 0x1e0   : > { %v2048_v49 = vpop.f32.mrf.mxu2  ;;  %v1583_v55 = vpop.f32.mrf.mxu0 }
 0x1e1   : > { %v2282_v51 = vpop.f32.mrf.mxu3  ;;  %v2121_v52 = vadd.f32 %v2048_v49, %v1887_v39  ;;  %v1817_v62 = vpop.f32.mrf.mxu1  ;;  %v1654_v17 = vadd.f32 %v1583_v55, %v12831_v19  ;;  %v2175_v49 = vld [vmem:[%s12689_s24 + $0xfb] sm:$0xff] }
 0x1e2   : > { %v2193_v55 = vpack.c.bf16 %v2175_v49, %v2174_v44 }
 0x1e3   : > { %v13077_v2 = vadd.f32 %v2282_v51, %v2121_v52  ;;  %v1888_v11 = vadd.f32 %v1817_v62, %v1654_v17  ;;  %1622 = vmatmul.bf16.gmra.mxu0 %v1956_v10  ;;  %v1942_v17 = vld [vmem:[%s12689_s24 + $0x102] sm:$0xff] }
 0x1e4   : > { %1856 = vmatmul.bf16.gmra.mxu1 %v2190_v13 }
 0x1e5   : > { %2090 = vmatmul.bf16.gmra.mxu2 %v1957_v31 }
 0x1e6   : > { %2324 = vmatmul.bf16.gmra.mxu3 %v2191_v0 }
 0x1e8   : > { %v2051_v3 = vpop.f32.mrf.mxu2  ;;  %v1585_v45 = vpop.f32.mrf.mxu0 }
 0x1e9   : > { %v2285_v4 = vpop.f32.mrf.mxu3  ;;  %v2122_v5 = vadd.f32 %v2051_v3, %v1888_v11  ;;  %v1819_v57 = vpop.f32.mrf.mxu1  ;;  %v1655_v6 = vadd.f32 %v1585_v45, %v12839_v38  ;;  %v1943_v11 = vld [vmem:[%s12689_s24 + $0x10a] sm:$0xff] }
 0x1ea   : > { %v2176_v3 = vld [vmem:[%s12689_s24 + $0x103] sm:$0xff] }
 0x1eb   : > { %v13080_v15 = vadd.f32 %v2285_v4, %v2122_v5  ;;  %v1889_v19 = vadd.f32 %v1819_v57, %v1655_v6  ;;  %v1960_v5 = vpack.c.bf16 %v1943_v11, %v1942_v17 }
 0x1f0   : > { %v2053_v29 = vpop.f32.mrf.mxu2  ;;  %v1588_v56 = vpop.f32.mrf.mxu0 }
 0x1f1   : > { %v2287_v10 = vpop.f32.mrf.mxu3  ;;  %v2123_v13 = vadd.f32 %v2053_v29, %v1889_v19  ;;  %v13087_v39 = vadd.f32 %v1588_v56, %v12862_v54  ;;  %v1941_v54 = vld [vmem:[%s12689_s24 + $0xfa] sm:$0xff]  ;;  %v1477_v19 = vld [vmem:[%s12689_s24 + $0x10a] sm:$0x7f]  ;;  %v1961_v56 = vpack.c.bf16 %v1945_v22, %v1944_v47 }
 0x1f2   : > { %v1959_v52 = vpack.c.bf16 %v1941_v54, %v12945_v14  ;;  %v2177_v14 = vld [vmem:[%s12689_s24 + $0x10b] sm:$0xff]  ;;  %v2179_v29 = vld [vmem:[%s12689_s24 + $0x11b] sm:$0x7f] }
 0x1f3   : > { %v13089_v38 = vadd.f32 %v2287_v10, %v2123_v13  ;;  %1627 = vmatmul.bf16.gmra.mxu0 %v1957_v31  ;;  %v2194_v45 = vpack.c.bf16 %v2177_v14, %v2176_v3  ;;  %v1493_v10 = vpack.c.bf16 %v1477_v19, %v1942_v17  ;;  %v1727_v13 = vpack.c.bf16 %v1711_v21, %v2176_v3  ;;  %v12053_v19 = vld [vmem:[%s15469_s3 + $0xb0] sm:$0xff]  ;;  %v2389_v22 = vld [vmem:[%s12689_s24 + $0x5c] sm:$0xff] }
 0x1f4   : > { %1861 = vmatmul.bf16.gmra.mxu1 %v2191_v0  ;;  %v1474_v0 = vld [vmem:[%s12689_s24 + $0xf2] sm:$0xff] }
 0x1f5   : > { %2095 = vmatmul.bf16.gmra.mxu2 %v1958_v32  ;;  %v12045_v47 = vld [vmem:[%s15469_s3 + $0x70] sm:$0xff] }
 0x1f6   : > { %2329 = vmatmul.bf16.gmra.mxu3 %v2192_v36  ;;  %v2388_v21 = vld [vmem:[%s12689_s24 + $0x54] sm:$0xff] }
 0x1f8   : > { %v1590_v41 = vpop.f32.mrf.mxu0 }
 0x1f9   : > { %v13095_v23 = vadd.f32 %v1590_v41, %v12888_v18  ;;  %v2382_v41 = vld [vmem:[%s12689_s24 + $0x24] sm:$0xff] }
 0x200   : > { %v1593_v51 = vpop.f32.mrf.mxu0 }
 0x201   : > { %v13102_v62 = vadd.f32 %v1593_v51, %v12908_v35  ;;  %v1492_v35 = vpack.c.bf16 %v1941_v54, %v1474_v0  ;;  %v2383_v54 = vld [vmem:[%s12689_s24 + $0x2c] sm:$0xff]  ;;  %v2385_v0 = vld [vmem:[%s12689_s24 + $0x3c] sm:$0xff] }
 0x202   : > { %v2414_v44 = vpack.c.bf16 %v2383_v54, %v2382_v41  ;;  %v12052_v54 = vld [vmem:[%s15469_s3 + $0xa8] sm:$0xff] }
 0x203   : > { %1632 = vmatmul.bf16.gmra.mxu0 %v1958_v32  ;;  %v2195_v32 = vpack.c.bf16 %v2179_v29, %v2178_v28  ;;  %v2417_v28 = vpack.c.bf16 %v2389_v22, %v2388_v21 }
 0x204   : > { %1866 = vmatmul.bf16.gmra.mxu1 %v2192_v36 }
 0x205   : > { %2100 = vmatmul.bf16.gmra.mxu2 %v1959_v52  ;;  %v12054_v52 = vld [vmem:[%s15469_s3 + $0xb8] sm:$0xff] }
 0x206   : > { %2334 = vmatmul.bf16.gmra.mxu3 %v2193_v55 }
 0x207   : > { %3504 = vmatpush.bf16.msra.mxu3 %v12054_v52  ;;  %v13201_v52 = vpop.f32.mrf.mxu3 }
 0x208   : > { %v1595_v31 = vpop.f32.mrf.mxu0 }
 0x209   : > { %v13105_v18 = vadd.f32 %v1595_v31, %v12934_v63  ;;  %v2384_v31 = vld [vmem:[%s12689_s24 + $0x34] sm:$0xff] }
 0x20a   : > { %v2415_v17 = vpack.c.bf16 %v2385_v0, %v2384_v31 }
 0x20b   : > { %3505 = vmatpush.bf16.msra.mxu3 %v12053_v19  ;;  %v2395_v19 = vld [vmem:[%s12689_s24 + $0x8c] sm:$0xff] }
 0x20f   : > { %3506 = vmatpush.bf16.msra.mxu3 %v12052_v54 }
 0x210   : > { %v1598_v4 = vpop.f32.mrf.mxu0 }
 0x211   : > { %v13113_v57 = vadd.f32 %v1598_v4, %v12939_v9  ;;  %v2386_v4 = vld [vmem:[%s12689_s24 + $0x44] sm:$0xff] }
 0x213   : > { %1637 = vmatmul.bf16.gmra.mxu0 %v1492_v35 }
 0x214   : > { %1871 = vmatmul.bf16.gmra.mxu1 %v2193_v55  ;;  %v12046_v55 = vld [vmem:[%s15469_s3 + $0x78] sm:$0xff] }
 0x215   : > { %2105 = vmatmul.bf16.gmra.mxu2 %v1960_v5  ;;  %3308 = vmatpush.bf16.msra.mxu1 %v12046_v55  ;;  %v2387_v5 = vld [vmem:[%s12689_s24 + $0x4c] sm:$0xff]  ;;  %v2393_v55 = vld [vmem:[%s12689_s24 + $0x7c] sm:$0xff] }
 0x216   : > { %2339 = vmatmul.bf16.gmra.mxu3 %v2194_v45  ;;  %v2416_v45 = vpack.c.bf16 %v2387_v5, %v2386_v4  ;;  %v13212_v4 = vpop.f32.mrf.mxu3 }
 0x218   : > { %v1600_v63 = vpop.f32.mrf.mxu0 }
 0x219   : > { %v13116_v6 = vadd.f32 %v1600_v63, %v12951_v34  ;;  %3309 = vmatpush.bf16.msra.mxu1 %v12045_v47 }
 0x220   : > { %v1603_v9 = vpop.f32.mrf.mxu0 }
 0x221   : > { %v13125_v36 = vadd.f32 %v1603_v9, %v12953_v43  ;;  %v12038_v43 = vld [vmem:[%s15469_s3 + $0x38] sm:$0xff] }
 0x222   : > { %3390 = vmatpush.bf16.msra.mxu2 %v12038_v43 }
 0x223   : > { %1642 = vmatmul.bf16.gmra.mxu0 %v1493_v10 }
 0x224   : > { %1876 = vmatmul.bf16.gmra.mxu1 %v1727_v13 }
 0x225   : > { %2110 = vmatmul.bf16.gmra.mxu2 %v1961_v56  ;;  %v2390_v56 = vld [vmem:[%s12689_s24 + $0x64] sm:$0xff] }
 0x226   : > { %2344 = vmatmul.bf16.gmra.mxu3 %v2195_v32  ;;  %v2391_v32 = vld [vmem:[%s12689_s24 + $0x6c] sm:$0xff] }
 0x228   : > { %v1605_v34 = vpop.f32.mrf.mxu0 }
 0x229   : > { %v13128_v27 = vadd.f32 %v1605_v34, %v12959_v60  ;;  %v2418_v34 = vpack.c.bf16 %v2391_v32, %v2390_v56 }
 0x230   : > { %v1608_v49 = vpop.f32.mrf.mxu0 }
 0x231   : > { %v13133_v51 = vadd.f32 %v1608_v49, %v12966_v7 }
 0x233   : > { %2503 = vmatmul.bf16.vlgmr.msra.gmra.mxu0 %v2414_v44  ;;  %v13193_v44 = vpop.f32.mrf.mxu2 }
 0x238   : > { %v1610_v60 = vpop.f32.mrf.mxu0 }
 0x239   : > { %v13145_v7 = vadd.f32 %v1610_v60, %v12970_v24  ;;  %v2392_v60 = vld [vmem:[%s12689_s24 + $0x74] sm:$0xff] }
 0x23a   : > { %v2419_v31 = vpack.c.bf16 %v2393_v55, %v2392_v60 }
 0x240   : > { %v1613_v11 = vpop.f32.mrf.mxu0 }
 0x241   : > { %v13150_v3 = vadd.f32 %v1613_v11, %v12974_v33  ;;  %v12037_v33 = vld [vmem:[%s15469_s3 + $0x30] sm:$0xff] }
 0x242   : > { %3391 = vmatpush.bf16.msra.mxu2 %v12037_v33  ;;  %v2394_v33 = vld [vmem:[%s12689_s24 + $0x84] sm:$0xff] }
 0x243   : > { %2508 = vmatmul.bf16.gmra.mxu0 %v2415_v17 }
 0x248   : > { %v1615_v14 = vpop.f32.mrf.mxu0 }
 0x249   : > { %v13153_v35 = vadd.f32 %v1615_v14, %v12978_v46  ;;  %v13210_v14 = vpop.f32.mrf.mxu2 }
 0x24b   : > { %15492 = vst [vmem:[#allocation8_spill] sm:$0xff] %v13153_v35 }
 0x250   : > { %v1618_v24 = vpop.f32.mrf.mxu0 }
 0x251   : > { %v13158_v63 = vadd.f32 %v1618_v24, %v12985_v58  ;;  %v13219_v24 = vpop.f32.mrf.mxu2 }
 0x253   : > { %15493 = vst [vmem:[#allocation9_spill] sm:$0xff] %v13158_v63  ;;  %2513 = vmatmul.bf16.gmra.mxu0 %v2416_v45  ;;  %v2407_v63 = vld [vmem:[%s12689_s24 + $0xec] sm:$0xff] }
 0x258   : > { %v1620_v46 = vpop.f32.mrf.mxu0 }
 0x259   : > { %v13170_v58 = vadd.f32 %v1620_v46, %v12991_v53  ;;  %v13223_v46 = vpop.f32.mrf.mxu3 }
 0x25b   : > { %15494 = vst [vmem:[#allocation10_spill] sm:$0xff] %v13170_v58 }
 0x260   : > { %v1623_v29 = vpop.f32.mrf.mxu0 }
 0x261   : > { %v13175_v10 = vadd.f32 %v1623_v29, %v12994_v25  ;;  %v12036_v25 = vld [vmem:[%s15469_s3 + $0x28] sm:$0xff]  ;;  %v12043_v29 = vld [vmem:[%s15469_s3 + $0x60] sm:$0xff] }
 0x262   : > { %3392 = vmatpush.bf16.msra.mxu2 %v12036_v25 }
 0x263   : > { %15495 = vst [vmem:[#allocation11_spill] sm:$0xff] %v13175_v10  ;;  %2518 = vmatmul.bf16.gmra.mxu0 %v2417_v28  ;;  %v12051_v28 = vld [vmem:[%s15469_s3 + $0xa0] sm:$0xff]  ;;  %v12502_v10 = vmov 0.0|0.0  }
 0x264   : > { %3507 = vmatpush.bf16.msra.mxu3 %v12051_v28 }
 0x268   : > { %v1625_v13 = vpop.f32.mrf.mxu0 }
 0x269   : > { %v13178_v9 = vadd.f32 %v1625_v13, %v13002_v48  ;;  %v13191_v48 = vpop.f32.mrf.mxu1  ;;  %v13239_v13 = vpop.f32.mrf.mxu2 }
 0x26b   : > { %15496 = vst [vmem:[#allocation12_spill] sm:$0xff] %v13178_v9  ;;  %v2405_v9 = vld [vmem:[%s12689_s24 + $0xdc] sm:$0xff] }
 0x270   : > { %v1628_v53 = vpop.f32.mrf.mxu0 }
 0x271   : > { %v13183_v41 = vadd.f32 %v1628_v53, %v13007_v8  ;;  %v12044_v8 = vld [vmem:[%s15469_s3 + $0x68] sm:$0xff]  ;;  %v13205_v17 = vpop.f32.mrf.mxu1  ;;  %v2397_v53 = vld [vmem:[%s12689_s24 + $0x9c] sm:$0xff] }
 0x272   : > { %3310 = vmatpush.bf16.msra.mxu1 %v12044_v8 }
 0x273   : > { %15497 = vst [vmem:[#allocation13_spill] sm:$0xff] %v13183_v41  ;;  %2523 = vmatmul.bf16.gmra.mxu0 %v2418_v34  ;;  %v2396_v34 = vld [vmem:[%s12689_s24 + $0x94] sm:$0xff] }
 0x274   : > { %v2421_v54 = vpack.c.bf16 %v2397_v53, %v2396_v34  ;;  %v12042_v34 = vld [vmem:[%s15469_s3 + $0x58] sm:$0xff] }
 0x276   : > { %3311 = vmatpush.bf16.msra.mxu1 %v12043_v29 }
 0x278   : > { %v1630_v49 = vpop.f32.mrf.mxu0 }
 0x279   : > { %v13199_v43 = vadd.f32 %v1630_v49, %v13013_v16  ;;  %v13217_v45 = vpop.f32.mrf.mxu1  ;;  %v13250_v49 = vpop.f32.mrf.mxu2 }
 0x27a   : > { %3312 = vmatpush.bf16.msra.mxu1 %v12042_v34 }
 0x27b   : > { %15498 = vst [vmem:[#allocation14_spill] sm:$0xff] %v13199_v43 }
 0x280   : > { %v1633_v0 = vpop.f32.mrf.mxu0 }
 0x281   : > { %v13208_v11 = vadd.f32 %v1633_v0, %v13015_v30  ;;  %v2420_v30 = vpack.c.bf16 %v2395_v19, %v2394_v33  ;;  %v13228_v22 = vpop.f32.mrf.mxu1  ;;  %v2398_v19 = vld [vmem:[%s12689_s24 + $0xa4] sm:$0xff] }
 0x283   : > { %15499 = vst [vmem:[#allocation15_spill] sm:$0xff] %v13208_v11  ;;  %2528 = vmatmul.bf16.gmra.mxu0 %v2419_v31  ;;  %v2403_v11 = vld [vmem:[%s12689_s24 + $0xcc] sm:$0xff] }
 0x288   : > { %v1635_v16 = vpop.f32.mrf.mxu0 }
 0x289   : > { %v13215_v5 = vadd.f32 %v1635_v16, %v13021_v50  ;;  %v12035_v50 = vld [vmem:[%s15469_s3 + $0x20] sm:$0xff]  ;;  %v13248_v25 = vpop.f32.mrf.mxu1  ;;  %v13262_v16 = vpop.f32.mrf.mxu2 }
 0x28a   : > { %3393 = vmatpush.bf16.msra.mxu2 %v12035_v50 }
 0x28b   : > { %15500 = vst [vmem:[#allocation16_spill] sm:$0xff] %v13215_v5 }
 0x290   : > { %v1638_v47 = vpop.f32.mrf.mxu0 }
 0x291   : > { %v13226_v21 = vadd.f32 %v1638_v47, %v13026_v1  ;;  %v13241_v1 = vpop.f32.mrf.mxu3  ;;  %v13257_v0 = vpop.f32.mrf.mxu1 }
 0x292   : > { %v13272_v28 = vpop.f32.mrf.mxu2 }
 0x293   : > { %15501 = vst [vmem:[#allocation17_spill] sm:$0xff] %v13226_v21  ;;  %2533 = vmatmul.bf16.gmra.mxu0 %v2420_v30  ;;  %v2399_v30 = vld [vmem:[%s12689_s24 + $0xac] sm:$0xff] }
 0x294   : > { %v2422_v47 = vpack.c.bf16 %v2399_v30, %v2398_v19  ;;  %v2400_v19 = vld [vmem:[%s12689_s24 + $0xb4] sm:$0xff]  ;;  %v2401_v30 = vld [vmem:[%s12689_s24 + $0xbc] sm:$0xff] }
 0x298   : > { %v1640_v56 = vpop.f32.mrf.mxu0 }
 0x299   : > { %v13244_v32 = vadd.f32 %v1640_v56, %v13032_v26  ;;  %v13255_v55 = vpop.f32.mrf.mxu3  ;;  %v12050_v56 = vld [vmem:[%s15469_s3 + $0x98] sm:$0xff] }
 0x29a   : > { %3508 = vmatpush.bf16.msra.mxu3 %v12050_v56 }
 0x29b   : > { %15502 = vst [vmem:[#allocation18_spill] sm:$0xff] %v13244_v32  ;;  %v2423_v32 = vpack.c.bf16 %v2401_v30, %v2400_v19  ;;  %v2402_v30 = vld [vmem:[%s12689_s24 + $0xc4] sm:$0xff] }
 0x2a0   : > { %v1643_v8 = vpop.f32.mrf.mxu0 }
 0x2a1   : > { %v13253_v60 = vadd.f32 %v1643_v8, %v13034_v40  ;;  %v13264_v33 = vpop.f32.mrf.mxu3  ;;  %v13270_v40 = vpop.f32.mrf.mxu1 }
 0x2a3   : > { %15503 = vst [vmem:[#allocation19_spill] sm:$0xff] %v13253_v60  ;;  %2538 = vmatmul.bf16.gmra.mxu0 %v2421_v54  ;;  %v13288_v54 = vld [vmem:[%s15468_s2] ss:$0 sm:$0xff]  ;;  %v13296_v60 = vpop.f32.mrf.mxu2 }
 0x2a8   : > { %v1645_v31 = vpop.f32.mrf.mxu0 }
 0x2a9   : > { %v13260_v26 = vadd.f32 %v1645_v31, %v13041_v61  ;;  %v13274_v29 = vpop.f32.mrf.mxu3  ;;  %v12034_v61 = vld [vmem:[%s15469_s3 + $0x18] sm:$0xff] }
 0x2aa   : > { %3394 = vmatpush.bf16.msra.mxu2 %v12034_v61 }
 0x2ab   : > { %15504 = vst [vmem:[#allocation20_spill] sm:$0xff] %v13260_v26 }
 0x2b0   : > { %v13268_v50 = vpop.f32.mrf.mxu0 }
 0x2b1   : > { %v13298_v21 = vpop.f32.mrf.mxu3 }
 0x2b3   : > { %2543 = vmatmul.bf16.gmra.mxu0 %v2422_v47  ;;  %v13294_v47 = vpop.f32.mrf.mxu1 }
 0x2b8   : > { %v2506_v53 = vpop.f32.mrf.mxu0 }
 0x2b9   : > { %v2585_v8 = vadd.f32 %v2506_v53, %v13054_v42  ;;  %v13304_v53 = vpop.f32.mrf.mxu2 }
 0x2bb   : > { %v2621_v31 = vadd.f32 %v13288_v54, %v2585_v8  ;;  %v13302_v34 = vpop.f32.mrf.mxu1 }
 0x2bd   : > { %v2653_v26 = vmax.f32 %v2621_v31, 0.0 }
 0x2bf   : > { %2685 = vst [vmem:[#allocation2 + $0x8] sm:$0xff] %v2653_v26  ;;  %v13307_v26 = vpop.f32.mrf.mxu3 }
 0x2c0   : > { %v2509_v5 = vpop.f32.mrf.mxu0 }
 0x2c1   : > { %v2586_v42 = vadd.f32 %v2509_v5, %v13057_v59  ;;  %v12041_v59 = vld [vmem:[%s15469_s3 + $0x50] sm:$0xff] }
 0x2c2   : > { %v12033_v5 = vld [vmem:[%s15469_s3 + $0x10] sm:$0xff]  ;;  %3313 = vmatpush.bf16.msra.mxu1 %v12041_v59 }
 0x2c3   : > { %v2622_v61 = vadd.f32 %v13288_v54, %v2586_v42  ;;  %2548 = vmatmul.bf16.gmra.mxu0 %v2423_v32  ;;  %v12049_v32 = vld [vmem:[%s15469_s3 + $0x90] sm:$0xff]  ;;  %3395 = vmatpush.bf16.msra.mxu2 %v12033_v5  ;;  %v12039_v5 = vld [vmem:[%s15469_s3 + $0x40] sm:$0xff] }
 0x2c4   : > { %3509 = vmatpush.bf16.msra.mxu3 %v12049_v32  ;;  %v12031_v32 = vld [vmem:[%s15469_s3] sm:$0xff] }
 0x2c5   : > { %v2654_v56 = vmax.f32 %v2622_v61, 0.0  ;;  %v13321_v61 = vpop.f32.mrf.mxu1 }
 0x2c7   : > { %2686 = vst [vmem:[#allocation2 + $0x10] sm:$0xff] %v2654_v56 }
 0x2c8   : > { %v2511_v8 = vpop.f32.mrf.mxu0 }
 0x2c9   : > { %v2587_v31 = vadd.f32 %v2511_v8, %v13064_v20  ;;  %v2424_v20 = vpack.c.bf16 %v2403_v11, %v2402_v30  ;;  %v15486_v8 = vmov 0.0   ;;  %v12048_v11 = vld [vmem:[%s15469_s3 + $0x88] sm:$0xff]  ;;  %v13339_v30 = vpop.f32.mrf.mxu3 }
 0x2ca   : > { %547 = vst [vmem:[#allocation3] sm:$0xff] %v15486_v8  ;;  %3510 = vmatpush.bf16.msra.mxu3 %v12048_v11 }
 0x2cb   : > { %v2623_v19 = vadd.f32 %v13288_v54, %v2587_v31  ;;  %v13325_v31 = vpop.f32.mrf.mxu2  ;;  %548 = vst [vmem:[#allocation3 + $0x8] sm:$0xff] %v15486_v8 }
 0x2cc   : > { %549 = vst [vmem:[#allocation3 + $0x10] sm:$0xff] %v15486_v8 }
 0x2cd   : > { %v2655_v43 = vmax.f32 %v2623_v19, 0.0  ;;  %v12040_v19 = vld [vmem:[%s15469_s3 + $0x48] sm:$0xff]  ;;  %550 = vst [vmem:[#allocation3 + $0x18] sm:$0xff] %v15486_v8 }
 0x2ce   : > { %3314 = vmatpush.bf16.msra.mxu1 %v12040_v19  ;;  %551 = vst [vmem:[#allocation3 + $0x20] sm:$0xff] %v15486_v8 }
 0x2cf   : > { %2687 = vst [vmem:[#allocation2 + $0x18] sm:$0xff] %v2655_v43  ;;  %v12032_v43 = vld [vmem:[%s15469_s3 + $0x8] sm:$0xff] }
 0x2d0   : > { %v2514_v42 = vpop.f32.mrf.mxu0  ;;  %3396 = vmatpush.bf16.msra.mxu2 %v12032_v43  ;;  %552 = vst [vmem:[#allocation3 + $0x28] sm:$0xff] %v15486_v8 }
 0x2d1   : > { %v2588_v56 = vadd.f32 %v2514_v42, %v13070_v37  ;;  %553 = vst [vmem:[#allocation3 + $0x30] sm:$0xff] %v15486_v8 }
 0x2d2   : > { %3315 = vmatpush.bf16.msra.mxu1 %v12039_v5  ;;  %v3228_v19 = vld [vmem:[#allocation3 + $0x1] sm:$0xff]  ;;  %554 = vst [vmem:[#allocation3 + $0x38] sm:$0xff] %v15486_v8  ;;  %v2584_v5 = vadd.f32 %v13268_v50, %v13047_v12  ;;  %v13369_v12 = vpop.f32.mrf.mxu3 }
 0x2d3   : > { %v2624_v37 = vadd.f32 %v13288_v54, %v2588_v56  ;;  %2553 = vmatmul.bf16.gmra.mxu0 %v2424_v20  ;;  %v12047_v20 = vld [vmem:[%s15469_s3 + $0x80] sm:$0xff]  ;;  %v3229_v11 = vld [vmem:[#allocation3 + $0x9] sm:$0xff]  ;;  %555 = vst [vmem:[#allocation3 + $0x40] sm:$0xff] %v15486_v8 }
 0x2d4   : > { %3397 = vmatpush.bf16.msra.mxu2 %v12031_v32  ;;  %3511 = vmatpush.bf16.msra.mxu3 %v12047_v20  ;;  %v3424_v43 = vld [vmem:[#allocation3 + $0x2] sm:$0xff]  ;;  %556 = vst [vmem:[#allocation3 + $0x48] sm:$0xff] %v15486_v8  ;;  %v13363_v20 = vpop.f32.mrf.mxu2  ;;  %v2620_v50 = vadd.f32 %v13288_v54, %v2584_v5 }
 0x2d5   : > { %v2656_v59 = vmax.f32 %v2624_v37, 0.0  ;;  %v3425_v37 = vld [vmem:[#allocation3 + $0xa] sm:$0xff]  ;;  %15506 = vst [vmem:[#allocation22_spill] sm:$0xff] %v13363_v20 }
 0x2d6   : > { %v3434_v32 = vpack.c.bf16 %v3425_v37, %v3424_v43  ;;  %557 = vst [vmem:[#allocation3 + $0x50] sm:$0xff] %v15486_v8 }
 0x2d7   : > { %2688 = vst [vmem:[#allocation2 + $0x20] sm:$0xff] %v2656_v59  ;;  %v13357_v59 = vpop.f32.mrf.mxu1  ;;  %3398 = vmatmul.bf16.vlgmr.msra.gmra.mxu2 %v12502_v10  ;;  %v2718_v10 = vld [vmem:[#allocation2 + $0x11] sm:$0xff] }
 0x2d8   : > { %v2516_v42 = vpop.f32.mrf.mxu0  ;;  %15505 = vst [vmem:[#allocation21_spill] sm:$0xff] %v13357_v59  ;;  %3512 = vmatmul.bf16.vlgmr.msra.gmra.mxu3 %v3434_v32  ;;  %v1890_v32 = vadd.f32 %v13191_v48, %v13087_v39  ;;  %v2719_v39 = vld [vmem:[#allocation2 + $0x19] sm:$0x7f] }
 0x2d9   : > { %v2589_v56 = vadd.f32 %v2516_v42, %v13077_v2  ;;  %v3238_v2 = vpack.c.bf16 %v3229_v11, %v3228_v19  ;;  %v2404_v42 = vld [vmem:[%s12689_s24 + $0xd4] sm:$0xff]  ;;  %558 = vst [vmem:[#allocation3 + $0x58] sm:$0xff] %v15486_v8 }
 0x2da   : > { %15507 = vst [vmem:[#allocation23_spill] sm:$0xff] %v13369_v12 }
 0x2db   : > { %v2625_v41 = vadd.f32 %v13288_v54, %v2589_v56  ;;  %3316 = vmatmul.bf16.vlgmr.msra.gmra.mxu1 %v3238_v2  ;;  %559 = vst [vmem:[#allocation3 + $0x60] sm:$0xff] %v15486_v8  ;;  %v2425_v56 = vpack.c.bf16 %v2405_v9, %v2404_v42  ;;  %v13391_v42 = vpop.f32.mrf.mxu3 }
 0x2dc   : > { %560 = vst [vmem:[#allocation3 + $0x68] sm:$0xff] %v15486_v8 }
 0x2dd   : > { %v2657_v58 = vmax.f32 %v2625_v41, 0.0  ;;  %561 = vst [vmem:[#allocation3 + $0x70] sm:$0xff] %v15486_v8  ;;  %v2652_v41 = vmax.f32 %v2620_v50, 0.0 }
 0x2de   : > { %562 = vst [vmem:[#allocation3 + $0x78] sm:$0xff] %v15486_v8 }
 0x2df   : > { %2689 = vst [vmem:[#allocation2 + $0x28] sm:$0xff] %v2657_v58  ;;  %v13380_v58 = vpop.f32.mrf.mxu1  ;;  %v2720_v9 = vmax.f32 %v2652_v41, %v2718_v10  ;;  %v2124_v41 = vadd.f32 %v13193_v44, %v1890_v32 }
 0x2e0   : > { %v2519_v19 = vpop.f32.mrf.mxu0  ;;  %563 = vst [vmem:[#allocation4] sm:$0xff] %v15486_v8 }
 0x2e1   : > { %v2590_v43 = vadd.f32 %v2519_v19, %v13080_v15  ;;  %564 = vst [vmem:[#allocation4 + $0x8] sm:$0xff] %v15486_v8  ;;  %v13383_v15 = vpop.f32.mrf.mxu2  ;;  %v2358_v32 = vadd.f32 %v13201_v52, %v2124_v41 }
 0x2e2   : > { %15508 = vst [vmem:[#allocation24_spill] sm:$0xff] %v13380_v58 }
 0x2e3   : > { %v2626_v11 = vadd.f32 %v13288_v54, %v2590_v43  ;;  %2558 = vmatmul.bf16.gmra.mxu0 %v2425_v56  ;;  %565 = vst [vmem:[#allocation4 + $0x10] sm:$0xff] %v15486_v8 }
 0x2e4   : > { %15509 = vst [vmem:[#allocation25_spill] sm:$0xff] %v13383_v15 }
 0x2e5   : > { %v2658_v37 = vmax.f32 %v2626_v11, 0.0  ;;  %566 = vst [vmem:[#allocation4 + $0x18] sm:$0xff] %v15486_v8 }
 0x2e6   : > { %v13385_v5 = vld [vmem:[#allocation2 + $0x22] sm:$0xff]  ;;  %15510 = vst [vmem:[#allocation26_spill] sm:$0xff] %v13391_v42 }
 0x2e7   : > { %v2724_v2 = vmax.f32 %v2720_v9, %v13385_v5  ;;  %2690 = vst [vmem:[#allocation2 + $0x30] sm:$0xff] %v2658_v37  ;;  %v13411_v59 = vpop.f32.mrf.mxu1 }
 0x2e8   : > { %v2521_v50 = vpop.f32.mrf.mxu0  ;;  %567 = vst [vmem:[#allocation5] sm:$0xff] %v15486_v8 }
 0x2e9   : > { %v2591_v56 = vadd.f32 %v2521_v50, %v13089_v38  ;;  %568 = vst [vmem:[#allocation5 + $0x8] sm:$0xff] %v15486_v8  ;;  %v2727_v19 = vsel %vm2726_vm0, %v2724_v2, -inf  ;;  %v2736_v43 = vsel %vm2735_vm1, %v2724_v2, -inf  ;;  %v2745_v10 = vsel %vm2744_vm2, %v2724_v2, -inf  ;;  %v2717_v38 = vld [vmem:[#allocation2 + $0x8] sm:$0x7f] }
 0x2ea   : > { %569 = vst [vmem:[#allocation5 + $0x10] sm:$0xff] %v15486_v8  ;;  %v2728_v48 = vrot.slane %v2727_v19, 4  ;;  %v2737_v11 = vrot.slane %v2736_v43, 4  ;;  %v2746_v9 = vrot.slane %v2745_v10, 4  ;;  %v2406_v50 = vld [vmem:[%s12689_s24 + $0xe4] sm:$0xff]  ;;  %v2721_v35 = vmax.f32 %v2717_v38, %v2719_v39 }
 0x2eb   : > { %v2627_v37 = vadd.f32 %v13288_v54, %v2591_v56  ;;  %570 = vst [vmem:[#allocation5 + $0x18] sm:$0xff] %v15486_v8  ;;  %v1891_v56 = vadd.f32 %v13205_v17, %v13095_v23  ;;  %v2754_v17 = vsel %vm2753_vm3, %v2724_v2, -inf }
 0x2ec   : > { %571 = vst [vmem:[#allocation6] sm:$0xff] %v15486_v8  ;;  %v2729_v42 = vmax.f32 %v2727_v19, %v2728_v48  ;;  %v2738_v15 = vmax.f32 %v2736_v43, %v2737_v11  ;;  %v2747_v58 = vmax.f32 %v2745_v10, %v2746_v9  ;;  %v2426_v43 = vpack.c.bf16 %v2407_v63, %v2406_v50  ;;  %v13414_v11 = vpop.f32.mrf.mxu2 }
 0x2ed   : > { %v2659_v44 = vmax.f32 %v2627_v37, 0.0  ;;  %572 = vst [vmem:[#allocation6 + $0x8] sm:$0xff] %v15486_v8  ;;  %v2125_v48 = vadd.f32 %v13210_v14, %v1891_v56 }
 0x2ee   : > { %v2723_v12 = vld [vmem:[#allocation2 + $0x2a] sm:$0x7f]  ;;  %573 = vst [vmem:[#allocation6 + $0x10] sm:$0xff] %v15486_v8  ;;  %v2730_v20 = vrot.slane %v2729_v42, 2  ;;  %v2739_v10 = vrot.slane %v2738_v15, 2  ;;  %v2748_v39 = vrot.slane %v2747_v58, 2 }
 0x2ef   : > { %v2725_v19 = vmax.f32 %v2721_v35, %v2723_v12  ;;  %2691 = vst [vmem:[#allocation2 + $0x38] sm:$0xff] %v2659_v44  ;;  %v13419_v35 = vpop.f32.mrf.mxu3 }
 0x2f0   : > { %15511 = vst [vmem:[#allocation27_spill] sm:$0xff] %v13414_v11  ;;  %v2524_v52 = vpop.f32.mrf.mxu0  ;;  %v2731_v23 = vmax.f32 %v2729_v42, %v2730_v20  ;;  %v2740_v37 = vmax.f32 %v2738_v15, %v2739_v10  ;;  %v2749_v38 = vmax.f32 %v2747_v58, %v2748_v39 }
 0x2f1   : > { %574 = vst [vmem:[#allocation6 + $0x18] sm:$0xff] %v15486_v8  ;;  %v2756_v41 = vsel %vm2755_vm4, %v2725_v19, -inf  ;;  %v2592_v9 = vadd.f32 %v2524_v52, %v2358_v32  ;;  %v2765_v50 = vsel %vm2726_vm0, %v2725_v19, -inf  ;;  %v2773_v14 = vsel %vm2735_vm1, %v2725_v19, -inf }
 0x2f2   : > { %15512 = vst [vmem:[#allocation28_spill] sm:$0xff] %v13419_v35  ;;  %v2732_v63 = vrot.slane %v2731_v23, 1  ;;  %v2757_v12 = vmax.f32 %v2754_v17, %v2756_v41  ;;  %v2741_v56 = vrot.slane %v2740_v37, 1  ;;  %v2750_v20 = vrot.slane %v2749_v38, 1 }
 0x2f3   : > { %v2628_v44 = vadd.f32 %v13288_v54, %v2592_v9  ;;  %2563 = vmatmul.bf16.gmra.mxu0 %v2426_v43  ;;  %v2766_v42 = vrot.slane %v2765_v50, 4  ;;  %v2774_v11 = vrot.slane %v2773_v14, 4  ;;  %v2781_v15 = vsel %vm2744_vm2, %v2725_v19, -inf }
 0x2f4   : > { %v2733_v2 = vmax.f32 %v2731_v23, %v2732_v63  ;;  %v2758_v8 = vrot.slane %v2757_v12, 4  ;;  %v2742_v32 = vmax.f32 %v2740_v37, %v2741_v56  ;;  %v2751_v10 = vmax.f32 %v2749_v38, %v2750_v20  ;;  %v12134_v23 = vld [vmem:[%s15469_s3 + $0x338] sm:$0xff] }
 0x2f5   : > { %v2660_v58 = vmax.f32 %v2628_v44, 0.0  ;;  %v2767_v39 = vmax.f32 %v2765_v50, %v2766_v42  ;;  %v2775_v17 = vmax.f32 %v2773_v14, %v2774_v11  ;;  %v2782_v41 = vrot.slane %v2781_v15, 4  ;;  %4744 = vmatpush.bf16.msrb.mxu0 %v12134_v23  ;;  %v2409_v42 = vld [vmem:[%s12689_s24 + $0xfc] sm:$0xff] }
 0x2f6   : > { %2734 = vst [vmem:[#allocation3 + $0x18] sm:$0x1] %v2733_v2  ;;  %v2759_v52 = vmax.f32 %v2757_v12, %v2758_v8  ;;  %v2359_v35 = vadd.f32 %v13212_v4, %v2125_v48  ;;  %v1892_v37 = vadd.f32 %v13217_v45, %v13102_v62  ;;  %v13431_v8 = vpop.f32.mrf.mxu1  ;;  %v13433_v48 = vpop.f32.mrf.mxu2  ;;  %v12133_v62 = vld [vmem:[%s15469_s3 + $0x330] sm:$0xff] }
 0x2f7   : > { %2692 = vst [vmem:[#allocation2 + $0x40] sm:$0xff] %v2660_v58  ;;  %v2768_v43 = vrot.slane %v2767_v39, 2  ;;  %v2776_v19 = vrot.slane %v2775_v17, 2  ;;  %v2783_v44 = vmax.f32 %v2781_v15, %v2782_v41  ;;  %v13440_v45 = vpop.f32.mrf.mxu3 }
 0x2f8   : > { %v2526_v9 = vpop.f32.mrf.mxu0  ;;  %2743 = vst [vmem:[#allocation3 + $0x19] sm:$0x1] %v2742_v32  ;;  %v2760_v63 = vrot.slane %v2759_v52, 2  ;;  %v2126_v14 = vadd.f32 %v13219_v24, %v1892_v37 }
 0x2f9   : > { %v2593_v11 = vadd.f32 %v2526_v9, %v2359_v35  ;;  %2752 = vst [vmem:[#allocation3 + $0x1a] sm:$0x1] %v2751_v10  ;;  %v2769_v4 = vmax.f32 %v2767_v39, %v2768_v43  ;;  %v2777_v12 = vmax.f32 %v2775_v17, %v2776_v19  ;;  %v2784_v50 = vrot.slane %v2783_v44, 2  ;;  %v2408_v35 = vld [vmem:[%s12689_s24 + $0xf4] sm:$0xff]  ;;  %4745 = vmatpush.bf16.msrb.mxu0 %v12133_v62  ;;  %v12132_v43 = vld [vmem:[%s15469_s3 + $0x328] sm:$0xff] }
 0x2fa   : > { %v2761_v38 = vmax.f32 %v2759_v52, %v2760_v63  ;;  %v2360_v17 = vadd.f32 %v13223_v46, %v2126_v14  ;;  %v2427_v41 = vpack.c.bf16 %v2409_v42, %v2408_v35  ;;  %v1893_v19 = vadd.f32 %v13228_v22, %v13105_v18 }
 0x2fb   : > { %v2629_v56 = vadd.f32 %v13288_v54, %v2593_v11  ;;  %v2770_v20 = vrot.slane %v2769_v4, 1  ;;  %v2778_v15 = vrot.slane %v2777_v12, 1  ;;  %v2785_v58 = vmax.f32 %v2783_v44, %v2784_v50  ;;  %v2791_v44 = vld [vmem:[#allocation2 + $0x33] sm:$0xff]  ;;  %v12131_v11 = vld [vmem:[%s15469_s3 + $0x320] sm:$0xff] }
 0x2fc   : > { %v2762_v2 = vrot.slane %v2761_v38, 1 }
 0x2fd   : > { %v2661_v32 = vmax.f32 %v2629_v56, 0.0  ;;  %v2771_v10 = vmax.f32 %v2769_v4, %v2770_v20  ;;  %v2779_v52 = vmax.f32 %v2777_v12, %v2778_v15  ;;  %v2786_v24 = vrot.slane %v2785_v58, 1  ;;  %4746 = vmatpush.bf16.msrb.mxu0 %v12132_v43  ;;  %v12130_v56 = vld [vmem:[%s15469_s3 + $0x318] sm:$0xff] }
 0x2fe   : > { %v2763_v39 = vmax.f32 %v2761_v38, %v2762_v2  ;;  %v13450_v37 = vpop.f32.mrf.mxu1  ;;  %v2127_v4 = vadd.f32 %v13239_v13, %v1893_v19  ;;  %v13457_v38 = vpop.f32.mrf.mxu2  ;;  %v2793_v12 = vmax.f32 %v13385_v5, %v2791_v44  ;;  %v3230_v62 = vld [vmem:[#allocation3 + $0x11] sm:$0xff]  ;;  %v1894_v5 = vadd.f32 %v13248_v25, %v13113_v57  ;;  %v2792_v35 = vld [vmem:[#allocation2 + $0x3b] sm:$0x7f] }
 0x2ff   : > { %2693 = vst [vmem:[#allocation2 + $0x48] sm:$0xff] %v2661_v32  ;;  %v2787_v9 = vmax.f32 %v2785_v58, %v2786_v24  ;;  %v13460_v18 = vpop.f32.mrf.mxu3  ;;  %v3426_v58 = vld [vmem:[#allocation3 + $0x12] sm:$0xff] }
 0x300   : > { %v2529_v23 = vpop.f32.mrf.mxu0  ;;  %2764 = vst [vmem:[#allocation3 + $0x1b] sm:$0x1] %v2763_v39  ;;  %v2361_v20 = vadd.f32 %v13241_v1, %v2127_v4  ;;  %v2128_v57 = vadd.f32 %v13250_v49, %v1894_v5  ;;  %v2410_v4 = vld [vmem:[%s12689_s24 + $0x104] sm:$0xff]  ;;  %v1895_v49 = vadd.f32 %v13257_v0, %v13116_v6 }
 0x301   : > { %v2594_v63 = vadd.f32 %v2529_v23, %v2360_v17  ;;  %2772 = vst [vmem:[#allocation3 + $0x1c] sm:$0x1] %v2771_v10  ;;  %4747 = vmatpush.bf16.msrb.mxu0 %v12131_v11  ;;  %v12128_v0 = vld [vmem:[%s15469_s3 + $0x308] sm:$0xff] }
 0x302   : > { %2780 = vst [vmem:[#allocation3 + $0x1d] sm:$0x1] %v2779_v52 }
 0x303   : > { %v2630_v46 = vadd.f32 %v13288_v54, %v2594_v63  ;;  %2568 = vmatmul.bf16.gmra.mxu0 %v2427_v41  ;;  %2788 = vst [vmem:[#allocation3 + $0x1e] sm:$0x1] %v2787_v9  ;;  %v15513_v41 = vmov 0.0   ;;  %v12129_v9 = vld [vmem:[%s15469_s3 + $0x310] sm:$0xff] }
 0x304   : > { %v2790_v63 = vld [vmem:[#allocation2 + $0x2a] sm:$0x7f] }
 0x305   : > { %v2662_v50 = vmax.f32 %v2630_v46, 0.0  ;;  %4748 = vmatpush.bf16.msrb.mxu0 %v12130_v56  ;;  %v2794_v56 = vmax.f32 %v2790_v63, %v2792_v35 }
 0x306   : > { %v13462_v22 = vld [vmem:[#allocation2 + $0x44] sm:$0xff] }
 0x307   : > { %v2797_v14 = vmax.f32 %v2793_v12, %v13462_v22  ;;  %2694 = vst [vmem:[#allocation2 + $0x50] sm:$0xff] %v2662_v50  ;;  %v2411_v12 = vld [vmem:[%s12689_s24 + $0x10c] sm:$0xff]  ;;  %v13487_v50 = vpop.f32.mrf.mxu1  ;;  %v13496_v35 = vpop.f32.mrf.mxu3 }
 0x308   : > { %v2531_v13 = vpop.f32.mrf.mxu0  ;;  %v2428_v6 = vpack.c.bf16 %v2411_v12, %v2410_v4 }
 0x309   : > { %v2799_v42 = vsel %vm2726_vm0, %v2797_v14, -inf  ;;  %v2807_v2 = vsel %vm2735_vm1, %v2797_v14, -inf  ;;  %v2815_v15 = vsel %vm2744_vm2, %v2797_v14, -inf  ;;  %v2595_v1 = vadd.f32 %v2531_v13, %v2361_v20  ;;  %v13489_v20 = vpop.f32.mrf.mxu2  ;;  %4749 = vmatpush.bf16.msrb.mxu0 %v12129_v9 }
 0x30a   : > { %v2800_v32 = vrot.slane %v2799_v42, 4  ;;  %v2808_v10 = vrot.slane %v2807_v2, 4  ;;  %v2816_v39 = vrot.slane %v2815_v15, 4  ;;  %v3231_v52 = vld [vmem:[#allocation3 + $0x19] sm:$0xff] }
 0x30b   : > { %v13474_v24 = vld [vmem:[#allocation3 + $0x18] sm:$0xff]  ;;  %v3239_v25 = vpack.c.bf16 %v3231_v52, %v3230_v62  ;;  %v2631_v11 = vadd.f32 %v13288_v54, %v2595_v1 }
 0x30c   : > { %v3427_v17 = vld [vmem:[#allocation3 + $0x1a] sm:$0xff]  ;;  %v3208_v43 = vpack.c.bf16 %v13474_v24, %v15513_v41  ;;  %v2801_v19 = vmax.f32 %v2799_v42, %v2800_v32  ;;  %v2809_v44 = vmax.f32 %v2807_v2, %v2808_v10  ;;  %v2817_v46 = vmax.f32 %v2815_v15, %v2816_v39 }
 0x30d   : > { %v3435_v23 = vpack.c.bf16 %v3427_v17, %v3426_v58  ;;  %3321 = vmatmul.bf16.gmra.mxu1 %v3239_v25  ;;  %v2663_v2 = vmax.f32 %v2631_v11, 0.0  ;;  %v2362_v15 = vadd.f32 %v13255_v55, %v2128_v57  ;;  %v2129_v58 = vadd.f32 %v13262_v16, %v1895_v49  ;;  %4750 = vmatpush.bf16.msrb.mxu0 %v12128_v0 }
 0x30e   : > { %3403 = vmatmul.bf16.gmra.mxu2 %v3208_v43  ;;  %v2802_v13 = vrot.slane %v2801_v19, 2  ;;  %v2810_v62 = vrot.slane %v2809_v44, 2  ;;  %v2818_v5 = vrot.slane %v2817_v46, 2  ;;  %v2796_v42 = vld [vmem:[#allocation2 + $0x4c] sm:$0x7f]  ;;  %v2823_v10 = vsel %vm2753_vm3, %v2797_v14, -inf }
 0x30f   : > { %3517 = vmatmul.bf16.gmra.mxu3 %v3435_v23  ;;  %v2798_v32 = vmax.f32 %v2794_v56, %v2796_v42  ;;  %2695 = vst [vmem:[#allocation2 + $0x58] sm:$0xff] %v2663_v2  ;;  %v12127_v14 = vld [vmem:[%s15469_s3 + $0x300] sm:$0xff] }
 0x310   : > { %v2534_v39 = vpop.f32.mrf.mxu0  ;;  %v2803_v1 = vmax.f32 %v2801_v19, %v2802_v13  ;;  %v2811_v52 = vmax.f32 %v2809_v44, %v2810_v62  ;;  %v2819_v17 = vmax.f32 %v2817_v46, %v2818_v5 }
 0x311   : > { %v2824_v25 = vsel %vm2755_vm4, %v2798_v32, -inf  ;;  %v2833_v55 = vsel %vm2726_vm0, %v2798_v32, -inf  ;;  %v2596_v16 = vadd.f32 %v2534_v39, %v2362_v15  ;;  %v2841_v57 = vsel %vm2735_vm1, %v2798_v32, -inf  ;;  %4751 = vmatpush.bf16.msrb.mxu0 %v12127_v14  ;;  %v2413_v14 = vld [vmem:[%s12689_s24 + $0x11c] sm:$0x7f] }
 0x312   : > { %v2825_v41 = vmax.f32 %v2823_v10, %v2824_v25  ;;  %v2834_v43 = vrot.slane %v2833_v55, 4  ;;  %v2804_v23 = vrot.slane %v2803_v1, 1  ;;  %v2812_v9 = vrot.slane %v2811_v52, 1 }
 0x313   : > { %v2632_v63 = vadd.f32 %v13288_v54, %v2596_v16  ;;  %2573 = vmatmul.bf16.gmra.mxu0 %v2428_v6  ;;  %v2820_v19 = vrot.slane %v2819_v17, 1  ;;  %v2842_v44 = vrot.slane %v2841_v57, 4  ;;  %v2849_v46 = vsel %vm2744_vm2, %v2798_v32, -inf  ;;  %v13508_v6 = vpop.f32.mrf.mxu1  ;;  %v13510_v32 = vpop.f32.mrf.mxu2 }
 0x314   : > { %v2826_v11 = vrot.slane %v2825_v41, 4  ;;  %v2835_v4 = vmax.f32 %v2833_v55, %v2834_v43  ;;  %v2805_v12 = vmax.f32 %v2803_v1, %v2804_v23  ;;  %v2813_v49 = vmax.f32 %v2811_v52, %v2812_v9 }
 0x315   : > { %v2664_v56 = vmax.f32 %v2632_v63, 0.0  ;;  %v2821_v13 = vmax.f32 %v2819_v17, %v2820_v19  ;;  %v2843_v62 = vmax.f32 %v2841_v57, %v2842_v44  ;;  %v2850_v5 = vrot.slane %v2849_v46, 4  ;;  %v2412_v63 = vld [vmem:[%s12689_s24 + $0x114] sm:$0xff] }
 0x316   : > { %v2827_v42 = vmax.f32 %v2825_v41, %v2826_v11  ;;  %v2836_v2 = vrot.slane %v2835_v4, 2  ;;  %2806 = vst [vmem:[#allocation3 + $0x23] sm:$0x1] %v2805_v12  ;;  %v2363_v15 = vadd.f32 %v13264_v33, %v2129_v58  ;;  %v1896_v17 = vadd.f32 %v13270_v40, %v13125_v36  ;;  %v13514_v58 = vpop.f32.mrf.mxu3 }
 0x317   : > { %2696 = vst [vmem:[#allocation2 + $0x60] sm:$0xff] %v2664_v56  ;;  %v2844_v0 = vrot.slane %v2843_v62, 2  ;;  %v2851_v10 = vmax.f32 %v2849_v46, %v2850_v5  ;;  %v2429_v12 = vpack.c.bf16 %v2413_v14, %v2412_v63  ;;  %v2858_v63 = vld [vmem:[#allocation2 + $0x4c] sm:$0x7f] }
 0x318   : > { %v2828_v39 = vrot.slane %v2827_v42, 2  ;;  %v2837_v1 = vmax.f32 %v2835_v4, %v2836_v2  ;;  %v2536_v52 = vpop.f32.mrf.mxu0  ;;  %2814 = vst [vmem:[#allocation3 + $0x24] sm:$0x1] %v2813_v49  ;;  %v2130_v41 = vadd.f32 %v13272_v28, %v1896_v17  ;;  %v1897_v28 = vadd.f32 %v13294_v47, %v13128_v27 }
 0x319   : > { %v2597_v25 = vadd.f32 %v2536_v52, %v2363_v15  ;;  %2822 = vst [vmem:[#allocation3 + $0x25] sm:$0x1] %v2821_v13  ;;  %v2845_v55 = vmax.f32 %v2843_v62, %v2844_v0  ;;  %v2852_v33 = vrot.slane %v2851_v10, 2  ;;  %v1898_v52 = vadd.f32 %v13302_v34, %v13133_v51 }
 0x31a   : > { %v2829_v16 = vmax.f32 %v2827_v42, %v2828_v39  ;;  %v2838_v57 = vrot.slane %v2837_v1, 1  ;;  %v2364_v4 = vadd.f32 %v13274_v29, %v2130_v41  ;;  %v2859_v42 = vld [vmem:[#allocation2 + $0x55] sm:$0xff]  ;;  %v2131_v2 = vadd.f32 %v13296_v60, %v1897_v28 }
 0x31b   : > { %v2633_v43 = vadd.f32 %v13288_v54, %v2597_v25  ;;  %v2846_v23 = vrot.slane %v2845_v55, 1  ;;  %v2853_v9 = vmax.f32 %v2851_v10, %v2852_v33  ;;  %v13523_v13 = vpop.f32.mrf.mxu1  ;;  %v13525_v5 = vpop.f32.mrf.mxu2  ;;  %v2861_v0 = vmax.f32 %v13462_v22, %v2859_v42 }
 0x31c   : > { %v2830_v19 = vrot.slane %v2829_v16, 1  ;;  %v2839_v44 = vmax.f32 %v2837_v1, %v2838_v57  ;;  %v2365_v27 = vadd.f32 %v13298_v21, %v2131_v2  ;;  %v2132_v41 = vadd.f32 %v13304_v53, %v1898_v52 }
 0x31d   : > { %v2665_v46 = vmax.f32 %v2633_v43, 0.0  ;;  %v2847_v36 = vmax.f32 %v2845_v55, %v2846_v23  ;;  %v2854_v40 = vrot.slane %v2853_v9, 1  ;;  %v13543_v21 = vld [vmem:[#allocation3 + $0x1c] sm:$0xff] }
 0x31e   : > { %v2831_v11 = vmax.f32 %v2829_v16, %v2830_v19  ;;  %2840 = vst [vmem:[#allocation3 + $0x27] sm:$0x1] %v2839_v44  ;;  %v13529_v15 = vpop.f32.mrf.mxu3  ;;  %v2860_v22 = vld [vmem:[#allocation2 + $0x5d] sm:$0x7f]  ;;  %v1899_v44 = vadd.f32 %v13321_v61, %v13145_v7 }
 0x31f   : > { %2697 = vst [vmem:[#allocation2 + $0x68] sm:$0xff] %v2665_v46  ;;  %v2855_v49 = vmax.f32 %v2853_v9, %v2854_v40  ;;  %v2862_v46 = vmax.f32 %v2858_v63, %v2860_v22 }
 0x320   : > { %v2539_v56 = vpop.f32.mrf.mxu0  ;;  %2832 = vst [vmem:[#allocation3 + $0x26] sm:$0x1] %v2831_v11  ;;  %v2133_v28 = vadd.f32 %v13325_v31, %v1899_v44 }
 0x321   : > { %v2598_v62 = vadd.f32 %v2539_v56, %v2364_v4  ;;  %2848 = vst [vmem:[#allocation3 + $0x28] sm:$0x1] %v2847_v36  ;;  %v2366_v56 = vadd.f32 %v13307_v26, %v2132_v41 }
 0x322   : > { %2856 = vst [vmem:[#allocation3 + $0x29] sm:$0x1] %v2855_v49 }
 0x323   : > { %v2634_v29 = vadd.f32 %v13288_v54, %v2598_v62  ;;  %2578 = vmatmul.bf16.gmra.mxu0 %v2429_v12  ;;  %v13546_v43 = vpop.f32.mrf.mxu1  ;;  %v13551_v9 = vpop.f32.mrf.mxu2 }
 0x325   : > { %v2666_v10 = vmax.f32 %v2634_v29, 0.0 }
 0x326   : > { %v13532_v39 = vld [vmem:[#allocation2 + $0x66] sm:$0xff]  ;;  %v13557_v11 = vpop.f32.mrf.mxu3 }
 0x327   : > { %v2865_v47 = vmax.f32 %v2861_v0, %v13532_v39  ;;  %2698 = vst [vmem:[#allocation2 + $0x70] sm:$0xff] %v2666_v10  ;;  %v13555_v40 = vld [vmem:[#allocation3 + $0x20] sm:$0xff] }
 0x328   : > { %v2541_v1 = vpop.f32.mrf.mxu0  ;;  %v4674_v61 = vpack.c.bf16 %v13555_v40, %v13474_v24 }
 0x329   : > { %v2599_v60 = vadd.f32 %v2541_v1, %v2365_v27  ;;  %v2867_v17 = vsel %vm2726_vm0, %v2865_v47, -inf  ;;  %v2875_v25 = vsel %vm2735_vm1, %v2865_v47, -inf  ;;  %v13540_v55 = vld [vmem:[#allocation3 + $0x24] sm:$0xff]  ;;  %v2883_v57 = vsel %vm2744_vm2, %v2865_v47, -inf }
 0x32a   : > { %v2868_v33 = vrot.slane %v2867_v17, 4  ;;  %v2876_v16 = vrot.slane %v2875_v25, 4  ;;  %v2884_v34 = vrot.slane %v2883_v57, 4  ;;  %v3931_v23 = vpack.c.bf16 %v13540_v55, %v13543_v21  ;;  %v12121_v55 = vld [vmem:[%s15469_s3 + $0x2d0] sm:$0xff] }
 0x32b   : > { %v2635_v51 = vadd.f32 %v13288_v54, %v2599_v60  ;;  %v2891_v2 = vsel %vm2753_vm3, %v2865_v47, -inf  ;;  %v13571_v44 = vpop.f32.mrf.mxu2  ;;  %v12193_v21 = vld [vmem:[%s15469_s3 + $0x510] sm:$0xff] }
 0x32c   : > { %v2869_v14 = vmax.f32 %v2867_v17, %v2868_v33  ;;  %v2877_v19 = vmax.f32 %v2875_v25, %v2876_v16  ;;  %v2885_v53 = vmax.f32 %v2883_v57, %v2884_v34 }
 0x32d   : > { %v2667_v36 = vmax.f32 %v2635_v51, 0.0  ;;  %v13569_v51 = vpop.f32.mrf.mxu1 }
 0x32e   : > { %v2864_v4 = vld [vmem:[#allocation2 + $0x6e] sm:$0x7f]  ;;  %v2870_v12 = vrot.slane %v2869_v14, 2  ;;  %v2878_v49 = vrot.slane %v2877_v19, 2  ;;  %v2886_v42 = vrot.slane %v2885_v53, 2 }
 0x32f   : > { %v2866_v62 = vmax.f32 %v2862_v46, %v2864_v4  ;;  %2699 = vst [vmem:[#allocation2 + $0x78] sm:$0xff] %v2667_v36 }
 0x330   : > { %v2544_v7 = vpop.f32.mrf.mxu0  ;;  %v2871_v29 = vmax.f32 %v2869_v14, %v2870_v12  ;;  %v2879_v0 = vmax.f32 %v2877_v19, %v2878_v49  ;;  %v2887_v1 = vmax.f32 %v2885_v53, %v2886_v42  ;;  %v2367_v53 = vadd.f32 %v13339_v30, %v2133_v28  ;;  %v13574_v49 = vpop.f32.mrf.mxu3  ;;  %v15515_v30 = vld [vmem:[#allocation22_spill] sm:$0xff] }
 0x331   : > { %v2892_v10 = vsel %vm2755_vm4, %v2866_v62, -inf  ;;  %v2600_v27 = vadd.f32 %v2544_v7, %v2366_v56  ;;  %v2901_v52 = vsel %vm2726_vm0, %v2866_v62, -inf  ;;  %v2909_v22 = vsel %vm2735_vm1, %v2866_v62, -inf }
 0x332   : > { %v2872_v26 = vrot.slane %v2871_v29, 1  ;;  %v2880_v60 = vrot.slane %v2879_v0, 1  ;;  %v2893_v31 = vmax.f32 %v2891_v2, %v2892_v10  ;;  %v2902_v17 = vrot.slane %v2901_v52, 4  ;;  %v15514_v2 = vld [vmem:[#allocation21_spill] sm:$0xff] }
 0x333   : > { %v2636_v25 = vadd.f32 %v13288_v54, %v2600_v27  ;;  %4752 = vmatmul.bf16.vlgmr.msrb.gmra.mxu0 %v4674_v61  ;;  %v2888_v47 = vrot.slane %v2887_v1, 1  ;;  %v2917_v24 = vsel %vm2744_vm2, %v2866_v62, -inf  ;;  %v2910_v14 = vrot.slane %v2909_v22, 4 }
 0x334   : > { %v2873_v33 = vmax.f32 %v2871_v29, %v2872_v26  ;;  %v2881_v16 = vmax.f32 %v2879_v0, %v2880_v60  ;;  %v2894_v57 = vrot.slane %v2893_v31, 4  ;;  %v2903_v41 = vmax.f32 %v2901_v52, %v2902_v17 }
 0x335   : > { %v2668_v34 = vmax.f32 %v2636_v25, 0.0  ;;  %v2889_v63 = vmax.f32 %v2887_v1, %v2888_v47  ;;  %v2918_v19 = vrot.slane %v2917_v24, 4  ;;  %v2911_v4 = vmax.f32 %v2909_v22, %v2910_v14  ;;  %v12078_v14 = vld [vmem:[%s15469_s3 + $0x178] sm:$0xff] }
 0x336   : > { %2874 = vst [vmem:[#allocation3 + $0x2e] sm:$0x1] %v2873_v33  ;;  %v2895_v46 = vmax.f32 %v2893_v31, %v2894_v57  ;;  %v2904_v36 = vrot.slane %v2903_v41, 2  ;;  %v1900_v7 = vadd.f32 %v15514_v2, %v13150_v3  ;;  %v2927_v10 = vld [vmem:[#allocation2 + $0x77] sm:$0xff]  ;;  %v13585_v57 = vpop.f32.mrf.mxu1  ;;  %3876 = vmatpush.bf16.msrb.mxu3 %v12078_v14 }
 0x337   : > { %2700 = vst [vmem:[#allocation2 + $0x80] sm:$0xff] %v2668_v34  ;;  %v2919_v12 = vmax.f32 %v2917_v24, %v2918_v19  ;;  %v2912_v29 = vrot.slane %v2911_v4, 2  ;;  %v2929_v25 = vmax.f32 %v13532_v39, %v2927_v10  ;;  %v15516_v33 = vld [vmem:[#allocation23_spill] sm:$0xff]  ;;  %v15517_v19 = vld [vmem:[#allocation8_spill] sm:$0xff] }
 0x338   : > { %v2546_v56 = vpop.f32.mrf.mxu0  ;;  %2882 = vst [vmem:[#allocation3 + $0x2f] sm:$0x1] %v2881_v16  ;;  %v2896_v62 = vrot.slane %v2895_v46, 2  ;;  %v2905_v42 = vmax.f32 %v2903_v41, %v2904_v36  ;;  %v2134_v28 = vadd.f32 %v15515_v30, %v1900_v7  ;;  %v12070_v39 = vld [vmem:[%s15469_s3 + $0x138] sm:$0xff]  ;;  %v15519_v30 = vld [vmem:[#allocation25_spill] sm:$0xff] }
 0x339   : > { %v2601_v61 = vadd.f32 %v2546_v56, %v2367_v53  ;;  %2890 = vst [vmem:[#allocation3 + $0x30] sm:$0x1] %v2889_v63  ;;  %v2920_v0 = vrot.slane %v2919_v12, 2  ;;  %v2913_v26 = vmax.f32 %v2911_v4, %v2912_v29  ;;  %v13601_v53 = vpop.f32.mrf.mxu2  ;;  %3752 = vmatpush.bf16.msrb.mxu2 %v12070_v39  ;;  %v12077_v29 = vld [vmem:[%s15469_s3 + $0x170] sm:$0xff] }
 0x33a   : > { %v2897_v27 = vmax.f32 %v2895_v46, %v2896_v62  ;;  %v2906_v1 = vrot.slane %v2905_v42, 1  ;;  %v2368_v16 = vadd.f32 %v15516_v33, %v2134_v28  ;;  %v15518_v46 = vld [vmem:[#allocation24_spill] sm:$0xff]  ;;  %3877 = vmatpush.bf16.msrb.mxu3 %v12077_v29 }
 0x33b   : > { %v13580_v52 = vadd.f32 %v13288_v54, %v2601_v61  ;;  %v2921_v60 = vmax.f32 %v2919_v12, %v2920_v0  ;;  %v2914_v47 = vrot.slane %v2913_v26, 1  ;;  %v1901_v36 = vadd.f32 %v15518_v46, %v15517_v19  ;;  %v3232_v12 = vld [vmem:[#allocation3 + $0x21] sm:$0xff]  ;;  %v12069_v61 = vld [vmem:[%s15469_s3 + $0x130] sm:$0xff]  ;;  %v13616_v0 = vpop.f32.mrf.mxu3 }
 0x33c   : > { %v2898_v31 = vrot.slane %v2897_v27, 1  ;;  %v2907_v17 = vmax.f32 %v2905_v42, %v2906_v1  ;;  %v12062_v42 = vld [vmem:[%s15469_s3 + $0xf8] sm:$0xff] }
 0x33d   : > { %v2669_v3 = vmax.f32 %v13580_v52, 0.0  ;;  %v2922_v22 = vrot.slane %v2921_v60, 1  ;;  %v2915_v34 = vmax.f32 %v2913_v26, %v2914_v47  ;;  %3628 = vmatpush.bf16.msrb.mxu1 %v12062_v42  ;;  %v2135_v28 = vadd.f32 %v15519_v30, %v1901_v36  ;;  %v13626_v26 = vld [vmem:[%s15468_s2] ss:$0 sm:$0xff]  ;;  %3753 = vmatpush.bf16.msrb.mxu2 %v12069_v61  ;;  %v12073_v52 = vld [vmem:[%s15469_s3 + $0x150] sm:$0xff] }
 0x33e   : > { %v2899_v24 = vmax.f32 %v2897_v27, %v2898_v31  ;;  %2908 = vst [vmem:[#allocation3 + $0x32] sm:$0x1] %v2907_v17  ;;  %v13634_v61 = vpop.f32.mrf.mxu1 }
 0x33f   : > { %v13589_v54 = vmax.f32 %v2929_v25, %v2669_v3  ;;  %v13591_v41 = vld [vmem:[#allocation3 + $0x28] sm:$0xff]  ;;  %v2923_v63 = vmax.f32 %v2921_v60, %v2922_v22  ;;  %2916 = vst [vmem:[#allocation3 + $0x33] sm:$0x1] %v2915_v34 }
 0x340   : > { %v2549_v4 = vpop.f32.mrf.mxu0  ;;  %v3233_v56 = vld [vmem:[#allocation3 + $0x29] sm:$0xff]  ;;  %v3209_v62 = vpack.c.bf16 %v13591_v41, %v13555_v40  ;;  %2900 = vst [vmem:[#allocation3 + $0x31] sm:$0x1] %v2899_v24 }
 0x341   : > { %v2602_v2 = vadd.f32 %v2549_v4, %v2368_v16  ;;  %v3240_v7 = vpack.c.bf16 %v3233_v56, %v3232_v12  ;;  %v2935_v40 = vsel %vm2726_vm0, %v13589_v54, -inf  ;;  %2924 = vst [vmem:[#allocation3 + $0x34] sm:$0x1] %v2923_v63  ;;  %v2943_v27 = vsel %vm2735_vm1, %v13589_v54, -inf  ;;  %v15520_v16 = vld [vmem:[#allocation26_spill] sm:$0xff]  ;;  %v3428_v63 = vld [vmem:[#allocation3 + $0x22] sm:$0xff]  ;;  %v13636_v29 = vpop.f32.mrf.mxu2 }
 0x342   : > { %3408 = vmatmul.bf16.gmra.mxu2 %v3209_v62  ;;  %v2936_v10 = vrot.slane %v2935_v40, 4  ;;  %v2951_v1 = vsel %vm2744_vm2, %v13589_v54, -inf  ;;  %v2944_v31 = vrot.slane %v2943_v27, 4  ;;  %v2369_v34 = vadd.f32 %v15520_v16, %v2135_v28  ;;  %v15521_v12 = vld [vmem:[#allocation9_spill] sm:$0xff] }
 0x343   : > { %v2638_v60 = vadd.f32 %v13626_v26, %v2602_v2  ;;  %3326 = vmatmul.bf16.gmra.mxu1 %v3240_v7  ;;  %v2952_v17 = vrot.slane %v2951_v1, 4  ;;  %v1902_v56 = vadd.f32 %v13411_v59, %v15521_v12  ;;  %v12061_v12 = vld [vmem:[%s15469_s3 + $0xf0] sm:$0xff] }
 0x344   : > { %v2937_v25 = vmax.f32 %v2935_v40, %v2936_v10  ;;  %v2945_v22 = vmax.f32 %v2943_v27, %v2944_v31  ;;  %v2928_v40 = vld [vmem:[#allocation2 + $0x7f] sm:$0x7f]  ;;  %v13642_v31 = vpop.f32.mrf.mxu3  ;;  %3629 = vmatpush.bf16.msrb.mxu1 %v12061_v12  ;;  %v12076_v12 = vld [vmem:[%s15469_s3 + $0x168] sm:$0xff] }
 0x345   : > { %v2670_v47 = vmax.f32 %v2638_v60, 0.0  ;;  %v2953_v24 = vmax.f32 %v2951_v1, %v2952_v17  ;;  %v15522_v1 = vld [vmem:[#allocation27_spill] sm:$0xff]  ;;  %v2926_v17 = vld [vmem:[#allocation2 + $0x6e] sm:$0x7f]  ;;  %3878 = vmatpush.bf16.msrb.mxu3 %v12076_v12 }
 0x346   : > { %v2938_v33 = vrot.slane %v2937_v25, 2  ;;  %v2946_v14 = vrot.slane %v2945_v22, 2  ;;  %v2136_v30 = vadd.f32 %v15522_v1, %v1902_v56  ;;  %v12068_v56 = vld [vmem:[%s15469_s3 + $0x128] sm:$0xff] }
 0x347   : > { %2702 = vst [vmem:[#allocation2 + $0x90] sm:$0xff] %v2670_v47  ;;  %v3429_v39 = vld [vmem:[#allocation3 + $0x2a] sm:$0xff]  ;;  %v2954_v19 = vrot.slane %v2953_v24, 2  ;;  %v2930_v47 = vmax.f32 %v2926_v17, %v2928_v40  ;;  %3754 = vmatpush.bf16.msrb.mxu2 %v12068_v56 }
 0x348   : > { %v2551_v46 = vpop.f32.mrf.mxu0  ;;  %v3436_v36 = vpack.c.bf16 %v3429_v39, %v3428_v63  ;;  %v2939_v4 = vmax.f32 %v2937_v25, %v2938_v33  ;;  %v13632_v42 = vld [vmem:[#allocation3 + $0x30] sm:$0xff]  ;;  %v2947_v2 = vmax.f32 %v2945_v22, %v2946_v14  ;;  %v2959_v39 = vsel %vm2753_vm3, %v13589_v54, -inf }
 0x349   : > { %v2603_v62 = vadd.f32 %v2551_v46, %v2369_v34  ;;  %v2955_v7 = vmax.f32 %v2953_v24, %v2954_v19  ;;  %v4675_v10 = vpack.c.bf16 %v13632_v42, %v13591_v41  ;;  %v15523_v34 = vld [vmem:[#allocation28_spill] sm:$0xff]  ;;  %v15524_v19 = vld [vmem:[#allocation10_spill] sm:$0xff] }
 0x34a   : > { %3522 = vmatmul.bf16.gmra.mxu3 %v3436_v36  ;;  %v2940_v27 = vrot.slane %v2939_v4, 1  ;;  %v2948_v59 = vrot.slane %v2947_v2, 1  ;;  %v2370_v41 = vadd.f32 %v15523_v34, %v2136_v30  ;;  %v1903_v46 = vadd.f32 %v13431_v8, %v15524_v19  ;;  %v13661_v30 = vpop.f32.mrf.mxu1 }
 0x34b   : > { %v2639_v28 = vadd.f32 %v13626_v26, %v2603_v62  ;;  %v2956_v60 = vrot.slane %v2955_v7, 1  ;;  %4757 = vmatmul.bf16.gmra.mxu0 %v4675_v10 }
 0x34c   : > { %v2941_v25 = vmax.f32 %v2939_v4, %v2940_v27  ;;  %v2949_v24 = vmax.f32 %v2947_v2, %v2948_v59  ;;  %v2137_v40 = vadd.f32 %v13433_v48, %v1903_v46  ;;  %v13670_v46 = vld [vmem:[#allocation3 + $0x2c] sm:$0xff] }
 0x34d   : > { %v2671_v22 = vmax.f32 %v2639_v28, 0.0  ;;  %v2957_v33 = vmax.f32 %v2955_v7, %v2956_v60  ;;  %v13663_v28 = vpop.f32.mrf.mxu2 }
 0x34e   : > { %v2932_v16 = vld [vmem:[#allocation2 + $0x90] sm:$0x7f]  ;;  %2942 = vst [vmem:[#allocation3 + $0x39] sm:$0x1] %v2941_v25  ;;  %v2371_v48 = vadd.f32 %v13440_v45, %v2137_v40 }
 0x34f   : > { %v2934_v63 = vmax.f32 %v2930_v47, %v2932_v16  ;;  %2703 = vst [vmem:[#allocation2 + $0x98] sm:$0xff] %v2671_v22  ;;  %v13665_v22 = vpop.f32.mrf.mxu3 }
 0x350   : > { %v2554_v14 = vpop.f32.mrf.mxu0  ;;  %2950 = vst [vmem:[#allocation3 + $0x3a] sm:$0x1] %v2949_v24 }
 0x351   : > { %v2960_v36 = vsel %vm2755_vm4, %v2934_v63, -inf  ;;  %v2604_v4 = vadd.f32 %v2554_v14, %v2370_v41  ;;  %2958 = vst [vmem:[#allocation3 + $0x3b] sm:$0x1] %v2957_v33  ;;  %v2969_v62 = vsel %vm2726_vm0, %v2934_v63, -inf  ;;  %v2977_v7 = vsel %vm2735_vm1, %v2934_v63, -inf  ;;  %v15525_v41 = vld [vmem:[#allocation11_spill] sm:$0xff] }
 0x352   : > { %v2961_v54 = vmax.f32 %v2959_v39, %v2960_v36  ;;  %v2970_v2 = vrot.slane %v2969_v62, 4  ;;  %v2985_v8 = vsel %vm2744_vm2, %v2934_v63, -inf  ;;  %v2978_v27 = vrot.slane %v2977_v7, 4 }
 0x353   : > { %v2640_v10 = vadd.f32 %v13626_v26, %v2604_v4  ;;  %v2986_v1 = vrot.slane %v2985_v8, 4  ;;  %v1904_v63 = vadd.f32 %v13450_v37, %v15525_v41 }
 0x354   : > { %v2962_v59 = vrot.slane %v2961_v54, 4  ;;  %v2971_v60 = vmax.f32 %v2969_v62, %v2970_v2  ;;  %v2979_v25 = vmax.f32 %v2977_v7, %v2978_v27  ;;  %v12060_v62 = vld [vmem:[%s15469_s3 + $0xe8] sm:$0xff] }
 0x355   : > { %v2672_v17 = vmax.f32 %v2640_v10, 0.0  ;;  %v2987_v47 = vmax.f32 %v2985_v8, %v2986_v1  ;;  %v2138_v7 = vadd.f32 %v13457_v38, %v1904_v63  ;;  %3630 = vmatpush.bf16.msrb.mxu1 %v12060_v62  ;;  %v12067_v38 = vld [vmem:[%s15469_s3 + $0x120] sm:$0xff]  ;;  %v12074_v62 = vld [vmem:[%s15469_s3 + $0x158] sm:$0xff] }
 0x356   : > { %v2963_v24 = vmax.f32 %v2961_v54, %v2962_v59  ;;  %v2972_v33 = vrot.slane %v2971_v60, 2  ;;  %v2980_v16 = vrot.slane %v2979_v25, 2  ;;  %v15526_v63 = vld [vmem:[#allocation12_spill] sm:$0xff]  ;;  %3755 = vmatpush.bf16.msrb.mxu2 %v12067_v38 }
 0x357   : > { %2704 = vst [vmem:[#allocation2 + $0xa0] sm:$0xff] %v2672_v17  ;;  %v2988_v34 = vrot.slane %v2987_v47, 2  ;;  %v13686_v17 = vpop.f32.mrf.mxu1 }
 0x358   : > { %v2556_v39 = vpop.f32.mrf.mxu0  ;;  %v2964_v14 = vrot.slane %v2963_v24, 2  ;;  %v2973_v19 = vmax.f32 %v2971_v60, %v2972_v33  ;;  %v13672_v36 = vld [vmem:[#allocation3 + $0x34] sm:$0xff]  ;;  %v2981_v56 = vmax.f32 %v2979_v25, %v2980_v16  ;;  %v13688_v25 = vpop.f32.mrf.mxu2  ;;  %v2372_v33 = vadd.f32 %v13460_v18, %v2138_v7  ;;  %v12059_v16 = vld [vmem:[%s15469_s3 + $0xe0] sm:$0xff] }
 0x359   : > { %v2605_v4 = vadd.f32 %v2556_v39, %v2371_v48  ;;  %v2989_v45 = vmax.f32 %v2987_v47, %v2988_v34  ;;  %v13682_v37 = vpack.c.bf16 %v13672_v36, %v13670_v46  ;;  %v12075_v48 = vld [vmem:[%s15469_s3 + $0x160] sm:$0xff]  ;;  %v13700_v34 = vpop.f32.mrf.mxu3  ;;  %v1905_v18 = vadd.f32 %v13487_v50, %v15526_v63  ;;  %3631 = vmatpush.bf16.msrb.mxu1 %v12059_v16  ;;  %v12066_v50 = vld [vmem:[%s15469_s3 + $0x118] sm:$0xff] }
 0x35a   : > { %v2965_v54 = vmax.f32 %v2963_v24, %v2964_v14  ;;  %v2974_v2 = vrot.slane %v2973_v19, 1  ;;  %v2982_v40 = vrot.slane %v2981_v56, 1  ;;  %3879 = vmatpush.bf16.msrb.mxu3 %v12075_v48  ;;  %v3234_v7 = vld [vmem:[#allocation3 + $0x31] sm:$0xff]  ;;  %3756 = vmatpush.bf16.msrb.mxu2 %v12066_v50 }
 0x35b   : > { %v2641_v8 = vadd.f32 %v13626_v26, %v2605_v4  ;;  %v2990_v10 = vrot.slane %v2989_v45, 1  ;;  %v2139_v14 = vadd.f32 %v13489_v20, %v1905_v18  ;;  %v12058_v20 = vld [vmem:[%s15469_s3 + $0xd8] sm:$0xff] }
 0x35c   : > { %v2966_v27 = vrot.slane %v2965_v54, 1  ;;  %v2975_v1 = vmax.f32 %v2973_v19, %v2974_v2  ;;  %v2983_v60 = vmax.f32 %v2981_v56, %v2982_v40 }
 0x35d   : > { %v2673_v59 = vmax.f32 %v2641_v8, 0.0  ;;  %v2991_v24 = vmax.f32 %v2989_v45, %v2990_v10  ;;  %v2373_v45 = vadd.f32 %v13496_v35, %v2139_v14  ;;  %v3430_v8 = vld [vmem:[#allocation3 + $0x32] sm:$0xff]  ;;  %v15527_v10 = vld [vmem:[#allocation13_spill] sm:$0xff]  ;;  %3632 = vmatpush.bf16.msrb.mxu1 %v12058_v20 }
 0x35e   : > { %v2967_v47 = vmax.f32 %v2965_v54, %v2966_v27  ;;  %2976 = vst [vmem:[#allocation3 + $0x3d] sm:$0x1] %v2975_v1  ;;  %v1906_v35 = vadd.f32 %v13508_v6, %v15527_v10  ;;  %3880 = vmatpush.bf16.msrb.mxu3 %v12074_v62 }
 0x35f   : > { %2705 = vst [vmem:[#allocation2 + $0xa8] sm:$0xff] %v2673_v59  ;;  %v3317_v12 = vpop.f32.mrf.mxu1 }
 0x360   : > { %v2559_v41 = vpop.f32.mrf.mxu0  ;;  %2968 = vst [vmem:[#allocation3 + $0x3c] sm:$0x1] %v2967_v47  ;;  %v3399_v56 = vpop.f32.mrf.mxu2  ;;  %v2140_v16 = vadd.f32 %v13510_v32, %v1906_v35 }
 0x361   : > { %v2606_v39 = vadd.f32 %v2559_v41, %v2372_v33  ;;  %2984 = vst [vmem:[#allocation3 + $0x3e] sm:$0x1] %v2983_v60  ;;  %v3400_v54 = vadd.f32 %v3399_v56, %v3317_v12  ;;  %v3513_v40 = vpop.f32.mrf.mxu3  ;;  %v12065_v12 = vld [vmem:[%s15469_s3 + $0x110] sm:$0xff]  ;;  %v2996_v56 = vld [vmem:[#allocation2 + $0xa1] sm:$0x7f] }
 0x362   : > { %2992 = vst [vmem:[#allocation3 + $0x3f] sm:$0x1] %v2991_v24  ;;  %v2995_v24 = vld [vmem:[#allocation2 + $0x99] sm:$0xff]  ;;  %3757 = vmatpush.bf16.msrb.mxu2 %v12065_v12  ;;  %3881 = vmatpush.bf16.msrb.mxu3 %v12073_v52 }
 0x363   : > { %v2642_v19 = vadd.f32 %v13626_v26, %v2606_v39  ;;  %v13720_v47 = vadd.f32 %v3513_v40, %v3400_v54  ;;  %v2997_v41 = vmax.f32 %v2669_v3, %v2995_v24  ;;  %v2374_v39 = vadd.f32 %v13514_v58, %v2140_v16 }
 0x365   : > { %v2674_v4 = vmax.f32 %v2642_v19, 0.0  ;;  %v15528_v19 = vld [vmem:[#allocation14_spill] sm:$0xff] }
 0x366   : > { %v1907_v32 = vadd.f32 %v13523_v13, %v15528_v19 }
 0x367   : > { %2706 = vst [vmem:[#allocation2 + $0xb0] sm:$0xff] %v2674_v4 }
 0x368   : > { %v2561_v2 = vpop.f32.mrf.mxu0  ;;  %v2141_v62 = vadd.f32 %v13525_v5, %v1907_v32 }
 0x369   : > { %v2607_v27 = vadd.f32 %v2561_v2, %v2373_v45  ;;  %v3235_v1 = vld [vmem:[#allocation3 + $0x39] sm:$0xff]  ;;  %v2994_v2 = vld [vmem:[#allocation2 + $0x90] sm:$0x7f] }
 0x36a   : > { %v13718_v59 = vld [vmem:[#allocation3 + $0x38] sm:$0xff]  ;;  %v3241_v33 = vpack.c.bf16 %v3235_v1, %v3234_v7 }
 0x36b   : > { %v3431_v60 = vld [vmem:[#allocation3 + $0x3a] sm:$0xff]  ;;  %v3210_v38 = vpack.c.bf16 %v13718_v59, %v13632_v42  ;;  %v2643_v6 = vadd.f32 %v13626_v26, %v2607_v27 }
 0x36c   : > { %v3437_v48 = vpack.c.bf16 %v3431_v60, %v3430_v8  ;;  %3331 = vmatmul.bf16.gmra.mxu1 %v3241_v33  ;;  %v2998_v8 = vmax.f32 %v2994_v2, %v2996_v56  ;;  %v15529_v27 = vld [vmem:[#allocation15_spill] sm:$0xff]  ;;  %v2375_v33 = vadd.f32 %v13529_v15, %v2141_v62  ;;  %v12064_v15 = vld [vmem:[%s15469_s3 + $0x108] sm:$0xff] }
 0x36d   : > { %3413 = vmatmul.bf16.gmra.mxu2 %v3210_v38  ;;  %v2675_v63 = vmax.f32 %v2643_v6, 0.0  ;;  %v1908_v1 = vadd.f32 %v13546_v43, %v15529_v27  ;;  %v12057_v43 = vld [vmem:[%s15469_s3 + $0xd0] sm:$0xff]  ;;  %v12056_v27 = vld [vmem:[%s15469_s3 + $0xc8] sm:$0xff] }
 0x36e   : > { %3527 = vmatmul.bf16.gmra.mxu3 %v3437_v48  ;;  %v13728_v18 = vld [vmem:[#allocation2 + $0xaa] sm:$0xff]  ;;  %3633 = vmatpush.bf16.msrb.mxu1 %v12057_v43 }
 0x36f   : > { %v3001_v14 = vmax.f32 %v2997_v41, %v13728_v18  ;;  %2707 = vst [vmem:[#allocation2 + $0xb8] sm:$0xff] %v2675_v63  ;;  %v2142_v16 = vadd.f32 %v13551_v9, %v1908_v1  ;;  %3758 = vmatpush.bf16.msrb.mxu2 %v12064_v15  ;;  %v12055_v15 = vld [vmem:[%s15469_s3 + $0xc0] sm:$0xff] }
 0x370   : > { %v2564_v42 = vpop.f32.mrf.mxu0 }
 0x371   : > { %v2608_v4 = vadd.f32 %v2564_v42, %v2374_v39  ;;  %v3003_v3 = vsel %vm2726_vm0, %v3001_v14, -inf  ;;  %v3011_v45 = vsel %vm2735_vm1, %v3001_v14, -inf  ;;  %v3019_v50 = vsel %vm2744_vm2, %v3001_v14, -inf }
 0x372   : > { %v3004_v58 = vrot.slane %v3003_v3, 4  ;;  %v3012_v54 = vrot.slane %v3011_v45, 4  ;;  %v3020_v20 = vrot.slane %v3019_v50, 4  ;;  %v3027_v6 = vsel %vm2753_vm3, %v3001_v14, -inf  ;;  %3634 = vmatpush.bf16.msrb.mxu1 %v12056_v27 }
 0x373   : > { %v2644_v13 = vadd.f32 %v13626_v26, %v2608_v4  ;;  %v2376_v1 = vadd.f32 %v13557_v11, %v2142_v16  ;;  %v12063_v11 = vld [vmem:[%s15469_s3 + $0x100] sm:$0xff] }
 0x374   : > { %v3005_v7 = vmax.f32 %v3003_v3, %v3004_v58  ;;  %v3013_v10 = vmax.f32 %v3011_v45, %v3012_v54  ;;  %v3021_v35 = vmax.f32 %v3019_v50, %v3020_v20  ;;  %v12071_v16 = vld [vmem:[%s15469_s3 + $0x140] sm:$0xff]  ;;  %3759 = vmatpush.bf16.msrb.mxu2 %v12063_v11 }
 0x375   : > { %v2676_v40 = vmax.f32 %v2644_v13, 0.0 }
 0x376   : > { %v3000_v60 = vld [vmem:[#allocation2 + $0xb2] sm:$0x7f]  ;;  %v3006_v24 = vrot.slane %v3005_v7, 2  ;;  %v3014_v38 = vrot.slane %v3013_v10, 2  ;;  %v3022_v48 = vrot.slane %v3021_v35, 2  ;;  %3635 = vmatpush.bf16.msrb.mxu1 %v12055_v15 }
 0x377   : > { %v3002_v5 = vmax.f32 %v2998_v8, %v3000_v60  ;;  %2708 = vst [vmem:[#allocation2 + $0xc0] sm:$0xff] %v2676_v40  ;;  %v12072_v8 = vld [vmem:[%s15469_s3 + $0x148] sm:$0xff] }
 0x378   : > { %v2566_v41 = vpop.f32.mrf.mxu0  ;;  %v3007_v63 = vmax.f32 %v3005_v7, %v3006_v24  ;;  %v3015_v19 = vmax.f32 %v3013_v10, %v3014_v38  ;;  %v3023_v32 = vmax.f32 %v3021_v35, %v3022_v48  ;;  %3882 = vmatpush.bf16.msrb.mxu3 %v12072_v8  ;;  %v15530_v48 = vld [vmem:[#allocation16_spill] sm:$0xff] }
 0x379   : > { %v3028_v39 = vsel %vm2755_vm4, %v3002_v5, -inf  ;;  %v2609_v42 = vadd.f32 %v2566_v41, %v2375_v33  ;;  %v3037_v9 = vsel %vm2726_vm0, %v3002_v5, -inf  ;;  %v3045_v14 = vsel %vm2735_vm1, %v3002_v5, -inf }
 0x37a   : > { %v3008_v4 = vrot.slane %v3007_v63, 1  ;;  %v3029_v12 = vmax.f32 %v3027_v6, %v3028_v39  ;;  %v3016_v3 = vrot.slane %v3015_v19, 1  ;;  %v3024_v56 = vrot.slane %v3023_v32, 1 }
 0x37b   : > { %v2645_v52 = vadd.f32 %v13626_v26, %v2609_v42  ;;  %v3038_v58 = vrot.slane %v3037_v9, 4  ;;  %v3046_v62 = vrot.slane %v3045_v14, 4  ;;  %v3053_v13 = vsel %vm2744_vm2, %v3002_v5, -inf }
 0x37c   : > { %v3009_v45 = vmax.f32 %v3007_v63, %v3008_v4  ;;  %v3030_v50 = vrot.slane %v3029_v12, 4  ;;  %v3017_v20 = vmax.f32 %v3015_v19, %v3016_v3  ;;  %v3025_v2 = vmax.f32 %v3023_v32, %v3024_v56  ;;  %3883 = vmatpush.bf16.msrb.mxu3 %v12071_v16  ;;  %v13783_v56 = vpop.f32.mrf.mxu2 }
 0x37d   : > { %v2677_v54 = vmax.f32 %v2645_v52, 0.0  ;;  %v3039_v7 = vmax.f32 %v3037_v9, %v3038_v58  ;;  %v3047_v10 = vmax.f32 %v3045_v14, %v3046_v62  ;;  %v3054_v35 = vrot.slane %v3053_v13, 4  ;;  %v13781_v14 = vpop.f32.mrf.mxu1  ;;  %v13786_v62 = vpop.f32.mrf.mxu3 }
 0x37e   : > { %3010 = vst [vmem:[#allocation3 + $0x44] sm:$0x1] %v3009_v45  ;;  %v3031_v40 = vmax.f32 %v3029_v12, %v3030_v50  ;;  %v1909_v6 = vadd.f32 %v13569_v51, %v15530_v48  ;;  %v3063_v8 = vld [vmem:[#allocation2 + $0xbb] sm:$0xff] }
 0x37f   : > { %2709 = vst [vmem:[#allocation2 + $0xc8] sm:$0xff] %v2677_v54  ;;  %v3040_v60 = vrot.slane %v3039_v7, 2  ;;  %v3048_v5 = vrot.slane %v3047_v10, 2  ;;  %v3055_v38 = vmax.f32 %v3053_v13, %v3054_v35 }
 0x380   : > { %v2569_v24 = vpop.f32.mrf.mxu0  ;;  %3018 = vst [vmem:[#allocation3 + $0x45] sm:$0x1] %v3017_v20  ;;  %v3032_v33 = vrot.slane %v3031_v40, 2  ;;  %v2143_v51 = vadd.f32 %v13571_v44, %v1909_v6  ;;  %v15531_v20 = vld [vmem:[#allocation17_spill] sm:$0xff] }
 0x381   : > { %v2610_v41 = vadd.f32 %v2569_v24, %v2376_v1  ;;  %3026 = vst [vmem:[#allocation3 + $0x46] sm:$0x1] %v3025_v2  ;;  %v3041_v63 = vmax.f32 %v3039_v7, %v3040_v60  ;;  %v3049_v42 = vmax.f32 %v3047_v10, %v3048_v5  ;;  %v3056_v43 = vrot.slane %v3055_v38, 2 }
 0x382   : > { %v3033_v39 = vmax.f32 %v3031_v40, %v3032_v33  ;;  %v2377_v44 = vadd.f32 %v13574_v49, %v2143_v51  ;;  %v1910_v2 = vadd.f32 %v13585_v57, %v15531_v20  ;;  %v3065_v49 = vmax.f32 %v13728_v18, %v3063_v8  ;;  %v15532_v33 = vld [vmem:[#allocation18_spill] sm:$0xff] }
 0x383   : > { %v2646_v19 = vadd.f32 %v13626_v26, %v2610_v41  ;;  %v3042_v32 = vrot.slane %v3041_v63, 1  ;;  %v3050_v12 = vrot.slane %v3049_v42, 1  ;;  %v3057_v9 = vmax.f32 %v3055_v38, %v3056_v43  ;;  %v15533_v43 = vld [vmem:[#allocation19_spill] sm:$0xff] }
 0x384   : > { %v3034_v4 = vrot.slane %v3033_v39, 1  ;;  %v2144_v40 = vadd.f32 %v13601_v53, %v1910_v2  ;;  %v1911_v5 = vadd.f32 %v13634_v61, %v15532_v33  ;;  %v1912_v11 = vadd.f32 %v13661_v30, %v15533_v43  ;;  %v3062_v30 = vld [vmem:[#allocation2 + $0xb2] sm:$0x7f]  ;;  %v13823_v2 = vld [vmem:[#allocation3 + $0x3c] sm:$0xff] }
 0x385   : > { %v2678_v52 = vmax.f32 %v2646_v19, 0.0  ;;  %v3043_v3 = vmax.f32 %v3041_v63, %v3042_v32  ;;  %v3051_v45 = vmax.f32 %v3049_v42, %v3050_v12  ;;  %v3058_v50 = vrot.slane %v3057_v9, 1 }
 0x386   : > { %v3035_v58 = vmax.f32 %v3033_v39, %v3034_v4  ;;  %v2378_v1 = vadd.f32 %v13616_v0, %v2144_v40  ;;  %v12094_v0 = vld [vmem:[%s15469_s3 + $0x1f8] sm:$0xff]  ;;  %v2145_v61 = vadd.f32 %v13636_v29, %v1911_v5 }
 0x387   : > { %2710 = vst [vmem:[#allocation2 + $0xd0] sm:$0xff] %v2678_v52  ;;  %v3059_v54 = vmax.f32 %v3057_v9, %v3058_v50  ;;  %v12102_v39 = vld [vmem:[%s15469_s3 + $0x238] sm:$0xff]  ;;  %4124 = vmatpush.bf16.msra.mxu2 %v12094_v0 }
 0x388   : > { %v2571_v13 = vpop.f32.mrf.mxu0  ;;  %3036 = vst [vmem:[#allocation3 + $0x47] sm:$0x1] %v3035_v58  ;;  %v12086_v29 = vld [vmem:[%s15469_s3 + $0x1b8] sm:$0xff]  ;;  %4248 = vmatpush.bf16.msra.mxu3 %v12102_v39 }
 0x389   : > { %v2611_v7 = vadd.f32 %v2571_v13, %v2377_v44  ;;  %3044 = vst [vmem:[#allocation3 + $0x48] sm:$0x1] %v3043_v3  ;;  %4000 = vmatpush.bf16.msra.mxu1 %v12086_v29 }
 0x38a   : > { %3052 = vst [vmem:[#allocation3 + $0x49] sm:$0x1] %v3051_v45  ;;  %v3322_v24 = vpop.f32.mrf.mxu1 }
 0x38b   : > { %v2647_v10 = vadd.f32 %v13626_v26, %v2611_v7  ;;  %3060 = vst [vmem:[#allocation3 + $0x4a] sm:$0x1] %v3059_v54  ;;  %v2379_v7 = vadd.f32 %v13642_v31, %v2145_v61 }
 0x38d   : > { %v2679_v35 = vmax.f32 %v2647_v10, 0.0 }
 0x38e   : > { %v13793_v27 = vld [vmem:[#allocation2 + $0xcc] sm:$0xff] }
 0x38f   : > { %v3069_v60 = vmax.f32 %v3065_v49, %v13793_v27  ;;  %2711 = vst [vmem:[#allocation2 + $0xd8] sm:$0xff] %v2679_v35  ;;  %v3205_v57 = vld [vmem:[#allocation3 + $0x40] sm:$0xff]  ;;  %v2146_v49 = vadd.f32 %v13663_v28, %v1912_v11  ;;  %v12085_v28 = vld [vmem:[%s15469_s3 + $0x1b0] sm:$0xff]  ;;  %v12092_v11 = vld [vmem:[%s15469_s3 + $0x1e8] sm:$0xff] }
 0x390   : > { %v2574_v53 = vpop.f32.mrf.mxu0  ;;  %v3236_v48 = vld [vmem:[#allocation3 + $0x41] sm:$0xff]  ;;  %v4676_v6 = vpack.c.bf16 %v3205_v57, %v13718_v59  ;;  %4001 = vmatpush.bf16.msra.mxu1 %v12085_v28 }
 0x391   : > { %v3404_v38 = vpop.f32.mrf.mxu2  ;;  %v2612_v18 = vadd.f32 %v2574_v53, %v2378_v1  ;;  %v13800_v63 = vld [vmem:[#allocation3 + $0x42] sm:$0xff]  ;;  %v3071_v42 = vsel %vm2726_vm0, %v3069_v60, -inf  ;;  %v3079_v45 = vsel %vm2735_vm1, %v3069_v60, -inf  ;;  %v3087_v50 = vsel %vm2744_vm2, %v3069_v60, -inf  ;;  %v12093_v53 = vld [vmem:[%s15469_s3 + $0x1f0] sm:$0xff] }
 0x392   : > { %v3405_v41 = vadd.f32 %v3404_v38, %v3322_v24  ;;  %v3064_v59 = vld [vmem:[#allocation2 + $0xc3] sm:$0x7f]  ;;  %v3518_v16 = vpop.f32.mrf.mxu3  ;;  %4762 = vmatmul.bf16.gmra.mxu0 %v4676_v6  ;;  %v3433_v9 = vld [vmem:[#allocation3 + $0x4a] sm:$0x1f]  ;;  %v3072_v58 = vrot.slane %v3071_v42, 4  ;;  %v3080_v54 = vrot.slane %v3079_v45, 4  ;;  %v2380_v39 = vadd.f32 %v13665_v22, %v2146_v49  ;;  %4125 = vmatpush.bf16.msra.mxu2 %v12093_v53 }
 0x393   : > { %v3237_v15 = vld [vmem:[#allocation3 + $0x49] sm:$0x1f]  ;;  %v2648_v32 = vadd.f32 %v13626_v26, %v2612_v18  ;;  %v3438_v3 = vpack.c.bf16 %v3433_v9, %v13800_v63  ;;  %v3066_v44 = vmax.f32 %v3062_v30, %v3064_v59  ;;  %v3088_v20 = vrot.slane %v3087_v50, 4 }
 0x394   : > { %v3206_v51 = vld [vmem:[#allocation3 + $0x48] sm:$0x1f]  ;;  %v13812_v19 = vadd.f32 %v3518_v16, %v3405_v41  ;;  %v3242_v4 = vpack.c.bf16 %v3237_v15, %v3236_v48  ;;  %v3073_v40 = vmax.f32 %v3071_v42, %v3072_v58  ;;  %v3081_v1 = vmax.f32 %v3079_v45, %v3080_v54  ;;  %v12101_v48 = vld [vmem:[%s15469_s3 + $0x230] sm:$0xff] }
 0x395   : > { %v3211_v12 = vpack.c.bf16 %v3206_v51, %v3205_v57  ;;  %v13818_v52 = vld [vmem:[#allocation3 + $0x44] sm:$0xff]  ;;  %v2680_v13 = vmax.f32 %v2648_v32, 0.0  ;;  %3532 = vmatmul.bf16.gmra.mxu3 %v3438_v3  ;;  %v3089_v24 = vmax.f32 %v3087_v50, %v3088_v20  ;;  %v3095_v5 = vsel %vm2753_vm3, %v3069_v60, -inf }
 0x396   : > { %3336 = vmatmul.bf16.gmra.mxu1 %v3242_v4  ;;  %v3068_v8 = vld [vmem:[#allocation2 + $0xd4] sm:$0x7f]  ;;  %v13828_v10 = vpack.c.bf16 %v13818_v52, %v13823_v2  ;;  %v3074_v33 = vrot.slane %v3073_v40, 2  ;;  %v3082_v6 = vrot.slane %v3081_v1, 2  ;;  %4249 = vmatpush.bf16.msra.mxu3 %v12101_v48  ;;  %v12100_v22 = vld [vmem:[%s15469_s3 + $0x228] sm:$0xff] }
 0x397   : > { %3418 = vmatmul.bf16.gmra.mxu2 %v3211_v12  ;;  %v3070_v35 = vmax.f32 %v3066_v44, %v3068_v8  ;;  %2712 = vst [vmem:[#allocation2 + $0xe0] sm:$0xff] %v2680_v13  ;;  %v3090_v18 = vrot.slane %v3089_v24, 2  ;;  %v12084_v32 = vld [vmem:[%s15469_s3 + $0x1a8] sm:$0xff]  ;;  %v15534_v13 = vld [vmem:[#allocation20_spill] sm:$0xff] }
 0x398   : > { %v2576_v57 = vpop.f32.mrf.mxu0  ;;  %v3075_v41 = vmax.f32 %v3073_v40, %v3074_v33  ;;  %v3083_v61 = vmax.f32 %v3081_v1, %v3082_v6  ;;  %v3548_v12 = vld [vmem:[#allocation3 + $0x3] sm:$0xff]  ;;  %v1913_v54 = vadd.f32 %v13686_v17, %v15534_v13  ;;  %v3549_v20 = vld [vmem:[#allocation3 + $0xb] sm:$0xff]  ;;  %4126 = vmatpush.bf16.msra.mxu2 %v12092_v11  ;;  %4002 = vmatpush.bf16.msra.mxu1 %v12084_v32 }
 0x399   : > { %v3096_v31 = vsel %vm2755_vm4, %v3070_v35, -inf  ;;  %v2613_v38 = vadd.f32 %v2576_v57, %v2379_v7  ;;  %v3105_v60 = vsel %vm2726_vm0, %v3070_v35, -inf  ;;  %v3091_v16 = vmax.f32 %v3089_v24, %v3090_v18  ;;  %v3672_v3 = vld [vmem:[#allocation3 + $0x4] sm:$0xff]  ;;  %v13858_v24 = vld [vmem:[#allocation3 + $0xc] sm:$0xff] }
 0x39a   : > { %v3097_v0 = vmax.f32 %v3095_v5, %v3096_v31  ;;  %v3106_v43 = vrot.slane %v3105_v60, 4  ;;  %v3076_v59 = vrot.slane %v3075_v41, 1  ;;  %v3113_v51 = vsel %vm2735_vm1, %v3070_v35, -inf  ;;  %4250 = vmatpush.bf16.msra.mxu3 %v12100_v22  ;;  %v12091_v17 = vld [vmem:[%s15469_s3 + $0x1e0] sm:$0xff] }
 0x39b   : > { %v2649_v42 = vadd.f32 %v13626_v26, %v2613_v38  ;;  %v3084_v9 = vrot.slane %v3083_v61, 1  ;;  %v3114_v30 = vrot.slane %v3113_v51, 4  ;;  %v3092_v45 = vrot.slane %v3091_v16, 1  ;;  %v13864_v38 = vld [vmem:[#allocation3 + $0x13] sm:$0xff] }
 0x39c   : > { %v3098_v15 = vrot.slane %v3097_v0, 4  ;;  %v3107_v29 = vmax.f32 %v3105_v60, %v3106_v43  ;;  %v3077_v58 = vmax.f32 %v3075_v41, %v3076_v59  ;;  %v3121_v44 = vsel %vm2744_vm2, %v3070_v35, -inf  ;;  %4127 = vmatpush.bf16.msra.mxu2 %v12091_v17 }
 0x39d   : > { %v2681_v4 = vmax.f32 %v2649_v42, 0.0  ;;  %v3085_v7 = vmax.f32 %v3083_v61, %v3084_v9  ;;  %v3115_v40 = vmax.f32 %v3113_v51, %v3114_v30  ;;  %v3558_v1 = vpack.c.bf16 %v3549_v20, %v3548_v12  ;;  %v12166_v51 = vld [vmem:[%s15469_s3 + $0x438] sm:$0xff]  ;;  %v12165_v30 = vld [vmem:[%s15469_s3 + $0x430] sm:$0xff] }
 0x39e   : > { %v3099_v50 = vmax.f32 %v3097_v0, %v3098_v15  ;;  %v3108_v8 = vrot.slane %v3107_v29, 2  ;;  %3078 = vst [vmem:[#allocation3 + $0x4f] sm:$0x1] %v3077_v58  ;;  %v3093_v57 = vmax.f32 %v3091_v16, %v3092_v45  ;;  %v3122_v5 = vrot.slane %v3121_v44, 4  ;;  %5240 = vmatpush.bf16.msra.mxu0 %v12166_v51  ;;  %v12089_v51 = vld [vmem:[%s15469_s3 + $0x1d0] sm:$0xff] }
 0x39f   : > { %2713 = vst [vmem:[#allocation2 + $0xe8] sm:$0xff] %v2681_v4  ;;  %v3682_v31 = vpack.c.bf16 %v13858_v24, %v3672_v3  ;;  %v3116_v48 = vrot.slane %v3115_v40, 2  ;;  %v2147_v41 = vadd.f32 %v13688_v25, %v1913_v54  ;;  %v3806_v42 = vpack.c.bf16 %v13864_v38, %v3549_v20  ;;  %v12099_v25 = vld [vmem:[%s15469_s3 + $0x220] sm:$0xff]  ;;  %v12164_v54 = vld [vmem:[%s15469_s3 + $0x428] sm:$0xff]  ;;  %v12098_v20 = vld [vmem:[%s15469_s3 + $0x218] sm:$0xff] }
 0x3a0   : > { %v2579_v49 = vpop.f32.mrf.mxu0  ;;  %v3100_v33 = vrot.slane %v3099_v50, 2  ;;  %3086 = vst [vmem:[#allocation3 + $0x50] sm:$0x1] %v3085_v7  ;;  %v3109_v53 = vmax.f32 %v3107_v29, %v3108_v8  ;;  %v3123_v6 = vmax.f32 %v3121_v44, %v3122_v5  ;;  %v12083_v4 = vld [vmem:[%s15469_s3 + $0x1a0] sm:$0xff]  ;;  %4251 = vmatpush.bf16.msra.mxu3 %v12099_v25  ;;  %v13904_v5 = vld [vmem:[#allocation3 + $0x14] sm:$0xff] }
 0x3a1   : > { %v2614_v35 = vadd.f32 %v2579_v49, %v2380_v39  ;;  %3094 = vst [vmem:[#allocation3 + $0x51] sm:$0x1] %v3093_v57  ;;  %v3117_v60 = vmax.f32 %v3115_v40, %v3116_v48  ;;  %v2381_v22 = vadd.f32 %v13700_v34, %v2147_v41  ;;  %4003 = vmatpush.bf16.msra.mxu1 %v12083_v4  ;;  %v12090_v34 = vld [vmem:[%s15469_s3 + $0x1d8] sm:$0xff]  ;;  %v13896_v40 = vld [vmem:[#allocation3 + $0x23] sm:$0xff] }
 0x3a2   : > { %v3101_v28 = vmax.f32 %v3099_v50, %v3100_v33  ;;  %v3110_v0 = vrot.slane %v3109_v53, 1  ;;  %v3124_v61 = vrot.slane %v3123_v6, 2  ;;  %v3131_v3 = vld [vmem:[#allocation2 + $0xdd] sm:$0xff]  ;;  %4128 = vmatpush.bf16.msra.mxu2 %v12090_v34  ;;  %5241 = vmatpush.bf16.msra.mxu0 %v12165_v30  ;;  %v12081_v30 = vld [vmem:[%s15469_s3 + $0x190] sm:$0xff] }
 0x3a3   : > { %v2650_v18 = vadd.f32 %v13626_v26, %v2614_v35  ;;  %v3118_v59 = vrot.slane %v3117_v60, 1  ;;  %v3133_v50 = vmax.f32 %v13793_v27, %v3131_v3  ;;  %v3551_v8 = vld [vmem:[#allocation3 + $0x1b] sm:$0xff] }
 0x3a4   : > { %v3102_v39 = vrot.slane %v3101_v28, 1  ;;  %v3111_v11 = vmax.f32 %v3109_v53, %v3110_v0  ;;  %v3125_v15 = vmax.f32 %v3123_v6, %v3124_v61  ;;  %4252 = vmatpush.bf16.msra.mxu3 %v12098_v20  ;;  %v12163_v27 = vld [vmem:[%s15469_s3 + $0x420] sm:$0xff]  ;;  %v3559_v53 = vpack.c.bf16 %v3551_v8, %v13864_v38  ;;  %v3130_v0 = vld [vmem:[#allocation2 + $0xd4] sm:$0x7f] }
 0x3a5   : > { %v2682_v43 = vmax.f32 %v2650_v18, 0.0  ;;  %3884 = vmatmul.bf16.vlgmr.msrb.gmra.mxu3 %v3806_v42  ;;  %v3119_v32 = vmax.f32 %v3117_v60, %v3118_v59  ;;  %v12490_v48 = vld [vmem:[#allocation3 + $0x1c] sm:$0xff]  ;;  %v3807_v6 = vpack.c.bf16 %v13896_v40, %v3551_v8  ;;  %v4670_v41 = vld [vmem:[#allocation3 + $0x48] sm:$0xff] }
 0x3a6   : > { %3636 = vmatmul.bf16.vlgmr.msrb.gmra.mxu1 %v3558_v1  ;;  %v3103_v16 = vmax.f32 %v3101_v28, %v3102_v39  ;;  %v3126_v9 = vrot.slane %v3125_v15, 1  ;;  %3112 = vst [vmem:[#allocation3 + $0x53] sm:$0x1] %v3111_v11  ;;  %5242 = vmatpush.bf16.msra.mxu0 %v12164_v54  ;;  %v3132_v33 = vld [vmem:[#allocation2 + $0xe5] sm:$0x7f]  ;;  %v3683_v28 = vpack.c.bf16 %v12490_v48, %v13904_v5 }
 0x3a7   : > { %3760 = vmatmul.bf16.vlgmr.msrb.gmra.mxu2 %v3682_v31  ;;  %2714 = vst [vmem:[#allocation2 + $0xf0] sm:$0xff] %v2682_v43  ;;  %v3134_v43 = vmax.f32 %v3130_v0, %v3132_v33 }
 0x3a8   : > { %v2581_v12 = vpop.f32.mrf.mxu0  ;;  %3104 = vst [vmem:[#allocation3 + $0x52] sm:$0x1] %v3103_v16  ;;  %v3127_v58 = vmax.f32 %v3125_v15, %v3126_v9  ;;  %v12162_v15 = vld [vmem:[%s15469_s3 + $0x418] sm:$0xff]  ;;  %4129 = vmatpush.bf16.msra.mxu2 %v12089_v51 }
 0x3a9   : > { %v2615_v29 = vadd.f32 %v2581_v12, %v2381_v22  ;;  %3120 = vst [vmem:[#allocation3 + $0x54] sm:$0x1] %v3119_v32  ;;  %v12097_v22 = vld [vmem:[%s15469_s3 + $0x210] sm:$0xff] }
 0x3aa   : > { %3128 = vst [vmem:[#allocation3 + $0x55] sm:$0x1] %v3127_v58  ;;  %5243 = vmatpush.bf16.msra.mxu0 %v12163_v27  ;;  %4253 = vmatpush.bf16.msra.mxu3 %v12097_v22 }
 0x3ab   : > { %v2651_v45 = vadd.f32 %v13626_v26, %v2615_v29  ;;  %v12082_v26 = vld [vmem:[%s15469_s3 + $0x198] sm:$0xff]  ;;  %v12161_v29 = vld [vmem:[%s15469_s3 + $0x410] sm:$0xff] }
 0x3ac   : > { %4004 = vmatpush.bf16.msra.mxu1 %v12082_v26 }
 0x3ad   : > { %v2683_v44 = vmax.f32 %v2651_v45, 0.0 }
 0x3ae   : > { %v3135_v13 = vld [vmem:[#allocation2 + $0xee] sm:$0xff]  ;;  %5244 = vmatpush.bf16.msra.mxu0 %v12162_v15  ;;  %v12491_v15 = vld [vmem:[#allocation3 + $0x24] sm:$0xff] }
 0x3af   : > { %v3137_v7 = vmax.f32 %v3133_v50, %v3135_v13  ;;  %2715 = vst [vmem:[#allocation2 + $0xf8] sm:$0x7f] %v2683_v44  ;;  %v12088_v50 = vld [vmem:[%s15469_s3 + $0x1c8] sm:$0xff] }
 0x3b0   : > { %v12096_v44 = vld [vmem:[%s15469_s3 + $0x208] sm:$0xff]  ;;  %4005 = vmatpush.bf16.msra.mxu1 %v12081_v30  ;;  %4130 = vmatpush.bf16.msra.mxu2 %v12088_v50  ;;  %v12087_v50 = vld [vmem:[%s15469_s3 + $0x1c0] sm:$0xff] }
 0x3b1   : > { %v3139_v49 = vsel %vm2726_vm0, %v3137_v7, -inf  ;;  %v3147_v1 = vsel %vm2735_vm1, %v3137_v7, -inf  ;;  %v3155_v57 = vsel %vm2744_vm2, %v3137_v7, -inf  ;;  %v4671_v18 = vld [vmem:[#allocation3 + $0x50] sm:$0xff]  ;;  %v3163_v32 = vsel %vm2753_vm3, %v3137_v7, -inf  ;;  %4254 = vmatpush.bf16.msra.mxu3 %v12096_v44  ;;  %v12095_v44 = vld [vmem:[%s15469_s3 + $0x200] sm:$0xff] }
 0x3b2   : > { %v3140_v17 = vrot.slane %v3139_v49, 4  ;;  %v3148_v35 = vrot.slane %v3147_v1, 4  ;;  %v3156_v31 = vrot.slane %v3155_v57, 4  ;;  %v4677_v60 = vpack.c.bf16 %v4671_v18, %v4670_v41  ;;  %5245 = vmatpush.bf16.msra.mxu0 %v12161_v29  ;;  %v3553_v41 = vld [vmem:[#allocation3 + $0x2b] sm:$0xff] }
 0x3b4   : > { %v3141_v42 = vmax.f32 %v3139_v49, %v3140_v17  ;;  %v3149_v39 = vmax.f32 %v3147_v1, %v3148_v35  ;;  %v3157_v61 = vmax.f32 %v3155_v57, %v3156_v31  ;;  %4767 = vmatmul.bf16.gmra.mxu0 %v4677_v60  ;;  %v12160_v17 = vld [vmem:[%s15469_s3 + $0x408] sm:$0xff]  ;;  %v13938_v35 = vpop.f32.mrf.mxu1  ;;  %v13940_v31 = vpop.f32.mrf.mxu2  ;;  %4131 = vmatpush.bf16.msra.mxu2 %v12087_v50 }
 0x3b5   : > { %3889 = vmatmul.bf16.gmra.mxu3 %v3807_v6  ;;  %v3930_v50 = vpack.c.bf16 %v13904_v5, %v13858_v24  ;;  %v12107_v24 = vld [vmem:[%s15469_s3 + $0x260] sm:$0xff]  ;;  %v12197_v5 = vld [vmem:[%s15469_s3 + $0x530] sm:$0xff] }
 0x3b6   : > { %3641 = vmatmul.bf16.gmra.mxu1 %v3559_v53  ;;  %v3136_v11 = vld [vmem:[#allocation2 + $0xf6] sm:$0x7f]  ;;  %v3142_v38 = vrot.slane %v3141_v42, 2  ;;  %v3150_v59 = vrot.slane %v3149_v39, 2  ;;  %v3158_v16 = vrot.slane %v3157_v61, 2  ;;  %5246 = vmatpush.bf16.msra.mxu0 %v12160_v17 }
 0x3b7   : > { %3765 = vmatmul.bf16.gmra.mxu2 %v3683_v28  ;;  %v3138_v25 = vmax.f32 %v3134_v43, %v3136_v11  ;;  %4255 = vmatpush.bf16.msra.mxu3 %v12095_v44  ;;  %v12118_v17 = vld [vmem:[%s15469_s3 + $0x2b8] sm:$0xff] }
 0x3b8   : > { %v3143_v4 = vmax.f32 %v3141_v42, %v3142_v38  ;;  %v3151_v12 = vmax.f32 %v3149_v39, %v3150_v59  ;;  %v3159_v9 = vmax.f32 %v3157_v61, %v3158_v16  ;;  %v12159_v39 = vld [vmem:[%s15469_s3 + $0x400] sm:$0xff]  ;;  %v3801_v61 = vld [vmem:[#allocation3 + $0x33] sm:$0xff]  ;;  %v3560_v59 = vpack.c.bf16 %v3553_v41, %v13896_v40  ;;  %4496 = vmatpush.bf16.msrb.mxu2 %v12118_v17 }
 0x3b9   : > { %v3164_v34 = vsel %vm2755_vm4, %v3138_v25, -inf  ;;  %v3173_v3 = vsel %vm2726_vm0, %v3138_v25, -inf  ;;  %v3181_v58 = vsel %vm2735_vm1, %v3138_v25, -inf  ;;  %v3189_v45 = vsel %vm2744_vm2, %v3138_v25, -inf }
 0x3ba   : > { %v3144_v13 = vrot.slane %v3143_v4, 1  ;;  %v3152_v54 = vrot.slane %v3151_v12, 1  ;;  %v3160_v20 = vrot.slane %v3159_v9, 1  ;;  %v3165_v7 = vmax.f32 %v3163_v32, %v3164_v34  ;;  %5247 = vmatpush.bf16.msra.mxu0 %v12159_v39 }
 0x3bb   : > { %v3174_v26 = vrot.slane %v3173_v3, 4  ;;  %v3182_v8 = vrot.slane %v3181_v58, 4  ;;  %v3190_v27 = vrot.slane %v3189_v45, 4  ;;  %v3684_v25 = vpack.c.bf16 %v13670_v46, %v12491_v15  ;;  %v12080_v46 = vld [vmem:[%s15469_s3 + $0x188] sm:$0xff] }
 0x3bc   : > { %v3145_v49 = vmax.f32 %v3143_v4, %v3144_v13  ;;  %v3153_v1 = vmax.f32 %v3151_v12, %v3152_v54  ;;  %v3161_v57 = vmax.f32 %v3159_v9, %v3160_v20  ;;  %v3166_v33 = vrot.slane %v3165_v7, 4  ;;  %v13947_v4 = vpop.f32.mrf.mxu3  ;;  %4006 = vmatpush.bf16.msra.mxu1 %v12080_v46  ;;  %v12079_v13 = vld [vmem:[%s15469_s3 + $0x180] sm:$0xff] }
 0x3bd   : > { %v3175_v53 = vmax.f32 %v3173_v3, %v3174_v26  ;;  %v3183_v48 = vmax.f32 %v3181_v58, %v3182_v8  ;;  %v3191_v28 = vmax.f32 %v3189_v45, %v3190_v27  ;;  %v3808_v12 = vpack.c.bf16 %v3801_v61, %v3553_v41  ;;  %v3803_v8 = vld [vmem:[#allocation3 + $0x43] sm:$0xff]  ;;  %v3557_v41 = vld [vmem:[#allocation3 + $0x4b] sm:$0x1f] }
 0x3be   : > { %3146 = vst [vmem:[#allocation3 + $0x5a] sm:$0x1] %v3145_v49  ;;  %v3167_v6 = vmax.f32 %v3165_v7, %v3166_v33  ;;  %v3555_v7 = vld [vmem:[#allocation3 + $0x3b] sm:$0xff]  ;;  %v3562_v39 = vpack.c.bf16 %v3557_v41, %v3803_v8 }
 0x3bf   : > { %3154 = vst [vmem:[#allocation3 + $0x5b] sm:$0x1] %v3153_v1  ;;  %v3176_v18 = vrot.slane %v3175_v53, 2  ;;  %v3184_v0 = vrot.slane %v3183_v48, 2  ;;  %v3192_v60 = vrot.slane %v3191_v28, 2  ;;  %v3561_v1 = vpack.c.bf16 %v3555_v7, %v3801_v61  ;;  %v12115_v46 = vld [vmem:[%s15469_s3 + $0x2a0] sm:$0xff] }
 0x3c0   : > { %3162 = vst [vmem:[#allocation3 + $0x5c] sm:$0x1] %v3161_v57  ;;  %v3168_v42 = vrot.slane %v3167_v6, 2  ;;  %v3327_v29 = vpop.f32.mrf.mxu1  ;;  %4007 = vmatpush.bf16.msra.mxu1 %v12079_v13  ;;  %v3685_v57 = vpack.c.bf16 %v13823_v2, %v13672_v36  ;;  %v3809_v33 = vpack.c.bf16 %v3803_v8, %v3555_v7  ;;  %v12117_v36 = vld [vmem:[%s15469_s3 + $0x2b0] sm:$0xff]  ;;  %v12198_v7 = vld [vmem:[%s15469_s3 + $0x538] sm:$0xff] }
 0x3c1   : > { %v3177_v43 = vmax.f32 %v3175_v53, %v3176_v18  ;;  %v3185_v11 = vmax.f32 %v3183_v48, %v3184_v0  ;;  %v3193_v38 = vmax.f32 %v3191_v28, %v3192_v60  ;;  %v12126_v53 = vld [vmem:[%s15469_s3 + $0x2f8] sm:$0xff]  ;;  %v12125_v2 = vld [vmem:[%s15469_s3 + $0x2f0] sm:$0xff]  ;;  %4497 = vmatpush.bf16.msrb.mxu2 %v12117_v36  ;;  %v5160_v60 = vld [vmem:[#allocation3 + $0x22] sm:$0xff]  ;;  %5736 = vmatpush.bf16.msrb.mxu0 %v12198_v7 }
 0x3c2   : > { %v3169_v16 = vmax.f32 %v3167_v6, %v3168_v42  ;;  %4620 = vmatpush.bf16.msrb.mxu3 %v12126_v53  ;;  %v12110_v48 = vld [vmem:[%s15469_s3 + $0x278] sm:$0xff]  ;;  %v12109_v28 = vld [vmem:[%s15469_s3 + $0x270] sm:$0xff]  ;;  %v5169_v7 = vld [vmem:[#allocation3 + $0x6a] sm:$0x1f] }
 0x3c3   : > { %v3178_v51 = vrot.slane %v3177_v43, 1  ;;  %v3186_v22 = vrot.slane %v3185_v11, 1  ;;  %v3194_v32 = vrot.slane %v3193_v38, 1  ;;  %v5161_v6 = vld [vmem:[#allocation3 + $0x2a] sm:$0xff]  ;;  %v12122_v8 = vld [vmem:[%s15469_s3 + $0x2d8] sm:$0xff] }
 0x3c4   : > { %v3170_v9 = vrot.slane %v3169_v16, 1  ;;  %4372 = vmatpush.bf16.msrb.mxu1 %v12110_v48  ;;  %v3681_v18 = vld [vmem:[#allocation3 + $0x4c] sm:$0x1f]  ;;  %v5170_v42 = vpack.c.bf16 %v5161_v6, %v5160_v60  ;;  %v14033_v48 = vld [vmem:[#allocation3 + $0x1e] sm:$0xff] }
 0x3c5   : > { %v3409_v30 = vpop.f32.mrf.mxu2  ;;  %v3179_v34 = vmax.f32 %v3177_v43, %v3178_v51  ;;  %v3187_v3 = vmax.f32 %v3185_v11, %v3186_v22  ;;  %3894 = vmatmul.bf16.gmra.mxu3 %v3808_v12  ;;  %v3195_v45 = vmax.f32 %v3193_v38, %v3194_v32  ;;  %v3804_v0 = vld [vmem:[#allocation3 + $0x4b] sm:$0xff]  ;;  %v3686_v61 = vpack.c.bf16 %v3681_v18, %v13818_v52  ;;  %v3805_v43 = vld [vmem:[#allocation3 + $0x53] sm:$0x1f]  ;;  %v5163_v32 = vld [vmem:[#allocation3 + $0x3a] sm:$0xff] }
 0x3c6   : > { %3646 = vmatmul.bf16.gmra.mxu1 %v3560_v59  ;;  %v3410_v40 = vadd.f32 %v3409_v30, %v3327_v29  ;;  %v3171_v58 = vmax.f32 %v3169_v16, %v3170_v9  ;;  %4621 = vmatpush.bf16.msrb.mxu3 %v12125_v2  ;;  %v3810_v11 = vpack.c.bf16 %v3805_v43, %v3804_v0  ;;  %v12116_v38 = vld [vmem:[%s15469_s3 + $0x2a8] sm:$0xff]  ;;  %v4045_v29 = vld [vmem:[#allocation3 + $0x15] sm:$0xff]  ;;  %v12195_v2 = vld [vmem:[%s15469_s3 + $0x520] sm:$0xff] }
 0x3c7   : > { %3770 = vmatmul.bf16.gmra.mxu2 %v3684_v25  ;;  %3180 = vst [vmem:[#allocation3 + $0x5e] sm:$0x1] %v3179_v34  ;;  %v12124_v59 = vld [vmem:[%s15469_s3 + $0x2e8] sm:$0xff]  ;;  %5737 = vmatpush.bf16.msrb.mxu0 %v12197_v5  ;;  %v12106_v36 = vld [vmem:[%s15469_s3 + $0x258] sm:$0xff]  ;;  %v12113_v6 = vld [vmem:[%s15469_s3 + $0x290] sm:$0xff] }
 0x3c8   : > { %3172 = vst [vmem:[#allocation3 + $0x5d] sm:$0x1] %v3171_v58  ;;  %4373 = vmatpush.bf16.msrb.mxu1 %v12109_v28  ;;  %v12108_v16 = vld [vmem:[%s15469_s3 + $0x268] sm:$0xff]  ;;  %v13993_v15 = vpop.f32.mrf.mxu1  ;;  %4498 = vmatpush.bf16.msrb.mxu2 %v12116_v38  ;;  %v5166_v43 = vld [vmem:[#allocation3 + $0x52] sm:$0xff] }
 0x3c9   : > { %3188 = vst [vmem:[#allocation3 + $0x5f] sm:$0x1] %v3187_v3  ;;  %v4044_v9 = vld [vmem:[#allocation3 + $0xd] sm:$0xff]  ;;  %v13999_v3 = vld [vmem:[#allocation3 + $0x16] sm:$0xff]  ;;  %v4051_v5 = vld [vmem:[#allocation3 + $0x45] sm:$0xff] }
 0x3ca   : > { %3196 = vst [vmem:[#allocation3 + $0x60] sm:$0x1] %v3195_v45  ;;  %4622 = vmatpush.bf16.msrb.mxu3 %v12124_v59  ;;  %v4168_v34 = vld [vmem:[#allocation3 + $0xe] sm:$0xff]  ;;  %v4054_v44 = vpack.c.bf16 %v4045_v29, %v4044_v9 }
 0x3cb   : > { %v4178_v13 = vpack.c.bf16 %v13999_v3, %v4168_v34  ;;  %v12192_v0 = vld [vmem:[%s15469_s3 + $0x508] sm:$0xff] }
 0x3cc   : > { %4374 = vmatpush.bf16.msrb.mxu1 %v12108_v16  ;;  %4499 = vmatpush.bf16.msrb.mxu2 %v12115_v46  ;;  %v4048_v38 = vld [vmem:[#allocation3 + $0x2d] sm:$0xff] }
 0x3cd   : > { %v3523_v54 = vpop.f32.mrf.mxu3  ;;  %v13995_v52 = vpop.f32.mrf.mxu2  ;;  %v14072_v59 = vld [vmem:[#allocation3 + $0x2e] sm:$0xff] }
 0x3ce   : > { %v13961_v20 = vadd.f32 %v3523_v54, %v3410_v40  ;;  %v5162_v40 = vld [vmem:[#allocation3 + $0x32] sm:$0xff]  ;;  %v12123_v54 = vld [vmem:[%s15469_s3 + $0x2e0] sm:$0xff]  ;;  %v12104_v29 = vld [vmem:[%s15469_s3 + $0x248] sm:$0xff] }
 0x3cf   : > { %v5171_v45 = vpack.c.bf16 %v5163_v32, %v5162_v40  ;;  %4623 = vmatpush.bf16.msrb.mxu3 %v12123_v54  ;;  %v12191_v32 = vld [vmem:[%s15469_s3 + $0x500] sm:$0xff] }
 0x3d0   : > { %v4672_v26 = vld [vmem:[#allocation3 + $0x58] sm:$0xff]  ;;  %4375 = vmatpush.bf16.msrb.mxu1 %v12107_v24  ;;  %v5168_v54 = vld [vmem:[#allocation3 + $0x62] sm:$0xff] }
 0x3d1   : > { %v4673_v27 = vld [vmem:[#allocation3 + $0x60] sm:$0x1f] }
 0x3d2   : > { %v4678_v49 = vpack.c.bf16 %v4673_v27, %v4672_v26  ;;  %v12114_v26 = vld [vmem:[%s15469_s3 + $0x298] sm:$0xff]  ;;  %v12196_v27 = vld [vmem:[%s15469_s3 + $0x528] sm:$0xff] }
 0x3d3   : > { %4500 = vmatpush.bf16.msrb.mxu2 %v12114_v26  ;;  %4624 = vmatpush.bf16.msrb.mxu3 %v12122_v8  ;;  %v5167_v18 = vld [vmem:[#allocation3 + $0x5a] sm:$0xff]  ;;  %v5174_v26 = vpack.c.bf16 %v5169_v7, %v5168_v54  ;;  %v3407_v54 = vadd.f32 %v13940_v31, %v13938_v35 }
 0x3d4   : > { %4772 = vmatmul.bf16.gmra.mxu0 %v4678_v49  ;;  %v5165_v49 = vld [vmem:[#allocation3 + $0x4a] sm:$0xff]  ;;  %4376 = vmatpush.bf16.msrb.mxu1 %v12106_v36  ;;  %v5173_v16 = vpack.c.bf16 %v5167_v18, %v5166_v43 }
 0x3d5   : > { %3899 = vmatmul.bf16.gmra.mxu3 %v3809_v33  ;;  %v13997_v25 = vpop.f32.mrf.mxu3  ;;  %5738 = vmatpush.bf16.msrb.mxu0 %v12196_v27  ;;  %v4046_v33 = vld [vmem:[#allocation3 + $0x1d] sm:$0xff]  ;;  %v5172_v17 = vpack.c.bf16 %v5165_v49, %v13800_v63  ;;  %v14100_v49 = vld [vmem:[#allocation3 + $0x46] sm:$0xff]  ;;  %v12149_v43 = vld [vmem:[%s15469_s3 + $0x3b0] sm:$0xff]  ;;  %v3541_v35 = vadd.f32 %v13947_v4, %v3407_v54 }
 0x3d6   : > { %3651 = vmatmul.bf16.gmra.mxu1 %v3561_v1  ;;  %v4047_v1 = vld [vmem:[#allocation3 + $0x25] sm:$0xff]  ;;  %v12194_v63 = vld [vmem:[%s15469_s3 + $0x518] sm:$0xff] }
 0x3d7   : > { %3775 = vmatmul.bf16.gmra.mxu2 %v3685_v57  ;;  %v14030_v57 = vld [vmem:[#allocation3 + $0x26] sm:$0xff]  ;;  %v4055_v53 = vpack.c.bf16 %v4047_v1, %v4046_v33  ;;  %4625 = vmatpush.bf16.msrb.mxu3 %v12121_v55  ;;  %v4050_v33 = vld [vmem:[#allocation3 + $0x3d] sm:$0xff]  ;;  %v3402_v55 = vadd.f32 %v13783_v56, %v13781_v14 }
 0x3d8   : > { %v4179_v28 = vpack.c.bf16 %v14030_v57, %v14033_v48  ;;  %4501 = vmatpush.bf16.msrb.mxu2 %v12113_v6  ;;  %v4057_v36 = vpack.c.bf16 %v4051_v5, %v4050_v33  ;;  %v12158_v6 = vld [vmem:[%s15469_s3 + $0x3f8] sm:$0xff]  ;;  %v14127_v14 = vld [vmem:[#allocation3 + $0x4c] sm:$0xff]  ;;  %v14145_v5 = vpop.f32.mrf.mxu0  ;;  %v12147_v4 = vld [vmem:[%s15469_s3 + $0x3a0] sm:$0xff] }
 0x3d9   : > { %5739 = vmatpush.bf16.msrb.mxu0 %v12195_v2  ;;  %v14105_v2 = vld [vmem:[#allocation3 + $0x3e] sm:$0xff]  ;;  %v4052_v56 = vld [vmem:[#allocation3 + $0x4d] sm:$0xff] }
 0x3dd   : > { %5740 = vmatpush.bf16.msrb.mxu0 %v12194_v63  ;;  %v12150_v63 = vld [vmem:[%s15469_s3 + $0x3b8] sm:$0xff] }
 0x3e1   : > { %5741 = vmatpush.bf16.msrb.mxu0 %v12193_v21 }
 0x3e4   : > { %5248 = vmatmul.bf16.vlgmr.msra.gmra.mxu0 %v5170_v42  ;;  %v4049_v42 = vld [vmem:[#allocation3 + $0x35] sm:$0xff] }
 0x3e5   : > { %3904 = vmatmul.bf16.gmra.mxu3 %v3810_v11  ;;  %5742 = vmatpush.bf16.msrb.mxu0 %v12192_v0 }
 0x3e6   : > { %3656 = vmatmul.bf16.gmra.mxu1 %v3562_v39 }
 0x3e7   : > { %3780 = vmatmul.bf16.gmra.mxu2 %v3686_v61  ;;  %v14070_v61 = vld [vmem:[#allocation3 + $0x36] sm:$0xff] }
 0x3e8   : > { %v4180_v9 = vpack.c.bf16 %v14070_v61, %v14072_v59 }
 0x3e9   : > { %v3332_v51 = vpop.f32.mrf.mxu1  ;;  %5743 = vmatpush.bf16.msrb.mxu0 %v12191_v32  ;;  %v4177_v32 = vld [vmem:[#allocation3 + $0x56] sm:$0x1f] }
 0x3f0   : > { %v3414_v22 = vpop.f32.mrf.mxu2 }
 0x3f1   : > { %v3415_v12 = vadd.f32 %v3414_v22, %v3332_v51  ;;  %v3528_v30 = vpop.f32.mrf.mxu3  ;;  %v14052_v41 = vpop.f32.mrf.mxu1  ;;  %v4056_v51 = vpack.c.bf16 %v4049_v42, %v4048_v38  ;;  %v12112_v22 = vld [vmem:[%s15469_s3 + $0x288] sm:$0xff]  ;;  %v12142_v42 = vld [vmem:[%s15469_s3 + $0x378] sm:$0xff] }
 0x3f2   : > { %4502 = vmatpush.bf16.msrb.mxu2 %v12112_v22 }
 0x3f3   : > { %v14001_v58 = vadd.f32 %v3528_v30, %v3415_v12  ;;  %v12120_v12 = vld [vmem:[%s15469_s3 + $0x2c8] sm:$0xff] }
 0x3f4   : > { %5253 = vmatmul.bf16.gmra.mxu0 %v5171_v45  ;;  %4626 = vmatpush.bf16.msrb.mxu3 %v12120_v12 }
 0x3f5   : > { %4256 = vmatmul.bf16.vlgmr.msra.gmra.mxu3 %v4178_v13  ;;  %v12103_v13 = vld [vmem:[%s15469_s3 + $0x240] sm:$0xff] }
 0x3f6   : > { %4008 = vmatmul.bf16.vlgmr.msra.gmra.mxu1 %v3930_v50  ;;  %v12111_v50 = vld [vmem:[%s15469_s3 + $0x280] sm:$0xff] }
 0x3f7   : > { %4132 = vmatmul.bf16.vlgmr.msra.gmra.mxu2 %v4054_v44  ;;  %v12119_v44 = vld [vmem:[%s15469_s3 + $0x2c0] sm:$0xff] }
 0x3f8   : > { %v14066_v60 = vpop.f32.mrf.mxu2  ;;  %4503 = vmatpush.bf16.msrb.mxu2 %v12111_v50  ;;  %4627 = vmatpush.bf16.msrb.mxu3 %v12119_v44  ;;  %v12157_v50 = vld [vmem:[%s15469_s3 + $0x3f0] sm:$0xff] }
 0x3f9   : > { %v14068_v39 = vpop.f32.mrf.mxu3  ;;  %v12141_v44 = vld [vmem:[%s15469_s3 + $0x370] sm:$0xff] }
 0x3fc   : > { %4992 = vmatpush.bf16.msra.mxu2 %v12150_v63  ;;  %5116 = vmatpush.bf16.msra.mxu3 %v12158_v6  ;;  %v4541_v6 = vld [vmem:[#allocation3 + $0x1f] sm:$0xff] }
 0x400   : > { %4993 = vmatpush.bf16.msra.mxu2 %v12149_v43  ;;  %5117 = vmatpush.bf16.msra.mxu3 %v12157_v50 }
 0x404   : > { %5258 = vmatmul.bf16.gmra.mxu0 %v5172_v17 }
 0x405   : > { %4261 = vmatmul.bf16.gmra.mxu3 %v4179_v28  ;;  %v4181_v28 = vpack.c.bf16 %v14100_v49, %v14105_v2 }
 0x406   : > { %4013 = vmatmul.bf16.gmra.mxu1 %v3931_v23  ;;  %v12105_v23 = vld [vmem:[%s15469_s3 + $0x250] sm:$0xff] }
 0x407   : > { %4137 = vmatmul.bf16.gmra.mxu2 %v4055_v53  ;;  %4377 = vmatpush.bf16.msrb.mxu1 %v12105_v23 }
 0x40b   : > { %4378 = vmatpush.bf16.msrb.mxu1 %v12104_v29  ;;  %v4053_v29 = vld [vmem:[#allocation3 + $0x55] sm:$0x1f] }
 0x40f   : > { %4379 = vmatpush.bf16.msrb.mxu1 %v12103_v13 }
 0x413   : > { %v3337_v11 = vpop.f32.mrf.mxu1  ;;  %4868 = vmatpush.bf16.msra.mxu1 %v12142_v42  ;;  %v14167_v42 = vpop.f32.mrf.mxu0 }
 0x414   : > { %5263 = vmatmul.bf16.gmra.mxu0 %v5173_v16 }
 0x415   : > { %4266 = vmatmul.bf16.gmra.mxu3 %v4180_v9  ;;  %v3929_v9 = vld [vmem:[#allocation3 + $0x54] sm:$0x1f] }
 0x416   : > { %4018 = vmatmul.bf16.gmra.mxu1 %v13682_v37 }
 0x417   : > { %4142 = vmatmul.bf16.gmra.mxu2 %v4056_v51  ;;  %4869 = vmatpush.bf16.msra.mxu1 %v12141_v44 }
 0x418   : > { %v3533_v40 = vpop.f32.mrf.mxu3 }
 0x41a   : > { %v3419_v30 = vpop.f32.mrf.mxu2 }
 0x41b   : > { %v3420_v34 = vadd.f32 %v3419_v30, %v3337_v11  ;;  %v3339_v45 = vpop.f32.mrf.mxu1  ;;  %v3539_v11 = vadd.f32 %v13786_v62, %v3402_v55  ;;  %v4058_v62 = vpack.c.bf16 %v4053_v29, %v4052_v56  ;;  %v3412_v56 = vadd.f32 %v13995_v52, %v13993_v15  ;;  %v12228_v15 = vld [vmem:[%s15469_s3 + $0x628] sm:$0xff] }
 0x41d   : > { %v14089_v46 = vadd.f32 %v3533_v40, %v3420_v34  ;;  %v3934_v40 = vpack.c.bf16 %v3929_v9, %v14127_v14  ;;  %v12154_v9 = vld [vmem:[%s15469_s3 + $0x3d8] sm:$0xff]  ;;  %v3543_v29 = vadd.f32 %v13997_v25, %v3412_v56  ;;  %v4428_v56 = vpack.c.bf16 %v14105_v2, %v14070_v61  ;;  %v12136_v61 = vld [vmem:[%s15469_s3 + $0x348] sm:$0xff] }
 0x420   : > { %v3535_v27 = vpop.f32.mrf.mxu3 }
 0x422   : > { %v3421_v24 = vpop.f32.mrf.mxu2 }
 0x423   : > { %v3422_v8 = vadd.f32 %v3421_v24, %v3339_v45  ;;  %v3637_v1 = vpop.f32.mrf.mxu1  ;;  %v14133_v45 = vld [vmem:[#allocation3 + $0x4e] sm:$0xff] }
 0x424   : > { %v3662_v53 = vadd.f32 %v3637_v1, %v13720_v47  ;;  %5268 = vmatmul.bf16.gmra.mxu0 %v5174_v26  ;;  %v4182_v13 = vpack.c.bf16 %v4177_v32, %v14133_v45  ;;  %v12140_v1 = vld [vmem:[%s15469_s3 + $0x368] sm:$0xff]  ;;  %v12146_v32 = vld [vmem:[%s15469_s3 + $0x398] sm:$0xff] }
 0x425   : > { %v14102_v17 = vadd.f32 %v3535_v27, %v3422_v8  ;;  %4271 = vmatmul.bf16.gmra.mxu3 %v4181_v28  ;;  %v12156_v27 = vld [vmem:[%s15469_s3 + $0x3e8] sm:$0xff]  ;;  %4870 = vmatpush.bf16.msra.mxu1 %v12140_v1 }
 0x426   : > { %4023 = vmatmul.bf16.gmra.mxu1 %v13828_v10  ;;  %5118 = vmatpush.bf16.msra.mxu3 %v12156_v27  ;;  %v12227_v27 = vld [vmem:[%s15469_s3 + $0x620] sm:$0xff] }
 0x427   : > { %4147 = vmatmul.bf16.gmra.mxu2 %v4057_v36  ;;  %v4293_v36 = vld [vmem:[#allocation3 + $0x17] sm:$0xff] }
 0x428   : > { %v3885_v23 = vpop.f32.mrf.mxu3  ;;  %v4550_v43 = vpack.c.bf16 %v4541_v6, %v4293_v36 }
 0x42a   : > { %v3761_v47 = vpop.f32.mrf.mxu2 }
 0x42b   : > { %v3786_v21 = vadd.f32 %v3761_v47, %v3662_v53  ;;  %v3639_v18 = vpop.f32.mrf.mxu1  ;;  %v4292_v53 = vld [vmem:[#allocation3 + $0xf] sm:$0xff] }
 0x42c   : > { %v3663_v38 = vadd.f32 %v3639_v18, %v3539_v11  ;;  %v4426_v18 = vpack.c.bf16 %v14033_v48, %v13999_v3  ;;  %v12230_v3 = vld [vmem:[%s15469_s3 + $0x638] sm:$0xff]  ;;  %v12139_v48 = vld [vmem:[%s15469_s3 + $0x360] sm:$0xff] }
 0x42d   : > { %v14118_v0 = vadd.f32 %v3885_v23, %v3786_v21  ;;  %v4302_v23 = vpack.c.bf16 %v4293_v36, %v4292_v53  ;;  %6232 = vmatpush.bf16.msra.mxu0 %v12230_v3  ;;  %4871 = vmatpush.bf16.msra.mxu1 %v12139_v48  ;;  %v4545_v48 = vld [vmem:[#allocation3 + $0x3f] sm:$0xff] }
 0x430   : > { %v3887_v22 = vpop.f32.mrf.mxu3 }
 0x432   : > { %v3763_v16 = vpop.f32.mrf.mxu2 }
 0x433   : > { %v3787_v51 = vadd.f32 %v3763_v16, %v3663_v38  ;;  %v3642_v12 = vpop.f32.mrf.mxu1 }
 0x434   : > { %v3664_v34 = vadd.f32 %v3642_v12, %v13812_v19  ;;  %5744 = vmatmul.bf16.vlgmr.msrb.gmra.mxu0 %v13682_v37  ;;  %v12148_v37 = vld [vmem:[%s15469_s3 + $0x3a8] sm:$0xff]  ;;  %v14189_v12 = vpop.f32.mrf.mxu0 }
 0x435   : > { %v14129_v30 = vadd.f32 %v3887_v22, %v3787_v51  ;;  %4276 = vmatmul.bf16.gmra.mxu3 %v4182_v13  ;;  %4994 = vmatpush.bf16.msra.mxu2 %v12148_v37  ;;  %v12229_v22 = vld [vmem:[%s15469_s3 + $0x630] sm:$0xff]  ;;  %v12138_v37 = vld [vmem:[%s15469_s3 + $0x358] sm:$0xff] }
 0x436   : > { %4028 = vmatmul.bf16.gmra.mxu1 %v3934_v40  ;;  %6233 = vmatpush.bf16.msra.mxu0 %v12229_v22  ;;  %v4543_v13 = vld [vmem:[#allocation3 + $0x2f] sm:$0xff] }
 0x437   : > { %4152 = vmatmul.bf16.gmra.mxu2 %v4058_v62  ;;  %v4295_v62 = vld [vmem:[#allocation3 + $0x27] sm:$0xff]  ;;  %4872 = vmatpush.bf16.msra.mxu1 %v12138_v37 }
 0x438   : > { %v3890_v24 = vpop.f32.mrf.mxu3  ;;  %v4551_v1 = vpack.c.bf16 %v4543_v13, %v4295_v62  ;;  %v12144_v22 = vld [vmem:[%s15469_s3 + $0x388] sm:$0xff] }
 0x439   : > { %4995 = vmatpush.bf16.msra.mxu2 %v12147_v4 }
 0x43a   : > { %v3766_v19 = vpop.f32.mrf.mxu2  ;;  %6234 = vmatpush.bf16.msra.mxu0 %v12228_v15 }
 0x43b   : > { %v3788_v7 = vadd.f32 %v3766_v19, %v3664_v34  ;;  %v3644_v26 = vpop.f32.mrf.mxu1  ;;  %v5661_v34 = vld [vmem:[#allocation3 + $0x54] sm:$0xff] }
 0x43c   : > { %v3665_v31 = vadd.f32 %v3644_v26, %v3541_v35  ;;  %v5668_v54 = vpack.c.bf16 %v5661_v34, %v14127_v14  ;;  %v4427_v26 = vpack.c.bf16 %v14072_v59, %v14030_v57  ;;  %v14210_v14 = vpop.f32.mrf.mxu0  ;;  %v12145_v57 = vld [vmem:[%s15469_s3 + $0x390] sm:$0xff]  ;;  %v3417_v35 = vadd.f32 %v14066_v60, %v14052_v41 }
 0x43d   : > { %v14147_v8 = vadd.f32 %v3890_v24, %v3788_v7  ;;  %4996 = vmatpush.bf16.msra.mxu2 %v12146_v32  ;;  %v4303_v24 = vpack.c.bf16 %v4295_v62, %v4541_v6  ;;  %v12137_v6 = vld [vmem:[%s15469_s3 + $0x350] sm:$0xff]  ;;  %v12223_v32 = vld [vmem:[%s15469_s3 + $0x600] sm:$0xff] }
 0x43e   : > { %6235 = vmatpush.bf16.msra.mxu0 %v12227_v27  ;;  %v3545_v41 = vadd.f32 %v14068_v39, %v3417_v35  ;;  %4873 = vmatpush.bf16.msra.mxu1 %v12137_v6 }
 0x440   : > { %v3892_v63 = vpop.f32.mrf.mxu3 }
 0x441   : > { %4997 = vmatpush.bf16.msra.mxu2 %v12145_v57 }
 0x442   : > { %v3768_v33 = vpop.f32.mrf.mxu2  ;;  %4874 = vmatpush.bf16.msra.mxu1 %v12136_v61  ;;  %v4549_v61 = vld [vmem:[#allocation3 + $0x5f] sm:$0x1f] }
 0x443   : > { %v3789_v28 = vadd.f32 %v3768_v33, %v3665_v31  ;;  %v3647_v47 = vpop.f32.mrf.mxu1 }
 0x444   : > { %v3666_v21 = vadd.f32 %v3647_v47, %v13961_v20  ;;  %5749 = vmatmul.bf16.gmra.mxu0 %v13828_v10  ;;  %v12155_v20 = vld [vmem:[%s15469_s3 + $0x3e0] sm:$0xff]  ;;  %v14232_v60 = vpop.f32.mrf.mxu0 }
 0x445   : > { %v14159_v55 = vadd.f32 %v3892_v63, %v3789_v28  ;;  %4628 = vmatmul.bf16.vlgmr.msrb.gmra.mxu3 %v4550_v43  ;;  %v12153_v28 = vld [vmem:[%s15469_s3 + $0x3d0] sm:$0xff]  ;;  %4998 = vmatpush.bf16.msra.mxu2 %v12144_v22 }
 0x446   : > { %4380 = vmatmul.bf16.vlgmr.msrb.gmra.mxu1 %v4302_v23  ;;  %5119 = vmatpush.bf16.msra.mxu3 %v12155_v20  ;;  %v12225_v63 = vld [vmem:[%s15469_s3 + $0x610] sm:$0xff]  ;;  %v5663_v23 = vld [vmem:[#allocation3 + $0x64] sm:$0xff] }
 0x447   : > { %4504 = vmatmul.bf16.vlgmr.msrb.gmra.mxu2 %v4426_v18  ;;  %v12224_v18 = vld [vmem:[%s15469_s3 + $0x608] sm:$0xff]  ;;  %v4297_v43 = vld [vmem:[#allocation3 + $0x37] sm:$0xff] }
 0x448   : > { %v3895_v38 = vpop.f32.mrf.mxu3 }
 0x44a   : > { %v3771_v11 = vpop.f32.mrf.mxu2  ;;  %5120 = vmatpush.bf16.msra.mxu3 %v12154_v9  ;;  %v12152_v9 = vld [vmem:[%s15469_s3 + $0x3c8] sm:$0xff] }
 0x44b   : > { %v3790_v10 = vadd.f32 %v3771_v11, %v3666_v21  ;;  %v3649_v16 = vpop.f32.mrf.mxu1  ;;  %v5662_v21 = vld [vmem:[#allocation3 + $0x5c] sm:$0xff] }
 0x44c   : > { %v3667_v52 = vadd.f32 %v3649_v16, %v3543_v29  ;;  %v4304_v16 = vpack.c.bf16 %v4297_v43, %v4543_v13  ;;  %v4552_v29 = vpack.c.bf16 %v4545_v48, %v4297_v43  ;;  %v12135_v13 = vld [vmem:[%s15469_s3 + $0x340] sm:$0xff]  ;;  %v4301_v43 = vld [vmem:[#allocation3 + $0x57] sm:$0x1f] }
 0x44d   : > { %v14181_v51 = vadd.f32 %v3895_v38, %v3790_v10  ;;  %v5669_v10 = vpack.c.bf16 %v5663_v23, %v5662_v21  ;;  %4875 = vmatpush.bf16.msra.mxu1 %v12135_v13  ;;  %v12174_v21 = vld [vmem:[%s15469_s3 + $0x478] sm:$0xff]  ;;  %v12181_v23 = vld [vmem:[%s15469_s3 + $0x4b0] sm:$0xff] }
 0x44e   : > { %5121 = vmatpush.bf16.msra.mxu3 %v12153_v28  ;;  %v12190_v28 = vld [vmem:[%s15469_s3 + $0x4f8] sm:$0xff] }
 0x450   : > { %v3897_v44 = vpop.f32.mrf.mxu3 }
 0x451   : > { %5364 = vmatpush.bf16.msrb.mxu1 %v12174_v21 }
 0x452   : > { %v3773_v40 = vpop.f32.mrf.mxu2  ;;  %5122 = vmatpush.bf16.msra.mxu3 %v12152_v9 }
 0x453   : > { %v3791_v50 = vadd.f32 %v3773_v40, %v3667_v52  ;;  %v3652_v19 = vpop.f32.mrf.mxu1 }
 0x454   : > { %v3668_v25 = vadd.f32 %v3652_v19, %v14001_v58  ;;  %5754 = vmatmul.bf16.gmra.mxu0 %v5668_v54  ;;  %v12226_v58 = vld [vmem:[%s15469_s3 + $0x618] sm:$0xff]  ;;  %v5664_v19 = vld [vmem:[#allocation3 + $0x6c] sm:$0xff] }
 0x455   : > { %v14199_v7 = vadd.f32 %v3897_v44, %v3791_v50  ;;  %4633 = vmatmul.bf16.gmra.mxu3 %v4551_v1  ;;  %6236 = vmatpush.bf16.msra.mxu0 %v12226_v58  ;;  %v12143_v50 = vld [vmem:[%s15469_s3 + $0x380] sm:$0xff]  ;;  %v5665_v54 = vld [vmem:[#allocation3 + $0x74] sm:$0x1f] }
 0x456   : > { %4385 = vmatmul.bf16.gmra.mxu1 %v4303_v24  ;;  %v12151_v44 = vld [vmem:[%s15469_s3 + $0x3c0] sm:$0xff]  ;;  %4999 = vmatpush.bf16.msra.mxu2 %v12143_v50  ;;  %v4547_v1 = vld [vmem:[#allocation3 + $0x4f] sm:$0xff] }
 0x457   : > { %4509 = vmatmul.bf16.gmra.mxu2 %v4427_v26  ;;  %5123 = vmatpush.bf16.msra.mxu3 %v12151_v44  ;;  %v4299_v24 = vld [vmem:[#allocation3 + $0x47] sm:$0xff]  ;;  %v5670_v26 = vpack.c.bf16 %v5665_v54, %v5664_v19  ;;  %v4306_v9 = vpack.c.bf16 %v4301_v43, %v4547_v1 }
 0x458   : > { %v3900_v33 = vpop.f32.mrf.mxu3  ;;  %v4305_v35 = vpack.c.bf16 %v4299_v24, %v4545_v48  ;;  %v12180_v19 = vld [vmem:[%s15469_s3 + $0x4a8] sm:$0xff] }
 0x459   : > { %6237 = vmatpush.bf16.msra.mxu0 %v12225_v63  ;;  %v12188_v54 = vld [vmem:[%s15469_s3 + $0x4e8] sm:$0xff] }
 0x45a   : > { %v3776_v59 = vpop.f32.mrf.mxu2 }
 0x45b   : > { %v3792_v31 = vadd.f32 %v3776_v59, %v3668_v25  ;;  %v3654_v53 = vpop.f32.mrf.mxu1  ;;  %5612 = vmatpush.bf16.msrb.mxu3 %v12190_v28 }
 0x45c   : > { %v3669_v47 = vadd.f32 %v3654_v53, %v3545_v41  ;;  %v12182_v53 = vld [vmem:[%s15469_s3 + $0x4b8] sm:$0xff] }
 0x45d   : > { %v14220_v36 = vadd.f32 %v3900_v33, %v3792_v31  ;;  %6238 = vmatpush.bf16.msra.mxu0 %v12224_v18  ;;  %v4429_v31 = vpack.c.bf16 %v14133_v45, %v14100_v49  ;;  %v4553_v33 = vpack.c.bf16 %v4547_v1, %v4299_v24  ;;  %5488 = vmatpush.bf16.msrb.mxu2 %v12182_v53  ;;  %v6153_v18 = vld [vmem:[#allocation3 + $0x38] sm:$0xff] }
 0x45e   : > { %v4912_v53 = vld [vmem:[#allocation3 + $0x1a] sm:$0xff] }
 0x460   : > { %v3902_v3 = vpop.f32.mrf.mxu3 }
 0x461   : > { %6239 = vmatpush.bf16.msra.mxu0 %v12223_v32  ;;  %5489 = vmatpush.bf16.msrb.mxu2 %v12181_v23 }
 0x462   : > { %v3778_v4 = vpop.f32.mrf.mxu2 }
 0x463   : > { %v3793_v20 = vadd.f32 %v3778_v4, %v3669_v47  ;;  %v3657_v11 = vpop.f32.mrf.mxu1 }
 0x464   : > { %v3670_v38 = vadd.f32 %v3657_v11, %v14089_v46  ;;  %5759 = vmatmul.bf16.gmra.mxu0 %v5669_v10  ;;  %v14254_v46 = vpop.f32.mrf.mxu0  ;;  %v4548_v11 = vld [vmem:[#allocation3 + $0x57] sm:$0xff] }
 0x465   : > { %v14237_v39 = vadd.f32 %v3902_v3, %v3793_v20  ;;  %4638 = vmatmul.bf16.gmra.mxu3 %v4552_v29  ;;  %v4424_v20 = vld [vmem:[#allocation3 + $0x56] sm:$0xff]  ;;  %5490 = vmatpush.bf16.msrb.mxu2 %v12180_v19 }
 0x466   : > { %4390 = vmatmul.bf16.gmra.mxu1 %v4304_v16  ;;  %v6152_v10 = vld [vmem:[#allocation3 + $0x30] sm:$0xff]  ;;  %v4425_v16 = vld [vmem:[#allocation3 + $0x5e] sm:$0x1f] }
 0x467   : > { %4514 = vmatmul.bf16.gmra.mxu2 %v4428_v56  ;;  %v6162_v56 = vpack.c.bf16 %v6153_v18, %v6152_v10  ;;  %v4430_v29 = vpack.c.bf16 %v4425_v16, %v4424_v20  ;;  %v12187_v18 = vld [vmem:[%s15469_s3 + $0x4e0] sm:$0xff]  ;;  %v12178_v10 = vld [vmem:[%s15469_s3 + $0x498] sm:$0xff] }
 0x468   : > { %v3905_v52 = vpop.f32.mrf.mxu3  ;;  %v6157_v16 = vld [vmem:[#allocation3 + $0x58] sm:$0xff] }
 0x46a   : > { %v3781_v2 = vpop.f32.mrf.mxu2 }
 0x46b   : > { %v3794_v15 = vadd.f32 %v3781_v2, %v3670_v38  ;;  %v3659_v34 = vpop.f32.mrf.mxu1  ;;  %v12189_v2 = vld [vmem:[%s15469_s3 + $0x4f0] sm:$0xff] }
 0x46c   : > { %v3671_v62 = vadd.f32 %v3659_v34, %v14102_v17  ;;  %v14268_v25 = vpop.f32.mrf.mxu0  ;;  %5613 = vmatpush.bf16.msrb.mxu3 %v12189_v2 }
 0x46d   : > { %v14256_v40 = vadd.f32 %v3905_v52, %v3794_v15  ;;  %v12173_v15 = vld [vmem:[%s15469_s3 + $0x470] sm:$0xff]  ;;  %v4554_v52 = vpack.c.bf16 %v4549_v61, %v4548_v11 }
 0x46e   : > { %5365 = vmatpush.bf16.msrb.mxu1 %v12173_v15  ;;  %v5039_v15 = vld [vmem:[#allocation3 + $0x39] sm:$0xff] }
 0x470   : > { %v3907_v27 = vpop.f32.mrf.mxu3  ;;  %5614 = vmatpush.bf16.msrb.mxu3 %v12188_v54  ;;  %v12170_v54 = vld [vmem:[%s15469_s3 + $0x458] sm:$0xff] }
 0x472   : > { %v3783_v17 = vpop.f32.mrf.mxu2 }
 0x473   : > { %v3795_v37 = vadd.f32 %v3783_v17, %v3671_v62  ;;  %v4009_v58 = vpop.f32.mrf.mxu1  ;;  %v12172_v17 = vld [vmem:[%s15469_s3 + $0x468] sm:$0xff] }
 0x474   : > { %v4034_v59 = vadd.f32 %v4009_v58, %v14118_v0  ;;  %5764 = vmatmul.bf16.gmra.mxu0 %v5670_v26  ;;  %v14281_v41 = vpop.f32.mrf.mxu0  ;;  %5366 = vmatpush.bf16.msrb.mxu1 %v12172_v17  ;;  %v6155_v26 = vld [vmem:[#allocation3 + $0x48] sm:$0xff] }
 0x475   : > { %v14270_v57 = vadd.f32 %v3907_v27, %v3795_v37  ;;  %4643 = vmatmul.bf16.gmra.mxu3 %v4553_v33  ;;  %v4913_v27 = vld [vmem:[#allocation3 + $0x22] sm:$0xff]  ;;  %v4788_v33 = vld [vmem:[#allocation3 + $0x19] sm:$0xff] }
 0x476   : > { %4395 = vmatmul.bf16.gmra.mxu1 %v4305_v35  ;;  %v6154_v35 = vld [vmem:[#allocation3 + $0x40] sm:$0xff]  ;;  %5615 = vmatpush.bf16.msrb.mxu3 %v12187_v18 }
 0x477   : > { %4519 = vmatmul.bf16.gmra.mxu2 %v4429_v31  ;;  %v6163_v28 = vpack.c.bf16 %v6155_v26, %v6154_v35  ;;  %v12177_v26 = vld [vmem:[%s15469_s3 + $0x490] sm:$0xff]  ;;  %v4916_v18 = vld [vmem:[#allocation3 + $0x3a] sm:$0xff] }
 0x478   : > { %v4257_v6 = vpop.f32.mrf.mxu3  ;;  %v12185_v35 = vld [vmem:[%s15469_s3 + $0x4d0] sm:$0xff] }
 0x47a   : > { %v4133_v63 = vpop.f32.mrf.mxu2 }
 0x47b   : > { %v4158_v0 = vadd.f32 %v4133_v63, %v4034_v59  ;;  %v4011_v49 = vpop.f32.mrf.mxu1  ;;  %v5037_v59 = vld [vmem:[#allocation3 + $0x29] sm:$0xff] }
 0x47c   : > { %v4035_v47 = vadd.f32 %v4011_v49, %v14129_v30  ;;  %v14292_v38 = vpop.f32.mrf.mxu0  ;;  %v4922_v49 = vpack.c.bf16 %v4913_v27, %v4912_v53 }
 0x47d   : > { %v14283_v45 = vadd.f32 %v4257_v6, %v4158_v0 }
 0x480   : > { %v4259_v48 = vpop.f32.mrf.mxu3 }
 0x482   : > { %v4135_v4 = vpop.f32.mrf.mxu2 }
 0x483   : > { %v4159_v3 = vadd.f32 %v4135_v4, %v4035_v47  ;;  %v4014_v30 = vpop.f32.mrf.mxu1  ;;  %v12179_v47 = vld [vmem:[%s15469_s3 + $0x4a0] sm:$0xff] }
 0x484   : > { %v4036_v32 = vadd.f32 %v4014_v30, %v14147_v8  ;;  %6240 = vmatmul.bf16.vlgmr.msra.gmra.mxu0 %v6162_v56  ;;  %v14315_v24 = vpop.f32.mrf.mxu0  ;;  %5491 = vmatpush.bf16.msrb.mxu2 %v12179_v47  ;;  %v12186_v30 = vld [vmem:[%s15469_s3 + $0x4d8] sm:$0xff]  ;;  %v5041_v47 = vld [vmem:[#allocation3 + $0x49] sm:$0xff] }
 0x485   : > { %v14294_v22 = vadd.f32 %v4259_v48, %v4159_v3  ;;  %4648 = vmatmul.bf16.gmra.mxu3 %v4554_v52 }
 0x486   : > { %4400 = vmatmul.bf16.gmra.mxu1 %v4306_v9  ;;  %5616 = vmatpush.bf16.msrb.mxu3 %v12186_v30  ;;  %v4791_v9 = vld [vmem:[#allocation3 + $0x31] sm:$0xff] }
 0x487   : > { %4524 = vmatmul.bf16.gmra.mxu2 %v4430_v29  ;;  %v4915_v29 = vld [vmem:[#allocation3 + $0x32] sm:$0xff]  ;;  %v5047_v17 = vpack.c.bf16 %v5039_v15, %v4791_v9 }
 0x488   : > { %v4262_v62 = vpop.f32.mrf.mxu3  ;;  %5492 = vmatpush.bf16.msrb.mxu2 %v12178_v10  ;;  %v12184_v10 = vld [vmem:[%s15469_s3 + $0x4c8] sm:$0xff] }
 0x48a   : > { %v4138_v34 = vpop.f32.mrf.mxu2  ;;  %5617 = vmatpush.bf16.msrb.mxu3 %v12185_v35  ;;  %v12214_v35 = vld [vmem:[%s15469_s3 + $0x5b8] sm:$0xff] }
 0x48b   : > { %v4160_v8 = vadd.f32 %v4138_v34, %v4036_v32  ;;  %v4016_v50 = vpop.f32.mrf.mxu1  ;;  %v4914_v34 = vld [vmem:[#allocation3 + $0x2a] sm:$0xff] }
 0x48c   : > { %v4037_v13 = vadd.f32 %v4016_v50, %v14159_v55  ;;  %v4789_v55 = vld [vmem:[#allocation3 + $0x21] sm:$0xff]  ;;  %v14323_v23 = vpop.f32.mrf.mxu0  ;;  %v4923_v19 = vpack.c.bf16 %v4915_v29, %v4914_v34  ;;  %5493 = vmatpush.bf16.msrb.mxu2 %v12177_v26  ;;  %v4918_v26 = vld [vmem:[#allocation3 + $0x4a] sm:$0xff] }
 0x48d   : > { %v14303_v44 = vadd.f32 %v4262_v62, %v4160_v8  ;;  %v4798_v6 = vpack.c.bf16 %v4789_v55, %v4788_v33  ;;  %v5046_v21 = vpack.c.bf16 %v5037_v59, %v4789_v55  ;;  %v6158_v33 = vld [vmem:[#allocation3 + $0x60] sm:$0xff] }
 0x48e   : > { %5618 = vmatpush.bf16.msrb.mxu3 %v12184_v10  ;;  %v12167_v34 = vld [vmem:[%s15469_s3 + $0x440] sm:$0xff] }
 0x490   : > { %v4264_v58 = vpop.f32.mrf.mxu3 }
 0x492   : > { %v4140_v37 = vpop.f32.mrf.mxu2 }
 0x493   : > { %v4161_v1 = vadd.f32 %v4140_v37, %v4037_v13  ;;  %v4019_v31 = vpop.f32.mrf.mxu1  ;;  %v4799_v13 = vpack.c.bf16 %v4791_v9, %v5037_v59 }
 0x494   : > { %v4038_v0 = vadd.f32 %v4019_v31, %v14181_v51  ;;  %6245 = vmatmul.bf16.gmra.mxu0 %v6163_v28  ;;  %v12171_v51 = vld [vmem:[%s15469_s3 + $0x460] sm:$0xff]  ;;  %v14340_v56 = vpop.f32.mrf.mxu0  ;;  %v12169_v31 = vld [vmem:[%s15469_s3 + $0x450] sm:$0xff] }
 0x495   : > { %v14317_v63 = vadd.f32 %v4264_v58, %v4161_v1  ;;  %5124 = vmatmul.bf16.vlgmr.msra.gmra.mxu3 %v5046_v21  ;;  %5367 = vmatpush.bf16.msrb.mxu1 %v12171_v51  ;;  %v4793_v28 = vld [vmem:[#allocation3 + $0x41] sm:$0xff] }
 0x496   : > { %4876 = vmatmul.bf16.vlgmr.msra.gmra.mxu1 %v4798_v6 }
 0x497   : > { %5000 = vmatmul.bf16.vlgmr.msra.gmra.mxu2 %v4922_v49 }
 0x498   : > { %v4267_v20 = vpop.f32.mrf.mxu3 }
 0x499   : > { %5368 = vmatpush.bf16.msrb.mxu1 %v12170_v54  ;;  %v5043_v54 = vld [vmem:[#allocation3 + $0x59] sm:$0xff] }
 0x49a   : > { %v4143_v4 = vpop.f32.mrf.mxu2 }
 0x49b   : > { %v4162_v43 = vadd.f32 %v4143_v4, %v4038_v0  ;;  %v4021_v3 = vpop.f32.mrf.mxu1  ;;  %v4917_v0 = vld [vmem:[#allocation3 + $0x42] sm:$0xff] }
 0x49c   : > { %v4039_v11 = vadd.f32 %v4021_v3, %v14199_v7  ;;  %v6156_v7 = vld [vmem:[#allocation3 + $0x50] sm:$0xff]  ;;  %v14351_v27 = vpop.f32.mrf.mxu0  ;;  %v4924_v3 = vpack.c.bf16 %v4917_v0, %v4916_v18  ;;  %v5045_v18 = vld [vmem:[#allocation3 + $0x69] sm:$0x1f] }
 0x49d   : > { %v14331_v48 = vadd.f32 %v4267_v20, %v4162_v43  ;;  %v6164_v8 = vpack.c.bf16 %v6157_v16, %v6156_v7  ;;  %5369 = vmatpush.bf16.msrb.mxu1 %v12169_v31  ;;  %v4800_v20 = vpack.c.bf16 %v4793_v28, %v5039_v15  ;;  %v5048_v16 = vpack.c.bf16 %v5041_v47, %v4793_v28  ;;  %v12175_v7 = vld [vmem:[%s15469_s3 + $0x480] sm:$0xff]  ;;  %v12222_v31 = vld [vmem:[%s15469_s3 + $0x5f8] sm:$0xff] }
 0x4a0   : > { %v4269_v2 = vpop.f32.mrf.mxu3 }
 0x4a2   : > { %v4145_v32 = vpop.f32.mrf.mxu2 }
 0x4a3   : > { %v4163_v61 = vadd.f32 %v4145_v32, %v4039_v11  ;;  %v4024_v52 = vpop.f32.mrf.mxu1  ;;  %v12176_v11 = vld [vmem:[%s15469_s3 + $0x488] sm:$0xff] }
 0x4a4   : > { %v4040_v50 = vadd.f32 %v4024_v52, %v14220_v36  ;;  %6250 = vmatmul.bf16.gmra.mxu0 %v6164_v8  ;;  %v14374_v30 = vpop.f32.mrf.mxu0  ;;  %5494 = vmatpush.bf16.msrb.mxu2 %v12176_v11  ;;  %v12183_v52 = vld [vmem:[%s15469_s3 + $0x4c0] sm:$0xff] }
 0x4a5   : > { %v14342_v62 = vadd.f32 %v4269_v2, %v4163_v61  ;;  %5129 = vmatmul.bf16.gmra.mxu3 %v5047_v17 }
 0x4a6   : > { %4881 = vmatmul.bf16.gmra.mxu1 %v4799_v13  ;;  %5619 = vmatpush.bf16.msrb.mxu3 %v12183_v52  ;;  %v4919_v13 = vld [vmem:[#allocation3 + $0x52] sm:$0xff] }
 0x4a7   : > { %5005 = vmatmul.bf16.gmra.mxu2 %v4923_v19 }
 0x4a8   : > { %v4272_v36 = vpop.f32.mrf.mxu3  ;;  %5495 = vmatpush.bf16.msrb.mxu2 %v12175_v7 }
 0x4aa   : > { %v4148_v37 = vpop.f32.mrf.mxu2  ;;  %6108 = vmatpush.bf16.msra.mxu3 %v12222_v31 }
 0x4ab   : > { %v4164_v55 = vadd.f32 %v4148_v37, %v4040_v50  ;;  %v4026_v1 = vpop.f32.mrf.mxu1  ;;  %v4795_v50 = vld [vmem:[#allocation3 + $0x51] sm:$0xff] }
 0x4ac   : > { %v4041_v59 = vadd.f32 %v4026_v1, %v14237_v39  ;;  %v14362_v39 = vld [vmem:[#allocation3] sm:$0xff]  ;;  %v4925_v1 = vpack.c.bf16 %v4919_v13, %v4918_v26  ;;  %5984 = vmatpush.bf16.msra.mxu2 %v12214_v35  ;;  %v12212_v13 = vld [vmem:[%s15469_s3 + $0x5a8] sm:$0xff] }
 0x4ad   : > { %v14353_v58 = vadd.f32 %v4272_v36, %v4164_v55  ;;  %v6165_v51 = vpack.c.bf16 %v14362_v39, %v6158_v33  ;;  %v4801_v36 = vpack.c.bf16 %v4795_v50, %v5041_v47  ;;  %v12213_v47 = vld [vmem:[%s15469_s3 + $0x5b0] sm:$0xff]  ;;  %v5408_v35 = vld [vmem:[#allocation3 + $0x24] sm:$0xff] }
 0x4ae   : > { %v5409_v26 = vld [vmem:[#allocation3 + $0x2c] sm:$0xff] }
 0x4b0   : > { %v4274_v49 = vpop.f32.mrf.mxu3  ;;  %5985 = vmatpush.bf16.msra.mxu2 %v12213_v47  ;;  %v12219_v47 = vld [vmem:[%s15469_s3 + $0x5e0] sm:$0xff] }
 0x4b2   : > { %v4150_v53 = vpop.f32.mrf.mxu2 }
 0x4b3   : > { %v4165_v6 = vadd.f32 %v4150_v53, %v4041_v59  ;;  %v4029_v21 = vpop.f32.mrf.mxu1  ;;  %v5049_v59 = vpack.c.bf16 %v5043_v54, %v4795_v50 }
 0x4b4   : > { %v4042_v43 = vadd.f32 %v4029_v21, %v14256_v40  ;;  %6255 = vmatmul.bf16.gmra.mxu0 %v6165_v51  ;;  %v12168_v40 = vld [vmem:[%s15469_s3 + $0x448] sm:$0xff]  ;;  %5986 = vmatpush.bf16.msra.mxu2 %v12212_v13  ;;  %v14459_v13 = vld [vmem:[#allocation3 + $0x35] sm:$0xff] }
 0x4b5   : > { %v14365_v4 = vadd.f32 %v4274_v49, %v4165_v6  ;;  %5134 = vmatmul.bf16.gmra.mxu3 %v5048_v16  ;;  %5370 = vmatpush.bf16.msrb.mxu1 %v12168_v40  ;;  %v12206_v49 = vld [vmem:[%s15469_s3 + $0x578] sm:$0xff]  ;;  %v5044_v21 = vld [vmem:[#allocation3 + $0x61] sm:$0xff] }
 0x4b6   : > { %4886 = vmatmul.bf16.gmra.mxu1 %v4800_v20  ;;  %v4920_v20 = vld [vmem:[#allocation3 + $0x5a] sm:$0xff] }
 0x4b7   : > { %5010 = vmatmul.bf16.gmra.mxu2 %v4924_v3  ;;  %v4921_v3 = vld [vmem:[#allocation3 + $0x62] sm:$0x1f] }
 0x4b8   : > { %v4277_v29 = vpop.f32.mrf.mxu3 }
 0x4b9   : > { %5371 = vmatpush.bf16.msrb.mxu1 %v12167_v34 }
 0x4ba   : > { %v4153_v32 = vpop.f32.mrf.mxu2 }
 0x4bb   : > { %v4166_v9 = vadd.f32 %v4153_v32, %v4042_v43  ;;  %v4031_v61 = vpop.f32.mrf.mxu1  ;;  %v4797_v43 = vld [vmem:[#allocation3 + $0x61] sm:$0x1f] }
 0x4bc   : > { %v4043_v15 = vadd.f32 %v4031_v61, %v14270_v57  ;;  %v12221_v61 = vld [vmem:[%s15469_s3 + $0x5f0] sm:$0xff] }
 0x4bd   : > { %v14379_v2 = vadd.f32 %v4277_v29, %v4166_v9  ;;  %5860 = vmatpush.bf16.msra.mxu1 %v12206_v49  ;;  %v4802_v9 = vpack.c.bf16 %v4797_v43, %v5043_v54  ;;  %v4926_v29 = vpack.c.bf16 %v4921_v3, %v4920_v20  ;;  %6109 = vmatpush.bf16.msra.mxu3 %v12221_v61  ;;  %v14454_v61 = vld [vmem:[#allocation3 + $0x3d] sm:$0xff] }
 0x4c0   : > { %v4279_v57 = vpop.f32.mrf.mxu3 }
 0x4c2   : > { %v4155_v8 = vpop.f32.mrf.mxu2 }
 0x4c3   : > { %v4167_v19 = vadd.f32 %v4155_v8, %v4043_v15  ;;  %v4381_v17 = vpop.f32.mrf.mxu1  ;;  %v12205_v15 = vld [vmem:[%s15469_s3 + $0x570] sm:$0xff] }
 0x4c4   : > { %v4406_v55 = vadd.f32 %v4381_v17, %v14283_v45  ;;  %5861 = vmatpush.bf16.msra.mxu1 %v12205_v15  ;;  %v5285_v17 = vld [vmem:[#allocation3 + $0x2b] sm:$0xff] }
 0x4c5   : > { %v14391_v37 = vadd.f32 %v4279_v57, %v4167_v19  ;;  %5139 = vmatmul.bf16.gmra.mxu3 %v5049_v59  ;;  %v12220_v19 = vld [vmem:[%s15469_s3 + $0x5e8] sm:$0xff] }
 0x4c6   : > { %4891 = vmatmul.bf16.gmra.mxu1 %v4801_v36  ;;  %v12204_v57 = vld [vmem:[%s15469_s3 + $0x568] sm:$0xff]  ;;  %6110 = vmatpush.bf16.msra.mxu3 %v12220_v19  ;;  %v12202_v19 = vld [vmem:[%s15469_s3 + $0x558] sm:$0xff] }
 0x4c7   : > { %5015 = vmatmul.bf16.gmra.mxu2 %v4925_v1  ;;  %v14430_v36 = vld [vmem:[#allocation3 + $0x2d] sm:$0xff]  ;;  %v5284_v59 = vld [vmem:[#allocation3 + $0x23] sm:$0xff] }
 0x4c8   : > { %v4629_v28 = vpop.f32.mrf.mxu3  ;;  %5862 = vmatpush.bf16.msra.mxu1 %v12204_v57  ;;  %v5543_v57 = vpack.c.bf16 %v14454_v61, %v14459_v13 }
 0x4ca   : > { %v4505_v33 = vpop.f32.mrf.mxu2  ;;  %6111 = vmatpush.bf16.msra.mxu3 %v12219_v47 }
 0x4cb   : > { %v4530_v53 = vadd.f32 %v4505_v33, %v4406_v55  ;;  %v4383_v45 = vpop.f32.mrf.mxu1 }
 0x4cc   : > { %v4407_v6 = vadd.f32 %v4383_v45, %v14294_v22  ;;  %v5050_v22 = vpack.c.bf16 %v5045_v18, %v5044_v21  ;;  %v5532_v45 = vld [vmem:[#allocation3 + $0x25] sm:$0xff] }
 0x4cd   : > { %v14400_v0 = vadd.f32 %v4629_v28, %v4530_v53  ;;  %v5294_v53 = vpack.c.bf16 %v5285_v17, %v5284_v59  ;;  %v5418_v28 = vpack.c.bf16 %v5409_v26, %v5408_v35  ;;  %v5542_v49 = vpack.c.bf16 %v14430_v36, %v5532_v45  ;;  %v12217_v59 = vld [vmem:[%s15469_s3 + $0x5d0] sm:$0xff] }
 0x4ce   : > { %v12201_v35 = vld [vmem:[%s15469_s3 + $0x550] sm:$0xff] }
 0x4d0   : > { %v4631_v10 = vpop.f32.mrf.mxu3 }
 0x4d2   : > { %v4507_v51 = vpop.f32.mrf.mxu2 }
 0x4d3   : > { %v4531_v11 = vadd.f32 %v4507_v51, %v4407_v6  ;;  %v4386_v16 = vpop.f32.mrf.mxu1  ;;  %v12211_v6 = vld [vmem:[%s15469_s3 + $0x5a0] sm:$0xff] }
 0x4d4   : > { %v4408_v32 = vadd.f32 %v4386_v16, %v14303_v44  ;;  %5987 = vmatpush.bf16.msra.mxu2 %v12211_v6 }
 0x4d5   : > { %v14409_v40 = vadd.f32 %v4631_v10, %v4531_v11  ;;  %5144 = vmatmul.bf16.gmra.mxu3 %v5050_v22  ;;  %v12210_v11 = vld [vmem:[%s15469_s3 + $0x598] sm:$0xff] }
 0x4d6   : > { %4896 = vmatmul.bf16.gmra.mxu1 %v4802_v9  ;;  %v12218_v10 = vld [vmem:[%s15469_s3 + $0x5d8] sm:$0xff] }
 0x4d7   : > { %5020 = vmatmul.bf16.gmra.mxu2 %v4926_v29  ;;  %6112 = vmatpush.bf16.msra.mxu3 %v12218_v10  ;;  %v5287_v22 = vld [vmem:[#allocation3 + $0x3b] sm:$0xff]  ;;  %v12216_v10 = vld [vmem:[%s15469_s3 + $0x5c8] sm:$0xff] }
 0x4d8   : > { %v4634_v34 = vpop.f32.mrf.mxu3  ;;  %5988 = vmatpush.bf16.msra.mxu2 %v12210_v11  ;;  %v12208_v11 = vld [vmem:[%s15469_s3 + $0x588] sm:$0xff] }
 0x4da   : > { %v4510_v7 = vpop.f32.mrf.mxu2 }
 0x4db   : > { %v4532_v52 = vadd.f32 %v4510_v7, %v4408_v32  ;;  %v4388_v8 = vpop.f32.mrf.mxu1  ;;  %v5411_v32 = vld [vmem:[#allocation3 + $0x3c] sm:$0xff]  ;;  %v5286_v7 = vld [vmem:[#allocation3 + $0x33] sm:$0xff]  ;;  %6113 = vmatpush.bf16.msra.mxu3 %v12217_v59 }
 0x4dc   : > { %v4409_v50 = vadd.f32 %v4388_v8, %v14317_v63  ;;  %v5295_v8 = vpack.c.bf16 %v5287_v22, %v5286_v7  ;;  %v5414_v59 = vld [vmem:[#allocation3 + $0x54] sm:$0xff] }
 0x4dd   : > { %v14418_v44 = vadd.f32 %v4634_v34, %v4532_v52 }
 0x4df   : > { %6114 = vmatpush.bf16.msra.mxu3 %v12216_v10  ;;  %v5293_v10 = vld [vmem:[#allocation3 + $0x6b] sm:$0x1f] }
 0x4e0   : > { %v4636_v63 = vpop.f32.mrf.mxu3 }
 0x4e2   : > { %v4512_v54 = vpop.f32.mrf.mxu2 }
 0x4e3   : > { %v4533_v55 = vadd.f32 %v4512_v54, %v4409_v50  ;;  %v4391_v1 = vpop.f32.mrf.mxu1  ;;  %v12209_v54 = vld [vmem:[%s15469_s3 + $0x590] sm:$0xff] }
 0x4e4   : > { %v4410_v33 = vadd.f32 %v4391_v1, %v14331_v48  ;;  %v12203_v48 = vld [vmem:[%s15469_s3 + $0x560] sm:$0xff]  ;;  %5989 = vmatpush.bf16.msra.mxu2 %v12209_v54 }
 0x4e5   : > { %v14432_v31 = vadd.f32 %v4636_v63, %v4533_v55  ;;  %5620 = vmatmul.bf16.vlgmr.msrb.gmra.mxu3 %v5542_v49  ;;  %5863 = vmatpush.bf16.msra.mxu1 %v12203_v48  ;;  %v14478_v49 = vld [vmem:[#allocation3 + $0x4d] sm:$0xff]  ;;  %v5288_v48 = vld [vmem:[#allocation3 + $0x43] sm:$0xff] }
 0x4e6   : > { %5372 = vmatmul.bf16.vlgmr.msrb.gmra.mxu1 %v5294_v53  ;;  %v5289_v53 = vld [vmem:[#allocation3 + $0x4b] sm:$0xff] }
 0x4e7   : > { %5496 = vmatmul.bf16.vlgmr.msrb.gmra.mxu2 %v5418_v28  ;;  %v5413_v28 = vld [vmem:[#allocation3 + $0x4c] sm:$0xff] }
 0x4e8   : > { %v4639_v51 = vpop.f32.mrf.mxu3  ;;  %5990 = vmatpush.bf16.msra.mxu2 %v12208_v11  ;;  %v5292_v11 = vld [vmem:[#allocation3 + $0x63] sm:$0xff] }
 0x4e9   : > { %5864 = vmatpush.bf16.msra.mxu1 %v12202_v19 }
 0x4ea   : > { %v4515_v21 = vpop.f32.mrf.mxu2 }
 0x4eb   : > { %v4534_v18 = vadd.f32 %v4515_v21, %v4410_v33  ;;  %v4393_v43 = vpop.f32.mrf.mxu1 }
 0x4ec   : > { %v4411_v3 = vadd.f32 %v4393_v43, %v14342_v62  ;;  %v5410_v62 = vld [vmem:[#allocation3 + $0x34] sm:$0xff] }
 0x4ed   : > { %v14445_v20 = vadd.f32 %v4639_v51, %v4534_v18  ;;  %v5419_v50 = vpack.c.bf16 %v5411_v32, %v5410_v62  ;;  %5865 = vmatpush.bf16.msra.mxu1 %v12201_v35  ;;  %v5296_v51 = vpack.c.bf16 %v5289_v53, %v5288_v48  ;;  %v12207_v62 = vld [vmem:[%s15469_s3 + $0x580] sm:$0xff] }
 0x4ee   : > { %5991 = vmatpush.bf16.msra.mxu2 %v12207_v62  ;;  %v4780_v62 = vadd.f32 %v14189_v12, %v14418_v44 }
 0x4f0   : > { %v4641_v29 = vpop.f32.mrf.mxu3 }
 0x4f2   : > { %v4517_v16 = vpop.f32.mrf.mxu2 }
 0x4f3   : > { %v4535_v9 = vadd.f32 %v4517_v16, %v4411_v3  ;;  %v4396_v15 = vpop.f32.mrf.mxu1  ;;  %v14483_v3 = vld [vmem:[#allocation3 + $0x45] sm:$0xff] }
 0x4f4   : > { %v4412_v34 = vadd.f32 %v4396_v15, %v14353_v58  ;;  %v5544_v16 = vpack.c.bf16 %v14478_v49, %v14483_v3 }
 0x4f5   : > { %v14456_v52 = vadd.f32 %v4641_v29, %v4535_v9  ;;  %5625 = vmatmul.bf16.gmra.mxu3 %v5543_v57  ;;  %v5291_v57 = vld [vmem:[#allocation3 + $0x5b] sm:$0xff] }
 0x4f6   : > { %5377 = vmatmul.bf16.gmra.mxu1 %v5295_v8  ;;  %v12199_v8 = vld [vmem:[%s15469_s3 + $0x540] sm:$0xff] }
 0x4f7   : > { %5501 = vmatmul.bf16.gmra.mxu2 %v5419_v50  ;;  %v14508_v50 = vpop.f32.mrf.mxu0 }
 0x4f8   : > { %v4644_v26 = vpop.f32.mrf.mxu3 }
 0x4fa   : > { %v4520_v58 = vpop.f32.mrf.mxu2 }
 0x4fb   : > { %v4536_v17 = vadd.f32 %v4520_v58, %v4412_v34  ;;  %v4398_v55 = vpop.f32.mrf.mxu1  ;;  %v12215_v34 = vld [vmem:[%s15469_s3 + $0x5c0] sm:$0xff] }
 0x4fc   : > { %v4413_v1 = vadd.f32 %v4398_v55, %v14365_v4  ;;  %v5412_v4 = vld [vmem:[#allocation3 + $0x44] sm:$0xff]  ;;  %6115 = vmatpush.bf16.msra.mxu3 %v12215_v34  ;;  %v5298_v34 = vpack.c.bf16 %v5293_v10, %v5292_v11  ;;  %v6028_v11 = vld [vmem:[#allocation3 + $0x2f] sm:$0xff] }
 0x4fd   : > { %v14469_v63 = vadd.f32 %v4644_v26, %v4536_v17  ;;  %v5420_v43 = vpack.c.bf16 %v5413_v28, %v5412_v4  ;;  %v4778_v17 = vadd.f32 %v14145_v5, %v14400_v0  ;;  %v14512_v26 = vld [vmem:[#allocation3 + $0x5d] sm:$0xff]  ;;  %v4779_v4 = vadd.f32 %v14167_v42, %v14409_v40  ;;  %v14530_v42 = vld [vmem:[#allocation3 + $0x65] sm:$0xff] }
 0x500   : > { %v4646_v6 = vpop.f32.mrf.mxu3 }
 0x502   : > { %v4522_v33 = vpop.f32.mrf.mxu2 }
 0x503   : > { %v4537_v45 = vadd.f32 %v4522_v33, %v4413_v1  ;;  %v4401_v47 = vpop.f32.mrf.mxu1  ;;  %v5290_v1 = vld [vmem:[#allocation3 + $0x53] sm:$0xff] }
 0x504   : > { %v4414_v18 = vadd.f32 %v4401_v47, %v14379_v2  ;;  %v12200_v2 = vld [vmem:[%s15469_s3 + $0x548] sm:$0xff]  ;;  %v5297_v53 = vpack.c.bf16 %v5291_v57, %v5290_v1  ;;  %v14520_v47 = vpop.f32.mrf.mxu0 }
 0x505   : > { %v14480_v21 = vadd.f32 %v4646_v6, %v4537_v45  ;;  %5630 = vmatmul.bf16.gmra.mxu3 %v5544_v16  ;;  %5866 = vmatpush.bf16.msra.mxu1 %v12200_v2  ;;  %v14516_v45 = vld [vmem:[#allocation3 + $0x55] sm:$0xff]  ;;  %v5416_v16 = vld [vmem:[#allocation3 + $0x64] sm:$0xff]  ;;  %v5417_v2 = vld [vmem:[#allocation3 + $0x6c] sm:$0x1f] }
 0x506   : > { %5382 = vmatmul.bf16.gmra.mxu1 %v5296_v51  ;;  %v5545_v6 = vpack.c.bf16 %v14512_v26, %v14516_v45 }
 0x507   : > { %5506 = vmatmul.bf16.gmra.mxu2 %v5420_v43 }
 0x508   : > { %v4649_v9 = vpop.f32.mrf.mxu3 }
 0x509   : > { %5867 = vmatpush.bf16.msra.mxu1 %v12199_v8  ;;  %v5422_v8 = vpack.c.bf16 %v5417_v2, %v5416_v16 }
 0x50a   : > { %v4525_v22 = vpop.f32.mrf.mxu2 }
 0x50b   : > { %v4538_v32 = vadd.f32 %v4525_v22, %v4414_v18  ;;  %v4403_v29 = vpop.f32.mrf.mxu1  ;;  %v5541_v22 = vld [vmem:[#allocation3 + $0x6d] sm:$0x1f] }
 0x50c   : > { %v4415_v7 = vadd.f32 %v4403_v29, %v14391_v37  ;;  %v5415_v37 = vld [vmem:[#allocation3 + $0x5c] sm:$0xff] }
 0x50d   : > { %v14496_v15 = vadd.f32 %v4649_v9, %v4538_v32  ;;  %v5421_v28 = vpack.c.bf16 %v5415_v37, %v5414_v59  ;;  %v14526_v32 = vpop.f32.mrf.mxu0 }
 0x510   : > { %v4651_v58 = vpop.f32.mrf.mxu3 }
 0x512   : > { %v4527_v19 = vpop.f32.mrf.mxu2 }
 0x513   : > { %v4539_v54 = vadd.f32 %v4527_v19, %v4415_v7  ;;  %v4877_v55 = vpop.f32.mrf.mxu1  ;;  %v5546_v19 = vpack.c.bf16 %v5541_v22, %v14530_v42 }
 0x514   : > { %v4902_v33 = vadd.f32 %v4877_v55, %v4778_v17  ;;  %v4781_v55 = vadd.f32 %v14210_v14, %v14432_v31  ;;  %v5790_v14 = vpack.c.bf16 %v14459_v13, %v14430_v36  ;;  %v5907_v13 = vld [vmem:[#allocation3 + $0x46] sm:$0xff] }
 0x515   : > { %v14514_v35 = vadd.f32 %v4651_v58, %v4539_v54  ;;  %5635 = vmatmul.bf16.gmra.mxu3 %v5545_v6  ;;  %v14537_v12 = vpop.f32.mrf.mxu0 }
 0x516   : > { %5387 = vmatmul.bf16.gmra.mxu1 %v5297_v53  ;;  %v5905_v53 = vld [vmem:[#allocation3 + $0x36] sm:$0xff] }
 0x517   : > { %5511 = vmatmul.bf16.gmra.mxu2 %v5421_v28 }
 0x518   : > { %v5125_v48 = vpop.f32.mrf.mxu3 }
 0x51a   : > { %v5001_v5 = vpop.f32.mrf.mxu2 }
 0x51b   : > { %v5026_v0 = vadd.f32 %v5001_v5, %v4902_v33  ;;  %v4879_v18 = vpop.f32.mrf.mxu1  ;;  %v4782_v5 = vadd.f32 %v14232_v60, %v14445_v20  ;;  %v4783_v20 = vadd.f32 %v14254_v46, %v14456_v52  ;;  %v5791_v46 = vpack.c.bf16 %v14483_v3, %v14454_v61  ;;  %v6033_v3 = vld [vmem:[#allocation3 + $0x57] sm:$0xff] }
 0x51c   : > { %v4903_v43 = vadd.f32 %v4879_v18, %v4779_v4  ;;  %v5904_v4 = vld [vmem:[#allocation3 + $0x2e] sm:$0xff]  ;;  %v4786_v61 = vadd.f32 %v14292_v38, %v14496_v15 }
 0x51d   : > { %v14524_v51 = vadd.f32 %v5125_v48, %v5026_v0  ;;  %v6029_v0 = vld [vmem:[#allocation3 + $0x37] sm:$0xff]  ;;  %v5914_v31 = vpack.c.bf16 %v5905_v53, %v5904_v4  ;;  %v14547_v10 = vpop.f32.mrf.mxu0 }
 0x51e   : > { %v6038_v16 = vpack.c.bf16 %v6029_v0, %v6028_v11 }
 0x520   : > { %v5127_v7 = vpop.f32.mrf.mxu3 }
 0x522   : > { %v5003_v9 = vpop.f32.mrf.mxu2 }
 0x523   : > { %v5027_v29 = vadd.f32 %v5003_v9, %v4903_v43  ;;  %v4882_v40 = vpop.f32.mrf.mxu1 }
 0x524   : > { %v4904_v37 = vadd.f32 %v4882_v40, %v4780_v62  ;;  %v4784_v40 = vadd.f32 %v14268_v25, %v14469_v63 }
 0x525   : > { %v14533_v57 = vadd.f32 %v5127_v7, %v5027_v29  ;;  %5640 = vmatmul.bf16.gmra.mxu3 %v5546_v19  ;;  %v14553_v62 = vpop.f32.mrf.mxu0  ;;  %v6031_v19 = vld [vmem:[#allocation3 + $0x47] sm:$0xff] }
 0x526   : > { %5392 = vmatmul.bf16.gmra.mxu1 %v5298_v34 }
 0x527   : > { %5516 = vmatmul.bf16.gmra.mxu2 %v5422_v8 }
 0x528   : > { %v5130_v17 = vpop.f32.mrf.mxu3 }
 0x52a   : > { %v5006_v54 = vpop.f32.mrf.mxu2 }
 0x52b   : > { %v5028_v58 = vadd.f32 %v5006_v54, %v4904_v37  ;;  %v4884_v44 = vpop.f32.mrf.mxu1  ;;  %v5906_v54 = vld [vmem:[#allocation3 + $0x3e] sm:$0xff] }
 0x52c   : > { %v4905_v59 = vadd.f32 %v4884_v44, %v4781_v55  ;;  %v5915_v52 = vpack.c.bf16 %v5907_v13, %v5906_v54  ;;  %v6030_v55 = vld [vmem:[#allocation3 + $0x3f] sm:$0xff]  ;;  %v5793_v54 = vpack.c.bf16 %v14530_v42, %v14512_v26  ;;  %v6037_v26 = vld [vmem:[#allocation3 + $0x77] sm:$0x1f] }
 0x52d   : > { %v14539_v1 = vadd.f32 %v5130_v17, %v5028_v58  ;;  %v6039_v44 = vpack.c.bf16 %v6031_v19, %v6030_v55  ;;  %v5911_v13 = vld [vmem:[#allocation3 + $0x66] sm:$0xff] }
 0x530   : > { %v5132_v6 = vpop.f32.mrf.mxu3 }
 0x532   : > { %v5008_v33 = vpop.f32.mrf.mxu2 }
 0x533   : > { %v5029_v28 = vadd.f32 %v5008_v33, %v4905_v59  ;;  %v4887_v48 = vpop.f32.mrf.mxu1  ;;  %v14561_v59 = vpop.f32.mrf.mxu0 }
 0x534   : > { %v4906_v43 = vadd.f32 %v4887_v48, %v4782_v5  ;;  %v5909_v5 = vld [vmem:[#allocation3 + $0x56] sm:$0xff] }
 0x535   : > { %v14543_v18 = vadd.f32 %v5132_v6, %v5029_v28  ;;  %6116 = vmatmul.bf16.vlgmr.msra.gmra.mxu3 %v6038_v16  ;;  %v6032_v16 = vld [vmem:[#allocation3 + $0x4f] sm:$0xff] }
 0x536   : > { %5868 = vmatmul.bf16.vlgmr.msra.gmra.mxu1 %v5790_v14 }
 0x537   : > { %5992 = vmatmul.bf16.vlgmr.msra.gmra.mxu2 %v5914_v31  ;;  %v5792_v31 = vpack.c.bf16 %v14516_v45, %v14478_v49  ;;  %v5910_v45 = vld [vmem:[#allocation3 + $0x5e] sm:$0xff] }
 0x538   : > { %v5135_v60 = vpop.f32.mrf.mxu3 }
 0x53a   : > { %v5011_v2 = vpop.f32.mrf.mxu2 }
 0x53b   : > { %v5030_v22 = vadd.f32 %v5011_v2, %v4906_v43  ;;  %v4889_v9 = vpop.f32.mrf.mxu1  ;;  %v14573_v48 = vpop.f32.mrf.mxu0  ;;  %v5908_v43 = vld [vmem:[#allocation3 + $0x4e] sm:$0xff]  ;;  %v6040_v2 = vpack.c.bf16 %v6033_v3, %v6032_v16 }
 0x53c   : > { %v4907_v7 = vadd.f32 %v4889_v9, %v4783_v20  ;;  %v5916_v11 = vpack.c.bf16 %v5909_v5, %v5908_v43  ;;  %v5912_v5 = vld [vmem:[#allocation3 + $0x6e] sm:$0xff] }
 0x53d   : > { %v14551_v29 = vadd.f32 %v5135_v60, %v5030_v22  ;;  %v6161_v22 = vld [vmem:[#allocation3 + $0x78] sm:$0x1f]  ;;  %v6036_v3 = vld [vmem:[#allocation3 + $0x6f] sm:$0xff] }
 0x53e   : > { %v6166_v60 = vpack.c.bf16 %v6161_v22, %v14362_v39  ;;  %v6034_v39 = vld [vmem:[#allocation3 + $0x5f] sm:$0xff] }
 0x540   : > { %v5137_v8 = vpop.f32.mrf.mxu3  ;;  %6260 = vmatmul.bf16.gmra.mxu0 %v6166_v60 }
 0x542   : > { %v5013_v36 = vpop.f32.mrf.mxu2 }
 0x543   : > { %v5031_v34 = vadd.f32 %v5013_v36, %v4907_v7  ;;  %v4892_v37 = vpop.f32.mrf.mxu1  ;;  %v14582_v36 = vpop.f32.mrf.mxu0 }
 0x544   : > { %v4908_v17 = vadd.f32 %v4892_v37, %v4784_v40  ;;  %v6035_v40 = vld [vmem:[#allocation3 + $0x67] sm:$0xff] }
 0x545   : > { %v14557_v58 = vadd.f32 %v5137_v8, %v5031_v34  ;;  %6121 = vmatmul.bf16.gmra.mxu3 %v6039_v44  ;;  %v5274_v8 = vadd.f32 %v14323_v23, %v14524_v51  ;;  %v5788_v51 = vld [vmem:[#allocation3 + $0x6d] sm:$0xff] }
 0x546   : > { %5873 = vmatmul.bf16.gmra.mxu1 %v5791_v46  ;;  %v6041_v46 = vpack.c.bf16 %v6035_v40, %v6034_v39 }
 0x547   : > { %5997 = vmatmul.bf16.gmra.mxu2 %v5915_v52 }
 0x548   : > { %v5140_v25 = vpop.f32.mrf.mxu3 }
 0x54a   : > { %v5016_v33 = vpop.f32.mrf.mxu2 }
 0x54b   : > { %v5032_v53 = vadd.f32 %v5016_v33, %v4908_v17  ;;  %v14563_v63 = vpop.f32.mrf.mxu1  ;;  %v5917_v17 = vpack.c.bf16 %v5911_v13, %v5910_v45  ;;  %v14592_v52 = vpop.f32.mrf.mxu0 }
 0x54d   : > { %v14565_v28 = vadd.f32 %v5140_v25, %v5032_v53  ;;  %v5789_v25 = vld [vmem:[#allocation3 + $0x75] sm:$0x1f] }
 0x550   : > { %v14569_v0 = vpop.f32.mrf.mxu3 }
 0x552   : > { %v14567_v6 = vpop.f32.mrf.mxu2 }
 0x553   : > { %v4897_v4 = vpop.f32.mrf.mxu1  ;;  %v14598_v42 = vpop.f32.mrf.mxu0 }
 0x554   : > { %v4910_v14 = vadd.f32 %v4897_v4, %v4786_v61  ;;  %v5913_v61 = vld [vmem:[#allocation3 + $0x76] sm:$0x1f] }
 0x555   : > { %6126 = vmatmul.bf16.gmra.mxu3 %v6040_v2  ;;  %v6042_v2 = vpack.c.bf16 %v6037_v26, %v6036_v3 }
 0x556   : > { %5878 = vmatmul.bf16.gmra.mxu1 %v5792_v31  ;;  %v5794_v31 = vpack.c.bf16 %v5789_v25, %v5788_v51 }
 0x557   : > { %6002 = vmatmul.bf16.gmra.mxu2 %v5916_v11  ;;  %v5918_v11 = vpack.c.bf16 %v5913_v61, %v5912_v5 }
 0x558   : > { %v5145_v15 = vpop.f32.mrf.mxu3 }
 0x55a   : > { %v5021_v20 = vpop.f32.mrf.mxu2 }
 0x55b   : > { %v5034_v38 = vadd.f32 %v5021_v20, %v4910_v14  ;;  %v14578_v9 = vpop.f32.mrf.mxu1  ;;  %v5276_v14 = vadd.f32 %v14351_v27, %v14539_v1  ;;  %v5278_v1 = vadd.f32 %v14508_v50, %v14551_v29  ;;  %v5280_v50 = vadd.f32 %v14526_v32, %v14565_v28 }
 0x55d   : > { %v14580_v7 = vadd.f32 %v5145_v15, %v5034_v38  ;;  %v14602_v15 = vpop.f32.mrf.mxu0 }
 0x560   : > { %v14586_v34 = vpop.f32.mrf.mxu3 }
 0x562   : > { %v14584_v49 = vpop.f32.mrf.mxu2 }
 0x563   : > { %v5373_v19 = vpop.f32.mrf.mxu1 }
 0x564   : > { %v5398_v37 = vadd.f32 %v5373_v19, %v5274_v8 }
 0x565   : > { %6131 = vmatmul.bf16.gmra.mxu3 %v6041_v46  ;;  %v14614_v19 = vpop.f32.mrf.mxu0 }
 0x566   : > { %5883 = vmatmul.bf16.gmra.mxu1 %v5793_v54 }
 0x567   : > { %6007 = vmatmul.bf16.gmra.mxu2 %v5917_v17 }
 0x568   : > { %v5621_v33 = vpop.f32.mrf.mxu3 }
 0x56a   : > { %v5497_v55 = vpop.f32.mrf.mxu2 }
 0x56b   : > { %v5522_v44 = vadd.f32 %v5497_v55, %v5398_v37  ;;  %v14594_v53 = vpop.f32.mrf.mxu1 }
 0x56d   : > { %v14596_v23 = vadd.f32 %v5621_v33, %v5522_v44  ;;  %v14620_v44 = vpop.f32.mrf.mxu0 }
 0x570   : > { %v5623_v43 = vpop.f32.mrf.mxu3 }
 0x572   : > { %v5499_v4 = vpop.f32.mrf.mxu2 }
 0x573   : > { %v5378_v16 = vpop.f32.mrf.mxu1 }
 0x574   : > { %v5400_v22 = vadd.f32 %v5378_v16, %v5276_v14 }
 0x575   : > { %6136 = vmatmul.bf16.gmra.mxu3 %v6042_v2  ;;  %v14628_v5 = vpop.f32.mrf.mxu0  ;;  %v5282_v2 = vadd.f32 %v14547_v10, %v14580_v7 }
 0x576   : > { %5888 = vmatmul.bf16.gmra.mxu1 %v5794_v31 }
 0x577   : > { %6012 = vmatmul.bf16.gmra.mxu2 %v5918_v11 }
 0x578   : > { %v5626_v38 = vpop.f32.mrf.mxu3 }
 0x57a   : > { %v5502_v60 = vpop.f32.mrf.mxu2 }
 0x57b   : > { %v5524_v20 = vadd.f32 %v5502_v60, %v5400_v22  ;;  %v14604_v45 = vpop.f32.mrf.mxu1 }
 0x57d   : > { %v14606_v13 = vadd.f32 %v5626_v38, %v5524_v20  ;;  %v14640_v22 = vpop.f32.mrf.mxu0 }
 0x580   : > { %v14610_v27 = vpop.f32.mrf.mxu3 }
 0x582   : > { %v14608_v8 = vpop.f32.mrf.mxu2 }
 0x583   : > { %v5383_v39 = vpop.f32.mrf.mxu1 }
 0x584   : > { %v5402_v40 = vadd.f32 %v5383_v39, %v5278_v1 }
 0x588   : > { %v5631_v17 = vpop.f32.mrf.mxu3 }
 0x58a   : > { %v5507_v37 = vpop.f32.mrf.mxu2 }
 0x58b   : > { %v5526_v54 = vadd.f32 %v5507_v37, %v5402_v40  ;;  %v14616_v46 = vpop.f32.mrf.mxu1  ;;  %v6241_v40 = vpop.f32.mrf.mxu0 }
 0x58d   : > { %v14618_v55 = vadd.f32 %v5631_v17, %v5526_v54  ;;  %v5275_v54 = vadd.f32 %v14340_v56, %v14533_v57  ;;  %v14658_v56 = vld [vmem:[%s15470_s4] ss:$0 sm:$0xff] }
 0x58f   : > { %v5399_v7 = vadd.f32 %v14594_v53, %v5275_v54 }
 0x590   : > { %v14624_v51 = vpop.f32.mrf.mxu3 }
 0x592   : > { %v14622_v33 = vpop.f32.mrf.mxu2 }
 0x593   : > { %v5388_v29 = vpop.f32.mrf.mxu1 }
 0x594   : > { %v5404_v25 = vadd.f32 %v5388_v29, %v5280_v50  ;;  %v5523_v50 = vadd.f32 %v5499_v4, %v5399_v7  ;;  %v5770_v29 = vadd.f32 %v14561_v59, %v14596_v23 }
 0x598   : > { %v5636_v26 = vpop.f32.mrf.mxu3 }
 0x59a   : > { %v5512_v61 = vpop.f32.mrf.mxu2 }
 0x59b   : > { %v5528_v3 = vadd.f32 %v5512_v61, %v5404_v25  ;;  %v14630_v14 = vpop.f32.mrf.mxu1  ;;  %v6243_v25 = vpop.f32.mrf.mxu0 }
 0x59d   : > { %v14632_v31 = vadd.f32 %v5636_v26, %v5528_v3  ;;  %v5647_v26 = vadd.f32 %v5623_v43, %v5523_v50  ;;  %v5277_v43 = vadd.f32 %v14374_v30, %v14543_v18 }
 0x59f   : > { %v5771_v53 = vadd.f32 %v14573_v48, %v5647_v26  ;;  %v5401_v50 = vadd.f32 %v14604_v45, %v5277_v43  ;;  %v5772_v48 = vadd.f32 %v14582_v36, %v14606_v13  ;;  %v12238_v36 = vld [vmem:[%s15471_s5 + $0x38] sm:$0xff] }
 0x5a0   : > { %v14636_v16 = vpop.f32.mrf.mxu3  ;;  %v12254_v13 = vld [vmem:[%s15471_s5 + $0xb8] sm:$0xff]  ;;  %6546 = vmatpush.bf16.msrb.mxu2 %v12238_v36 }
 0x5a1   : > { %6628 = vmatpush.bf16.msrb.mxu3 %v12254_v13 }
 0x5a2   : > { %v14634_v11 = vpop.f32.mrf.mxu2 }
 0x5a3   : > { %v5393_v32 = vpop.f32.mrf.mxu1  ;;  %v6246_v59 = vpop.f32.mrf.mxu0 }
 0x5a4   : > { %v5406_v28 = vadd.f32 %v5393_v32, %v5282_v2 }
 0x5a8   : > { %v5641_v38 = vpop.f32.mrf.mxu3 }
 0x5aa   : > { %v5517_v60 = vpop.f32.mrf.mxu2 }
 0x5ab   : > { %v5530_v20 = vadd.f32 %v5517_v60, %v5406_v28  ;;  %v14642_v1 = vpop.f32.mrf.mxu1 }
 0x5ad   : > { %v14644_v39 = vadd.f32 %v5641_v38, %v5530_v20 }
 0x5b0   : > { %v14650_v17 = vpop.f32.mrf.mxu3 }
 0x5b2   : > { %v14646_v37 = vpop.f32.mrf.mxu2 }
 0x5b3   : > { %v5869_v10 = vpop.f32.mrf.mxu1 }
 0x5b4   : > { %v5894_v61 = vadd.f32 %v5869_v10, %v5770_v29 }
 0x5b8   : > { %v6117_v32 = vpop.f32.mrf.mxu3 }
 0x5ba   : > { %v5993_v3 = vpop.f32.mrf.mxu2 }
 0x5bb   : > { %v6018_v2 = vadd.f32 %v5993_v3, %v5894_v61  ;;  %v5871_v28 = vpop.f32.mrf.mxu1  ;;  %v12246_v3 = vld [vmem:[%s15471_s5 + $0x78] sm:$0xff] }
 0x5bc   : > { %v5895_v20 = vadd.f32 %v5871_v28, %v5771_v53  ;;  %6484 = vmatpush.bf16.msrb.mxu1 %v12246_v3 }
 0x5bd   : > { %v6142_v60 = vadd.f32 %v6117_v32, %v6018_v2 }
 0x5bf   : > { %v6266_v57 = vadd.f32 %v6241_v40, %v6142_v60  ;;  %v5525_v40 = vadd.f32 %v14608_v8, %v5401_v50  ;;  %v6248_v60 = vpop.f32.mrf.mxu0 }
 0x5c0   : > { %v6119_v10 = vpop.f32.mrf.mxu3 }
 0x5c1   : > { %v6280_v4 = vadd.f32 %v14658_v56, %v6266_v57  ;;  %v5649_v2 = vadd.f32 %v14610_v27, %v5525_v40  ;;  %v12245_v57 = vld [vmem:[%s15471_s5 + $0x70] sm:$0xff]  ;;  %v12262_v27 = vld [vmem:[%s15471_s5 + $0xf8] sm:$0xff] }
 0x5c2   : > { %v5995_v23 = vpop.f32.mrf.mxu2  ;;  %6485 = vmatpush.bf16.msrb.mxu1 %v12245_v57  ;;  %6712 = vmatpush.bf16.msrb.mxu0 %v12262_v27  ;;  %v12242_v27 = vld [vmem:[%s15471_s5 + $0x58] sm:$0xff] }
 0x5c3   : > { %v6290_v38 = vmax.f32 %v6280_v4, 0.0  ;;  %v6019_v54 = vadd.f32 %v5995_v23, %v5895_v20  ;;  %v5874_v7 = vpop.f32.mrf.mxu1  ;;  %v5773_v4 = vadd.f32 %v14592_v52, %v5649_v2  ;;  %v12237_v20 = vld [vmem:[%s15471_s5 + $0x30] sm:$0xff] }
 0x5c4   : > { %v5896_v18 = vadd.f32 %v5874_v7, %v5772_v48  ;;  %v12253_v23 = vld [vmem:[%s15471_s5 + $0xb0] sm:$0xff]  ;;  %6547 = vmatpush.bf16.msrb.mxu2 %v12237_v20  ;;  %v4785_v48 = vadd.f32 %v14281_v41, %v14480_v21 }
 0x5c5   : > { %6300 = vst [vmem:[#allocation2] sm:$0xff] %v6290_v38  ;;  %v6143_v29 = vadd.f32 %v6119_v10, %v6019_v54  ;;  %6629 = vmatpush.bf16.msrb.mxu3 %v12253_v23 }
 0x5c7   : > { %v6267_v61 = vadd.f32 %v6243_v25, %v6143_v29 }
 0x5c8   : > { %v6122_v28 = vpop.f32.mrf.mxu3 }
 0x5c9   : > { %v6281_v30 = vadd.f32 %v14658_v56, %v6267_v61  ;;  %v6251_v61 = vpop.f32.mrf.mxu0 }
 0x5ca   : > { %v5998_v26 = vpop.f32.mrf.mxu2 }
 0x5cb   : > { %v6291_v45 = vmax.f32 %v6281_v30, 0.0  ;;  %v6020_v32 = vadd.f32 %v5998_v26, %v5896_v18  ;;  %v5876_v8 = vpop.f32.mrf.mxu1 }
 0x5cc   : > { %v5897_v38 = vadd.f32 %v5876_v8, %v5773_v4  ;;  %v6310_v4 = vld [vmem:[#allocation2] sm:$0x7f] }
 0x5cd   : > { %6301 = vst [vmem:[#allocation2 + $0x8] sm:$0xff] %v6291_v45  ;;  %v6144_v25 = vadd.f32 %v6122_v28, %v6020_v32 }
 0x5cf   : > { %v6268_v53 = vadd.f32 %v6246_v59, %v6144_v25  ;;  %v5279_v59 = vadd.f32 %v14520_v47, %v14557_v58  ;;  %v5774_v47 = vadd.f32 %v14598_v42, %v14618_v55  ;;  %v4909_v58 = vadd.f32 %v14563_v63, %v4785_v48  ;;  %v12236_v63 = vld [vmem:[%s15471_s5 + $0x28] sm:$0xff]  ;;  %v12261_v55 = vld [vmem:[%s15471_s5 + $0xf0] sm:$0xff] }
 0x5d0   : > { %v6124_v7 = vpop.f32.mrf.mxu3  ;;  %6548 = vmatpush.bf16.msrb.mxu2 %v12236_v63  ;;  %6713 = vmatpush.bf16.msrb.mxu0 %v12261_v55  ;;  %v12239_v55 = vld [vmem:[%s15471_s5 + $0x40] sm:$0xff] }
 0x5d1   : > { %v6282_v43 = vadd.f32 %v14658_v56, %v6268_v53  ;;  %v5403_v29 = vadd.f32 %v14616_v46, %v5279_v59  ;;  %v12244_v46 = vld [vmem:[%s15471_s5 + $0x68] sm:$0xff]  ;;  %v5033_v2 = vadd.f32 %v14567_v6, %v4909_v58  ;;  %v12243_v6 = vld [vmem:[%s15471_s5 + $0x60] sm:$0xff]  ;;  %v6253_v25 = vpop.f32.mrf.mxu0 }
 0x5d2   : > { %v6000_v54 = vpop.f32.mrf.mxu2  ;;  %6486 = vmatpush.bf16.msrb.mxu1 %v12244_v46  ;;  %v12240_v58 = vld [vmem:[%s15471_s5 + $0x48] sm:$0xff] }
 0x5d3   : > { %v6292_v52 = vmax.f32 %v6282_v43, 0.0  ;;  %v6021_v10 = vadd.f32 %v6000_v54, %v5897_v38  ;;  %v5879_v50 = vpop.f32.mrf.mxu1  ;;  %v5527_v3 = vadd.f32 %v14622_v33, %v5403_v29 }
 0x5d4   : > { %v5898_v26 = vadd.f32 %v5879_v50, %v5774_v47  ;;  %v12235_v50 = vld [vmem:[%s15471_s5 + $0x20] sm:$0xff] }
 0x5d5   : > { %6302 = vst [vmem:[#allocation2 + $0x10] sm:$0xff] %v6292_v52  ;;  %v6145_v40 = vadd.f32 %v6124_v7, %v6021_v10  ;;  %v5651_v41 = vadd.f32 %v14624_v51, %v5527_v3  ;;  %v5157_v51 = vadd.f32 %v14569_v0, %v5033_v2  ;;  %v12252_v7 = vld [vmem:[%s15471_s5 + $0xa8] sm:$0xff]  ;;  %6549 = vmatpush.bf16.msrb.mxu2 %v12235_v50 }
 0x5d6   : > { %6487 = vmatpush.bf16.msrb.mxu1 %v12243_v6  ;;  %6630 = vmatpush.bf16.msrb.mxu3 %v12252_v7 }
 0x5d7   : > { %v6269_v30 = vadd.f32 %v6248_v60, %v6145_v40  ;;  %v5775_v8 = vadd.f32 %v14602_v15, %v5651_v41  ;;  %v5281_v53 = vadd.f32 %v14537_v12, %v5157_v51  ;;  %v12241_v12 = vld [vmem:[%s15471_s5 + $0x50] sm:$0xff]  ;;  %v5776_v40 = vadd.f32 %v14614_v19, %v14632_v31 }
 0x5d8   : > { %v6127_v32 = vpop.f32.mrf.mxu3 }
 0x5d9   : > { %v6283_v18 = vadd.f32 %v14658_v56, %v6269_v30  ;;  %v5405_v38 = vadd.f32 %v14630_v14, %v5281_v53  ;;  %v4787_v14 = vadd.f32 %v14315_v24, %v14514_v35  ;;  %v12251_v24 = vld [vmem:[%s15471_s5 + $0xa0] sm:$0xff]  ;;  %v6256_v46 = vpop.f32.mrf.mxu0 }
 0x5da   : > { %v6003_v45 = vpop.f32.mrf.mxu2  ;;  %6488 = vmatpush.bf16.msrb.mxu1 %v12242_v27  ;;  %6631 = vmatpush.bf16.msrb.mxu3 %v12251_v24  ;;  %v12258_v24 = vld [vmem:[%s15471_s5 + $0xd8] sm:$0xff] }
 0x5db   : > { %v6293_v21 = vmax.f32 %v6283_v18, 0.0  ;;  %v6022_v33 = vadd.f32 %v6003_v45, %v5898_v26  ;;  %v5881_v28 = vpop.f32.mrf.mxu1  ;;  %v5529_v29 = vadd.f32 %v14634_v11, %v5405_v38  ;;  %v4911_v35 = vadd.f32 %v14578_v9, %v4787_v14  ;;  %v12233_v38 = vld [vmem:[%s15471_s5 + $0x10] sm:$0xff] }
 0x5dc   : > { %v6311_v36 = vld [vmem:[#allocation2 + $0xb] sm:$0x7f]  ;;  %v5899_v57 = vadd.f32 %v5881_v28, %v5775_v8 }
 0x5dd   : > { %6303 = vst [vmem:[#allocation2 + $0x18] sm:$0xff] %v6293_v21  ;;  %v6146_v42 = vadd.f32 %v6127_v32, %v6022_v33  ;;  %v6312_v0 = vmax.f32 %v6310_v4, %v6311_v36  ;;  %v5035_v2 = vadd.f32 %v14584_v49, %v4911_v35  ;;  %v5653_v9 = vadd.f32 %v14636_v16, %v5529_v29  ;;  %v12234_v16 = vld [vmem:[%s15471_s5 + $0x18] sm:$0xff]  ;;  %v12249_v35 = vld [vmem:[%s15471_s5 + $0x90] sm:$0xff] }
 0x5de   : > { %6489 = vmatpush.bf16.msrb.mxu1 %v12241_v12  ;;  %6550 = vmatpush.bf16.msrb.mxu2 %v12234_v16  ;;  %v12256_v16 = vld [vmem:[%s15471_s5 + $0xc8] sm:$0xff] }
 0x5df   : > { %v6270_v60 = vadd.f32 %v6251_v61, %v6146_v42  ;;  %v12260_v61 = vld [vmem:[%s15471_s5 + $0xe8] sm:$0xff]  ;;  %v5159_v8 = vadd.f32 %v14586_v34, %v5035_v2  ;;  %v5777_v53 = vadd.f32 %v14620_v44, %v5653_v9  ;;  %v12269_v44 = vld [vmem:[%s15471_s5 + $0x130] sm:$0xff] }
 0x5e0   : > { %v6129_v15 = vpop.f32.mrf.mxu3  ;;  %6714 = vmatpush.bf16.msrb.mxu0 %v12260_v61  ;;  %v12250_v61 = vld [vmem:[%s15471_s5 + $0x98] sm:$0xff] }
 0x5e1   : > { %v6284_v13 = vadd.f32 %v14658_v56, %v6270_v60  ;;  %v6258_v50 = vpop.f32.mrf.mxu0  ;;  %6632 = vmatpush.bf16.msrb.mxu3 %v12250_v61 }
 0x5e2   : > { %v6005_v20 = vpop.f32.mrf.mxu2  ;;  %6490 = vmatpush.bf16.msrb.mxu1 %v12240_v58  ;;  %6551 = vmatpush.bf16.msrb.mxu2 %v12233_v38 }
 0x5e3   : > { %v6294_v23 = vmax.f32 %v6284_v13, 0.0  ;;  %v6023_v43 = vadd.f32 %v6005_v20, %v5899_v57  ;;  %v5884_v59 = vpop.f32.mrf.mxu1 }
 0x5e4   : > { %v6313_v54 = vld [vmem:[#allocation2 + $0x16] sm:$0x7f]  ;;  %v5900_v26 = vadd.f32 %v5884_v59, %v5776_v40  ;;  %v12259_v40 = vld [vmem:[%s15471_s5 + $0xe0] sm:$0xff] }
 0x5e5   : > { %v6314_v52 = vmax.f32 %v6312_v0, %v6313_v54  ;;  %6304 = vst [vmem:[#allocation2 + $0x20] sm:$0xff] %v6294_v23  ;;  %v6147_v10 = vadd.f32 %v6129_v15, %v6023_v43  ;;  %v5283_v43 = vadd.f32 %v14553_v62, %v5159_v8  ;;  %6715 = vmatpush.bf16.msrb.mxu0 %v12259_v40 }
 0x5e6   : > { %6491 = vmatpush.bf16.msrb.mxu1 %v12239_v55  ;;  %6633 = vmatpush.bf16.msrb.mxu3 %v12249_v35  ;;  %v12284_v35 = vld [vmem:[%s15471_s5 + $0x1a8] sm:$0xff] }
 0x5e7   : > { %v6315_v48 = vsel %vm2726_vm0, %v6314_v52, -inf  ;;  %v6323_v3 = vsel %vm2735_vm1, %v6314_v52, -inf  ;;  %v6331_v30 = vsel %vm2744_vm2, %v6314_v52, -inf  ;;  %v6271_v47 = vadd.f32 %v6253_v25, %v6147_v10  ;;  %v12270_v25 = vld [vmem:[%s15471_s5 + $0x138] sm:$0xff] }
 0x5e8   : > { %v6316_v19 = vrot.slane %v6315_v48, 4  ;;  %v6324_v31 = vrot.slane %v6323_v3, 4  ;;  %v6332_v11 = vrot.slane %v6331_v30, 4  ;;  %v6132_v42 = vpop.f32.mrf.mxu3  ;;  %v5407_v14 = vadd.f32 %v14642_v1, %v5283_v43 }
 0x5e9   : > { %v6285_v18 = vadd.f32 %v14658_v56, %v6271_v47  ;;  %v5778_v47 = vadd.f32 %v14628_v5, %v14644_v39  ;;  %v12267_v39 = vld [vmem:[%s15471_s5 + $0x120] sm:$0xff]  ;;  %6716 = vmatpush.bf16.msrb.mxu0 %v12258_v24  ;;  %v12293_v24 = vld [vmem:[%s15471_s5 + $0x1f0] sm:$0xff] }
 0x5ea   : > { %v6008_v45 = vpop.f32.mrf.mxu2  ;;  %v6317_v41 = vmax.f32 %v6315_v48, %v6316_v19  ;;  %v6325_v21 = vmax.f32 %v6323_v3, %v6324_v31  ;;  %v6333_v33 = vmax.f32 %v6331_v30, %v6332_v11  ;;  %6796 = vmatpush.bf16.msra.mxu1 %v12270_v25  ;;  %v12232_v48 = vld [vmem:[%s15471_s5 + $0x8] sm:$0xff]  ;;  %v5531_v1 = vadd.f32 %v14646_v37, %v5407_v14  ;;  %v12231_v19 = vld [vmem:[%s15471_s5] sm:$0xff]  ;;  %v12278_v11 = vld [vmem:[%s15471_s5 + $0x178] sm:$0xff] }
 0x5eb   : > { %v6295_v32 = vmax.f32 %v6285_v18, 0.0  ;;  %v6024_v28 = vadd.f32 %v6008_v45, %v5900_v26  ;;  %v5886_v63 = vpop.f32.mrf.mxu1  ;;  %v12268_v3 = vld [vmem:[%s15471_s5 + $0x128] sm:$0xff]  ;;  %6552 = vmatpush.bf16.msrb.mxu2 %v12232_v48  ;;  %v6339_v18 = vld [vmem:[#allocation2 + $0x16] sm:$0x7f]  ;;  %v12247_v25 = vld [vmem:[%s15471_s5 + $0x80] sm:$0xff] }
 0x5ec   : > { %v6318_v6 = vrot.slane %v6317_v41, 2  ;;  %v6326_v51 = vrot.slane %v6325_v21, 2  ;;  %v6334_v60 = vrot.slane %v6333_v33, 2  ;;  %v5901_v23 = vadd.f32 %v5886_v63, %v5777_v53  ;;  %v6340_v37 = vld [vmem:[#allocation2 + $0x21] sm:$0x7f]  ;;  %v12277_v63 = vld [vmem:[%s15471_s5 + $0x170] sm:$0xff] }
 0x5ed   : > { %6305 = vst [vmem:[#allocation2 + $0x28] sm:$0xff] %v6295_v32  ;;  %v6148_v49 = vadd.f32 %v6132_v42, %v6024_v28  ;;  %v5655_v58 = vadd.f32 %v14650_v17, %v5531_v1  ;;  %v6261_v32 = vpop.f32.mrf.mxu0  ;;  %v12266_v42 = vld [vmem:[%s15471_s5 + $0x118] sm:$0xff]  ;;  %v12264_v14 = vld [vmem:[%s15471_s5 + $0x108] sm:$0xff] }
 0x5ee   : > { %v6319_v36 = vmax.f32 %v6317_v41, %v6318_v6  ;;  %v6327_v13 = vmax.f32 %v6325_v21, %v6326_v51  ;;  %v6335_v57 = vmax.f32 %v6333_v33, %v6334_v60  ;;  %6797 = vmatpush.bf16.msra.mxu1 %v12269_v44  ;;  %v12257_v21 = vld [vmem:[%s15471_s5 + $0xd0] sm:$0xff]  ;;  %v12248_v33 = vld [vmem:[%s15471_s5 + $0x88] sm:$0xff]  ;;  %v12255_v44 = vld [vmem:[%s15471_s5 + $0xc0] sm:$0xff] }
 0x5ef   : > { %v6272_v27 = vadd.f32 %v6256_v46, %v6148_v49  ;;  %v6341_v46 = vmax.f32 %v6339_v18, %v6340_v37  ;;  %6553 = vmatpush.bf16.msrb.mxu2 %v12231_v19  ;;  %v5779_v55 = vadd.f32 %v14640_v22, %v5655_v58  ;;  %6717 = vmatpush.bf16.msrb.mxu0 %v12257_v21  ;;  %v12263_v19 = vld [vmem:[%s15471_s5 + $0x100] sm:$0xff] }
 0x5f0   : > { %v6320_v4 = vrot.slane %v6319_v36, 1  ;;  %v6328_v20 = vrot.slane %v6327_v13, 1  ;;  %v6336_v0 = vrot.slane %v6335_v57, 1  ;;  %v6134_v7 = vpop.f32.mrf.mxu3  ;;  %6634 = vmatpush.bf16.msrb.mxu3 %v12248_v33  ;;  %v12283_v18 = vld [vmem:[%s15471_s5 + $0x1a0] sm:$0xff] }
 0x5f1   : > { %v6286_v34 = vadd.f32 %v14658_v56, %v6272_v27 }
 0x5f2   : > { %v6010_v15 = vpop.f32.mrf.mxu2  ;;  %v6321_v54 = vmax.f32 %v6319_v36, %v6320_v4  ;;  %v6329_v59 = vmax.f32 %v6327_v13, %v6328_v20  ;;  %v6337_v12 = vmax.f32 %v6335_v57, %v6336_v0  ;;  %6798 = vmatpush.bf16.msra.mxu1 %v12268_v3  ;;  %v12286_v57 = vld [vmem:[%s15471_s5 + $0x1b8] sm:$0xff]  ;;  %v12265_v4 = vld [vmem:[%s15471_s5 + $0x110] sm:$0xff]  ;;  %v12276_v20 = vld [vmem:[%s15471_s5 + $0x168] sm:$0xff] }
 0x5f3   : > { %v6296_v52 = vmax.f32 %v6286_v34, 0.0  ;;  %v6025_v10 = vadd.f32 %v6010_v15, %v5901_v23  ;;  %v5889_v29 = vpop.f32.mrf.mxu1  ;;  %6880 = vmatpush.bf16.msra.mxu2 %v12278_v11  ;;  %6718 = vmatpush.bf16.msrb.mxu0 %v12256_v16 }
 0x5f4   : > { %6322 = vst [vmem:[#allocation4 + $0x6] sm:$0x1] %v6321_v54  ;;  %v5902_v5 = vadd.f32 %v5889_v29, %v5778_v47  ;;  %6635 = vmatpush.bf16.msrb.mxu3 %v12247_v25  ;;  %v12275_v29 = vld [vmem:[%s15471_s5 + $0x160] sm:$0xff] }
 0x5f5   : > { %6306 = vst [vmem:[#allocation2 + $0x30] sm:$0xff] %v6296_v52  ;;  %v6149_v62 = vadd.f32 %v6134_v7, %v6025_v10  ;;  %v12294_v7 = vld [vmem:[%s15471_s5 + $0x1f8] sm:$0xff] }
 0x5f6   : > { %6330 = vst [vmem:[#allocation4 + $0x7] sm:$0x1] %v6329_v59  ;;  %6799 = vmatpush.bf16.msra.mxu1 %v12267_v39 }
 0x5f7   : > { %v6273_v30 = vadd.f32 %v6258_v50, %v6149_v62  ;;  %6338 = vst [vmem:[#allocation4 + $0x8] sm:$0x1] %v6337_v12  ;;  %6881 = vmatpush.bf16.msra.mxu2 %v12277_v63  ;;  %v12285_v12 = vld [vmem:[%s15471_s5 + $0x1b0] sm:$0xff]  ;;  %v6263_v62 = vpop.f32.mrf.mxu0  ;;  %6719 = vmatpush.bf16.msrb.mxu0 %v12255_v44 }
 0x5f8   : > { %v6137_v41 = vpop.f32.mrf.mxu3  ;;  %6964 = vmatpush.bf16.msra.mxu3 %v12286_v57  ;;  %v12289_v57 = vld [vmem:[%s15471_s5 + $0x1d0] sm:$0xff] }
 0x5f9   : > { %v6287_v31 = vadd.f32 %v14658_v56, %v6273_v30 }
 0x5fa   : > { %v6013_v26 = vpop.f32.mrf.mxu2  ;;  %6800 = vmatpush.bf16.msra.mxu1 %v12266_v42 }
 0x5fb   : > { %v6297_v2 = vmax.f32 %v6287_v31, 0.0  ;;  %v6026_v45 = vadd.f32 %v6013_v26, %v5902_v5  ;;  %v5891_v6 = vpop.f32.mrf.mxu1  ;;  %6882 = vmatpush.bf16.msra.mxu2 %v12276_v20  ;;  %7048 = vmatpush.bf16.msra.mxu0 %v12294_v7  ;;  %v12274_v31 = vld [vmem:[%s15471_s5 + $0x158] sm:$0xff]  ;;  %v12273_v26 = vld [vmem:[%s15471_s5 + $0x150] sm:$0xff] }
 0x5fc   : > { %v6342_v9 = vld [vmem:[#allocation2 + $0x2c] sm:$0x7f]  ;;  %v5903_v53 = vadd.f32 %v5891_v6, %v5779_v55  ;;  %6965 = vmatpush.bf16.msra.mxu3 %v12285_v12  ;;  %v12302_v55 = vld [vmem:[%s15471_s5 + $0x238] sm:$0xff] }
 0x5fd   : > { %v6343_v17 = vmax.f32 %v6341_v46, %v6342_v9  ;;  %6307 = vst [vmem:[#allocation2 + $0x38] sm:$0xff] %v6297_v2  ;;  %v6150_v28 = vadd.f32 %v6137_v41, %v6026_v45  ;;  %v12291_v2 = vld [vmem:[%s15471_s5 + $0x1e0] sm:$0xff]  ;;  %v12272_v45 = vld [vmem:[%s15471_s5 + $0x148] sm:$0xff]  ;;  %v12282_v41 = vld [vmem:[%s15471_s5 + $0x198] sm:$0xff] }
 0x5fe   : > { %6801 = vmatpush.bf16.msra.mxu1 %v12265_v4  ;;  %v6368_v21 = vld [vmem:[#allocation2 + $0x2c] sm:$0x7f]  ;;  %v6416_v42 = vld [vmem:[#allocation4 + $0x1] sm:$0xff] }
 0x5ff   : > { %v6274_v51 = vadd.f32 %v6261_v32, %v6150_v28  ;;  %v6344_v60 = vsel %vm2726_vm0, %v6343_v17, -inf  ;;  %v6352_v49 = vsel %vm2735_vm1, %v6343_v17, -inf  ;;  %v6360_v8 = vsel %vm2744_vm2, %v6343_v17, -inf  ;;  %6883 = vmatpush.bf16.msra.mxu2 %v12275_v29  ;;  %7049 = vmatpush.bf16.msra.mxu0 %v12293_v24  ;;  %v12290_v32 = vld [vmem:[%s15471_s5 + $0x1d8] sm:$0xff]  ;;  %v12281_v17 = vld [vmem:[%s15471_s5 + $0x190] sm:$0xff]  ;;  %v6397_v63 = vld [vmem:[#allocation4] sm:$0xff] }
 0x600   : > { %v6345_v36 = vrot.slane %v6344_v60, 4  ;;  %v6353_v22 = vrot.slane %v6352_v49, 4  ;;  %v6361_v13 = vrot.slane %v6360_v8, 4  ;;  %v6139_v54 = vpop.f32.mrf.mxu3  ;;  %6966 = vmatpush.bf16.msra.mxu3 %v12284_v35  ;;  %v12301_v4 = vld [vmem:[%s15471_s5 + $0x230] sm:$0xff]  ;;  %v12299_v29 = vld [vmem:[%s15471_s5 + $0x220] sm:$0xff] }
 0x601   : > { %v6288_v27 = vadd.f32 %v14658_v56, %v6274_v51 }
 0x602   : > { %v6015_v0 = vpop.f32.mrf.mxu2  ;;  %v6346_v34 = vmax.f32 %v6344_v60, %v6345_v36  ;;  %v6354_v23 = vmax.f32 %v6352_v49, %v6353_v22  ;;  %v6362_v43 = vmax.f32 %v6360_v8, %v6361_v13  ;;  %6802 = vmatpush.bf16.msra.mxu1 %v12264_v14  ;;  %v12271_v60 = vld [vmem:[%s15471_s5 + $0x140] sm:$0xff] }
 0x603   : > { %v6298_v15 = vmax.f32 %v6288_v27, 0.0  ;;  %v6027_v38 = vadd.f32 %v6015_v0, %v5903_v53  ;;  %6884 = vmatpush.bf16.msra.mxu2 %v12274_v31  ;;  %v12280_v27 = vld [vmem:[%s15471_s5 + $0x188] sm:$0xff] }
 0x604   : > { %v6347_v59 = vrot.slane %v6346_v34, 2  ;;  %v6355_v52 = vrot.slane %v6354_v23, 2  ;;  %v6363_v10 = vrot.slane %v6362_v43, 2  ;;  %v6369_v46 = vld [vmem:[#allocation2 + $0x37] sm:$0x7f]  ;;  %6967 = vmatpush.bf16.msra.mxu3 %v12283_v18  ;;  %v12295_v18 = vld [vmem:[%s15471_s5 + $0x200] sm:$0xff] }
 0x605   : > { %6308 = vst [vmem:[#allocation2 + $0x40] sm:$0xff] %v6298_v15  ;;  %v6151_v50 = vadd.f32 %v6139_v54, %v6027_v38  ;;  %v6370_v33 = vmax.f32 %v6368_v21, %v6369_v46  ;;  %v12288_v15 = vld [vmem:[%s15471_s5 + $0x1c8] sm:$0xff]  ;;  %v12279_v38 = vld [vmem:[%s15471_s5 + $0x180] sm:$0xff]  ;;  %v7065_v21 = vld [vmem:[#allocation4 + $0x14] sm:$0x7f] }
 0x606   : > { %v6348_v40 = vmax.f32 %v6346_v34, %v6347_v59  ;;  %v6356_v61 = vmax.f32 %v6354_v23, %v6355_v52  ;;  %v6364_v48 = vmax.f32 %v6362_v43, %v6363_v10  ;;  %6803 = vmatpush.bf16.msra.mxu1 %v12263_v19  ;;  %v12300_v54 = vld [vmem:[%s15471_s5 + $0x228] sm:$0xff] }
 0x607   : > { %v6275_v1 = vadd.f32 %v6263_v62, %v6151_v50  ;;  %6885 = vmatpush.bf16.msra.mxu2 %v12273_v26  ;;  %v12287_v50 = vld [vmem:[%s15471_s5 + $0x1c0] sm:$0xff] }
 0x608   : > { %v6349_v3 = vrot.slane %v6348_v40, 1  ;;  %v6357_v30 = vrot.slane %v6356_v61, 1  ;;  %v6365_v47 = vrot.slane %v6364_v48, 1  ;;  %6968 = vmatpush.bf16.msra.mxu3 %v12282_v41 }
 0x609   : > { %v6289_v37 = vadd.f32 %v14658_v56, %v6275_v1  ;;  %v12292_v56 = vld [vmem:[%s15471_s5 + $0x1e8] sm:$0xff]  ;;  %v12297_v1 = vld [vmem:[%s15471_s5 + $0x210] sm:$0xff] }
 0x60a   : > { %v6350_v5 = vmax.f32 %v6348_v40, %v6349_v3  ;;  %v6358_v39 = vmax.f32 %v6356_v61, %v6357_v30  ;;  %v6366_v58 = vmax.f32 %v6364_v48, %v6365_v47  ;;  %7050 = vmatpush.bf16.msra.mxu0 %v12292_v56  ;;  %v12298_v48 = vld [vmem:[%s15471_s5 + $0x218] sm:$0xff]  ;;  %v6560_v3 = vld [vmem:[#allocation4 + $0x2] sm:$0xff] }
 0x60b   : > { %v6299_v11 = vmax.f32 %v6289_v37, 0.0  ;;  %6886 = vmatpush.bf16.msra.mxu2 %v12272_v45  ;;  %v12296_v56 = vld [vmem:[%s15471_s5 + $0x208] sm:$0xff] }
 0x60c   : > { %6351 = vst [vmem:[#allocation4 + $0xb] sm:$0x1] %v6350_v5  ;;  %6969 = vmatpush.bf16.msra.mxu3 %v12281_v17  ;;  %v12318_v17 = vld [vmem:[%s15473_s7 + $0x78] sm:$0xff] }
 0x60d   : > { %6309 = vst [vmem:[#allocation2 + $0x48] sm:$0x1f] %v6299_v11 }
 0x60e   : > { %6359 = vst [vmem:[#allocation4 + $0xc] sm:$0x1] %v6358_v39  ;;  %7051 = vmatpush.bf16.msra.mxu0 %v12291_v2  ;;  %v6981_v2 = vld [vmem:[#allocation4 + $0x13] sm:$0x7f] }
 0x60f   : > { %6367 = vst [vmem:[#allocation4 + $0xd] sm:$0x1] %v6366_v58  ;;  %6887 = vmatpush.bf16.msra.mxu2 %v12271_v60 }
 0x610   : > { %6970 = vmatpush.bf16.msra.mxu3 %v12280_v27 }
 0x612   : > { %7052 = vmatpush.bf16.msra.mxu0 %v12290_v32 }
 0x614   : > { %v6371_v9 = vld [vmem:[#allocation2 + $0x42] sm:$0x7f]  ;;  %6971 = vmatpush.bf16.msra.mxu3 %v12279_v38 }
 0x615   : > { %v6372_v28 = vmax.f32 %v6370_v33, %v6371_v9  ;;  %v6644_v24 = vld [vmem:[#allocation4 + $0x5] sm:$0xff] }
 0x616   : > { %v6417_v6 = vld [vmem:[#allocation4 + $0x9] sm:$0x7f]  ;;  %7053 = vmatpush.bf16.msra.mxu0 %v12289_v57  ;;  %v12333_v57 = vld [vmem:[%s15473_s7 + $0xf0] sm:$0xff] }
 0x617   : > { %v6398_v51 = vld [vmem:[#allocation4 + $0x8] sm:$0x7f]  ;;  %v6418_v49 = vpack.c.bf16 %v6417_v6, %v6416_v42  ;;  %v6373_v16 = vsel %vm2726_vm0, %v6372_v28, -inf  ;;  %v6381_v25 = vsel %vm2735_vm1, %v6372_v28, -inf  ;;  %v6389_v13 = vsel %vm2744_vm2, %v6372_v28, -inf  ;;  %v12317_v28 = vld [vmem:[%s15473_s7 + $0x70] sm:$0xff] }
 0x618   : > { %v6399_v8 = vpack.c.bf16 %v6398_v51, %v6397_v63  ;;  %v6374_v36 = vrot.slane %v6373_v16, 4  ;;  %v6382_v22 = vrot.slane %v6381_v25, 4  ;;  %v6390_v53 = vrot.slane %v6389_v13, 4  ;;  %v6728_v35 = vld [vmem:[#allocation4 + $0x6] sm:$0xff]  ;;  %v12314_v6 = vld [vmem:[%s15473_s7 + $0x58] sm:$0xff]  ;;  %v12309_v51 = vld [vmem:[%s15473_s7 + $0x30] sm:$0xff] }
 0x619   : > { %6492 = vmatmul.bf16.vlgmr.msrb.gmra.mxu1 %v6418_v49  ;;  %v6812_v37 = vld [vmem:[#allocation4 + $0x7] sm:$0xff]  ;;  %v12313_v49 = vld [vmem:[%s15473_s7 + $0x50] sm:$0xff] }
 0x61a   : > { %6554 = vmatmul.bf16.vlgmr.msrb.gmra.mxu2 %v6399_v8  ;;  %7132 = vmatpush.bf16.msrb.mxu1 %v12302_v55  ;;  %v6375_v20 = vmax.f32 %v6373_v16, %v6374_v36  ;;  %v6383_v0 = vmax.f32 %v6381_v25, %v6382_v22  ;;  %v6391_v34 = vmax.f32 %v6389_v13, %v6390_v53  ;;  %v12316_v42 = vld [vmem:[%s15473_s7 + $0x68] sm:$0xff]  ;;  %v12315_v63 = vld [vmem:[%s15473_s7 + $0x60] sm:$0xff]  ;;  %v12310_v55 = vld [vmem:[%s15473_s7 + $0x38] sm:$0xff] }
 0x61b   : > { %7054 = vmatpush.bf16.msra.mxu0 %v12288_v15  ;;  %7251 = vmatpush.bf16.msrb.mxu2 %v12318_v17  ;;  %v12308_v8 = vld [vmem:[%s15473_s7 + $0x28] sm:$0xff]  ;;  %v12326_v16 = vld [vmem:[%s15473_s7 + $0xb8] sm:$0xff]  ;;  %v12307_v22 = vld [vmem:[%s15473_s7 + $0x20] sm:$0xff] }
 0x61c   : > { %v6376_v23 = vrot.slane %v6375_v20, 2  ;;  %v6384_v43 = vrot.slane %v6383_v0, 2  ;;  %v6392_v44 = vrot.slane %v6391_v34, 2  ;;  %v12334_v25 = vld [vmem:[%s15473_s7 + $0xf8] sm:$0xff]  ;;  %v12312_v36 = vld [vmem:[%s15473_s7 + $0x48] sm:$0xff]  ;;  %v12325_v13 = vld [vmem:[%s15473_s7 + $0xb0] sm:$0xff] }
 0x61d   : > { %v12342_v15 = vld [vmem:[%s15473_s7 + $0x138] sm:$0xff] }
 0x61e   : > { %7133 = vmatpush.bf16.msrb.mxu1 %v12301_v4  ;;  %v6377_v59 = vmax.f32 %v6375_v20, %v6376_v23  ;;  %v6385_v52 = vmax.f32 %v6383_v0, %v6384_v43  ;;  %v6393_v10 = vmax.f32 %v6391_v34, %v6392_v44  ;;  %v12311_v20 = vld [vmem:[%s15473_s7 + $0x40] sm:$0xff]  ;;  %v12306_v0 = vld [vmem:[%s15473_s7 + $0x18] sm:$0xff]  ;;  %v12324_v34 = vld [vmem:[%s15473_s7 + $0xa8] sm:$0xff] }
 0x61f   : > { %7055 = vmatpush.bf16.msra.mxu0 %v12287_v50  ;;  %7252 = vmatpush.bf16.msrb.mxu2 %v12317_v28  ;;  %v12332_v23 = vld [vmem:[%s15473_s7 + $0xe8] sm:$0xff]  ;;  %v12366_v28 = vld [vmem:[%s15473_s7 + $0x1f8] sm:$0xff] }
 0x620   : > { %v6378_v7 = vrot.slane %v6377_v59, 1  ;;  %v6386_v12 = vrot.slane %v6385_v52, 1  ;;  %v6394_v14 = vrot.slane %v6393_v10, 1  ;;  %v12304_v50 = vld [vmem:[%s15473_s7 + $0x8] sm:$0xff] }
 0x622   : > { %7134 = vmatpush.bf16.msrb.mxu1 %v12300_v54  ;;  %v6379_v62 = vmax.f32 %v6377_v59, %v6378_v7  ;;  %v6387_v40 = vmax.f32 %v6385_v52, %v6386_v12  ;;  %v6395_v61 = vmax.f32 %v6393_v10, %v6394_v14  ;;  %v12305_v54 = vld [vmem:[%s15473_s7 + $0x10] sm:$0xff]  ;;  %v12323_v59 = vld [vmem:[%s15473_s7 + $0xa0] sm:$0xff]  ;;  %v12322_v14 = vld [vmem:[%s15473_s7 + $0x98] sm:$0xff] }
 0x623   : > { %7253 = vmatpush.bf16.msrb.mxu2 %v12316_v42  ;;  %v12331_v52 = vld [vmem:[%s15473_s7 + $0xe0] sm:$0xff]  ;;  %v12341_v10 = vld [vmem:[%s15473_s7 + $0x130] sm:$0xff] }
 0x624   : > { %6380 = vst [vmem:[#allocation4 + $0x10] sm:$0x1] %v6379_v62 }
 0x625   : > { %6388 = vst [vmem:[#allocation4 + $0x11] sm:$0x1] %v6387_v40  ;;  %v12340_v40 = vld [vmem:[%s15473_s7 + $0x128] sm:$0xff] }
 0x626   : > { %7135 = vmatpush.bf16.msrb.mxu1 %v12299_v29  ;;  %6396 = vst [vmem:[#allocation4 + $0x12] sm:$0x1] %v6395_v61  ;;  %v12330_v29 = vld [vmem:[%s15473_s7 + $0xd8] sm:$0xff] }
 0x627   : > { %7254 = vmatpush.bf16.msrb.mxu2 %v12315_v63 }
 0x62a   : > { %7136 = vmatpush.bf16.msrb.mxu1 %v12298_v48 }
 0x62b   : > { %v6561_v30 = vld [vmem:[#allocation4 + $0xa] sm:$0x7f]  ;;  %7255 = vmatpush.bf16.msrb.mxu2 %v12314_v6 }
 0x62c   : > { %v6562_v47 = vpack.c.bf16 %v6561_v30, %v6560_v3  ;;  %v6896_v26 = vld [vmem:[#allocation4 + $0xa] sm:$0xff]  ;;  %v12303_v30 = vld [vmem:[%s15473_s7] sm:$0xff] }
 0x62d   : > { %v6645_v19 = vld [vmem:[#allocation4 + $0xd] sm:$0x7f] }
 0x62e   : > { %v6729_v31 = vld [vmem:[#allocation4 + $0xe] sm:$0x7f]  ;;  %6636 = vmatmul.bf16.vlgmr.msrb.gmra.mxu3 %v6562_v47  ;;  %v6646_v39 = vpack.c.bf16 %v6645_v19, %v6644_v24  ;;  %7137 = vmatpush.bf16.msrb.mxu1 %v12297_v1 }
 0x62f   : > { %v6813_v5 = vld [vmem:[#allocation4 + $0xf] sm:$0x7f]  ;;  %v6730_v11 = vpack.c.bf16 %v6729_v31, %v6728_v35  ;;  %7313 = vmatpush.bf16.msrb.mxu3 %v12310_v55  ;;  %7256 = vmatpush.bf16.msrb.mxu2 %v12313_v49  ;;  %v12339_v35 = vld [vmem:[%s15473_s7 + $0x120] sm:$0xff] }
 0x630   : > { %v6814_v58 = vpack.c.bf16 %v6813_v5, %v6812_v37  ;;  %6720 = vmatmul.bf16.vlgmr.msrb.gmra.mxu0 %v6646_v39  ;;  %v6897_v46 = vld [vmem:[#allocation4 + $0x12] sm:$0x7f]  ;;  %v12320_v39 = vld [vmem:[%s15473_s7 + $0x88] sm:$0xff]  ;;  %v12483_v55 = vld [vmem:[%s15472_s6] ss:$0 sm:$0xff] }
 0x631   : > { %6804 = vmatmul.bf16.vlgmr.msra.gmra.mxu1 %v6730_v11  ;;  %v6980_v45 = vld [vmem:[#allocation4 + $0xb] sm:$0xff]  ;;  %v6898_v33 = vpack.c.bf16 %v6897_v46, %v6896_v26  ;;  %7395 = vmatpush.bf16.msrb.mxu0 %v12326_v16  ;;  %v12350_v37 = vld [vmem:[%s15473_s7 + $0x178] sm:$0xff]  ;;  %v12319_v46 = vld [vmem:[%s15473_s7 + $0x80] sm:$0xff] }
 0x632   : > { %6888 = vmatmul.bf16.vlgmr.msra.gmra.mxu2 %v6814_v58  ;;  %7138 = vmatpush.bf16.msrb.mxu1 %v12296_v56  ;;  %v7064_v41 = vld [vmem:[#allocation4 + $0xc] sm:$0xff]  ;;  %v6982_v9 = vpack.c.bf16 %v6981_v2, %v6980_v45  ;;  %v12338_v58 = vld [vmem:[%s15473_s7 + $0x118] sm:$0xff] }
 0x633   : > { %v7066_v32 = vpack.c.bf16 %v7065_v21, %v7064_v41  ;;  %7314 = vmatpush.bf16.msrb.mxu3 %v12309_v51  ;;  %7257 = vmatpush.bf16.msrb.mxu2 %v12312_v36  ;;  %v12321_v47 = vld [vmem:[%s15473_s7 + $0x90] sm:$0xff]  ;;  %v12328_v11 = vld [vmem:[%s15473_s7 + $0xc8] sm:$0xff]  ;;  %v12327_v41 = vld [vmem:[%s15473_s7 + $0xc0] sm:$0xff] }
 0x634   : > { %v12329_v24 = vld [vmem:[%s15473_s7 + $0xd0] sm:$0xff]  ;;  %v12336_v6 = vld [vmem:[%s15473_s7 + $0x108] sm:$0xff] }
 0x635   : > { %7396 = vmatpush.bf16.msrb.mxu0 %v12325_v13  ;;  %v12349_v56 = vld [vmem:[%s15473_s7 + $0x170] sm:$0xff]  ;;  %v12335_v13 = vld [vmem:[%s15473_s7 + $0x100] sm:$0xff] }
 0x636   : > { %7139 = vmatpush.bf16.msrb.mxu1 %v12295_v18  ;;  %v12337_v21 = vld [vmem:[%s15473_s7 + $0x110] sm:$0xff] }
 0x637   : > { %7315 = vmatpush.bf16.msrb.mxu3 %v12308_v8  ;;  %7258 = vmatpush.bf16.msrb.mxu2 %v12311_v20  ;;  %v12357_v49 = vld [vmem:[%s15473_s7 + $0x1b0] sm:$0xff] }
 0x638   : > { %v12365_v16 = vld [vmem:[%s15473_s7 + $0x1f0] sm:$0xff] }
 0x639   : > { %7397 = vmatpush.bf16.msrb.mxu0 %v12324_v34 }
 0x63a   : > { %7479 = vmatpush.bf16.msra.mxu1 %v12334_v25 }
 0x63b   : > { %7316 = vmatpush.bf16.msrb.mxu3 %v12307_v22  ;;  %7563 = vmatpush.bf16.msra.mxu2 %v12342_v15  ;;  %v12345_v15 = vld [vmem:[%s15473_s7 + $0x150] sm:$0xff] }
 0x63d   : > { %7398 = vmatpush.bf16.msrb.mxu0 %v12323_v59 }
 0x63e   : > { %6972 = vmatmul.bf16.vlgmr.msra.gmra.mxu3 %v6898_v33  ;;  %7480 = vmatpush.bf16.msra.mxu1 %v12333_v57 }
 0x63f   : > { %7317 = vmatpush.bf16.msrb.mxu3 %v12306_v0  ;;  %7564 = vmatpush.bf16.msra.mxu2 %v12341_v10  ;;  %v12364_v0 = vld [vmem:[%s15473_s7 + $0x1e8] sm:$0xff]  ;;  %v12354_v10 = vld [vmem:[%s15473_s7 + $0x198] sm:$0xff] }
 0x640   : > { %7056 = vmatmul.bf16.vlgmr.msra.gmra.mxu0 %v6982_v9  ;;  %v12348_v9 = vld [vmem:[%s15473_s7 + $0x168] sm:$0xff] }
 0x641   : > { %7140 = vmatmul.bf16.vlgmr.msrb.gmra.mxu1 %v7066_v32  ;;  %7399 = vmatpush.bf16.msrb.mxu0 %v12322_v14  ;;  %v12358_v32 = vld [vmem:[%s15473_s7 + $0x1b8] sm:$0xff]  ;;  %v12343_v14 = vld [vmem:[%s15473_s7 + $0x140] sm:$0xff] }
 0x642   : > { %7481 = vmatpush.bf16.msra.mxu1 %v12332_v23 }
 0x643   : > { %7318 = vmatpush.bf16.msrb.mxu3 %v12305_v54  ;;  %7565 = vmatpush.bf16.msra.mxu2 %v12340_v40  ;;  %v12352_v40 = vld [vmem:[%s15473_s7 + $0x188] sm:$0xff] }
 0x645   : > { %7400 = vmatpush.bf16.msrb.mxu0 %v12321_v47  ;;  %v12360_v47 = vld [vmem:[%s15473_s7 + $0x1c8] sm:$0xff] }
 0x646   : > { %7482 = vmatpush.bf16.msra.mxu1 %v12331_v52  ;;  %v12344_v52 = vld [vmem:[%s15473_s7 + $0x148] sm:$0xff] }
 0x647   : > { %7319 = vmatpush.bf16.msrb.mxu3 %v12304_v50  ;;  %7566 = vmatpush.bf16.msra.mxu2 %v12339_v35  ;;  %v12362_v50 = vld [vmem:[%s15473_s7 + $0x1d8] sm:$0xff] }
 0x649   : > { %7401 = vmatpush.bf16.msrb.mxu0 %v12320_v39 }
 0x64a   : > { %7483 = vmatpush.bf16.msra.mxu1 %v12330_v29  ;;  %v12353_v29 = vld [vmem:[%s15473_s7 + $0x190] sm:$0xff] }
 0x64b   : > { %7320 = vmatpush.bf16.msrb.mxu3 %v12303_v30  ;;  %7567 = vmatpush.bf16.msra.mxu2 %v12338_v58 }
 0x64d   : > { %7402 = vmatpush.bf16.msrb.mxu0 %v12319_v46 }
 0x64e   : > { %7484 = vmatpush.bf16.msra.mxu1 %v12329_v24 }
 0x64f   : > { %7647 = vmatpush.bf16.msra.mxu3 %v12350_v37  ;;  %7568 = vmatpush.bf16.msra.mxu2 %v12337_v21 }
 0x651   : > { %7731 = vmatpush.bf16.msra.mxu0 %v12358_v32 }
 0x652   : > { %7485 = vmatpush.bf16.msra.mxu1 %v12328_v11  ;;  %v12372_v11 = vld [vmem:[%s15473_s7 + $0x228] sm:$0xff] }
 0x653   : > { %7648 = vmatpush.bf16.msra.mxu3 %v12349_v56  ;;  %7569 = vmatpush.bf16.msra.mxu2 %v12336_v6 }
 0x655   : > { %7732 = vmatpush.bf16.msra.mxu0 %v12357_v49 }
 0x656   : > { %7486 = vmatpush.bf16.msra.mxu1 %v12327_v41 }
 0x657   : > { %7649 = vmatpush.bf16.msra.mxu3 %v12348_v9  ;;  %7570 = vmatpush.bf16.msra.mxu2 %v12335_v13  ;;  %v12389_v13 = vld [vmem:[%s15475_s9 + $0x70] sm:$0xff] }
 0x65a   : > { %7815 = vmatpush.bf16.msrb.mxu1 %v12366_v28  ;;  %v12369_v28 = vld [vmem:[%s15473_s7 + $0x210] sm:$0xff] }
 0x65e   : > { %7816 = vmatpush.bf16.msrb.mxu1 %v12365_v16 }
 0x662   : > { %7817 = vmatpush.bf16.msrb.mxu1 %v12364_v0  ;;  %v12385_v0 = vld [vmem:[%s15475_s9 + $0x50] sm:$0xff] }
 0x696   : > { %v6493_v60 = vpop.f32.mrf.mxu1 }
 0x69d   : > { %v6555_v53 = vpop.f32.mrf.mxu2 }
 0x69e   : > { %v6495_v27 = vpop.f32.mrf.mxu1  ;;  %v6556_v44 = vadd.f32 %v6555_v53, %v6493_v60  ;;  %v12347_v60 = vld [vmem:[%s15473_s7 + $0x160] sm:$0xff]  ;;  %v12346_v53 = vld [vmem:[%s15473_s7 + $0x158] sm:$0xff] }
 0x69f   : > { %7650 = vmatpush.bf16.msra.mxu3 %v12347_v60 }
 0x6a3   : > { %7651 = vmatpush.bf16.msra.mxu3 %v12346_v53  ;;  %v12382_v53 = vld [vmem:[%s15475_s9 + $0x38] sm:$0xff] }
 0x6a5   : > { %v6557_v12 = vpop.f32.mrf.mxu2 }
 0x6a6   : > { %v6558_v3 = vadd.f32 %v6557_v12, %v6495_v27 }
 0x6a7   : > { %7652 = vmatpush.bf16.msra.mxu3 %v12345_v15  ;;  %v12384_v15 = vld [vmem:[%s15475_s9 + $0x48] sm:$0xff] }
 0x6ab   : > { %7653 = vmatpush.bf16.msra.mxu3 %v12344_v52  ;;  %v12378_v52 = vld [vmem:[%s15475_s9 + $0x18] sm:$0xff] }
 0x6ad   : > { %v6721_v4 = vpop.f32.mrf.mxu0 }
 0x6ae   : > { %v6805_v43 = vpop.f32.mrf.mxu1 }
 0x6af   : > { %7654 = vmatpush.bf16.msra.mxu3 %v12343_v14 }
 0x6b1   : > { %v6637_v38 = vpop.f32.mrf.mxu3 }
 0x6b2   : > { %v6642_v7 = vadd.f32 %v6637_v38, %v6556_v44  ;;  %v12355_v38 = vld [vmem:[%s15473_s7 + $0x1a0] sm:$0xff] }
 0x6b3   : > { %v12363_v44 = vld [vmem:[%s15473_s7 + $0x1e0] sm:$0xff] }
 0x6b4   : > { %v6726_v61 = vadd.f32 %v6721_v4, %v6642_v7  ;;  %v12356_v4 = vld [vmem:[%s15473_s7 + $0x1a8] sm:$0xff]  ;;  %7818 = vmatpush.bf16.msrb.mxu1 %v12363_v44  ;;  %v12397_v44 = vld [vmem:[%s15475_s9 + $0xb0] sm:$0xff] }
 0x6b5   : > { %v6723_v62 = vpop.f32.mrf.mxu0  ;;  %v6889_v5 = vpop.f32.mrf.mxu2  ;;  %7733 = vmatpush.bf16.msra.mxu0 %v12356_v4  ;;  %v12386_v4 = vld [vmem:[%s15475_s9 + $0x58] sm:$0xff] }
 0x6b6   : > { %v6807_v48 = vpop.f32.mrf.mxu1  ;;  %v6810_v19 = vadd.f32 %v6805_v43, %v6726_v61 }
 0x6b8   : > { %v6894_v18 = vadd.f32 %v6889_v5, %v6810_v19  ;;  %7819 = vmatpush.bf16.msrb.mxu1 %v12362_v50  ;;  %v12351_v19 = vld [vmem:[%s15473_s7 + $0x180] sm:$0xff]  ;;  %v12414_v50 = vld [vmem:[%s15475_s9 + $0x138] sm:$0xff] }
 0x6b9   : > { %v6639_v1 = vpop.f32.mrf.mxu3  ;;  %7734 = vmatpush.bf16.msra.mxu0 %v12355_v38  ;;  %v12359_v5 = vld [vmem:[%s15473_s7 + $0x1c0] sm:$0xff] }
 0x6ba   : > { %v6643_v31 = vadd.f32 %v6639_v1, %v6558_v3  ;;  %v12374_v1 = vld [vmem:[%s15473_s7 + $0x238] sm:$0xff]  ;;  %v12379_v38 = vld [vmem:[%s15475_s9 + $0x20] sm:$0xff] }
 0x6bc   : > { %v6727_v26 = vadd.f32 %v6723_v62, %v6643_v31  ;;  %v12361_v62 = vld [vmem:[%s15473_s7 + $0x1d0] sm:$0xff] }
 0x6bd   : > { %v7057_v2 = vpop.f32.mrf.mxu0  ;;  %v6891_v8 = vpop.f32.mrf.mxu2  ;;  %7735 = vmatpush.bf16.msra.mxu0 %v12354_v10  ;;  %7820 = vmatpush.bf16.msrb.mxu1 %v12361_v62  ;;  %v12373_v31 = vld [vmem:[%s15473_s7 + $0x230] sm:$0xff]  ;;  %v12396_v10 = vld [vmem:[%s15475_s9 + $0xa8] sm:$0xff] }
 0x6be   : > { %v7141_v17 = vpop.f32.mrf.mxu1  ;;  %v6811_v42 = vadd.f32 %v6807_v48, %v6727_v26 }
 0x6c0   : > { %v6895_v25 = vadd.f32 %v6891_v8, %v6811_v42  ;;  %v7748_v42 = vld [vmem:[#allocation5 + $0x13] sm:$0x7f]  ;;  %v12367_v8 = vld [vmem:[%s15473_s7 + $0x200] sm:$0xff] }
 0x6c1   : > { %v6973_v45 = vpop.f32.mrf.mxu3  ;;  %7736 = vmatpush.bf16.msra.mxu0 %v12353_v29  ;;  %7821 = vmatpush.bf16.msrb.mxu1 %v12360_v47  ;;  %v12413_v47 = vld [vmem:[%s15475_s9 + $0x130] sm:$0xff] }
 0x6c2   : > { %v6978_v33 = vadd.f32 %v6973_v45, %v6894_v18 }
 0x6c4   : > { %v7062_v63 = vadd.f32 %v7057_v2, %v6978_v33  ;;  %v12371_v2 = vld [vmem:[%s15473_s7 + $0x220] sm:$0xff] }
 0x6c5   : > { %v7059_v20 = vpop.f32.mrf.mxu0  ;;  %7737 = vmatpush.bf16.msra.mxu0 %v12352_v40  ;;  %7822 = vmatpush.bf16.msrb.mxu1 %v12359_v5  ;;  %v12402_v5 = vld [vmem:[%s15475_s9 + $0xd8] sm:$0xff] }
 0x6c6   : > { %v7146_v51 = vadd.f32 %v7141_v17, %v7062_v63  ;;  %v7143_v23 = vpop.f32.mrf.mxu1  ;;  %v12370_v17 = vld [vmem:[%s15473_s7 + $0x218] sm:$0xff] }
 0x6c8   : > { %v7152_v36 = vadd.f32 %v12483_v55, %v7146_v51  ;;  %v12368_v51 = vld [vmem:[%s15473_s7 + $0x208] sm:$0xff] }
 0x6c9   : > { %v6975_v22 = vpop.f32.mrf.mxu3  ;;  %7738 = vmatpush.bf16.msra.mxu0 %v12351_v19  ;;  %v12376_v19 = vld [vmem:[%s15475_s9 + $0x8] sm:$0xff] }
 0x6ca   : > { %v7154_v57 = vmax.f32 %v7152_v36, 0.0  ;;  %v6979_v27 = vadd.f32 %v6975_v22, %v6895_v25  ;;  %v7832_v25 = vld [vmem:[#allocation5 + $0x14] sm:$0x7f] }
 0x6cb   : > { %v12390_v22 = vld [vmem:[%s15475_s9 + $0x78] sm:$0xff] }
 0x6cc   : > { %7156 = vst [vmem:[#allocation2] sm:$0xff] %v7154_v57  ;;  %v7063_v34 = vadd.f32 %v7059_v20, %v6979_v27  ;;  %v12388_v57 = vld [vmem:[%s15475_s9 + $0x68] sm:$0xff]  ;;  %v12387_v27 = vld [vmem:[%s15475_s9 + $0x60] sm:$0xff]  ;;  %v12381_v20 = vld [vmem:[%s15475_s9 + $0x30] sm:$0xff] }
 0x6ce   : > { %v7147_v43 = vadd.f32 %v7143_v23, %v7063_v34  ;;  %v12380_v34 = vld [vmem:[%s15475_s9 + $0x28] sm:$0xff]  ;;  %v12398_v23 = vld [vmem:[%s15475_s9 + $0xb8] sm:$0xff] }
 0x6d0   : > { %v7153_v54 = vadd.f32 %v12483_v55, %v7147_v43  ;;  %v12406_v43 = vld [vmem:[%s15475_s9 + $0xf8] sm:$0xff] }
 0x6d2   : > { %v7155_v59 = vmax.f32 %v7153_v54, 0.0  ;;  %v12405_v54 = vld [vmem:[%s15475_s9 + $0xf0] sm:$0xff] }
 0x6d3   : > { %v7158_v7 = vld [vmem:[#allocation2] sm:$0x7]  ;;  %v7160_v12 = vld [vmem:[#allocation2 + $0x5] sm:$0x7] }
 0x6d4   : > { %7159 = vst [vmem:[#allocation5 + $0x6] sm:$0x7] %v7158_v7 }
 0x6d5   : > { %7161 = vst [vmem:[#allocation5 + $0xb] sm:$0x7] %v7160_v12  ;;  %v12404_v12 = vld [vmem:[%s15475_s9 + $0xe8] sm:$0xff] }
 0x6d6   : > { %7157 = vst [vmem:[#allocation2 + $0x8] sm:$0x7f] %v7155_v59  ;;  %v12383_v59 = vld [vmem:[%s15475_s9 + $0x40] sm:$0xff] }
 0x6db   : > { %v7183_v61 = vld [vmem:[#allocation5 + $0x1] sm:$0xff] }
 0x6dc   : > { %v7164_v48 = vld [vmem:[#allocation5] sm:$0xff]  ;;  %v7184_v3 = vld [vmem:[#allocation5 + $0x9] sm:$0x7f] }
 0x6dd   : > { %v7165_v30 = vld [vmem:[#allocation5 + $0x8] sm:$0x7f]  ;;  %v7185_v35 = vpack.c.bf16 %v7184_v3, %v7183_v61  ;;  %v12395_v3 = vld [vmem:[%s15475_s9 + $0xa0] sm:$0xff] }
 0x6de   : > { %v7162_v24 = vld [vmem:[#allocation2 + $0xa] sm:$0x7]  ;;  %v7166_v37 = vpack.c.bf16 %v7165_v30, %v7164_v48  ;;  %v7327_v39 = vld [vmem:[#allocation5 + $0x2] sm:$0xff] }
 0x6df   : > { %7163 = vst [vmem:[#allocation5 + $0x10] sm:$0x7] %v7162_v24  ;;  %7259 = vmatmul.bf16.vlgmr.msrb.gmra.mxu2 %v7185_v35  ;;  %v7411_v56 = vld [vmem:[#allocation5 + $0x5] sm:$0xff] }
 0x6e0   : > { %7321 = vmatmul.bf16.vlgmr.msrb.gmra.mxu3 %v7166_v37  ;;  %7899 = vmatpush.bf16.msrb.mxu2 %v12374_v1  ;;  %v7495_v21 = vld [vmem:[#allocation5 + $0x6] sm:$0xff]  ;;  %v12377_v1 = vld [vmem:[%s15475_s9 + $0x10] sm:$0xff] }
 0x6e1   : > { %v7579_v33 = vld [vmem:[#allocation5 + $0x7] sm:$0xff]  ;;  %8018 = vmatpush.bf16.msrb.mxu3 %v12390_v22 }
 0x6e2   : > { %v12403_v30 = vld [vmem:[%s15475_s9 + $0xe0] sm:$0xff] }
 0x6e4   : > { %7900 = vmatpush.bf16.msrb.mxu2 %v12373_v31  ;;  %v12394_v31 = vld [vmem:[%s15475_s9 + $0x98] sm:$0xff] }
 0x6e5   : > { %8019 = vmatpush.bf16.msrb.mxu3 %v12389_v13  ;;  %v12438_v13 = vld [vmem:[%s15475_s9 + $0x1f8] sm:$0xff] }
 0x6e6   : > { %v7328_v58 = vld [vmem:[#allocation5 + $0xa] sm:$0x7f]  ;;  %v7664_v55 = vld [vmem:[#allocation5 + $0x12] sm:$0x7f] }
 0x6e7   : > { %v7412_v18 = vld [vmem:[#allocation5 + $0xd] sm:$0x7f]  ;;  %v7329_v26 = vpack.c.bf16 %v7328_v58, %v7327_v39 }
 0x6e8   : > { %v7413_v46 = vpack.c.bf16 %v7412_v18, %v7411_v56  ;;  %7901 = vmatpush.bf16.msrb.mxu2 %v12372_v11  ;;  %v7496_v45 = vld [vmem:[#allocation5 + $0xe] sm:$0x7f] }
 0x6e9   : > { %7403 = vmatmul.bf16.vlgmr.msrb.gmra.mxu0 %v7329_v26  ;;  %v7580_v41 = vld [vmem:[#allocation5 + $0xf] sm:$0x7f]  ;;  %v7497_v9 = vpack.c.bf16 %v7496_v45, %v7495_v21  ;;  %8020 = vmatpush.bf16.msrb.mxu3 %v12388_v57  ;;  %v12375_v26 = vld [vmem:[%s15475_s9] sm:$0xff]  ;;  %v12422_v21 = vld [vmem:[%s15475_s9 + $0x178] sm:$0xff] }
 0x6ea   : > { %7487 = vmatmul.bf16.vlgmr.msra.gmra.mxu1 %v7413_v46  ;;  %v7581_v32 = vpack.c.bf16 %v7580_v41, %v7579_v33  ;;  %v7663_v63 = vld [vmem:[#allocation5 + $0xa] sm:$0xff]  ;;  %8080 = vmatpush.bf16.msrb.mxu0 %v12382_v53  ;;  %v12411_v41 = vld [vmem:[%s15475_s9 + $0x120] sm:$0xff] }
 0x6eb   : > { %v7747_v6 = vld [vmem:[#allocation5 + $0xb] sm:$0xff]  ;;  %v7665_v60 = vpack.c.bf16 %v7664_v55, %v7663_v63  ;;  %8162 = vmatpush.bf16.msra.mxu1 %v12398_v23 }
 0x6ec   : > { %7902 = vmatpush.bf16.msrb.mxu2 %v12371_v2  ;;  %v7749_v49 = vpack.c.bf16 %v7748_v42, %v7747_v6  ;;  %v7831_v16 = vld [vmem:[#allocation5 + $0xc] sm:$0xff]  ;;  %v12410_v42 = vld [vmem:[%s15475_s9 + $0x118] sm:$0xff] }
 0x6ed   : > { %v7833_v36 = vpack.c.bf16 %v7832_v25, %v7831_v16  ;;  %8021 = vmatpush.bf16.msrb.mxu3 %v12387_v27  ;;  %v12412_v39 = vld [vmem:[%s15475_s9 + $0x128] sm:$0xff]  ;;  %v12393_v46 = vld [vmem:[%s15475_s9 + $0x90] sm:$0xff] }
 0x6ee   : > { %8081 = vmatpush.bf16.msrb.mxu0 %v12381_v20  ;;  %v12401_v2 = vld [vmem:[%s15475_s9 + $0xd0] sm:$0xff]  ;;  %v12420_v25 = vld [vmem:[%s15475_s9 + $0x168] sm:$0xff]  ;;  %v12484_v20 = vld [vmem:[%s15474_s8] ss:$0 sm:$0xff] }
 0x6ef   : > { %7571 = vmatmul.bf16.vlgmr.msra.gmra.mxu2 %v7497_v9  ;;  %8163 = vmatpush.bf16.msra.mxu1 %v12397_v44  ;;  %v12421_v55 = vld [vmem:[%s15475_s9 + $0x170] sm:$0xff]  ;;  %v12408_v27 = vld [vmem:[%s15475_s9 + $0x108] sm:$0xff]  ;;  %v12407_v44 = vld [vmem:[%s15475_s9 + $0x100] sm:$0xff] }
 0x6f0   : > { %7655 = vmatmul.bf16.vlgmr.msra.gmra.mxu3 %v7581_v32  ;;  %7903 = vmatpush.bf16.msrb.mxu2 %v12370_v17  ;;  %v12392_v17 = vld [vmem:[%s15475_s9 + $0x88] sm:$0xff] }
 0x6f1   : > { %8022 = vmatpush.bf16.msrb.mxu3 %v12386_v4 }
 0x6f2   : > { %8082 = vmatpush.bf16.msrb.mxu0 %v12380_v34  ;;  %v12429_v34 = vld [vmem:[%s15475_s9 + $0x1b0] sm:$0xff] }
 0x6f3   : > { %8164 = vmatpush.bf16.msra.mxu1 %v12396_v10  ;;  %v12428_v10 = vld [vmem:[%s15475_s9 + $0x1a8] sm:$0xff] }
 0x6f4   : > { %7904 = vmatpush.bf16.msrb.mxu2 %v12369_v28  ;;  %v12400_v28 = vld [vmem:[%s15475_s9 + $0xc8] sm:$0xff] }
 0x6f5   : > { %8023 = vmatpush.bf16.msrb.mxu3 %v12385_v0  ;;  %v12419_v0 = vld [vmem:[%s15475_s9 + $0x160] sm:$0xff] }
 0x6f6   : > { %8083 = vmatpush.bf16.msrb.mxu0 %v12379_v38 }
 0x6f7   : > { %8165 = vmatpush.bf16.msra.mxu1 %v12395_v3  ;;  %v12416_v3 = vld [vmem:[%s15475_s9 + $0x148] sm:$0xff] }
 0x6f8   : > { %7905 = vmatpush.bf16.msrb.mxu2 %v12368_v51  ;;  %v12391_v51 = vld [vmem:[%s15475_s9 + $0x80] sm:$0xff] }
 0x6f9   : > { %7739 = vmatmul.bf16.vlgmr.msra.gmra.mxu0 %v7665_v60  ;;  %8024 = vmatpush.bf16.msrb.mxu3 %v12384_v15  ;;  %v12399_v60 = vld [vmem:[%s15475_s9 + $0xc0] sm:$0xff] }
 0x6fa   : > { %7823 = vmatmul.bf16.vlgmr.msrb.gmra.mxu1 %v7749_v49  ;;  %8084 = vmatpush.bf16.msrb.mxu0 %v12378_v52  ;;  %v12409_v49 = vld [vmem:[%s15475_s9 + $0x110] sm:$0xff]  ;;  %v12418_v52 = vld [vmem:[%s15475_s9 + $0x158] sm:$0xff] }
 0x6fb   : > { %8166 = vmatpush.bf16.msra.mxu1 %v12394_v31  ;;  %v12425_v31 = vld [vmem:[%s15475_s9 + $0x190] sm:$0xff] }
 0x6fc   : > { %7906 = vmatpush.bf16.msrb.mxu2 %v12367_v8 }
 0x6fd   : > { %8025 = vmatpush.bf16.msrb.mxu3 %v12383_v59 }
 0x6fe   : > { %8085 = vmatpush.bf16.msrb.mxu0 %v12377_v1 }
 0x6ff   : > { %7907 = vmatmul.bf16.vlgmr.msrb.gmra.mxu2 %v7833_v36  ;;  %8167 = vmatpush.bf16.msra.mxu1 %v12393_v46  ;;  %v12430_v36 = vld [vmem:[%s15475_s9 + $0x1b8] sm:$0xff] }
 0x700   : > { %8246 = vmatpush.bf16.msra.mxu2 %v12406_v43  ;;  %v12437_v43 = vld [vmem:[%s15475_s9 + $0x1f0] sm:$0xff] }
 0x701   : > { %8330 = vmatpush.bf16.msra.mxu3 %v12414_v50 }
 0x702   : > { %8086 = vmatpush.bf16.msrb.mxu0 %v12376_v19  ;;  %v12415_v19 = vld [vmem:[%s15475_s9 + $0x140] sm:$0xff] }
 0x703   : > { %8168 = vmatpush.bf16.msra.mxu1 %v12392_v17  ;;  %v12444_v17 = vld [vmem:[%s15475_s9 + $0x228] sm:$0xff] }
 0x704   : > { %8247 = vmatpush.bf16.msra.mxu2 %v12405_v54 }
 0x705   : > { %8331 = vmatpush.bf16.msra.mxu3 %v12413_v47  ;;  %v12434_v47 = vld [vmem:[%s15475_s9 + $0x1d8] sm:$0xff] }
 0x706   : > { %8087 = vmatpush.bf16.msrb.mxu0 %v12375_v26 }
 0x707   : > { %8169 = vmatpush.bf16.msra.mxu1 %v12391_v51  ;;  %v12443_v51 = vld [vmem:[%s15475_s9 + $0x220] sm:$0xff] }
 0x708   : > { %8248 = vmatpush.bf16.msra.mxu2 %v12404_v12 }
 0x709   : > { %8332 = vmatpush.bf16.msra.mxu3 %v12412_v39  ;;  %v12424_v39 = vld [vmem:[%s15475_s9 + $0x188] sm:$0xff] }
 0x70a   : > { %8414 = vmatpush.bf16.msra.mxu0 %v12422_v21 }
 0x70b   : > { %8498 = vmatpush.bf16.msrb.mxu1 %v12430_v36 }
 0x70c   : > { %8249 = vmatpush.bf16.msra.mxu2 %v12403_v30  ;;  %v12426_v30 = vld [vmem:[%s15475_s9 + $0x198] sm:$0xff] }
 0x70d   : > { %8333 = vmatpush.bf16.msra.mxu3 %v12411_v41 }
 0x70e   : > { %8415 = vmatpush.bf16.msra.mxu0 %v12421_v55 }
 0x70f   : > { %8499 = vmatpush.bf16.msrb.mxu1 %v12429_v34 }
 0x710   : > { %8250 = vmatpush.bf16.msra.mxu2 %v12402_v5  ;;  %v12433_v5 = vld [vmem:[%s15475_s9 + $0x1d0] sm:$0xff] }
 0x711   : > { %8334 = vmatpush.bf16.msra.mxu3 %v12410_v42 }
 0x712   : > { %8416 = vmatpush.bf16.msra.mxu0 %v12420_v25 }
 0x713   : > { %8500 = vmatpush.bf16.msrb.mxu1 %v12428_v10 }
 0x714   : > { %8251 = vmatpush.bf16.msra.mxu2 %v12401_v2 }
 0x715   : > { %8335 = vmatpush.bf16.msra.mxu3 %v12409_v49 }
 0x716   : > { %8417 = vmatpush.bf16.msra.mxu0 %v12419_v0 }
 0x718   : > { %8252 = vmatpush.bf16.msra.mxu2 %v12400_v28 }
 0x719   : > { %8336 = vmatpush.bf16.msra.mxu3 %v12408_v27 }
 0x71a   : > { %8418 = vmatpush.bf16.msra.mxu0 %v12418_v52 }
 0x71c   : > { %8253 = vmatpush.bf16.msra.mxu2 %v12399_v60 }
 0x71d   : > { %8337 = vmatpush.bf16.msra.mxu3 %v12407_v44 }
 0x720   : > { %8582 = vmatpush.bf16.msrb.mxu2 %v12438_v13  ;;  %v12441_v13 = vld [vmem:[%s15475_s9 + $0x210] sm:$0xff] }
 0x724   : > { %8583 = vmatpush.bf16.msrb.mxu2 %v12437_v43 }
 0x762   : > { %v7260_v7 = vpop.f32.mrf.mxu2 }
 0x763   : > { %v7322_v14 = vpop.f32.mrf.mxu3 }
 0x764   : > { %v7323_v61 = vadd.f32 %v7322_v14, %v7260_v7  ;;  %v12436_v7 = vld [vmem:[%s15475_s9 + $0x1e8] sm:$0xff] }
 0x765   : > { %8584 = vmatpush.bf16.msrb.mxu2 %v12436_v7 }
 0x766   : > { %v7404_v29 = vpop.f32.mrf.mxu0 }
 0x767   : > { %v7488_v40 = vpop.f32.mrf.mxu1  ;;  %v7409_v24 = vadd.f32 %v7404_v29, %v7323_v61  ;;  %v12417_v29 = vld [vmem:[%s15475_s9 + $0x150] sm:$0xff]  ;;  %v12435_v61 = vld [vmem:[%s15475_s9 + $0x1e0] sm:$0xff] }
 0x768   : > { %8419 = vmatpush.bf16.msra.mxu0 %v12417_v29 }
 0x769   : > { %v7493_v11 = vadd.f32 %v7488_v40, %v7409_v24  ;;  %8585 = vmatpush.bf16.msrb.mxu2 %v12435_v61  ;;  %v12453_v61 = vld [vmem:[%s15477_s11 + $0x30] sm:$0xff] }
 0x76a   : > { %v7262_v62 = vpop.f32.mrf.mxu2 }
 0x76b   : > { %v7324_v48 = vpop.f32.mrf.mxu3 }
 0x76c   : > { %v7325_v58 = vadd.f32 %v7324_v48, %v7262_v62  ;;  %v12427_v62 = vld [vmem:[%s15475_s9 + $0x1a0] sm:$0xff]  ;;  %8420 = vmatpush.bf16.msra.mxu0 %v12416_v3 }
 0x76d   : > { %8501 = vmatpush.bf16.msrb.mxu1 %v12427_v62  ;;  %8586 = vmatpush.bf16.msrb.mxu2 %v12434_v47 }
 0x76e   : > { %v7406_v35 = vpop.f32.mrf.mxu0 }
 0x76f   : > { %v7490_v56 = vpop.f32.mrf.mxu1  ;;  %v7410_v33 = vadd.f32 %v7406_v35, %v7325_v58 }
 0x770   : > { %8421 = vmatpush.bf16.msra.mxu0 %v12415_v19  ;;  %v12451_v19 = vld [vmem:[%s15477_s11 + $0x20] sm:$0xff] }
 0x771   : > { %v7494_v6 = vadd.f32 %v7490_v56, %v7410_v33  ;;  %8502 = vmatpush.bf16.msrb.mxu1 %v12426_v30  ;;  %8587 = vmatpush.bf16.msrb.mxu2 %v12433_v5  ;;  %v12446_v56 = vld [vmem:[%s15475_s9 + $0x238] sm:$0xff]  ;;  %v12431_v33 = vld [vmem:[%s15475_s9 + $0x1c0] sm:$0xff]  ;;  %v12452_v30 = vld [vmem:[%s15477_s11 + $0x28] sm:$0xff] }
 0x772   : > { %v7572_v37 = vpop.f32.mrf.mxu2 }
 0x773   : > { %v7577_v18 = vadd.f32 %v7572_v37, %v7493_v11  ;;  %v7656_v45 = vpop.f32.mrf.mxu3  ;;  %v12432_v11 = vld [vmem:[%s15475_s9 + $0x1c8] sm:$0xff] }
 0x775   : > { %v7661_v9 = vadd.f32 %v7656_v45, %v7577_v18  ;;  %8503 = vmatpush.bf16.msrb.mxu1 %v12425_v31  ;;  %v12423_v18 = vld [vmem:[%s15475_s9 + $0x180] sm:$0xff]  ;;  %8588 = vmatpush.bf16.msrb.mxu2 %v12432_v11 }
 0x776   : > { %v7740_v63 = vpop.f32.mrf.mxu0 }
 0x777   : > { %v7745_v8 = vadd.f32 %v7740_v63, %v7661_v9  ;;  %v7824_v22 = vpop.f32.mrf.mxu1  ;;  %v12445_v9 = vld [vmem:[%s15475_s9 + $0x230] sm:$0xff] }
 0x779   : > { %v7829_v53 = vadd.f32 %v7824_v22, %v7745_v8  ;;  %8504 = vmatpush.bf16.msrb.mxu1 %v12424_v39  ;;  %8589 = vmatpush.bf16.msrb.mxu2 %v12431_v33  ;;  %v12442_v22 = vld [vmem:[%s15475_s9 + $0x218] sm:$0xff] }
 0x77a   : > { %v7574_v32 = vpop.f32.mrf.mxu2 }
 0x77b   : > { %v7578_v16 = vadd.f32 %v7574_v32, %v7494_v6  ;;  %v7658_v57 = vpop.f32.mrf.mxu3 }
 0x77d   : > { %v7662_v4 = vadd.f32 %v7658_v57, %v7578_v16  ;;  %8505 = vmatpush.bf16.msrb.mxu1 %v12423_v18  ;;  %v8515_v57 = vld [vmem:[#allocation6 + $0x13] sm:$0x7f] }
 0x77e   : > { %v7742_v38 = vpop.f32.mrf.mxu0 }
 0x77f   : > { %v7746_v54 = vadd.f32 %v7742_v38, %v7662_v4  ;;  %v7826_v50 = vpop.f32.mrf.mxu1 }
 0x781   : > { %v7830_v14 = vadd.f32 %v7826_v50, %v7746_v54 }
 0x782   : > { %v7908_v23 = vpop.f32.mrf.mxu2 }
 0x783   : > { %v7913_v15 = vadd.f32 %v7908_v23, %v7829_v53  ;;  %v12439_v23 = vld [vmem:[%s15475_s9 + $0x200] sm:$0xff] }
 0x785   : > { %v7919_v59 = vadd.f32 %v12484_v20, %v7913_v15  ;;  %v8599_v15 = vld [vmem:[#allocation6 + $0x14] sm:$0x7f] }
 0x787   : > { %v7921_v12 = vmax.f32 %v7919_v59, 0.0 }
 0x789   : > { %7923 = vst [vmem:[#allocation2] sm:$0xff] %v7921_v12 }
 0x78a   : > { %v7910_v40 = vpop.f32.mrf.mxu2 }
 0x78b   : > { %v7914_v48 = vadd.f32 %v7910_v40, %v7830_v14  ;;  %v12454_v14 = vld [vmem:[%s15477_s11 + $0x38] sm:$0xff] }
 0x78d   : > { %v7920_v1 = vadd.f32 %v12484_v20, %v7914_v48  ;;  %v12440_v20 = vld [vmem:[%s15475_s9 + $0x208] sm:$0xff] }
 0x78f   : > { %v7922_v24 = vmax.f32 %v7920_v1, 0.0 }
 0x790   : > { %v7925_v35 = vld [vmem:[#allocation2] sm:$0x7]  ;;  %v7927_v37 = vld [vmem:[#allocation2 + $0x5] sm:$0x7] }
 0x791   : > { %7928 = vst [vmem:[#allocation6 + $0xb] sm:$0x7] %v7927_v37 }
 0x792   : > { %7926 = vst [vmem:[#allocation6 + $0x6] sm:$0x7] %v7925_v35 }
 0x793   : > { %7924 = vst [vmem:[#allocation2 + $0x8] sm:$0x7f] %v7922_v24 }
 0x798   : > { %v7951_v58 = vld [vmem:[#allocation6 + $0x9] sm:$0x7f] }
 0x799   : > { %v7950_v26 = vld [vmem:[#allocation6 + $0x1] sm:$0xff] }
 0x79a   : > { %v7931_v46 = vld [vmem:[#allocation6] sm:$0xff]  ;;  %v7932_v2 = vld [vmem:[#allocation6 + $0x8] sm:$0x7f]  ;;  %v7952_v41 = vpack.c.bf16 %v7951_v58, %v7950_v26 }
 0x79b   : > { %v7929_v45 = vld [vmem:[#allocation2 + $0xa] sm:$0x7]  ;;  %v7933_v21 = vpack.c.bf16 %v7932_v2, %v7931_v46  ;;  %v8094_v32 = vld [vmem:[#allocation6 + $0x2] sm:$0xff]  ;;  %v12485_v26 = vld [vmem:[%s15476_s10] ss:$0 sm:$0xff] }
 0x79c   : > { %7930 = vst [vmem:[#allocation6 + $0x10] sm:$0x7] %v7929_v45  ;;  %8026 = vmatmul.bf16.vlgmr.msrb.gmra.mxu3 %v7952_v41  ;;  %v8178_v42 = vld [vmem:[#allocation6 + $0x5] sm:$0xff] }
 0x79d   : > { %8088 = vmatmul.bf16.vlgmr.msrb.gmra.mxu0 %v7933_v21  ;;  %8666 = vmatpush.bf16.msrb.mxu3 %v12446_v56  ;;  %v8262_v8 = vld [vmem:[#allocation6 + $0x6] sm:$0xff]  ;;  %v12450_v56 = vld [vmem:[%s15477_s11 + $0x18] sm:$0xff]  ;;  %v12449_v21 = vld [vmem:[%s15477_s11 + $0x10] sm:$0xff] }
 0x79e   : > { %v8346_v16 = vld [vmem:[#allocation6 + $0x7] sm:$0xff]  ;;  %8773 = vmatpush.bf16.msrb.mxu0 %v12454_v14  ;;  %v12466_v14 = vld [vmem:[%s15481_s15 + $0x18] sm:$0xff] }
 0x7a1   : > { %8667 = vmatpush.bf16.msrb.mxu3 %v12445_v9 }
 0x7a2   : > { %8774 = vmatpush.bf16.msrb.mxu0 %v12453_v61 }
 0x7a3   : > { %v8095_v28 = vld [vmem:[#allocation6 + $0xa] sm:$0x7f]  ;;  %v8431_v53 = vld [vmem:[#allocation6 + $0x12] sm:$0x7f] }
 0x7a4   : > { %v8179_v63 = vld [vmem:[#allocation6 + $0xd] sm:$0x7f]  ;;  %v8096_v55 = vpack.c.bf16 %v8095_v28, %v8094_v32 }
 0x7a5   : > { %v8180_v6 = vpack.c.bf16 %v8179_v63, %v8178_v42  ;;  %8668 = vmatpush.bf16.msrb.mxu3 %v12444_v17  ;;  %v8263_v60 = vld [vmem:[#allocation6 + $0xe] sm:$0x7f] }
 0x7a6   : > { %8170 = vmatmul.bf16.vlgmr.msra.gmra.mxu1 %v8096_v55  ;;  %v8347_v49 = vld [vmem:[#allocation6 + $0xf] sm:$0x7f]  ;;  %v8264_v25 = vpack.c.bf16 %v8263_v60, %v8262_v8  ;;  %8775 = vmatpush.bf16.msrb.mxu0 %v12452_v30  ;;  %v12447_v60 = vld [vmem:[%s15477_s11] sm:$0xff] }
 0x7a7   : > { %8254 = vmatmul.bf16.vlgmr.msra.gmra.mxu2 %v8180_v6  ;;  %v8348_v36 = vpack.c.bf16 %v8347_v49, %v8346_v16  ;;  %v8430_v27 = vld [vmem:[#allocation6 + $0xa] sm:$0xff]  ;;  %v12462_v6 = vld [vmem:[%s15479_s13 + $0x38] sm:$0xff] }
 0x7a8   : > { %v8514_v4 = vld [vmem:[#allocation6 + $0xb] sm:$0xff]  ;;  %v8432_v0 = vpack.c.bf16 %v8431_v53, %v8430_v27  ;;  %8856 = vmatpush.bf16.msra.mxu1 %v12462_v6  ;;  %v12458_v53 = vld [vmem:[%s15479_s13 + $0x18] sm:$0xff] }
 0x7a9   : > { %8669 = vmatpush.bf16.msrb.mxu3 %v12443_v51  ;;  %v8516_v34 = vpack.c.bf16 %v8515_v57, %v8514_v4  ;;  %v8598_v43 = vld [vmem:[#allocation6 + $0xc] sm:$0xff] }
 0x7aa   : > { %v8600_v38 = vpack.c.bf16 %v8599_v15, %v8598_v43  ;;  %8776 = vmatpush.bf16.msrb.mxu0 %v12451_v19  ;;  %v12448_v42 = vld [vmem:[%s15477_s11 + $0x8] sm:$0xff]  ;;  %v12461_v49 = vld [vmem:[%s15479_s13 + $0x30] sm:$0xff] }
 0x7ab   : > { %v12464_v30 = vld [vmem:[%s15481_s15 + $0x8] sm:$0xff] }
 0x7ac   : > { %8338 = vmatmul.bf16.vlgmr.msra.gmra.mxu3 %v8264_v25  ;;  %8857 = vmatpush.bf16.msra.mxu1 %v12461_v49  ;;  %v12460_v25 = vld [vmem:[%s15479_s13 + $0x28] sm:$0xff] }
 0x7ad   : > { %8422 = vmatmul.bf16.vlgmr.msra.gmra.mxu0 %v8348_v36  ;;  %8670 = vmatpush.bf16.msrb.mxu3 %v12442_v22 }
 0x7ae   : > { %8777 = vmatpush.bf16.msrb.mxu0 %v12450_v56 }
 0x7b0   : > { %8858 = vmatpush.bf16.msra.mxu1 %v12460_v25 }
 0x7b1   : > { %8671 = vmatpush.bf16.msrb.mxu3 %v12441_v13  ;;  %v12459_v13 = vld [vmem:[%s15479_s13 + $0x20] sm:$0xff] }
 0x7b2   : > { %8778 = vmatpush.bf16.msrb.mxu0 %v12449_v21 }
 0x7b4   : > { %8859 = vmatpush.bf16.msra.mxu1 %v12459_v13 }
 0x7b5   : > { %8672 = vmatpush.bf16.msrb.mxu3 %v12440_v20 }
 0x7b6   : > { %8506 = vmatmul.bf16.vlgmr.msrb.gmra.mxu1 %v8432_v0  ;;  %8779 = vmatpush.bf16.msrb.mxu0 %v12448_v42 }
 0x7b7   : > { %8590 = vmatmul.bf16.vlgmr.msrb.gmra.mxu2 %v8516_v34  ;;  %v12457_v34 = vld [vmem:[%s15479_s13 + $0x10] sm:$0xff] }
 0x7b8   : > { %8860 = vmatpush.bf16.msra.mxu1 %v12458_v53 }
 0x7b9   : > { %8673 = vmatpush.bf16.msrb.mxu3 %v12439_v23 }
 0x7ba   : > { %8780 = vmatpush.bf16.msrb.mxu0 %v12447_v60 }
 0x7bc   : > { %8674 = vmatmul.bf16.vlgmr.msrb.gmra.mxu3 %v8600_v38  ;;  %8861 = vmatpush.bf16.msra.mxu1 %v12457_v34 }
 0x81a   : > { %v8089_v54 = vpop.f32.mrf.mxu0 }
 0x81f   : > { %v8027_v44 = vpop.f32.mrf.mxu3 }
 0x820   : > { %v8090_v12 = vadd.f32 %v8089_v54, %v8027_v44 }
 0x822   : > { %v8091_v7 = vpop.f32.mrf.mxu0 }
 0x823   : > { %v8171_v59 = vpop.f32.mrf.mxu1 }
 0x824   : > { %v8176_v40 = vadd.f32 %v8171_v59, %v8090_v12  ;;  %v12456_v59 = vld [vmem:[%s15479_s13 + $0x8] sm:$0xff] }
 0x825   : > { %8862 = vmatpush.bf16.msra.mxu1 %v12456_v59  ;;  %v12468_v12 = vld [vmem:[%s15481_s15 + $0x28] sm:$0xff] }
 0x827   : > { %v8029_v52 = vpop.f32.mrf.mxu3 }
 0x828   : > { %v8092_v1 = vadd.f32 %v8091_v7, %v8029_v52  ;;  %v12455_v52 = vld [vmem:[%s15479_s13] sm:$0xff]  ;;  %v12469_v7 = vld [vmem:[%s15481_s15 + $0x30] sm:$0xff] }
 0x829   : > { %8863 = vmatpush.bf16.msra.mxu1 %v12455_v52 }
 0x82a   : > { %v8255_v10 = vpop.f32.mrf.mxu2  ;;  %v8423_v47 = vpop.f32.mrf.mxu0 }
 0x82b   : > { %v8173_v29 = vpop.f32.mrf.mxu1  ;;  %v8260_v48 = vadd.f32 %v8255_v10, %v8176_v40  ;;  %v12470_v10 = vld [vmem:[%s15481_s15 + $0x38] sm:$0xff] }
 0x82c   : > { %v8177_v35 = vadd.f32 %v8173_v29, %v8092_v1  ;;  %8939 = vmatpush.bf16.msra.mxu2 %v12470_v10  ;;  %v12465_v29 = vld [vmem:[%s15481_s15 + $0x10] sm:$0xff] }
 0x82f   : > { %v8339_v50 = vpop.f32.mrf.mxu3 }
 0x830   : > { %v8344_v3 = vadd.f32 %v8339_v50, %v8260_v48  ;;  %8940 = vmatpush.bf16.msra.mxu2 %v12469_v7  ;;  %v12467_v50 = vld [vmem:[%s15481_s15 + $0x20] sm:$0xff] }
 0x832   : > { %v8257_v62 = vpop.f32.mrf.mxu2  ;;  %v8428_v37 = vadd.f32 %v8423_v47, %v8344_v3  ;;  %v8425_v46 = vpop.f32.mrf.mxu0  ;;  %v12463_v47 = vld [vmem:[%s15481_s15] sm:$0xff] }
 0x833   : > { %v8507_v31 = vpop.f32.mrf.mxu1  ;;  %v8261_v39 = vadd.f32 %v8257_v62, %v8177_v35  ;;  %v12486_v62 = vld [vmem:[%s15478_s12] ss:$0 sm:$0xff] }
 0x834   : > { %v8512_v11 = vadd.f32 %v8507_v31, %v8428_v37  ;;  %8941 = vmatpush.bf16.msra.mxu2 %v12468_v12 }
 0x837   : > { %v8341_v24 = vpop.f32.mrf.mxu3 }
 0x838   : > { %v8345_v58 = vadd.f32 %v8341_v24, %v8261_v39  ;;  %8942 = vmatpush.bf16.msra.mxu2 %v12467_v50  ;;  %v12487_v24 = vld [vmem:[%s15480_s14] ss:$0 sm:$0xff] }
 0x839   : > { %v12488_v39 = vld [vmem:[%s15482_s16] ss:$0 sm:$0xff] }
 0x83a   : > { %v8591_v5 = vpop.f32.mrf.mxu2  ;;  %v8429_v45 = vadd.f32 %v8425_v46, %v8345_v58 }
 0x83b   : > { %v8596_v18 = vadd.f32 %v8591_v5, %v8512_v11  ;;  %v8509_v9 = vpop.f32.mrf.mxu1 }
 0x83c   : > { %v8513_v17 = vadd.f32 %v8509_v9, %v8429_v45  ;;  %8943 = vmatpush.bf16.msra.mxu2 %v12466_v14 }
 0x83f   : > { %v8675_v2 = vpop.f32.mrf.mxu3 }
 0x840   : > { %v8680_v41 = vadd.f32 %v8675_v2, %v8596_v18  ;;  %8944 = vmatpush.bf16.msra.mxu2 %v12465_v29 }
 0x842   : > { %v8686_v33 = vadd.f32 %v12485_v26, %v8680_v41  ;;  %v8593_v32 = vpop.f32.mrf.mxu2 }
 0x843   : > { %v8597_v63 = vadd.f32 %v8593_v32, %v8513_v17 }
 0x844   : > { %v8688_v28 = vmax.f32 %v8686_v33, 0.0  ;;  %8945 = vmatpush.bf16.msra.mxu2 %v12464_v30 }
 0x846   : > { %8690 = vst [vmem:[#allocation2] sm:$0xff] %v8688_v28 }
 0x847   : > { %v8677_v55 = vpop.f32.mrf.mxu3 }
 0x848   : > { %v8681_v51 = vadd.f32 %v8677_v55, %v8597_v63  ;;  %8946 = vmatpush.bf16.msra.mxu2 %v12463_v47 }
 0x84a   : > { %v8687_v8 = vadd.f32 %v12485_v26, %v8681_v51 }
 0x84c   : > { %v8689_v16 = vmax.f32 %v8687_v8, 0.0 }
 0x84d   : > { %v8692_v36 = vld [vmem:[#allocation2] sm:$0x7]  ;;  %v8693_v22 = vld [vmem:[#allocation2 + $0x5] sm:$0x7] }
 0x84e   : > { %8691 = vst [vmem:[#allocation2 + $0x8] sm:$0x7f] %v8689_v16  ;;  %v8694_v57 = vmax.f32 %v8692_v36, %v8693_v22 }
 0x855   : > { %v8695_v27 = vld [vmem:[#allocation2 + $0xa] sm:$0x7] }
 0x856   : > { %v8696_v4 = vmax.f32 %v8694_v57, %v8695_v27 }
 0x858   : > { %v8697_v20 = vsel %vm2726_vm0, %v8696_v4, -inf }
 0x859   : > { %v8698_v0 = vrot.slane %v8697_v20, 4 }
 0x85b   : > { %v8699_v23 = vmax.f32 %v8697_v20, %v8698_v0 }
 0x85d   : > { %v8700_v43 = vrot.slane %v8699_v23, 2 }
 0x85f   : > { %v8701_v15 = vmax.f32 %v8699_v23, %v8700_v43 }
 0x861   : > { %v8702_v38 = vrot.slane %v8701_v15, 1 }
 0x863   : > { %v8703_v44 = vmax.f32 %v8701_v15, %v8702_v38 }
 0x865   : > { %v8704_v54 = vpack.c.bf16 %v8703_v44, %v8703_v44 }
 0x867   : > { %8781 = vmatmul.bf16.vlgmr.msrb.gmra.mxu0 %v8704_v54 }
 0x8e4   : > { %v8782_v40 = vpop.f32.mrf.mxu0 }
 0x8e5   : > { %v8783_v61 = vadd.f32 %v12486_v62, %v8782_v40 }
 0x8e7   : > { %v8786_v48 = vmax.f32 %v8783_v61, 0.0 }
 0x8e9   : > { %v8787_v1 = vpack.c.bf16 %v8786_v48, %v8786_v48 }
 0x8eb   : > { %8864 = vmatmul.bf16.vlgmr.msra.gmra.mxu1 %v8787_v1 }
 0x8ec   : > { %v8784_v3 = vpop.f32.mrf.mxu0 }
 0x968   : > { %v8865_v35 = vpop.f32.mrf.mxu1 }
 0x969   : > { %v8866_v37 = vadd.f32 %v12487_v24, %v8865_v35 }
 0x96b   : > { %v8869_v19 = vmax.f32 %v8866_v37, 0.0 }
 0x96d   : > { %v8870_v31 = vpack.c.bf16 %v8869_v19, %v8869_v19 }
 0x96f   : > { %8947 = vmatmul.bf16.vlgmr.msra.gmra.mxu2 %v8870_v31 }
 0x970   : > { %v8867_v5 = vpop.f32.mrf.mxu1 }
 0x9f2   : > { %v8948_v11 = vpop.f32.mrf.mxu2 }
 0x9f3   : > { %v8949_v58 = vadd.f32 %v12488_v39, %v8948_v11 }
 0x9f5   : > { %8952 = vst [vmem:[%s546_s27] sm:$0xff] %v8949_v58 }
 0x9fa   : > { %v8950_v56 = vpop.f32.mrf.mxu2 }
 0x9fb PF: > { %s15535_s20 = sld [smem:[#allocation7_spill]] }
 0xa01   : > { %s27_s24 = sadd.s32 1, %s15535_s20  }
 0xa02   : > { %p24_p4 = scmp.ge.s32.totalorder %s27_s24, 4  }
 0xa04   :  { %26 = sbr.rel (!%p24_p4) target bundleno = 3 (0x3), region = 174 }

</bundles_post_ra>
